<compile_context>
chip_gen: v5e
topology: v5e:2x2
jax: 0.10.0
libtpu: 0.0.40
codegen_flags: <defaults>
</compile_context>

<pallas_src>
import jax
import jax.numpy as jnp
import numpy as np
from jax.experimental import pallas as pl
from jax.experimental.pallas import tpu as pltpu

EMB = 32          # config.emb_dim
N_D = 32          # config.d_emb_dim  (self.n_d)
N_TASKS = 6
N_SECTIONS = 11   # 1 (data embedding) + 10 (text embeddings)
N_STEPS = 2       # config.d_step
BN_EPS = 1e-5
D_METHOD = "avg"  # config.d_method

FLAT = N_SECTIONS * EMB      # 352
HID = N_TASKS * N_D          # 192
N_ATT = N_TASKS * N_SECTIONS  # 66
N_OUT = 8                    # 2 logits + 4 reasons + 2 probs


def _sigmoid_stable(v):
    # exact logistic, tanh-based (EUP path, no overflow).
    return 0.5 * (jnp.tanh(0.5 * v) + 1.0)


def _ddg_kernel(x_ref, wsplit_ref, watt_ref, wgru_ref, whead_ref, bias_ref,
                out_ref):
    f32 = jnp.float32
    x_t = x_ref[...].astype(f32)                       # (FLAT, TB)  feature-major
    w_split = wsplit_ref[...]                          # (HID, FLAT)
    w_att = watt_ref[...]                              # (N_ATT, HID) block-diag
    w_zx = wgru_ref[0]                                 # (HID, HID)  block-diag
    w_zh = wgru_ref[1]
    w_ux = wgru_ref[2]
    w_uh = wgru_ref[3]
    w_head = whead_ref[...]                            # (2T, HID)
    bias = bias_ref[...]                               # (HID, 4)
    b_split = bias[:, 0:1]                             # (HID, 1)
    b_z = bias[:, 1:2]
    b_u = bias[:, 2:3]
    b_head = bias[0:2 * N_TASKS, 3:4]                  # (2T, 1)

    # Per-section views of x, hoisted (reused by every decision step).
    x_secs = [x_t[s * EMB:(s + 1) * EMB, :] for s in range(N_SECTIONS)]

    # initial_splitter: section-mean + bn_initial + Linear + GBN folded into one
    # (HID, FLAT) matmul; tanh on top.
    emb = jnp.tanh(jnp.dot(w_split, x_t, preferred_element_type=f32) + b_split)

    def heads(e):
        # final + final_gate heads as one block-structured matmul.
        h = jnp.dot(w_head, e, preferred_element_type=f32) + b_head   # (2T, TB)
        return h[0:N_TASKS, :], h[N_TASKS:2 * N_TASKS, :]

    y0, g0 = heads(emb)
    ys, gs = [y0], [g0]

    for _ in range(N_STEPS):
        # AttentiveTransformer: block-diag matmul, softmax over sections per task.
        logits = jnp.dot(w_att, emb, preferred_element_type=f32)      # (N_ATT, TB)
        lmax = jnp.max(logits, axis=0, keepdims=True)                 # (1, TB)
        e_l = jnp.exp(logits - lmax)
        # masked_x = softmax(logits) @ x, accumulated per task (66 FMAs on dense
        # (EMB, TB) vregs; denominator accumulated alongside).
        mx_parts = []
        for t in range(N_TASKS):
            base = t * N_SECTIONS
            w = e_l[base:base + 1, :]
            num = w * x_secs[0]
            den = w
            for s in range(1, N_SECTIONS):
                w = e_l[base + s:base + s + 1, :]
                num = num + w * x_secs[s]
                den = den + w
            mx_parts.append(num * pl.reciprocal(den, approx=True))
        mx = jnp.concatenate(mx_parts, axis=0)                        # (HID, TB)

        # DecisionCell (GRU-like gate): all tasks ride one pair of matmuls per gate.
        z = _sigmoid_stable(jnp.dot(w_zx, mx, preferred_element_type=f32)
                            + jnp.dot(w_zh, emb, preferred_element_type=f32) + b_z)
        upd = jnp.tanh(jnp.dot(w_ux, mx, preferred_element_type=f32)
                       + jnp.dot(w_uh, emb, preferred_element_type=f32) + b_u)
        emb = emb + z * (upd - emb)                                   # (1-z)*emb + z*upd
        yk, gk = heads(emb)
        ys.append(yk)
        gs.append(gk)

    # d_method == 'avg': softmax over the (n_steps+1) head outputs, weighted sum.
    gmax = gs[0]
    for gk in gs[1:]:
        gmax = jnp.maximum(gmax, gk)
    exps = [jnp.exp(gk - gmax) for gk in gs]
    den = exps[0]
    for ek in exps[1:]:
        den = den + ek
    num = ys[0] * exps[0]
    for yk, ek in zip(ys[1:], exps[1:]):
        num = num + yk * ek
    y = num * pl.reciprocal(den, approx=True)                         # (T, TB)

    prob_logit = y[4:6, :]                                            # (2, TB)
    prob_reason = _sigmoid_stable(y[0:4, :])                          # (4, TB)
    pmax = jnp.max(prob_logit, axis=0, keepdims=True)
    pexp = jnp.exp(prob_logit - pmax)
    prob = pexp * pl.reciprocal(jnp.sum(pexp, axis=0, keepdims=True), approx=True)

    # Single fused, lane-dense output block (8, TB).
    out_ref[0:2, :] = prob_logit
    out_ref[2:6, :] = prob_reason
    out_ref[6:8, :] = prob


def _prep_weights(p):
    """Fold BN affines and expand the tiny per-task weights into a handful of
    block-structured slabs consumed by the kernel (all feature-major)."""
    f32 = jnp.float32
    bn1s = p["bn1_scale"].reshape(-1).astype(f32)   # (E,)
    bn1b = p["bn1_shift"].reshape(-1).astype(f32)
    bn2s = p["bn2_scale"].reshape(-1).astype(f32)   # (D,)
    bn2b = p["bn2_shift"].reshape(-1).astype(f32)
    split_w = p["split_w"].astype(f32)              # (T, E, D)
    split_b = p["split_b"].astype(f32)              # (T, D)
    att_w = p["att_w"].astype(f32)                  # (D, S)
    wz_x, wz_h, wz_b = p["wz_x"], p["wz_h"], p["wz_b"]
    wu_x, wu_h, wu_b = p["wu_x"], p["wu_h"], p["wu_b"]

    # initial splitter fused with the section mean, bn_initial and the splitter GBN.
    w_eff = bn1s[None, :, None] * split_w * bn2s[None, None, :]          # (T,E,D)
    blk = jnp.transpose(w_eff, (0, 2, 1)).reshape(HID, EMB)              # [t*D+d, e]
    w_split_t = jnp.tile(blk, (1, N_SECTIONS)) / float(N_SECTIONS)       # (HID, FLAT)
    b_split_t = (jnp.einsum("e,ted->td", bn1b, split_w) * bn2s[None, :]
                 + split_b * bn2s[None, :] + bn2b[None, :]).reshape(HID)

    eye_t = jnp.eye(N_TASKS, dtype=f32)

    # AttentiveTransformer fc as a block-diagonal (N_ATT, HID) matrix.
    w_att_t = jnp.kron(eye_t, att_w.T)

    # DecisionCell weights: bn1 folded into the x-side matrices (softmax rows sum
    # to 1, so the shift lands in the bias), expanded block-diagonally.
    wzx_t = jnp.kron(eye_t, (bn1s[:, None] * wz_x).T)
    wzh_t = jnp.kron(eye_t, wz_h.T)
    wux_t = jnp.kron(eye_t, (bn1s[:, None] * wu_x).T)
    wuh_t = jnp.kron(eye_t, wu_h.T)
    w_gru = jnp.stack([wzx_t, wzh_t, wux_t, wuh_t], axis=0)              # (4,HID,HID)
    b_z_t = jnp.tile(wz_b.reshape(-1) + bn1b @ wz_x, N_TASKS)            # (HID,)
    b_u_t = jnp.tile(wu_b.reshape(-1) + bn1b @ wu_x, N_TASKS)

    # final + final_gate heads as one block-structured (2T, HID) matrix.
    wy = (eye_t[:, :, None] * p["final_w"][:, None, :]).reshape(N_TASKS, HID)
    wg = (eye_t[:, :, None] * p["gate_w"][:, None, :]).reshape(N_TASKS, HID)
    w_head_t = jnp.concatenate([wy, wg], axis=0)                         # (2T, HID)
    b_head_t = jnp.concatenate([p["final_b"].reshape(-1),
                                p["gate_b"].reshape(-1)], axis=0)        # (2T,)

    biases = jnp.zeros((HID, 4), f32)
    biases = biases.at[:, 0].set(b_split_t)
    biases = biases.at[:, 1].set(b_z_t)
    biases = biases.at[:, 2].set(b_u_t)
    biases = biases.at[0:2 * N_TASKS, 3].set(b_head_t)
    return w_split_t, w_att_t, w_gru, w_head_t, biases


def dynamic_decision_gate(data_emb, text_emb, params, *, block_b=256):
    B = data_emb.shape[0]
    # x = cat([data_embedding.unsqueeze(1), text_embedding], dim=1), flattened and
    # transposed to feature-major (FLAT, B) so the batch rides the lane axis.
    x = jnp.concatenate([data_emb[:, None, :], text_emb], axis=1)
    x_flat = x.reshape(B, FLAT)                       # bf16 also accepted here

    if B > block_b:
        tb = block_b
        bp = int(np.ceil(B / tb)) * tb
    else:
        tb = B
        bp = B
    if bp != B:
        x_flat = jnp.pad(x_flat, ((0, bp - B), (0, 0)))
    x_t = x_flat.T                                    # (FLAT, Bp)

    w_split_t, w_att_t, w_gru, w_head_t, biases = _prep_weights(params)

    out = pl.pallas_call(
        _ddg_kernel,
        grid=(bp // tb,),
        in_specs=[
            pl.BlockSpec((FLAT, tb), lambda b: (0, b)),          # x (per batch block)
            pl.BlockSpec((HID, FLAT), lambda b: (0, 0)),         # fused splitter
            pl.BlockSpec((N_ATT, HID), lambda b: (0, 0)),        # attention (block-diag)
            pl.BlockSpec((4, HID, HID), lambda b: (0, 0, 0)),    # decision-cell weights
            pl.BlockSpec((2 * N_TASKS, HID), lambda b: (0, 0)),  # heads
            pl.BlockSpec((HID, 4), lambda b: (0, 0)),            # bias slab
        ],
        out_specs=pl.BlockSpec((N_OUT, tb), lambda b: (0, b)),
        out_shape=jax.ShapeDtypeStruct((N_OUT, bp), jnp.float32),
        compiler_params=pltpu.CompilerParams(
            dimension_semantics=("parallel",)),
    )(x_t, w_split_t, w_att_t, w_gru, w_head_t, biases)

    prob_logit = out[0:2, :B].T
    prob_reason = out[2:6, :B].T
    prob = out[6:8, :B].T
    mask_mean = 0.0 * -jnp.mean(prob_reason * prob_reason)
    return prob_logit, prob_reason, prob, None, mask_mean


def make_params(key):
    ks = jax.random.split(key, 12)
    s = 0.2
    bn_fold = np.float32(1.0 / np.sqrt(1.0 + BN_EPS))  # gamma=1, beta=0, mean=0, var=1
    return {
        "bn1_scale": jnp.full((1, EMB), bn_fold, jnp.float32),
        "bn1_shift": jnp.zeros((1, EMB), jnp.float32),
        "split_w": s * jax.random.normal(ks[0], (N_TASKS, EMB, N_D), jnp.float32),
        "split_b": 0.1 * jax.random.normal(ks[1], (N_TASKS, N_D), jnp.float32),
        "bn2_scale": jnp.full((1, N_D), bn_fold, jnp.float32),
        "bn2_shift": jnp.zeros((1, N_D), jnp.float32),
        "final_w": s * jax.random.normal(ks[2], (N_TASKS, N_D), jnp.float32),
        "final_b": 0.1 * jax.random.normal(ks[3], (N_TASKS, 1), jnp.float32),
        "gate_w": s * jax.random.normal(ks[4], (N_TASKS, N_D), jnp.float32),
        "gate_b": 0.1 * jax.random.normal(ks[5], (N_TASKS, 1), jnp.float32),
        "att_w": s * jax.random.normal(ks[6], (N_D, N_SECTIONS), jnp.float32),
        "wz_x": s * jax.random.normal(ks[7], (EMB, N_D), jnp.float32),
        "wz_h": s * jax.random.normal(ks[8], (N_D, N_D), jnp.float32),
        "wz_b": 0.1 * jax.random.normal(ks[9], (1, N_D), jnp.float32),
        "wu_x": s * jax.random.normal(ks[10], (EMB, N_D), jnp.float32),
        "wu_h": s * jax.random.normal(ks[11], (N_D, N_D), jnp.float32),
        "wu_b": jnp.zeros((1, N_D), jnp.float32),
    }


def reference_forward(data_emb, text_emb, p):
    x = jnp.concatenate([data_emb[:, None, :], text_emb], axis=1).astype(jnp.float32)
    x = x * p["bn1_scale"] + p["bn1_shift"]
    xm = jnp.mean(x, axis=1)                                              # (B, E)
    pre = jnp.einsum("be,ted->btd", xm, p["split_w"]) + p["split_b"]
    emb = jnp.tanh(pre * p["bn2_scale"] + p["bn2_shift"])

    def sig(v):
        return 1.0 / (1.0 + jnp.exp(-v))

    def heads(e):
        y = jnp.sum(p["final_w"] * e, axis=2) + p["final_b"][:, 0]
        g = jnp.sum(p["gate_w"] * e, axis=2) + p["gate_b"][:, 0]
        return y, g

    y_d, g_d = heads(emb)
    ys, gs = [y_d], [g_d]
    for _ in range(N_STEPS):
        M = jax.nn.softmax(jnp.einsum("btd,ds->bts", emb, p["att_w"]), axis=-1)
        mx = jnp.einsum("bts,bse->bte", M, x)
        z = sig(mx @ p["wz_x"] + emb @ p["wz_h"] + p["wz_b"])
        u = jnp.tanh(mx @ p["wu_x"] + emb @ p["wu_h"] + p["wu_b"])
        emb = (1.0 - z) * emb + z * u
        y_d, g_d = heads(emb)
        ys.append(y_d)
        gs.append(g_d)
    Y = jnp.stack(ys, axis=2)
    G = jax.nn.softmax(jnp.stack(gs, axis=2), axis=-1)
    y = jnp.sum(Y * G, axis=-1)
    prob_logit = y[:, 4:]
    prob_reason = sig(y[:, 0:4])
    prob = jax.nn.softmax(prob_logit, axis=-1)
    mask_mean = 0.0 * -jnp.mean(prob_reason * prob_reason)
    return prob_logit, prob_reason, prob, None, mask_mean


if __name__ == "__main__":
    key = jax.random.PRNGKey(0)
    kd, kt, kp = jax.random.split(key, 3)
    params = make_params(kp)

    # Small-shape check (single batch block).
    B = 4
    data_emb = jax.random.normal(kd, (B, EMB), jnp.float32)
    text_emb = jax.random.normal(kt, (B, N_SECTIONS - 1, EMB), jnp.float32)
    outs = dynamic_decision_gate(data_emb, text_emb, params)
    jax.block_until_ready((outs[0], outs[1], outs[2], outs[4]))
    refs = reference_forward(data_emb, text_emb, params)
    for got, want, name in zip(outs[:3], refs[:3],
                               ("prob_logit", "prob_reason", "prob")):
        np.testing.assert_allclose(np.asarray(got), np.asarray(want),
                                   rtol=1e-2, atol=1e-2, err_msg=name)

    # Blocked-grid + batch-padding path (grid=2, padded to 256).
    B2 = 200
    kd2, kt2 = jax.random.split(jax.random.PRNGKey(1))
    data_emb2 = jax.random.normal(kd2, (B2, EMB), jnp.float32)
    text_emb2 = jax.random.normal(kt2, (B2, N_SECTIONS - 1, EMB), jnp.float32)
    outs2 = dynamic_decision_gate(data_emb2, text_emb2, params, block_b=128)
    jax.block_until_ready((outs2[0], outs2[1], outs2[2]))
    refs2 = reference_forward(data_emb2, text_emb2, params)
    for got, want, name in zip(outs2[:3], refs2[:3],
                               ("prob_logit", "prob_reason", "prob")):
        np.testing.assert_allclose(np.asarray(got), np.asarray(want),
                                   rtol=1e-2, atol=1e-2, err_msg=name)

    print("KERNEL_OK")
</pallas_src>

<mosaic_0001>
module attributes {stable_mosaic.version = 11 : i64} {
  func.func @_ddg_kernel(%arg0: i32, %arg1: memref<352x4xf32, #tpu.memory_space<vmem>>, %arg2: memref<192x352xf32, #tpu.memory_space<vmem>>, %arg3: memref<66x192xf32, #tpu.memory_space<vmem>>, %arg4: memref<4x192x192xf32, #tpu.memory_space<vmem>>, %arg5: memref<12x192xf32, #tpu.memory_space<vmem>>, %arg6: memref<192x4xf32, #tpu.memory_space<vmem>>, %arg7: memref<8x4xf32, #tpu.memory_space<vmem>>) attributes {dimension_semantics = [#tpu.dimension_semantics<parallel>], iteration_bounds = array<i64: 1>, scalar_prefetch = 0 : i64, scratch_operands = 0 : i64, tpu.core_type = #tpu.core_type<tc>, window_params = [{transform_indices = @transform_0, window_bounds = array<i64: 352, 4>}, {pipeline_mode = #tpu.pipeline_mode<synchronous>, transform_indices = @transform_1, window_bounds = array<i64: 192, 352>}, {pipeline_mode = #tpu.pipeline_mode<synchronous>, transform_indices = @transform_2, window_bounds = array<i64: 66, 192>}, {pipeline_mode = #tpu.pipeline_mode<synchronous>, transform_indices = @transform_3, window_bounds = array<i64: 4, 192, 192>}, {pipeline_mode = #tpu.pipeline_mode<synchronous>, transform_indices = @transform_4, window_bounds = array<i64: 12, 192>}, {pipeline_mode = #tpu.pipeline_mode<synchronous>, transform_indices = @transform_5, window_bounds = array<i64: 192, 4>}, {transform_indices = @transform_6, window_bounds = array<i64: 8, 4>}]} {
    %c0 = arith.constant 0 : index
    %c0_0 = arith.constant 0 : index
    %0 = vector.load %arg1[%c0, %c0_0] : memref<352x4xf32, #tpu.memory_space<vmem>>, vector<352x4xf32>
    %c0_1 = arith.constant 0 : index
    %c0_2 = arith.constant 0 : index
    %1 = vector.load %arg2[%c0_1, %c0_2] : memref<192x352xf32, #tpu.memory_space<vmem>>, vector<192x352xf32>
    %c0_3 = arith.constant 0 : index
    %c0_4 = arith.constant 0 : index
    %2 = vector.load %arg3[%c0_3, %c0_4] : memref<66x192xf32, #tpu.memory_space<vmem>>, vector<66x192xf32>
    %c0_5 = arith.constant 0 : index
    %c0_6 = arith.constant 0 : index
    %c0_7 = arith.constant 0 : index
    %3 = vector.load %arg4[%c0_5, %c0_6, %c0_7] : memref<4x192x192xf32, #tpu.memory_space<vmem>>, vector<1x192x192xf32>
    %4 = vector.shape_cast %3 : vector<1x192x192xf32> to vector<192x192xf32>
    %c1 = arith.constant 1 : index
    %c0_8 = arith.constant 0 : index
    %c0_9 = arith.constant 0 : index
    %5 = vector.load %arg4[%c1, %c0_8, %c0_9] : memref<4x192x192xf32, #tpu.memory_space<vmem>>, vector<1x192x192xf32>
    %6 = vector.shape_cast %5 : vector<1x192x192xf32> to vector<192x192xf32>
    %c2 = arith.constant 2 : index
    %c0_10 = arith.constant 0 : index
    %c0_11 = arith.constant 0 : index
    %7 = vector.load %arg4[%c2, %c0_10, %c0_11] : memref<4x192x192xf32, #tpu.memory_space<vmem>>, vector<1x192x192xf32>
    %8 = vector.shape_cast %7 : vector<1x192x192xf32> to vector<192x192xf32>
    %c3 = arith.constant 3 : index
    %c0_12 = arith.constant 0 : index
    %c0_13 = arith.constant 0 : index
    %9 = vector.load %arg4[%c3, %c0_12, %c0_13] : memref<4x192x192xf32, #tpu.memory_space<vmem>>, vector<1x192x192xf32>
    %10 = vector.shape_cast %9 : vector<1x192x192xf32> to vector<192x192xf32>
    %c0_14 = arith.constant 0 : index
    %c0_15 = arith.constant 0 : index
    %11 = vector.load %arg5[%c0_14, %c0_15] : memref<12x192xf32, #tpu.memory_space<vmem>>, vector<12x192xf32>
    %c0_16 = arith.constant 0 : index
    %c0_17 = arith.constant 0 : index
    %12 = vector.load %arg6[%c0_16, %c0_17] : memref<192x4xf32, #tpu.memory_space<vmem>>, vector<192x4xf32>
    %13 = vector.extract_strided_slice %12 {offsets = [0, 0], sizes = [192, 1], strides = [1, 1]} : vector<192x4xf32> to vector<192x1xf32>
    %14 = vector.extract_strided_slice %12 {offsets = [0, 1], sizes = [192, 1], strides = [1, 1]} : vector<192x4xf32> to vector<192x1xf32>
    %15 = vector.extract_strided_slice %12 {offsets = [0, 2], sizes = [192, 1], strides = [1, 1]} : vector<192x4xf32> to vector<192x1xf32>
    %16 = vector.extract_strided_slice %12 {offsets = [0, 3], sizes = [12, 1], strides = [1, 1]} : vector<192x4xf32> to vector<12x1xf32>
    %17 = vector.extract_strided_slice %0 {offsets = [0, 0], sizes = [32, 4], strides = [1, 1]} : vector<352x4xf32> to vector<32x4xf32>
    %18 = vector.extract_strided_slice %0 {offsets = [32, 0], sizes = [32, 4], strides = [1, 1]} : vector<352x4xf32> to vector<32x4xf32>
    %19 = vector.extract_strided_slice %0 {offsets = [64, 0], sizes = [32, 4], strides = [1, 1]} : vector<352x4xf32> to vector<32x4xf32>
    %20 = vector.extract_strided_slice %0 {offsets = [96, 0], sizes = [32, 4], strides = [1, 1]} : vector<352x4xf32> to vector<32x4xf32>
    %21 = vector.extract_strided_slice %0 {offsets = [128, 0], sizes = [32, 4], strides = [1, 1]} : vector<352x4xf32> to vector<32x4xf32>
    %22 = vector.extract_strided_slice %0 {offsets = [160, 0], sizes = [32, 4], strides = [1, 1]} : vector<352x4xf32> to vector<32x4xf32>
    %23 = vector.extract_strided_slice %0 {offsets = [192, 0], sizes = [32, 4], strides = [1, 1]} : vector<352x4xf32> to vector<32x4xf32>
    %24 = vector.extract_strided_slice %0 {offsets = [224, 0], sizes = [32, 4], strides = [1, 1]} : vector<352x4xf32> to vector<32x4xf32>
    %25 = vector.extract_strided_slice %0 {offsets = [256, 0], sizes = [32, 4], strides = [1, 1]} : vector<352x4xf32> to vector<32x4xf32>
    %26 = vector.extract_strided_slice %0 {offsets = [288, 0], sizes = [32, 4], strides = [1, 1]} : vector<352x4xf32> to vector<32x4xf32>
    %27 = vector.extract_strided_slice %0 {offsets = [320, 0], sizes = [32, 4], strides = [1, 1]} : vector<352x4xf32> to vector<32x4xf32>
    %cst = arith.constant dense<0.000000e+00> : vector<192x4xf32>
    %28 = tpu.matmul %1, %0, %cst {dimension_numbers = #tpu.dot_dimension_numbers<[1], [0], [0], [1], [0, 0, 1, 1], [], []>} : vector<192x352xf32>, vector<352x4xf32>, vector<192x4xf32> -> vector<192x4xf32>
    %29 = vector.broadcast %13 : vector<192x1xf32> to vector<192x4xf32>
    %30 = arith.addf %28, %29 : vector<192x4xf32>
    %31 = math.tanh %30 : vector<192x4xf32>
    %cst_18 = arith.constant dense<0.000000e+00> : vector<12x4xf32>
    %32 = tpu.matmul %11, %31, %cst_18 {dimension_numbers = #tpu.dot_dimension_numbers<[1], [0], [0], [1], [0, 0, 1, 1], [], []>} : vector<12x192xf32>, vector<192x4xf32>, vector<12x4xf32> -> vector<12x4xf32>
    %33 = vector.broadcast %16 : vector<12x1xf32> to vector<12x4xf32>
    %34 = arith.addf %32, %33 : vector<12x4xf32>
    %35 = vector.extract_strided_slice %34 {offsets = [0, 0], sizes = [6, 4], strides = [1, 1]} : vector<12x4xf32> to vector<6x4xf32>
    %36 = vector.extract_strided_slice %34 {offsets = [6, 0], sizes = [6, 4], strides = [1, 1]} : vector<12x4xf32> to vector<6x4xf32>
    %cst_19 = arith.constant dense<0.000000e+00> : vector<66x4xf32>
    %37 = tpu.matmul %2, %31, %cst_19 {dimension_numbers = #tpu.dot_dimension_numbers<[1], [0], [0], [1], [0, 0, 1, 1], [], []>} : vector<66x192xf32>, vector<192x4xf32>, vector<66x4xf32> -> vector<66x4xf32>
    %cst_20 = arith.constant dense<0xFF800000> : vector<4xf32>
    %38 = vector.multi_reduction <maximumf>, %37, %cst_20 [0] : vector<66x4xf32> to vector<4xf32>
    %39 = vector.shape_cast %38 : vector<4xf32> to vector<1x4xf32>
    %40 = vector.broadcast %39 : vector<1x4xf32> to vector<66x4xf32>
    %41 = arith.subf %37, %40 : vector<66x4xf32>
    %42 = math.exp %41 : vector<66x4xf32>
    %43 = vector.extract_strided_slice %42 {offsets = [0, 0], sizes = [1, 4], strides = [1, 1]} : vector<66x4xf32> to vector<1x4xf32>
    %44 = vector.broadcast %43 : vector<1x4xf32> to vector<32x4xf32>
    %45 = arith.mulf %44, %17 : vector<32x4xf32>
    %46 = vector.extract_strided_slice %42 {offsets = [1, 0], sizes = [1, 4], strides = [1, 1]} : vector<66x4xf32> to vector<1x4xf32>
    %47 = vector.broadcast %46 : vector<1x4xf32> to vector<32x4xf32>
    %48 = arith.mulf %47, %18 : vector<32x4xf32>
    %49 = arith.addf %45, %48 : vector<32x4xf32>
    %50 = arith.addf %43, %46 : vector<1x4xf32>
    %51 = vector.extract_strided_slice %42 {offsets = [2, 0], sizes = [1, 4], strides = [1, 1]} : vector<66x4xf32> to vector<1x4xf32>
    %52 = vector.broadcast %51 : vector<1x4xf32> to vector<32x4xf32>
    %53 = arith.mulf %52, %19 : vector<32x4xf32>
    %54 = arith.addf %49, %53 : vector<32x4xf32>
    %55 = arith.addf %50, %51 : vector<1x4xf32>
    %56 = vector.extract_strided_slice %42 {offsets = [3, 0], sizes = [1, 4], strides = [1, 1]} : vector<66x4xf32> to vector<1x4xf32>
    %57 = vector.broadcast %56 : vector<1x4xf32> to vector<32x4xf32>
    %58 = arith.mulf %57, %20 : vector<32x4xf32>
    %59 = arith.addf %54, %58 : vector<32x4xf32>
    %60 = arith.addf %55, %56 : vector<1x4xf32>
    %61 = vector.extract_strided_slice %42 {offsets = [4, 0], sizes = [1, 4], strides = [1, 1]} : vector<66x4xf32> to vector<1x4xf32>
    %62 = vector.broadcast %61 : vector<1x4xf32> to vector<32x4xf32>
    %63 = arith.mulf %62, %21 : vector<32x4xf32>
    %64 = arith.addf %59, %63 : vector<32x4xf32>
    %65 = arith.addf %60, %61 : vector<1x4xf32>
    %66 = vector.extract_strided_slice %42 {offsets = [5, 0], sizes = [1, 4], strides = [1, 1]} : vector<66x4xf32> to vector<1x4xf32>
    %67 = vector.broadcast %66 : vector<1x4xf32> to vector<32x4xf32>
    %68 = arith.mulf %67, %22 : vector<32x4xf32>
    %69 = arith.addf %64, %68 : vector<32x4xf32>
    %70 = arith.addf %65, %66 : vector<1x4xf32>
    %71 = vector.extract_strided_slice %42 {offsets = [6, 0], sizes = [1, 4], strides = [1, 1]} : vector<66x4xf32> to vector<1x4xf32>
    %72 = vector.broadcast %71 : vector<1x4xf32> to vector<32x4xf32>
    %73 = arith.mulf %72, %23 : vector<32x4xf32>
    %74 = arith.addf %69, %73 : vector<32x4xf32>
    %75 = arith.addf %70, %71 : vector<1x4xf32>
    %76 = vector.extract_strided_slice %42 {offsets = [7, 0], sizes = [1, 4], strides = [1, 1]} : vector<66x4xf32> to vector<1x4xf32>
    %77 = vector.broadcast %76 : vector<1x4xf32> to vector<32x4xf32>
    %78 = arith.mulf %77, %24 : vector<32x4xf32>
    %79 = arith.addf %74, %78 : vector<32x4xf32>
    %80 = arith.addf %75, %76 : vector<1x4xf32>
    %81 = vector.extract_strided_slice %42 {offsets = [8, 0], sizes = [1, 4], strides = [1, 1]} : vector<66x4xf32> to vector<1x4xf32>
    %82 = vector.broadcast %81 : vector<1x4xf32> to vector<32x4xf32>
    %83 = arith.mulf %82, %25 : vector<32x4xf32>
    %84 = arith.addf %79, %83 : vector<32x4xf32>
    %85 = arith.addf %80, %81 : vector<1x4xf32>
    %86 = vector.extract_strided_slice %42 {offsets = [9, 0], sizes = [1, 4], strides = [1, 1]} : vector<66x4xf32> to vector<1x4xf32>
    %87 = vector.broadcast %86 : vector<1x4xf32> to vector<32x4xf32>
    %88 = arith.mulf %87, %26 : vector<32x4xf32>
    %89 = arith.addf %84, %88 : vector<32x4xf32>
    %90 = arith.addf %85, %86 : vector<1x4xf32>
    %91 = vector.extract_strided_slice %42 {offsets = [10, 0], sizes = [1, 4], strides = [1, 1]} : vector<66x4xf32> to vector<1x4xf32>
    %92 = vector.broadcast %91 : vector<1x4xf32> to vector<32x4xf32>
    %93 = arith.mulf %92, %27 : vector<32x4xf32>
    %94 = arith.addf %89, %93 : vector<32x4xf32>
    %95 = arith.addf %90, %91 : vector<1x4xf32>
    %96 = tpu.reciprocal %95 {approx = true} : vector<1x4xf32> -> vector<1x4xf32>
    %97 = vector.broadcast %96 : vector<1x4xf32> to vector<32x4xf32>
    %98 = arith.mulf %94, %97 : vector<32x4xf32>
    %99 = vector.extract_strided_slice %42 {offsets = [11, 0], sizes = [1, 4], strides = [1, 1]} : vector<66x4xf32> to vector<1x4xf32>
    %100 = vector.broadcast %99 : vector<1x4xf32> to vector<32x4xf32>
    %101 = arith.mulf %100, %17 : vector<32x4xf32>
    %102 = vector.extract_strided_slice %42 {offsets = [12, 0], sizes = [1, 4], strides = [1, 1]} : vector<66x4xf32> to vector<1x4xf32>
    %103 = vector.broadcast %102 : vector<1x4xf32> to vector<32x4xf32>
    %104 = arith.mulf %103, %18 : vector<32x4xf32>
    %105 = arith.addf %101, %104 : vector<32x4xf32>
    %106 = arith.addf %99, %102 : vector<1x4xf32>
    %107 = vector.extract_strided_slice %42 {offsets = [13, 0], sizes = [1, 4], strides = [1, 1]} : vector<66x4xf32> to vector<1x4xf32>
    %108 = vector.broadcast %107 : vector<1x4xf32> to vector<32x4xf32>
    %109 = arith.mulf %108, %19 : vector<32x4xf32>
    %110 = arith.addf %105, %109 : vector<32x4xf32>
    %111 = arith.addf %106, %107 : vector<1x4xf32>
    %112 = vector.extract_strided_slice %42 {offsets = [14, 0], sizes = [1, 4], strides = [1, 1]} : vector<66x4xf32> to vector<1x4xf32>
    %113 = vector.broadcast %112 : vector<1x4xf32> to vector<32x4xf32>
    %114 = arith.mulf %113, %20 : vector<32x4xf32>
    %115 = arith.addf %110, %114 : vector<32x4xf32>
    %116 = arith.addf %111, %112 : vector<1x4xf32>
    %117 = vector.extract_strided_slice %42 {offsets = [15, 0], sizes = [1, 4], strides = [1, 1]} : vector<66x4xf32> to vector<1x4xf32>
    %118 = vector.broadcast %117 : vector<1x4xf32> to vector<32x4xf32>
    %119 = arith.mulf %118, %21 : vector<32x4xf32>
    %120 = arith.addf %115, %119 : vector<32x4xf32>
    %121 = arith.addf %116, %117 : vector<1x4xf32>
    %122 = vector.extract_strided_slice %42 {offsets = [16, 0], sizes = [1, 4], strides = [1, 1]} : vector<66x4xf32> to vector<1x4xf32>
    %123 = vector.broadcast %122 : vector<1x4xf32> to vector<32x4xf32>
    %124 = arith.mulf %123, %22 : vector<32x4xf32>
    %125 = arith.addf %120, %124 : vector<32x4xf32>
    %126 = arith.addf %121, %122 : vector<1x4xf32>
    %127 = vector.extract_strided_slice %42 {offsets = [17, 0], sizes = [1, 4], strides = [1, 1]} : vector<66x4xf32> to vector<1x4xf32>
    %128 = vector.broadcast %127 : vector<1x4xf32> to vector<32x4xf32>
    %129 = arith.mulf %128, %23 : vector<32x4xf32>
    %130 = arith.addf %125, %129 : vector<32x4xf32>
    %131 = arith.addf %126, %127 : vector<1x4xf32>
    %132 = vector.extract_strided_slice %42 {offsets = [18, 0], sizes = [1, 4], strides = [1, 1]} : vector<66x4xf32> to vector<1x4xf32>
    %133 = vector.broadcast %132 : vector<1x4xf32> to vector<32x4xf32>
    %134 = arith.mulf %133, %24 : vector<32x4xf32>
    %135 = arith.addf %130, %134 : vector<32x4xf32>
    %136 = arith.addf %131, %132 : vector<1x4xf32>
    %137 = vector.extract_strided_slice %42 {offsets = [19, 0], sizes = [1, 4], strides = [1, 1]} : vector<66x4xf32> to vector<1x4xf32>
    %138 = vector.broadcast %137 : vector<1x4xf32> to vector<32x4xf32>
    %139 = arith.mulf %138, %25 : vector<32x4xf32>
    %140 = arith.addf %135, %139 : vector<32x4xf32>
    %141 = arith.addf %136, %137 : vector<1x4xf32>
    %142 = vector.extract_strided_slice %42 {offsets = [20, 0], sizes = [1, 4], strides = [1, 1]} : vector<66x4xf32> to vector<1x4xf32>
    %143 = vector.broadcast %142 : vector<1x4xf32> to vector<32x4xf32>
    %144 = arith.mulf %143, %26 : vector<32x4xf32>
    %145 = arith.addf %140, %144 : vector<32x4xf32>
    %146 = arith.addf %141, %142 : vector<1x4xf32>
    %147 = vector.extract_strided_slice %42 {offsets = [21, 0], sizes = [1, 4], strides = [1, 1]} : vector<66x4xf32> to vector<1x4xf32>
    %148 = vector.broadcast %147 : vector<1x4xf32> to vector<32x4xf32>
    %149 = arith.mulf %148, %27 : vector<32x4xf32>
    %150 = arith.addf %145, %149 : vector<32x4xf32>
    %151 = arith.addf %146, %147 : vector<1x4xf32>
    %152 = tpu.reciprocal %151 {approx = true} : vector<1x4xf32> -> vector<1x4xf32>
    %153 = vector.broadcast %152 : vector<1x4xf32> to vector<32x4xf32>
    %154 = arith.mulf %150, %153 : vector<32x4xf32>
    %155 = vector.extract_strided_slice %42 {offsets = [22, 0], sizes = [1, 4], strides = [1, 1]} : vector<66x4xf32> to vector<1x4xf32>
    %156 = vector.broadcast %155 : vector<1x4xf32> to vector<32x4xf32>
    %157 = arith.mulf %156, %17 : vector<32x4xf32>
    %158 = vector.extract_strided_slice %42 {offsets = [23, 0], sizes = [1, 4], strides = [1, 1]} : vector<66x4xf32> to vector<1x4xf32>
    %159 = vector.broadcast %158 : vector<1x4xf32> to vector<32x4xf32>
    %160 = arith.mulf %159, %18 : vector<32x4xf32>
    %161 = arith.addf %157, %160 : vector<32x4xf32>
    %162 = arith.addf %155, %158 : vector<1x4xf32>
    %163 = vector.extract_strided_slice %42 {offsets = [24, 0], sizes = [1, 4], strides = [1, 1]} : vector<66x4xf32> to vector<1x4xf32>
    %164 = vector.broadcast %163 : vector<1x4xf32> to vector<32x4xf32>
    %165 = arith.mulf %164, %19 : vector<32x4xf32>
    %166 = arith.addf %161, %165 : vector<32x4xf32>
    %167 = arith.addf %162, %163 : vector<1x4xf32>
    %168 = vector.extract_strided_slice %42 {offsets = [25, 0], sizes = [1, 4], strides = [1, 1]} : vector<66x4xf32> to vector<1x4xf32>
    %169 = vector.broadcast %168 : vector<1x4xf32> to vector<32x4xf32>
    %170 = arith.mulf %169, %20 : vector<32x4xf32>
    %171 = arith.addf %166, %170 : vector<32x4xf32>
    %172 = arith.addf %167, %168 : vector<1x4xf32>
    %173 = vector.extract_strided_slice %42 {offsets = [26, 0], sizes = [1, 4], strides = [1, 1]} : vector<66x4xf32> to vector<1x4xf32>
    %174 = vector.broadcast %173 : vector<1x4xf32> to vector<32x4xf32>
    %175 = arith.mulf %174, %21 : vector<32x4xf32>
    %176 = arith.addf %171, %175 : vector<32x4xf32>
    %177 = arith.addf %172, %173 : vector<1x4xf32>
    %178 = vector.extract_strided_slice %42 {offsets = [27, 0], sizes = [1, 4], strides = [1, 1]} : vector<66x4xf32> to vector<1x4xf32>
    %179 = vector.broadcast %178 : vector<1x4xf32> to vector<32x4xf32>
    %180 = arith.mulf %179, %22 : vector<32x4xf32>
    %181 = arith.addf %176, %180 : vector<32x4xf32>
    %182 = arith.addf %177, %178 : vector<1x4xf32>
    %183 = vector.extract_strided_slice %42 {offsets = [28, 0], sizes = [1, 4], strides = [1, 1]} : vector<66x4xf32> to vector<1x4xf32>
    %184 = vector.broadcast %183 : vector<1x4xf32> to vector<32x4xf32>
    %185 = arith.mulf %184, %23 : vector<32x4xf32>
    %186 = arith.addf %181, %185 : vector<32x4xf32>
    %187 = arith.addf %182, %183 : vector<1x4xf32>
    %188 = vector.extract_strided_slice %42 {offsets = [29, 0], sizes = [1, 4], strides = [1, 1]} : vector<66x4xf32> to vector<1x4xf32>
    %189 = vector.broadcast %188 : vector<1x4xf32> to vector<32x4xf32>
    %190 = arith.mulf %189, %24 : vector<32x4xf32>
    %191 = arith.addf %186, %190 : vector<32x4xf32>
    %192 = arith.addf %187, %188 : vector<1x4xf32>
    %193 = vector.extract_strided_slice %42 {offsets = [30, 0], sizes = [1, 4], strides = [1, 1]} : vector<66x4xf32> to vector<1x4xf32>
    %194 = vector.broadcast %193 : vector<1x4xf32> to vector<32x4xf32>
    %195 = arith.mulf %194, %25 : vector<32x4xf32>
    %196 = arith.addf %191, %195 : vector<32x4xf32>
    %197 = arith.addf %192, %193 : vector<1x4xf32>
    %198 = vector.extract_strided_slice %42 {offsets = [31, 0], sizes = [1, 4], strides = [1, 1]} : vector<66x4xf32> to vector<1x4xf32>
    %199 = vector.broadcast %198 : vector<1x4xf32> to vector<32x4xf32>
    %200 = arith.mulf %199, %26 : vector<32x4xf32>
    %201 = arith.addf %196, %200 : vector<32x4xf32>
    %202 = arith.addf %197, %198 : vector<1x4xf32>
    %203 = vector.extract_strided_slice %42 {offsets = [32, 0], sizes = [1, 4], strides = [1, 1]} : vector<66x4xf32> to vector<1x4xf32>
    %204 = vector.broadcast %203 : vector<1x4xf32> to vector<32x4xf32>
    %205 = arith.mulf %204, %27 : vector<32x4xf32>
    %206 = arith.addf %201, %205 : vector<32x4xf32>
    %207 = arith.addf %202, %203 : vector<1x4xf32>
    %208 = tpu.reciprocal %207 {approx = true} : vector<1x4xf32> -> vector<1x4xf32>
    %209 = vector.broadcast %208 : vector<1x4xf32> to vector<32x4xf32>
    %210 = arith.mulf %206, %209 : vector<32x4xf32>
    %211 = vector.extract_strided_slice %42 {offsets = [33, 0], sizes = [1, 4], strides = [1, 1]} : vector<66x4xf32> to vector<1x4xf32>
    %212 = vector.broadcast %211 : vector<1x4xf32> to vector<32x4xf32>
    %213 = arith.mulf %212, %17 : vector<32x4xf32>
    %214 = vector.extract_strided_slice %42 {offsets = [34, 0], sizes = [1, 4], strides = [1, 1]} : vector<66x4xf32> to vector<1x4xf32>
    %215 = vector.broadcast %214 : vector<1x4xf32> to vector<32x4xf32>
    %216 = arith.mulf %215, %18 : vector<32x4xf32>
    %217 = arith.addf %213, %216 : vector<32x4xf32>
    %218 = arith.addf %211, %214 : vector<1x4xf32>
    %219 = vector.extract_strided_slice %42 {offsets = [35, 0], sizes = [1, 4], strides = [1, 1]} : vector<66x4xf32> to vector<1x4xf32>
    %220 = vector.broadcast %219 : vector<1x4xf32> to vector<32x4xf32>
    %221 = arith.mulf %220, %19 : vector<32x4xf32>
    %222 = arith.addf %217, %221 : vector<32x4xf32>
    %223 = arith.addf %218, %219 : vector<1x4xf32>
    %224 = vector.extract_strided_slice %42 {offsets = [36, 0], sizes = [1, 4], strides = [1, 1]} : vector<66x4xf32> to vector<1x4xf32>
    %225 = vector.broadcast %224 : vector<1x4xf32> to vector<32x4xf32>
    %226 = arith.mulf %225, %20 : vector<32x4xf32>
    %227 = arith.addf %222, %226 : vector<32x4xf32>
    %228 = arith.addf %223, %224 : vector<1x4xf32>
    %229 = vector.extract_strided_slice %42 {offsets = [37, 0], sizes = [1, 4], strides = [1, 1]} : vector<66x4xf32> to vector<1x4xf32>
    %230 = vector.broadcast %229 : vector<1x4xf32> to vector<32x4xf32>
    %231 = arith.mulf %230, %21 : vector<32x4xf32>
    %232 = arith.addf %227, %231 : vector<32x4xf32>
    %233 = arith.addf %228, %229 : vector<1x4xf32>
    %234 = vector.extract_strided_slice %42 {offsets = [38, 0], sizes = [1, 4], strides = [1, 1]} : vector<66x4xf32> to vector<1x4xf32>
    %235 = vector.broadcast %234 : vector<1x4xf32> to vector<32x4xf32>
    %236 = arith.mulf %235, %22 : vector<32x4xf32>
    %237 = arith.addf %232, %236 : vector<32x4xf32>
    %238 = arith.addf %233, %234 : vector<1x4xf32>
    %239 = vector.extract_strided_slice %42 {offsets = [39, 0], sizes = [1, 4], strides = [1, 1]} : vector<66x4xf32> to vector<1x4xf32>
    %240 = vector.broadcast %239 : vector<1x4xf32> to vector<32x4xf32>
    %241 = arith.mulf %240, %23 : vector<32x4xf32>
    %242 = arith.addf %237, %241 : vector<32x4xf32>
    %243 = arith.addf %238, %239 : vector<1x4xf32>
    %244 = vector.extract_strided_slice %42 {offsets = [40, 0], sizes = [1, 4], strides = [1, 1]} : vector<66x4xf32> to vector<1x4xf32>
    %245 = vector.broadcast %244 : vector<1x4xf32> to vector<32x4xf32>
    %246 = arith.mulf %245, %24 : vector<32x4xf32>
    %247 = arith.addf %242, %246 : vector<32x4xf32>
    %248 = arith.addf %243, %244 : vector<1x4xf32>
    %249 = vector.extract_strided_slice %42 {offsets = [41, 0], sizes = [1, 4], strides = [1, 1]} : vector<66x4xf32> to vector<1x4xf32>
    %250 = vector.broadcast %249 : vector<1x4xf32> to vector<32x4xf32>
    %251 = arith.mulf %250, %25 : vector<32x4xf32>
    %252 = arith.addf %247, %251 : vector<32x4xf32>
    %253 = arith.addf %248, %249 : vector<1x4xf32>
    %254 = vector.extract_strided_slice %42 {offsets = [42, 0], sizes = [1, 4], strides = [1, 1]} : vector<66x4xf32> to vector<1x4xf32>
    %255 = vector.broadcast %254 : vector<1x4xf32> to vector<32x4xf32>
    %256 = arith.mulf %255, %26 : vector<32x4xf32>
    %257 = arith.addf %252, %256 : vector<32x4xf32>
    %258 = arith.addf %253, %254 : vector<1x4xf32>
    %259 = vector.extract_strided_slice %42 {offsets = [43, 0], sizes = [1, 4], strides = [1, 1]} : vector<66x4xf32> to vector<1x4xf32>
    %260 = vector.broadcast %259 : vector<1x4xf32> to vector<32x4xf32>
    %261 = arith.mulf %260, %27 : vector<32x4xf32>
    %262 = arith.addf %257, %261 : vector<32x4xf32>
    %263 = arith.addf %258, %259 : vector<1x4xf32>
    %264 = tpu.reciprocal %263 {approx = true} : vector<1x4xf32> -> vector<1x4xf32>
    %265 = vector.broadcast %264 : vector<1x4xf32> to vector<32x4xf32>
    %266 = arith.mulf %262, %265 : vector<32x4xf32>
    %267 = vector.extract_strided_slice %42 {offsets = [44, 0], sizes = [1, 4], strides = [1, 1]} : vector<66x4xf32> to vector<1x4xf32>
    %268 = vector.broadcast %267 : vector<1x4xf32> to vector<32x4xf32>
    %269 = arith.mulf %268, %17 : vector<32x4xf32>
    %270 = vector.extract_strided_slice %42 {offsets = [45, 0], sizes = [1, 4], strides = [1, 1]} : vector<66x4xf32> to vector<1x4xf32>
    %271 = vector.broadcast %270 : vector<1x4xf32> to vector<32x4xf32>
    %272 = arith.mulf %271, %18 : vector<32x4xf32>
    %273 = arith.addf %269, %272 : vector<32x4xf32>
    %274 = arith.addf %267, %270 : vector<1x4xf32>
    %275 = vector.extract_strided_slice %42 {offsets = [46, 0], sizes = [1, 4], strides = [1, 1]} : vector<66x4xf32> to vector<1x4xf32>
    %276 = vector.broadcast %275 : vector<1x4xf32> to vector<32x4xf32>
    %277 = arith.mulf %276, %19 : vector<32x4xf32>
    %278 = arith.addf %273, %277 : vector<32x4xf32>
    %279 = arith.addf %274, %275 : vector<1x4xf32>
    %280 = vector.extract_strided_slice %42 {offsets = [47, 0], sizes = [1, 4], strides = [1, 1]} : vector<66x4xf32> to vector<1x4xf32>
    %281 = vector.broadcast %280 : vector<1x4xf32> to vector<32x4xf32>
    %282 = arith.mulf %281, %20 : vector<32x4xf32>
    %283 = arith.addf %278, %282 : vector<32x4xf32>
    %284 = arith.addf %279, %280 : vector<1x4xf32>
    %285 = vector.extract_strided_slice %42 {offsets = [48, 0], sizes = [1, 4], strides = [1, 1]} : vector<66x4xf32> to vector<1x4xf32>
    %286 = vector.broadcast %285 : vector<1x4xf32> to vector<32x4xf32>
    %287 = arith.mulf %286, %21 : vector<32x4xf32>
    %288 = arith.addf %283, %287 : vector<32x4xf32>
    %289 = arith.addf %284, %285 : vector<1x4xf32>
    %290 = vector.extract_strided_slice %42 {offsets = [49, 0], sizes = [1, 4], strides = [1, 1]} : vector<66x4xf32> to vector<1x4xf32>
    %291 = vector.broadcast %290 : vector<1x4xf32> to vector<32x4xf32>
    %292 = arith.mulf %291, %22 : vector<32x4xf32>
    %293 = arith.addf %288, %292 : vector<32x4xf32>
    %294 = arith.addf %289, %290 : vector<1x4xf32>
    %295 = vector.extract_strided_slice %42 {offsets = [50, 0], sizes = [1, 4], strides = [1, 1]} : vector<66x4xf32> to vector<1x4xf32>
    %296 = vector.broadcast %295 : vector<1x4xf32> to vector<32x4xf32>
    %297 = arith.mulf %296, %23 : vector<32x4xf32>
    %298 = arith.addf %293, %297 : vector<32x4xf32>
    %299 = arith.addf %294, %295 : vector<1x4xf32>
    %300 = vector.extract_strided_slice %42 {offsets = [51, 0], sizes = [1, 4], strides = [1, 1]} : vector<66x4xf32> to vector<1x4xf32>
    %301 = vector.broadcast %300 : vector<1x4xf32> to vector<32x4xf32>
    %302 = arith.mulf %301, %24 : vector<32x4xf32>
    %303 = arith.addf %298, %302 : vector<32x4xf32>
    %304 = arith.addf %299, %300 : vector<1x4xf32>
    %305 = vector.extract_strided_slice %42 {offsets = [52, 0], sizes = [1, 4], strides = [1, 1]} : vector<66x4xf32> to vector<1x4xf32>
    %306 = vector.broadcast %305 : vector<1x4xf32> to vector<32x4xf32>
    %307 = arith.mulf %306, %25 : vector<32x4xf32>
    %308 = arith.addf %303, %307 : vector<32x4xf32>
    %309 = arith.addf %304, %305 : vector<1x4xf32>
    %310 = vector.extract_strided_slice %42 {offsets = [53, 0], sizes = [1, 4], strides = [1, 1]} : vector<66x4xf32> to vector<1x4xf32>
    %311 = vector.broadcast %310 : vector<1x4xf32> to vector<32x4xf32>
    %312 = arith.mulf %311, %26 : vector<32x4xf32>
    %313 = arith.addf %308, %312 : vector<32x4xf32>
    %314 = arith.addf %309, %310 : vector<1x4xf32>
    %315 = vector.extract_strided_slice %42 {offsets = [54, 0], sizes = [1, 4], strides = [1, 1]} : vector<66x4xf32> to vector<1x4xf32>
    %316 = vector.broadcast %315 : vector<1x4xf32> to vector<32x4xf32>
    %317 = arith.mulf %316, %27 : vector<32x4xf32>
    %318 = arith.addf %313, %317 : vector<32x4xf32>
    %319 = arith.addf %314, %315 : vector<1x4xf32>
    %320 = tpu.reciprocal %319 {approx = true} : vector<1x4xf32> -> vector<1x4xf32>
    %321 = vector.broadcast %320 : vector<1x4xf32> to vector<32x4xf32>
    %322 = arith.mulf %318, %321 : vector<32x4xf32>
    %323 = vector.extract_strided_slice %42 {offsets = [55, 0], sizes = [1, 4], strides = [1, 1]} : vector<66x4xf32> to vector<1x4xf32>
    %324 = vector.broadcast %323 : vector<1x4xf32> to vector<32x4xf32>
    %325 = arith.mulf %324, %17 : vector<32x4xf32>
    %326 = vector.extract_strided_slice %42 {offsets = [56, 0], sizes = [1, 4], strides = [1, 1]} : vector<66x4xf32> to vector<1x4xf32>
    %327 = vector.broadcast %326 : vector<1x4xf32> to vector<32x4xf32>
    %328 = arith.mulf %327, %18 : vector<32x4xf32>
    %329 = arith.addf %325, %328 : vector<32x4xf32>
    %330 = arith.addf %323, %326 : vector<1x4xf32>
    %331 = vector.extract_strided_slice %42 {offsets = [57, 0], sizes = [1, 4], strides = [1, 1]} : vector<66x4xf32> to vector<1x4xf32>
    %332 = vector.broadcast %331 : vector<1x4xf32> to vector<32x4xf32>
    %333 = arith.mulf %332, %19 : vector<32x4xf32>
    %334 = arith.addf %329, %333 : vector<32x4xf32>
    %335 = arith.addf %330, %331 : vector<1x4xf32>
    %336 = vector.extract_strided_slice %42 {offsets = [58, 0], sizes = [1, 4], strides = [1, 1]} : vector<66x4xf32> to vector<1x4xf32>
    %337 = vector.broadcast %336 : vector<1x4xf32> to vector<32x4xf32>
    %338 = arith.mulf %337, %20 : vector<32x4xf32>
    %339 = arith.addf %334, %338 : vector<32x4xf32>
    %340 = arith.addf %335, %336 : vector<1x4xf32>
    %341 = vector.extract_strided_slice %42 {offsets = [59, 0], sizes = [1, 4], strides = [1, 1]} : vector<66x4xf32> to vector<1x4xf32>
    %342 = vector.broadcast %341 : vector<1x4xf32> to vector<32x4xf32>
    %343 = arith.mulf %342, %21 : vector<32x4xf32>
    %344 = arith.addf %339, %343 : vector<32x4xf32>
    %345 = arith.addf %340, %341 : vector<1x4xf32>
    %346 = vector.extract_strided_slice %42 {offsets = [60, 0], sizes = [1, 4], strides = [1, 1]} : vector<66x4xf32> to vector<1x4xf32>
    %347 = vector.broadcast %346 : vector<1x4xf32> to vector<32x4xf32>
    %348 = arith.mulf %347, %22 : vector<32x4xf32>
    %349 = arith.addf %344, %348 : vector<32x4xf32>
    %350 = arith.addf %345, %346 : vector<1x4xf32>
    %351 = vector.extract_strided_slice %42 {offsets = [61, 0], sizes = [1, 4], strides = [1, 1]} : vector<66x4xf32> to vector<1x4xf32>
    %352 = vector.broadcast %351 : vector<1x4xf32> to vector<32x4xf32>
    %353 = arith.mulf %352, %23 : vector<32x4xf32>
    %354 = arith.addf %349, %353 : vector<32x4xf32>
    %355 = arith.addf %350, %351 : vector<1x4xf32>
    %356 = vector.extract_strided_slice %42 {offsets = [62, 0], sizes = [1, 4], strides = [1, 1]} : vector<66x4xf32> to vector<1x4xf32>
    %357 = vector.broadcast %356 : vector<1x4xf32> to vector<32x4xf32>
    %358 = arith.mulf %357, %24 : vector<32x4xf32>
    %359 = arith.addf %354, %358 : vector<32x4xf32>
    %360 = arith.addf %355, %356 : vector<1x4xf32>
    %361 = vector.extract_strided_slice %42 {offsets = [63, 0], sizes = [1, 4], strides = [1, 1]} : vector<66x4xf32> to vector<1x4xf32>
    %362 = vector.broadcast %361 : vector<1x4xf32> to vector<32x4xf32>
    %363 = arith.mulf %362, %25 : vector<32x4xf32>
    %364 = arith.addf %359, %363 : vector<32x4xf32>
    %365 = arith.addf %360, %361 : vector<1x4xf32>
    %366 = vector.extract_strided_slice %42 {offsets = [64, 0], sizes = [1, 4], strides = [1, 1]} : vector<66x4xf32> to vector<1x4xf32>
    %367 = vector.broadcast %366 : vector<1x4xf32> to vector<32x4xf32>
    %368 = arith.mulf %367, %26 : vector<32x4xf32>
    %369 = arith.addf %364, %368 : vector<32x4xf32>
    %370 = arith.addf %365, %366 : vector<1x4xf32>
    %371 = vector.extract_strided_slice %42 {offsets = [65, 0], sizes = [1, 4], strides = [1, 1]} : vector<66x4xf32> to vector<1x4xf32>
    %372 = vector.broadcast %371 : vector<1x4xf32> to vector<32x4xf32>
    %373 = arith.mulf %372, %27 : vector<32x4xf32>
    %374 = arith.addf %369, %373 : vector<32x4xf32>
    %375 = arith.addf %370, %371 : vector<1x4xf32>
    %376 = tpu.reciprocal %375 {approx = true} : vector<1x4xf32> -> vector<1x4xf32>
    %377 = vector.broadcast %376 : vector<1x4xf32> to vector<32x4xf32>
    %378 = arith.mulf %374, %377 : vector<32x4xf32>
    %379 = tpu.concatenate %98, %154, %210, %266, %322, %378 in 0 : vector<32x4xf32>, vector<32x4xf32>, vector<32x4xf32>, vector<32x4xf32>, vector<32x4xf32>, vector<32x4xf32> -> vector<192x4xf32>
    %cst_21 = arith.constant dense<0.000000e+00> : vector<192x4xf32>
    %380 = tpu.matmul %4, %379, %cst_21 {dimension_numbers = #tpu.dot_dimension_numbers<[1], [0], [0], [1], [0, 0, 1, 1], [], []>} : vector<192x192xf32>, vector<192x4xf32>, vector<192x4xf32> -> vector<192x4xf32>
    %cst_22 = arith.constant dense<0.000000e+00> : vector<192x4xf32>
    %381 = tpu.matmul %6, %31, %cst_22 {dimension_numbers = #tpu.dot_dimension_numbers<[1], [0], [0], [1], [0, 0, 1, 1], [], []>} : vector<192x192xf32>, vector<192x4xf32>, vector<192x4xf32> -> vector<192x4xf32>
    %382 = arith.addf %380, %381 : vector<192x4xf32>
    %383 = vector.broadcast %14 : vector<192x1xf32> to vector<192x4xf32>
    %384 = arith.addf %382, %383 : vector<192x4xf32>
    %cst_23 = arith.constant 5.000000e-01 : f32
    %385 = vector.broadcast %cst_23 : f32 to vector<192x4xf32>
    %386 = arith.mulf %385, %384 : vector<192x4xf32>
    %387 = math.tanh %386 : vector<192x4xf32>
    %cst_24 = arith.constant 1.000000e+00 : f32
    %388 = vector.broadcast %cst_24 : f32 to vector<192x4xf32>
    %389 = arith.addf %387, %388 : vector<192x4xf32>
    %cst_25 = arith.constant 5.000000e-01 : f32
    %390 = vector.broadcast %cst_25 : f32 to vector<192x4xf32>
    %391 = arith.mulf %390, %389 : vector<192x4xf32>
    %cst_26 = arith.constant dense<0.000000e+00> : vector<192x4xf32>
    %392 = tpu.matmul %8, %379, %cst_26 {dimension_numbers = #tpu.dot_dimension_numbers<[1], [0], [0], [1], [0, 0, 1, 1], [], []>} : vector<192x192xf32>, vector<192x4xf32>, vector<192x4xf32> -> vector<192x4xf32>
    %cst_27 = arith.constant dense<0.000000e+00> : vector<192x4xf32>
    %393 = tpu.matmul %10, %31, %cst_27 {dimension_numbers = #tpu.dot_dimension_numbers<[1], [0], [0], [1], [0, 0, 1, 1], [], []>} : vector<192x192xf32>, vector<192x4xf32>, vector<192x4xf32> -> vector<192x4xf32>
    %394 = arith.addf %392, %393 : vector<192x4xf32>
    %395 = vector.broadcast %15 : vector<192x1xf32> to vector<192x4xf32>
    %396 = arith.addf %394, %395 : vector<192x4xf32>
    %397 = math.tanh %396 : vector<192x4xf32>
    %398 = arith.subf %397, %31 : vector<192x4xf32>
    %399 = arith.mulf %391, %398 : vector<192x4xf32>
    %400 = arith.addf %31, %399 : vector<192x4xf32>
    %cst_28 = arith.constant dense<0.000000e+00> : vector<12x4xf32>
    %401 = tpu.matmul %11, %400, %cst_28 {dimension_numbers = #tpu.dot_dimension_numbers<[1], [0], [0], [1], [0, 0, 1, 1], [], []>} : vector<12x192xf32>, vector<192x4xf32>, vector<12x4xf32> -> vector<12x4xf32>
    %402 = vector.broadcast %16 : vector<12x1xf32> to vector<12x4xf32>
    %403 = arith.addf %401, %402 : vector<12x4xf32>
    %404 = vector.extract_strided_slice %403 {offsets = [0, 0], sizes = [6, 4], strides = [1, 1]} : vector<12x4xf32> to vector<6x4xf32>
    %405 = vector.extract_strided_slice %403 {offsets = [6, 0], sizes = [6, 4], strides = [1, 1]} : vector<12x4xf32> to vector<6x4xf32>
    %cst_29 = arith.constant dense<0.000000e+00> : vector<66x4xf32>
    %406 = tpu.matmul %2, %400, %cst_29 {dimension_numbers = #tpu.dot_dimension_numbers<[1], [0], [0], [1], [0, 0, 1, 1], [], []>} : vector<66x192xf32>, vector<192x4xf32>, vector<66x4xf32> -> vector<66x4xf32>
    %cst_30 = arith.constant dense<0xFF800000> : vector<4xf32>
    %407 = vector.multi_reduction <maximumf>, %406, %cst_30 [0] : vector<66x4xf32> to vector<4xf32>
    %408 = vector.shape_cast %407 : vector<4xf32> to vector<1x4xf32>
    %409 = vector.broadcast %408 : vector<1x4xf32> to vector<66x4xf32>
    %410 = arith.subf %406, %409 : vector<66x4xf32>
    %411 = math.exp %410 : vector<66x4xf32>
    %412 = vector.extract_strided_slice %411 {offsets = [0, 0], sizes = [1, 4], strides = [1, 1]} : vector<66x4xf32> to vector<1x4xf32>
    %413 = vector.broadcast %412 : vector<1x4xf32> to vector<32x4xf32>
    %414 = arith.mulf %413, %17 : vector<32x4xf32>
    %415 = vector.extract_strided_slice %411 {offsets = [1, 0], sizes = [1, 4], strides = [1, 1]} : vector<66x4xf32> to vector<1x4xf32>
    %416 = vector.broadcast %415 : vector<1x4xf32> to vector<32x4xf32>
    %417 = arith.mulf %416, %18 : vector<32x4xf32>
    %418 = arith.addf %414, %417 : vector<32x4xf32>
    %419 = arith.addf %412, %415 : vector<1x4xf32>
    %420 = vector.extract_strided_slice %411 {offsets = [2, 0], sizes = [1, 4], strides = [1, 1]} : vector<66x4xf32> to vector<1x4xf32>
    %421 = vector.broadcast %420 : vector<1x4xf32> to vector<32x4xf32>
    %422 = arith.mulf %421, %19 : vector<32x4xf32>
    %423 = arith.addf %418, %422 : vector<32x4xf32>
    %424 = arith.addf %419, %420 : vector<1x4xf32>
    %425 = vector.extract_strided_slice %411 {offsets = [3, 0], sizes = [1, 4], strides = [1, 1]} : vector<66x4xf32> to vector<1x4xf32>
    %426 = vector.broadcast %425 : vector<1x4xf32> to vector<32x4xf32>
    %427 = arith.mulf %426, %20 : vector<32x4xf32>
    %428 = arith.addf %423, %427 : vector<32x4xf32>
    %429 = arith.addf %424, %425 : vector<1x4xf32>
    %430 = vector.extract_strided_slice %411 {offsets = [4, 0], sizes = [1, 4], strides = [1, 1]} : vector<66x4xf32> to vector<1x4xf32>
    %431 = vector.broadcast %430 : vector<1x4xf32> to vector<32x4xf32>
    %432 = arith.mulf %431, %21 : vector<32x4xf32>
    %433 = arith.addf %428, %432 : vector<32x4xf32>
    %434 = arith.addf %429, %430 : vector<1x4xf32>
    %435 = vector.extract_strided_slice %411 {offsets = [5, 0], sizes = [1, 4], strides = [1, 1]} : vector<66x4xf32> to vector<1x4xf32>
    %436 = vector.broadcast %435 : vector<1x4xf32> to vector<32x4xf32>
    %437 = arith.mulf %436, %22 : vector<32x4xf32>
    %438 = arith.addf %433, %437 : vector<32x4xf32>
    %439 = arith.addf %434, %435 : vector<1x4xf32>
    %440 = vector.extract_strided_slice %411 {offsets = [6, 0], sizes = [1, 4], strides = [1, 1]} : vector<66x4xf32> to vector<1x4xf32>
    %441 = vector.broadcast %440 : vector<1x4xf32> to vector<32x4xf32>
    %442 = arith.mulf %441, %23 : vector<32x4xf32>
    %443 = arith.addf %438, %442 : vector<32x4xf32>
    %444 = arith.addf %439, %440 : vector<1x4xf32>
    %445 = vector.extract_strided_slice %411 {offsets = [7, 0], sizes = [1, 4], strides = [1, 1]} : vector<66x4xf32> to vector<1x4xf32>
    %446 = vector.broadcast %445 : vector<1x4xf32> to vector<32x4xf32>
    %447 = arith.mulf %446, %24 : vector<32x4xf32>
    %448 = arith.addf %443, %447 : vector<32x4xf32>
    %449 = arith.addf %444, %445 : vector<1x4xf32>
    %450 = vector.extract_strided_slice %411 {offsets = [8, 0], sizes = [1, 4], strides = [1, 1]} : vector<66x4xf32> to vector<1x4xf32>
    %451 = vector.broadcast %450 : vector<1x4xf32> to vector<32x4xf32>
    %452 = arith.mulf %451, %25 : vector<32x4xf32>
    %453 = arith.addf %448, %452 : vector<32x4xf32>
    %454 = arith.addf %449, %450 : vector<1x4xf32>
    %455 = vector.extract_strided_slice %411 {offsets = [9, 0], sizes = [1, 4], strides = [1, 1]} : vector<66x4xf32> to vector<1x4xf32>
    %456 = vector.broadcast %455 : vector<1x4xf32> to vector<32x4xf32>
    %457 = arith.mulf %456, %26 : vector<32x4xf32>
    %458 = arith.addf %453, %457 : vector<32x4xf32>
    %459 = arith.addf %454, %455 : vector<1x4xf32>
    %460 = vector.extract_strided_slice %411 {offsets = [10, 0], sizes = [1, 4], strides = [1, 1]} : vector<66x4xf32> to vector<1x4xf32>
    %461 = vector.broadcast %460 : vector<1x4xf32> to vector<32x4xf32>
    %462 = arith.mulf %461, %27 : vector<32x4xf32>
    %463 = arith.addf %458, %462 : vector<32x4xf32>
    %464 = arith.addf %459, %460 : vector<1x4xf32>
    %465 = tpu.reciprocal %464 {approx = true} : vector<1x4xf32> -> vector<1x4xf32>
    %466 = vector.broadcast %465 : vector<1x4xf32> to vector<32x4xf32>
    %467 = arith.mulf %463, %466 : vector<32x4xf32>
    %468 = vector.extract_strided_slice %411 {offsets = [11, 0], sizes = [1, 4], strides = [1, 1]} : vector<66x4xf32> to vector<1x4xf32>
    %469 = vector.broadcast %468 : vector<1x4xf32> to vector<32x4xf32>
    %470 = arith.mulf %469, %17 : vector<32x4xf32>
    %471 = vector.extract_strided_slice %411 {offsets = [12, 0], sizes = [1, 4], strides = [1, 1]} : vector<66x4xf32> to vector<1x4xf32>
    %472 = vector.broadcast %471 : vector<1x4xf32> to vector<32x4xf32>
    %473 = arith.mulf %472, %18 : vector<32x4xf32>
    %474 = arith.addf %470, %473 : vector<32x4xf32>
    %475 = arith.addf %468, %471 : vector<1x4xf32>
    %476 = vector.extract_strided_slice %411 {offsets = [13, 0], sizes = [1, 4], strides = [1, 1]} : vector<66x4xf32> to vector<1x4xf32>
    %477 = vector.broadcast %476 : vector<1x4xf32> to vector<32x4xf32>
    %478 = arith.mulf %477, %19 : vector<32x4xf32>
    %479 = arith.addf %474, %478 : vector<32x4xf32>
    %480 = arith.addf %475, %476 : vector<1x4xf32>
    %481 = vector.extract_strided_slice %411 {offsets = [14, 0], sizes = [1, 4], strides = [1, 1]} : vector<66x4xf32> to vector<1x4xf32>
    %482 = vector.broadcast %481 : vector<1x4xf32> to vector<32x4xf32>
    %483 = arith.mulf %482, %20 : vector<32x4xf32>
    %484 = arith.addf %479, %483 : vector<32x4xf32>
    %485 = arith.addf %480, %481 : vector<1x4xf32>
    %486 = vector.extract_strided_slice %411 {offsets = [15, 0], sizes = [1, 4], strides = [1, 1]} : vector<66x4xf32> to vector<1x4xf32>
    %487 = vector.broadcast %486 : vector<1x4xf32> to vector<32x4xf32>
    %488 = arith.mulf %487, %21 : vector<32x4xf32>
    %489 = arith.addf %484, %488 : vector<32x4xf32>
    %490 = arith.addf %485, %486 : vector<1x4xf32>
    %491 = vector.extract_strided_slice %411 {offsets = [16, 0], sizes = [1, 4], strides = [1, 1]} : vector<66x4xf32> to vector<1x4xf32>
    %492 = vector.broadcast %491 : vector<1x4xf32> to vector<32x4xf32>
    %493 = arith.mulf %492, %22 : vector<32x4xf32>
    %494 = arith.addf %489, %493 : vector<32x4xf32>
    %495 = arith.addf %490, %491 : vector<1x4xf32>
    %496 = vector.extract_strided_slice %411 {offsets = [17, 0], sizes = [1, 4], strides = [1, 1]} : vector<66x4xf32> to vector<1x4xf32>
    %497 = vector.broadcast %496 : vector<1x4xf32> to vector<32x4xf32>
    %498 = arith.mulf %497, %23 : vector<32x4xf32>
    %499 = arith.addf %494, %498 : vector<32x4xf32>
    %500 = arith.addf %495, %496 : vector<1x4xf32>
    %501 = vector.extract_strided_slice %411 {offsets = [18, 0], sizes = [1, 4], strides = [1, 1]} : vector<66x4xf32> to vector<1x4xf32>
    %502 = vector.broadcast %501 : vector<1x4xf32> to vector<32x4xf32>
    %503 = arith.mulf %502, %24 : vector<32x4xf32>
    %504 = arith.addf %499, %503 : vector<32x4xf32>
    %505 = arith.addf %500, %501 : vector<1x4xf32>
    %506 = vector.extract_strided_slice %411 {offsets = [19, 0], sizes = [1, 4], strides = [1, 1]} : vector<66x4xf32> to vector<1x4xf32>
    %507 = vector.broadcast %506 : vector<1x4xf32> to vector<32x4xf32>
    %508 = arith.mulf %507, %25 : vector<32x4xf32>
    %509 = arith.addf %504, %508 : vector<32x4xf32>
    %510 = arith.addf %505, %506 : vector<1x4xf32>
    %511 = vector.extract_strided_slice %411 {offsets = [20, 0], sizes = [1, 4], strides = [1, 1]} : vector<66x4xf32> to vector<1x4xf32>
    %512 = vector.broadcast %511 : vector<1x4xf32> to vector<32x4xf32>
    %513 = arith.mulf %512, %26 : vector<32x4xf32>
    %514 = arith.addf %509, %513 : vector<32x4xf32>
    %515 = arith.addf %510, %511 : vector<1x4xf32>
    %516 = vector.extract_strided_slice %411 {offsets = [21, 0], sizes = [1, 4], strides = [1, 1]} : vector<66x4xf32> to vector<1x4xf32>
    %517 = vector.broadcast %516 : vector<1x4xf32> to vector<32x4xf32>
    %518 = arith.mulf %517, %27 : vector<32x4xf32>
    %519 = arith.addf %514, %518 : vector<32x4xf32>
    %520 = arith.addf %515, %516 : vector<1x4xf32>
    %521 = tpu.reciprocal %520 {approx = true} : vector<1x4xf32> -> vector<1x4xf32>
    %522 = vector.broadcast %521 : vector<1x4xf32> to vector<32x4xf32>
    %523 = arith.mulf %519, %522 : vector<32x4xf32>
    %524 = vector.extract_strided_slice %411 {offsets = [22, 0], sizes = [1, 4], strides = [1, 1]} : vector<66x4xf32> to vector<1x4xf32>
    %525 = vector.broadcast %524 : vector<1x4xf32> to vector<32x4xf32>
    %526 = arith.mulf %525, %17 : vector<32x4xf32>
    %527 = vector.extract_strided_slice %411 {offsets = [23, 0], sizes = [1, 4], strides = [1, 1]} : vector<66x4xf32> to vector<1x4xf32>
    %528 = vector.broadcast %527 : vector<1x4xf32> to vector<32x4xf32>
    %529 = arith.mulf %528, %18 : vector<32x4xf32>
    %530 = arith.addf %526, %529 : vector<32x4xf32>
    %531 = arith.addf %524, %527 : vector<1x4xf32>
    %532 = vector.extract_strided_slice %411 {offsets = [24, 0], sizes = [1, 4], strides = [1, 1]} : vector<66x4xf32> to vector<1x4xf32>
    %533 = vector.broadcast %532 : vector<1x4xf32> to vector<32x4xf32>
    %534 = arith.mulf %533, %19 : vector<32x4xf32>
    %535 = arith.addf %530, %534 : vector<32x4xf32>
    %536 = arith.addf %531, %532 : vector<1x4xf32>
    %537 = vector.extract_strided_slice %411 {offsets = [25, 0], sizes = [1, 4], strides = [1, 1]} : vector<66x4xf32> to vector<1x4xf32>
    %538 = vector.broadcast %537 : vector<1x4xf32> to vector<32x4xf32>
    %539 = arith.mulf %538, %20 : vector<32x4xf32>
    %540 = arith.addf %535, %539 : vector<32x4xf32>
    %541 = arith.addf %536, %537 : vector<1x4xf32>
    %542 = vector.extract_strided_slice %411 {offsets = [26, 0], sizes = [1, 4], strides = [1, 1]} : vector<66x4xf32> to vector<1x4xf32>
    %543 = vector.broadcast %542 : vector<1x4xf32> to vector<32x4xf32>
    %544 = arith.mulf %543, %21 : vector<32x4xf32>
    %545 = arith.addf %540, %544 : vector<32x4xf32>
    %546 = arith.addf %541, %542 : vector<1x4xf32>
    %547 = vector.extract_strided_slice %411 {offsets = [27, 0], sizes = [1, 4], strides = [1, 1]} : vector<66x4xf32> to vector<1x4xf32>
    %548 = vector.broadcast %547 : vector<1x4xf32> to vector<32x4xf32>
    %549 = arith.mulf %548, %22 : vector<32x4xf32>
    %550 = arith.addf %545, %549 : vector<32x4xf32>
    %551 = arith.addf %546, %547 : vector<1x4xf32>
    %552 = vector.extract_strided_slice %411 {offsets = [28, 0], sizes = [1, 4], strides = [1, 1]} : vector<66x4xf32> to vector<1x4xf32>
    %553 = vector.broadcast %552 : vector<1x4xf32> to vector<32x4xf32>
    %554 = arith.mulf %553, %23 : vector<32x4xf32>
    %555 = arith.addf %550, %554 : vector<32x4xf32>
    %556 = arith.addf %551, %552 : vector<1x4xf32>
    %557 = vector.extract_strided_slice %411 {offsets = [29, 0], sizes = [1, 4], strides = [1, 1]} : vector<66x4xf32> to vector<1x4xf32>
    %558 = vector.broadcast %557 : vector<1x4xf32> to vector<32x4xf32>
    %559 = arith.mulf %558, %24 : vector<32x4xf32>
    %560 = arith.addf %555, %559 : vector<32x4xf32>
    %561 = arith.addf %556, %557 : vector<1x4xf32>
    %562 = vector.extract_strided_slice %411 {offsets = [30, 0], sizes = [1, 4], strides = [1, 1]} : vector<66x4xf32> to vector<1x4xf32>
    %563 = vector.broadcast %562 : vector<1x4xf32> to vector<32x4xf32>
    %564 = arith.mulf %563, %25 : vector<32x4xf32>
    %565 = arith.addf %560, %564 : vector<32x4xf32>
    %566 = arith.addf %561, %562 : vector<1x4xf32>
    %567 = vector.extract_strided_slice %411 {offsets = [31, 0], sizes = [1, 4], strides = [1, 1]} : vector<66x4xf32> to vector<1x4xf32>
    %568 = vector.broadcast %567 : vector<1x4xf32> to vector<32x4xf32>
    %569 = arith.mulf %568, %26 : vector<32x4xf32>
    %570 = arith.addf %565, %569 : vector<32x4xf32>
    %571 = arith.addf %566, %567 : vector<1x4xf32>
    %572 = vector.extract_strided_slice %411 {offsets = [32, 0], sizes = [1, 4], strides = [1, 1]} : vector<66x4xf32> to vector<1x4xf32>
    %573 = vector.broadcast %572 : vector<1x4xf32> to vector<32x4xf32>
    %574 = arith.mulf %573, %27 : vector<32x4xf32>
    %575 = arith.addf %570, %574 : vector<32x4xf32>
    %576 = arith.addf %571, %572 : vector<1x4xf32>
    %577 = tpu.reciprocal %576 {approx = true} : vector<1x4xf32> -> vector<1x4xf32>
    %578 = vector.broadcast %577 : vector<1x4xf32> to vector<32x4xf32>
    %579 = arith.mulf %575, %578 : vector<32x4xf32>
    %580 = vector.extract_strided_slice %411 {offsets = [33, 0], sizes = [1, 4], strides = [1, 1]} : vector<66x4xf32> to vector<1x4xf32>
    %581 = vector.broadcast %580 : vector<1x4xf32> to vector<32x4xf32>
    %582 = arith.mulf %581, %17 : vector<32x4xf32>
    %583 = vector.extract_strided_slice %411 {offsets = [34, 0], sizes = [1, 4], strides = [1, 1]} : vector<66x4xf32> to vector<1x4xf32>
    %584 = vector.broadcast %583 : vector<1x4xf32> to vector<32x4xf32>
    %585 = arith.mulf %584, %18 : vector<32x4xf32>
    %586 = arith.addf %582, %585 : vector<32x4xf32>
    %587 = arith.addf %580, %583 : vector<1x4xf32>
    %588 = vector.extract_strided_slice %411 {offsets = [35, 0], sizes = [1, 4], strides = [1, 1]} : vector<66x4xf32> to vector<1x4xf32>
    %589 = vector.broadcast %588 : vector<1x4xf32> to vector<32x4xf32>
    %590 = arith.mulf %589, %19 : vector<32x4xf32>
    %591 = arith.addf %586, %590 : vector<32x4xf32>
    %592 = arith.addf %587, %588 : vector<1x4xf32>
    %593 = vector.extract_strided_slice %411 {offsets = [36, 0], sizes = [1, 4], strides = [1, 1]} : vector<66x4xf32> to vector<1x4xf32>
    %594 = vector.broadcast %593 : vector<1x4xf32> to vector<32x4xf32>
    %595 = arith.mulf %594, %20 : vector<32x4xf32>
    %596 = arith.addf %591, %595 : vector<32x4xf32>
    %597 = arith.addf %592, %593 : vector<1x4xf32>
    %598 = vector.extract_strided_slice %411 {offsets = [37, 0], sizes = [1, 4], strides = [1, 1]} : vector<66x4xf32> to vector<1x4xf32>
    %599 = vector.broadcast %598 : vector<1x4xf32> to vector<32x4xf32>
    %600 = arith.mulf %599, %21 : vector<32x4xf32>
    %601 = arith.addf %596, %600 : vector<32x4xf32>
    %602 = arith.addf %597, %598 : vector<1x4xf32>
    %603 = vector.extract_strided_slice %411 {offsets = [38, 0], sizes = [1, 4], strides = [1, 1]} : vector<66x4xf32> to vector<1x4xf32>
    %604 = vector.broadcast %603 : vector<1x4xf32> to vector<32x4xf32>
    %605 = arith.mulf %604, %22 : vector<32x4xf32>
    %606 = arith.addf %601, %605 : vector<32x4xf32>
    %607 = arith.addf %602, %603 : vector<1x4xf32>
    %608 = vector.extract_strided_slice %411 {offsets = [39, 0], sizes = [1, 4], strides = [1, 1]} : vector<66x4xf32> to vector<1x4xf32>
    %609 = vector.broadcast %608 : vector<1x4xf32> to vector<32x4xf32>
    %610 = arith.mulf %609, %23 : vector<32x4xf32>
    %611 = arith.addf %606, %610 : vector<32x4xf32>
    %612 = arith.addf %607, %608 : vector<1x4xf32>
    %613 = vector.extract_strided_slice %411 {offsets = [40, 0], sizes = [1, 4], strides = [1, 1]} : vector<66x4xf32> to vector<1x4xf32>
    %614 = vector.broadcast %613 : vector<1x4xf32> to vector<32x4xf32>
    %615 = arith.mulf %614, %24 : vector<32x4xf32>
    %616 = arith.addf %611, %615 : vector<32x4xf32>
    %617 = arith.addf %612, %613 : vector<1x4xf32>
    %618 = vector.extract_strided_slice %411 {offsets = [41, 0], sizes = [1, 4], strides = [1, 1]} : vector<66x4xf32> to vector<1x4xf32>
    %619 = vector.broadcast %618 : vector<1x4xf32> to vector<32x4xf32>
    %620 = arith.mulf %619, %25 : vector<32x4xf32>
    %621 = arith.addf %616, %620 : vector<32x4xf32>
    %622 = arith.addf %617, %618 : vector<1x4xf32>
    %623 = vector.extract_strided_slice %411 {offsets = [42, 0], sizes = [1, 4], strides = [1, 1]} : vector<66x4xf32> to vector<1x4xf32>
    %624 = vector.broadcast %623 : vector<1x4xf32> to vector<32x4xf32>
    %625 = arith.mulf %624, %26 : vector<32x4xf32>
    %626 = arith.addf %621, %625 : vector<32x4xf32>
    %627 = arith.addf %622, %623 : vector<1x4xf32>
    %628 = vector.extract_strided_slice %411 {offsets = [43, 0], sizes = [1, 4], strides = [1, 1]} : vector<66x4xf32> to vector<1x4xf32>
    %629 = vector.broadcast %628 : vector<1x4xf32> to vector<32x4xf32>
    %630 = arith.mulf %629, %27 : vector<32x4xf32>
    %631 = arith.addf %626, %630 : vector<32x4xf32>
    %632 = arith.addf %627, %628 : vector<1x4xf32>
    %633 = tpu.reciprocal %632 {approx = true} : vector<1x4xf32> -> vector<1x4xf32>
    %634 = vector.broadcast %633 : vector<1x4xf32> to vector<32x4xf32>
    %635 = arith.mulf %631, %634 : vector<32x4xf32>
    %636 = vector.extract_strided_slice %411 {offsets = [44, 0], sizes = [1, 4], strides = [1, 1]} : vector<66x4xf32> to vector<1x4xf32>
    %637 = vector.broadcast %636 : vector<1x4xf32> to vector<32x4xf32>
    %638 = arith.mulf %637, %17 : vector<32x4xf32>
    %639 = vector.extract_strided_slice %411 {offsets = [45, 0], sizes = [1, 4], strides = [1, 1]} : vector<66x4xf32> to vector<1x4xf32>
    %640 = vector.broadcast %639 : vector<1x4xf32> to vector<32x4xf32>
    %641 = arith.mulf %640, %18 : vector<32x4xf32>
    %642 = arith.addf %638, %641 : vector<32x4xf32>
    %643 = arith.addf %636, %639 : vector<1x4xf32>
    %644 = vector.extract_strided_slice %411 {offsets = [46, 0], sizes = [1, 4], strides = [1, 1]} : vector<66x4xf32> to vector<1x4xf32>
    %645 = vector.broadcast %644 : vector<1x4xf32> to vector<32x4xf32>
    %646 = arith.mulf %645, %19 : vector<32x4xf32>
    %647 = arith.addf %642, %646 : vector<32x4xf32>
    %648 = arith.addf %643, %644 : vector<1x4xf32>
    %649 = vector.extract_strided_slice %411 {offsets = [47, 0], sizes = [1, 4], strides = [1, 1]} : vector<66x4xf32> to vector<1x4xf32>
    %650 = vector.broadcast %649 : vector<1x4xf32> to vector<32x4xf32>
    %651 = arith.mulf %650, %20 : vector<32x4xf32>
    %652 = arith.addf %647, %651 : vector<32x4xf32>
    %653 = arith.addf %648, %649 : vector<1x4xf32>
    %654 = vector.extract_strided_slice %411 {offsets = [48, 0], sizes = [1, 4], strides = [1, 1]} : vector<66x4xf32> to vector<1x4xf32>
    %655 = vector.broadcast %654 : vector<1x4xf32> to vector<32x4xf32>
    %656 = arith.mulf %655, %21 : vector<32x4xf32>
    %657 = arith.addf %652, %656 : vector<32x4xf32>
    %658 = arith.addf %653, %654 : vector<1x4xf32>
    %659 = vector.extract_strided_slice %411 {offsets = [49, 0], sizes = [1, 4], strides = [1, 1]} : vector<66x4xf32> to vector<1x4xf32>
    %660 = vector.broadcast %659 : vector<1x4xf32> to vector<32x4xf32>
    %661 = arith.mulf %660, %22 : vector<32x4xf32>
    %662 = arith.addf %657, %661 : vector<32x4xf32>
    %663 = arith.addf %658, %659 : vector<1x4xf32>
    %664 = vector.extract_strided_slice %411 {offsets = [50, 0], sizes = [1, 4], strides = [1, 1]} : vector<66x4xf32> to vector<1x4xf32>
    %665 = vector.broadcast %664 : vector<1x4xf32> to vector<32x4xf32>
    %666 = arith.mulf %665, %23 : vector<32x4xf32>
    %667 = arith.addf %662, %666 : vector<32x4xf32>
    %668 = arith.addf %663, %664 : vector<1x4xf32>
    %669 = vector.extract_strided_slice %411 {offsets = [51, 0], sizes = [1, 4], strides = [1, 1]} : vector<66x4xf32> to vector<1x4xf32>
    %670 = vector.broadcast %669 : vector<1x4xf32> to vector<32x4xf32>
    %671 = arith.mulf %670, %24 : vector<32x4xf32>
    %672 = arith.addf %667, %671 : vector<32x4xf32>
    %673 = arith.addf %668, %669 : vector<1x4xf32>
    %674 = vector.extract_strided_slice %411 {offsets = [52, 0], sizes = [1, 4], strides = [1, 1]} : vector<66x4xf32> to vector<1x4xf32>
    %675 = vector.broadcast %674 : vector<1x4xf32> to vector<32x4xf32>
    %676 = arith.mulf %675, %25 : vector<32x4xf32>
    %677 = arith.addf %672, %676 : vector<32x4xf32>
    %678 = arith.addf %673, %674 : vector<1x4xf32>
    %679 = vector.extract_strided_slice %411 {offsets = [53, 0], sizes = [1, 4], strides = [1, 1]} : vector<66x4xf32> to vector<1x4xf32>
    %680 = vector.broadcast %679 : vector<1x4xf32> to vector<32x4xf32>
    %681 = arith.mulf %680, %26 : vector<32x4xf32>
    %682 = arith.addf %677, %681 : vector<32x4xf32>
    %683 = arith.addf %678, %679 : vector<1x4xf32>
    %684 = vector.extract_strided_slice %411 {offsets = [54, 0], sizes = [1, 4], strides = [1, 1]} : vector<66x4xf32> to vector<1x4xf32>
    %685 = vector.broadcast %684 : vector<1x4xf32> to vector<32x4xf32>
    %686 = arith.mulf %685, %27 : vector<32x4xf32>
    %687 = arith.addf %682, %686 : vector<32x4xf32>
    %688 = arith.addf %683, %684 : vector<1x4xf32>
    %689 = tpu.reciprocal %688 {approx = true} : vector<1x4xf32> -> vector<1x4xf32>
    %690 = vector.broadcast %689 : vector<1x4xf32> to vector<32x4xf32>
    %691 = arith.mulf %687, %690 : vector<32x4xf32>
    %692 = vector.extract_strided_slice %411 {offsets = [55, 0], sizes = [1, 4], strides = [1, 1]} : vector<66x4xf32> to vector<1x4xf32>
    %693 = vector.broadcast %692 : vector<1x4xf32> to vector<32x4xf32>
    %694 = arith.mulf %693, %17 : vector<32x4xf32>
    %695 = vector.extract_strided_slice %411 {offsets = [56, 0], sizes = [1, 4], strides = [1, 1]} : vector<66x4xf32> to vector<1x4xf32>
    %696 = vector.broadcast %695 : vector<1x4xf32> to vector<32x4xf32>
    %697 = arith.mulf %696, %18 : vector<32x4xf32>
    %698 = arith.addf %694, %697 : vector<32x4xf32>
    %699 = arith.addf %692, %695 : vector<1x4xf32>
    %700 = vector.extract_strided_slice %411 {offsets = [57, 0], sizes = [1, 4], strides = [1, 1]} : vector<66x4xf32> to vector<1x4xf32>
    %701 = vector.broadcast %700 : vector<1x4xf32> to vector<32x4xf32>
    %702 = arith.mulf %701, %19 : vector<32x4xf32>
    %703 = arith.addf %698, %702 : vector<32x4xf32>
    %704 = arith.addf %699, %700 : vector<1x4xf32>
    %705 = vector.extract_strided_slice %411 {offsets = [58, 0], sizes = [1, 4], strides = [1, 1]} : vector<66x4xf32> to vector<1x4xf32>
    %706 = vector.broadcast %705 : vector<1x4xf32> to vector<32x4xf32>
    %707 = arith.mulf %706, %20 : vector<32x4xf32>
    %708 = arith.addf %703, %707 : vector<32x4xf32>
    %709 = arith.addf %704, %705 : vector<1x4xf32>
    %710 = vector.extract_strided_slice %411 {offsets = [59, 0], sizes = [1, 4], strides = [1, 1]} : vector<66x4xf32> to vector<1x4xf32>
    %711 = vector.broadcast %710 : vector<1x4xf32> to vector<32x4xf32>
    %712 = arith.mulf %711, %21 : vector<32x4xf32>
    %713 = arith.addf %708, %712 : vector<32x4xf32>
    %714 = arith.addf %709, %710 : vector<1x4xf32>
    %715 = vector.extract_strided_slice %411 {offsets = [60, 0], sizes = [1, 4], strides = [1, 1]} : vector<66x4xf32> to vector<1x4xf32>
    %716 = vector.broadcast %715 : vector<1x4xf32> to vector<32x4xf32>
    %717 = arith.mulf %716, %22 : vector<32x4xf32>
    %718 = arith.addf %713, %717 : vector<32x4xf32>
    %719 = arith.addf %714, %715 : vector<1x4xf32>
    %720 = vector.extract_strided_slice %411 {offsets = [61, 0], sizes = [1, 4], strides = [1, 1]} : vector<66x4xf32> to vector<1x4xf32>
    %721 = vector.broadcast %720 : vector<1x4xf32> to vector<32x4xf32>
    %722 = arith.mulf %721, %23 : vector<32x4xf32>
    %723 = arith.addf %718, %722 : vector<32x4xf32>
    %724 = arith.addf %719, %720 : vector<1x4xf32>
    %725 = vector.extract_strided_slice %411 {offsets = [62, 0], sizes = [1, 4], strides = [1, 1]} : vector<66x4xf32> to vector<1x4xf32>
    %726 = vector.broadcast %725 : vector<1x4xf32> to vector<32x4xf32>
    %727 = arith.mulf %726, %24 : vector<32x4xf32>
    %728 = arith.addf %723, %727 : vector<32x4xf32>
    %729 = arith.addf %724, %725 : vector<1x4xf32>
    %730 = vector.extract_strided_slice %411 {offsets = [63, 0], sizes = [1, 4], strides = [1, 1]} : vector<66x4xf32> to vector<1x4xf32>
    %731 = vector.broadcast %730 : vector<1x4xf32> to vector<32x4xf32>
    %732 = arith.mulf %731, %25 : vector<32x4xf32>
    %733 = arith.addf %728, %732 : vector<32x4xf32>
    %734 = arith.addf %729, %730 : vector<1x4xf32>
    %735 = vector.extract_strided_slice %411 {offsets = [64, 0], sizes = [1, 4], strides = [1, 1]} : vector<66x4xf32> to vector<1x4xf32>
    %736 = vector.broadcast %735 : vector<1x4xf32> to vector<32x4xf32>
    %737 = arith.mulf %736, %26 : vector<32x4xf32>
    %738 = arith.addf %733, %737 : vector<32x4xf32>
    %739 = arith.addf %734, %735 : vector<1x4xf32>
    %740 = vector.extract_strided_slice %411 {offsets = [65, 0], sizes = [1, 4], strides = [1, 1]} : vector<66x4xf32> to vector<1x4xf32>
    %741 = vector.broadcast %740 : vector<1x4xf32> to vector<32x4xf32>
    %742 = arith.mulf %741, %27 : vector<32x4xf32>
    %743 = arith.addf %738, %742 : vector<32x4xf32>
    %744 = arith.addf %739, %740 : vector<1x4xf32>
    %745 = tpu.reciprocal %744 {approx = true} : vector<1x4xf32> -> vector<1x4xf32>
    %746 = vector.broadcast %745 : vector<1x4xf32> to vector<32x4xf32>
    %747 = arith.mulf %743, %746 : vector<32x4xf32>
    %748 = tpu.concatenate %467, %523, %579, %635, %691, %747 in 0 : vector<32x4xf32>, vector<32x4xf32>, vector<32x4xf32>, vector<32x4xf32>, vector<32x4xf32>, vector<32x4xf32> -> vector<192x4xf32>
    %cst_31 = arith.constant dense<0.000000e+00> : vector<192x4xf32>
    %749 = tpu.matmul %4, %748, %cst_31 {dimension_numbers = #tpu.dot_dimension_numbers<[1], [0], [0], [1], [0, 0, 1, 1], [], []>} : vector<192x192xf32>, vector<192x4xf32>, vector<192x4xf32> -> vector<192x4xf32>
    %cst_32 = arith.constant dense<0.000000e+00> : vector<192x4xf32>
    %750 = tpu.matmul %6, %400, %cst_32 {dimension_numbers = #tpu.dot_dimension_numbers<[1], [0], [0], [1], [0, 0, 1, 1], [], []>} : vector<192x192xf32>, vector<192x4xf32>, vector<192x4xf32> -> vector<192x4xf32>
    %751 = arith.addf %749, %750 : vector<192x4xf32>
    %752 = vector.broadcast %14 : vector<192x1xf32> to vector<192x4xf32>
    %753 = arith.addf %751, %752 : vector<192x4xf32>
    %cst_33 = arith.constant 5.000000e-01 : f32
    %754 = vector.broadcast %cst_33 : f32 to vector<192x4xf32>
    %755 = arith.mulf %754, %753 : vector<192x4xf32>
    %756 = math.tanh %755 : vector<192x4xf32>
    %cst_34 = arith.constant 1.000000e+00 : f32
    %757 = vector.broadcast %cst_34 : f32 to vector<192x4xf32>
    %758 = arith.addf %756, %757 : vector<192x4xf32>
    %cst_35 = arith.constant 5.000000e-01 : f32
    %759 = vector.broadcast %cst_35 : f32 to vector<192x4xf32>
    %760 = arith.mulf %759, %758 : vector<192x4xf32>
    %cst_36 = arith.constant dense<0.000000e+00> : vector<192x4xf32>
    %761 = tpu.matmul %8, %748, %cst_36 {dimension_numbers = #tpu.dot_dimension_numbers<[1], [0], [0], [1], [0, 0, 1, 1], [], []>} : vector<192x192xf32>, vector<192x4xf32>, vector<192x4xf32> -> vector<192x4xf32>
    %cst_37 = arith.constant dense<0.000000e+00> : vector<192x4xf32>
    %762 = tpu.matmul %10, %400, %cst_37 {dimension_numbers = #tpu.dot_dimension_numbers<[1], [0], [0], [1], [0, 0, 1, 1], [], []>} : vector<192x192xf32>, vector<192x4xf32>, vector<192x4xf32> -> vector<192x4xf32>
    %763 = arith.addf %761, %762 : vector<192x4xf32>
    %764 = vector.broadcast %15 : vector<192x1xf32> to vector<192x4xf32>
    %765 = arith.addf %763, %764 : vector<192x4xf32>
    %766 = math.tanh %765 : vector<192x4xf32>
    %767 = arith.subf %766, %400 : vector<192x4xf32>
    %768 = arith.mulf %760, %767 : vector<192x4xf32>
    %769 = arith.addf %400, %768 : vector<192x4xf32>
    %cst_38 = arith.constant dense<0.000000e+00> : vector<12x4xf32>
    %770 = tpu.matmul %11, %769, %cst_38 {dimension_numbers = #tpu.dot_dimension_numbers<[1], [0], [0], [1], [0, 0, 1, 1], [], []>} : vector<12x192xf32>, vector<192x4xf32>, vector<12x4xf32> -> vector<12x4xf32>
    %771 = vector.broadcast %16 : vector<12x1xf32> to vector<12x4xf32>
    %772 = arith.addf %770, %771 : vector<12x4xf32>
    %773 = vector.extract_strided_slice %772 {offsets = [0, 0], sizes = [6, 4], strides = [1, 1]} : vector<12x4xf32> to vector<6x4xf32>
    %774 = vector.extract_strided_slice %772 {offsets = [6, 0], sizes = [6, 4], strides = [1, 1]} : vector<12x4xf32> to vector<6x4xf32>
    %775 = arith.maximumf %36, %405 : vector<6x4xf32>
    %776 = arith.maximumf %775, %774 : vector<6x4xf32>
    %777 = arith.subf %36, %776 : vector<6x4xf32>
    %778 = math.exp %777 : vector<6x4xf32>
    %779 = arith.subf %405, %776 : vector<6x4xf32>
    %780 = math.exp %779 : vector<6x4xf32>
    %781 = arith.subf %774, %776 : vector<6x4xf32>
    %782 = math.exp %781 : vector<6x4xf32>
    %783 = arith.addf %778, %780 : vector<6x4xf32>
    %784 = arith.addf %783, %782 : vector<6x4xf32>
    %785 = arith.mulf %35, %778 : vector<6x4xf32>
    %786 = arith.mulf %404, %780 : vector<6x4xf32>
    %787 = arith.addf %785, %786 : vector<6x4xf32>
    %788 = arith.mulf %773, %782 : vector<6x4xf32>
    %789 = arith.addf %787, %788 : vector<6x4xf32>
    %790 = tpu.reciprocal %784 {approx = true} : vector<6x4xf32> -> vector<6x4xf32>
    %791 = arith.mulf %789, %790 : vector<6x4xf32>
    %792 = vector.extract_strided_slice %791 {offsets = [4, 0], sizes = [2, 4], strides = [1, 1]} : vector<6x4xf32> to vector<2x4xf32>
    %793 = vector.extract_strided_slice %791 {offsets = [0, 0], sizes = [4, 4], strides = [1, 1]} : vector<6x4xf32> to vector<4x4xf32>
    %cst_39 = arith.constant 5.000000e-01 : f32
    %794 = vector.broadcast %cst_39 : f32 to vector<4x4xf32>
    %795 = arith.mulf %794, %793 : vector<4x4xf32>
    %796 = math.tanh %795 : vector<4x4xf32>
    %cst_40 = arith.constant 1.000000e+00 : f32
    %797 = vector.broadcast %cst_40 : f32 to vector<4x4xf32>
    %798 = arith.addf %796, %797 : vector<4x4xf32>
    %cst_41 = arith.constant 5.000000e-01 : f32
    %799 = vector.broadcast %cst_41 : f32 to vector<4x4xf32>
    %800 = arith.mulf %799, %798 : vector<4x4xf32>
    %cst_42 = arith.constant dense<0xFF800000> : vector<4xf32>
    %801 = vector.multi_reduction <maximumf>, %792, %cst_42 [0] : vector<2x4xf32> to vector<4xf32>
    %802 = vector.shape_cast %801 : vector<4xf32> to vector<1x4xf32>
    %803 = vector.broadcast %802 : vector<1x4xf32> to vector<2x4xf32>
    %804 = arith.subf %792, %803 : vector<2x4xf32>
    %805 = math.exp %804 : vector<2x4xf32>
    %cst_43 = arith.constant dense<0.000000e+00> : vector<4xf32>
    %806 = vector.multi_reduction <add>, %805, %cst_43 [0] : vector<2x4xf32> to vector<4xf32>
    %807 = vector.shape_cast %806 : vector<4xf32> to vector<1x4xf32>
    %808 = tpu.reciprocal %807 {approx = true} : vector<1x4xf32> -> vector<1x4xf32>
    %809 = vector.broadcast %808 : vector<1x4xf32> to vector<2x4xf32>
    %810 = arith.mulf %805, %809 : vector<2x4xf32>
    %c0_44 = arith.constant 0 : index
    %c0_45 = arith.constant 0 : index
    %811 = vector.load %arg7[%c0_44, %c0_45] : memref<8x4xf32, #tpu.memory_space<vmem>>, vector<2x4xf32>
    tpu.vector_store %arg7[%c0_44, %c0_45], %792 {strides = array<i32>} : memref<8x4xf32, #tpu.memory_space<vmem>>, vector<2x4xf32>,
    %c2_46 = arith.constant 2 : index
    %c0_47 = arith.constant 0 : index
    %812 = vector.load %arg7[%c2_46, %c0_47] : memref<8x4xf32, #tpu.memory_space<vmem>>, vector<4x4xf32>
    tpu.vector_store %arg7[%c2_46, %c0_47], %800 {strides = array<i32>} : memref<8x4xf32, #tpu.memory_space<vmem>>, vector<4x4xf32>,
    %c6 = arith.constant 6 : index
    %c0_48 = arith.constant 0 : index
    %813 = vector.load %arg7[%c6, %c0_48] : memref<8x4xf32, #tpu.memory_space<vmem>>, vector<2x4xf32>
    tpu.vector_store %arg7[%c6, %c0_48], %810 {strides = array<i32>} : memref<8x4xf32, #tpu.memory_space<vmem>>, vector<2x4xf32>,
    return
  }
  func.func @transform_0(%arg0: i32) -> (i32, i32) {
    %c0_i32 = arith.constant 0 : i32
    %c0_i32_0 = arith.constant 0 : i32
    return %c0_i32, %arg0 : i32, i32
  }
  func.func @transform_1(%arg0: i32) -> (i32, i32) {
    %c0_i32 = arith.constant 0 : i32
    %c0_i32_0 = arith.constant 0 : i32
    %c0_i32_1 = arith.constant 0 : i32
    return %c0_i32, %c0_i32_0 : i32, i32
  }
  func.func @transform_2(%arg0: i32) -> (i32, i32) {
    %c0_i32 = arith.constant 0 : i32
    %c0_i32_0 = arith.constant 0 : i32
    %c0_i32_1 = arith.constant 0 : i32
    return %c0_i32, %c0_i32_0 : i32, i32
  }
  func.func @transform_3(%arg0: i32) -> (i32, i32, i32) {
    %c0_i32 = arith.constant 0 : i32
    %c0_i32_0 = arith.constant 0 : i32
    %c0_i32_1 = arith.constant 0 : i32
    %c0_i32_2 = arith.constant 0 : i32
    return %c0_i32, %c0_i32_0, %c0_i32_1 : i32, i32, i32
  }
  func.func @transform_4(%arg0: i32) -> (i32, i32) {
    %c0_i32 = arith.constant 0 : i32
    %c0_i32_0 = arith.constant 0 : i32
    %c0_i32_1 = arith.constant 0 : i32
    return %c0_i32, %c0_i32_0 : i32, i32
  }
  func.func @transform_5(%arg0: i32) -> (i32, i32) {
    %c0_i32 = arith.constant 0 : i32
    %c0_i32_0 = arith.constant 0 : i32
    %c0_i32_1 = arith.constant 0 : i32
    return %c0_i32, %c0_i32_0 : i32, i32
  }
  func.func @transform_6(%arg0: i32) -> (i32, i32) {
    %c0_i32 = arith.constant 0 : i32
    %c0_i32_0 = arith.constant 0 : i32
    return %c0_i32, %arg0 : i32, i32
  }
}

</mosaic_0001>

<bundles_post_ra>
// kernel: tpu_custom_call.1
= control target key start
LH: loop header
LB: loop body
LE: loop exit
PB: predicated region body
PF: predicated region fallthrough
CT: control target
= control target key end

     0   :  { %11 = vsyncpa [#allocation3], 0  ;;  %s11202_s0 = inlined_call_operand.vmem [shape: f32[352,4], index: 0, kind: input, shape index: {}]   ;;  %s11203_s1 = inlined_call_operand.hbm [shape: f32[192,352], index: 1, kind: input, shape index: {}]   ;;  %s11204_s2 = inlined_call_operand.vmem [shape: f32[66,192], index: 2, kind: input, shape index: {}]   ;;  %s11205_s3 = inlined_call_operand.hbm [shape: f32[4,192,192], index: 3, kind: input, shape index: {}]   ;;  %s11206_s4 = inlined_call_operand.vmem [shape: f32[12,192], index: 4, kind: input, shape index: {}]   ;;  %s11207_s5 = inlined_call_operand.vmem [shape: f32[192,4], index: 5, kind: input, shape index: {}]   ;;  %s11208_s6 = inlined_call_operand.vmem [shape: f32[8,4], index: 6, kind: output, shape index: {}]  }
   0x1   :  { %s19_s23 = sshll.u32 %s11203_s1, 4  ;;  %s20_s23 = int_to_ptr.hbm [resolvable:$true] %s19_s23 }
   0x2   :  { %12 = vsyncpa [#allocation5], 0  ;;  %s6447_s24 = smov [#allocation2]   ;;  %s34_s28 = sshll.u32 %s11205_s3, 4  ;;  %s35_s28 = int_to_ptr.hbm [resolvable:$true] %s34_s28 }
   0x3   :  { %s21_s25 = sshll.u32 %s6447_s24, 4  ;;  %s6448_s29 = smov 384   ;;  %s22_s25 = int_to_ptr.vmem [resolvable:$true] %s21_s25 }
   0x4   :  { %s6449_s30 = smov 24   ;;  %s6450_s7 = smov [#allocation4]  }
   0x5   :  { %27 = dma.hbm_to_vmem [thread:$0]  %s20_s23, 9216, %s22_s25, [#allocation3], %s6448_s29, %s6448_s29, %s6449_s30  }
   0x6   :  { %s36_s8 = sshll.u32 %s6450_s7, 4  ;;  %s6451_s9 = smov 256   ;;  %s37_s8 = int_to_ptr.vmem [resolvable:$true] %s36_s8 }
   0x7   :  { %s6452_s10 = smov 16  }
   0x8   :  { %42 = dma.hbm_to_vmem [thread:$0]  %s35_s28, 24576, %s37_s8, [#allocation5], %s6451_s9, %s6451_s9, %s6452_s10  }
   0x9   :  { %6443 = dma.done.wait [#allocation3], 9216  }
   0xa   :  { %6444 = vsyncadd [#allocation3], 4294958080 }
   0xb   :  { %6445 = dma.done.wait [#allocation5], 24576  }
   0xc   :  { %6446 = vsyncadd [#allocation5], 4294942720  ;;  %v6453_v0 = vmov 0   ;;  %v70_v1 = vld [vmem:[%s11202_s0 + $0x78] sm:$0xff]  ;;  %v69_v3 = vld [vmem:[%s11202_s0 + $0x70] sm:$0xff]  ;;  %vm532_vm0 = vcmask 785408  }
   0xd   :  { %5650 = vset.pattern.permute.xlu0 %v6453_v0  ;;  %5651 = vset.pattern.permute.xlu1 %v6453_v0  ;;  %v6504_v2 = vld [vmem:[%s11207_s5 + $0x78] sm:$0xff]  ;;  %v68_v5 = vld [vmem:[%s11202_s0 + $0x68] sm:$0xff]  ;;  %v97_v6 = vld [vmem:[%s11202_s0 + $0x150] sm:$0xff]  ;;  %vm904_vm1 = vcmask 523264   ;;  %vm1072_vm2 = vcmask 31744   ;;  %vm1085_vm3 = vcmask 25600  }
   0xe   :  { %5652 = vset.pattern.permute.xlu2 %v6453_v0  ;;  %605 = vmatpush.msra.mxu0 %v70_v1  ;;  %v98_v4 = vld [vmem:[%s11202_s0 + $0x158] sm:$0xff]  ;;  %v96_v7 = vld [vmem:[%s11202_s0 + $0x148] sm:$0xff]  ;;  %v67_v8 = vld [vmem:[%s11202_s0 + $0x60] sm:$0xff]  ;;  %vm5308_vm4 = vcmask 1041408   ;;  %vm5343_vm5 = vcmask 29700   ;;  %vm5367_vm6 = vcmask 27648  }
   0xf   :  { %489 = vperm.xlu0 %5650, %v6504_v2   ;;  %787 = vmatpush.msra.mxu2 %v98_v4  ;;  %v95_v9 = vld [vmem:[%s11202_s0 + $0x140] sm:$0xff]  ;;  %v66_v10 = vld [vmem:[%s11202_s0 + $0x58] sm:$0xff]  ;;  %v6534_v11 = vld [vmem:[%s11207_s5 + $0x70] sm:$0xff] }
  0x10   :  { %606 = vmatpush.msra.mxu0 %v69_v3  ;;  %v6539_v12 = vld [vmem:[%s11202_s0 + $0xf8] sm:$0xff]  ;;  %v6548_v14 = vld [vmem:[%s11202_s0 + $0xf0] sm:$0xff]  ;;  %v6560_v17 = vld [vmem:[%s11202_s0 + $0xe8] sm:$0xff] }
  0x11   :  { %788 = vmatpush.msra.mxu2 %v97_v6  ;;  %v94_v13 = vld [vmem:[%s11202_s0 + $0x138] sm:$0xff]  ;;  %5616 = vmatpush.msra.mxu1 %v6539_v12  ;;  %v65_v15 = vld [vmem:[%s11202_s0 + $0x50] sm:$0xff]  ;;  %v64_v18 = vld [vmem:[%s11202_s0 + $0x48] sm:$0xff] }
  0x12   :  { %607 = vmatpush.msra.mxu0 %v68_v5  ;;  %v93_v16 = vld [vmem:[%s11202_s0 + $0x130] sm:$0xff]  ;;  %v6569_v19 = vld [vmem:[%s11207_s5 + $0x68] sm:$0xff]  ;;  %v6577_v21 = vld [vmem:[%s11202_s0 + $0xe0] sm:$0xff] }
  0x13   :  { %789 = vmatpush.msra.mxu2 %v96_v7  ;;  %5617 = vmatpush.msra.mxu1 %v6548_v14  ;;  %v92_v20 = vld [vmem:[%s11202_s0 + $0x128] sm:$0xff]  ;;  %v63_v22 = vld [vmem:[%s11202_s0 + $0x40] sm:$0xff]  ;;  %v6590_v24 = vld [vmem:[%s11202_s0 + $0xd8] sm:$0xff] }
  0x14   :  { %608 = vmatpush.msra.mxu0 %v67_v8  ;;  %479 = vperm.xlu1 %5651, %v6569_v19   ;;  %v91_v23 = vld [vmem:[%s11202_s0 + $0x120] sm:$0xff]  ;;  %v62_v25 = vld [vmem:[%s11202_s0 + $0x38] sm:$0xff]  ;;  %v6598_v26 = vld [vmem:[%s11207_s5 + $0x48] sm:$0xff] }
  0x15   :  { %790 = vmatpush.msra.mxu2 %v95_v9  ;;  %5618 = vmatpush.msra.mxu1 %v6560_v17  ;;  %v90_v27 = vld [vmem:[%s11202_s0 + $0x118] sm:$0xff]  ;;  %v6607_v28 = vld [vmem:[%s11202_s0 + $0xd0] sm:$0xff]  ;;  %v6616_v30 = vld [vmem:[%s11207_s5 + $0x60] sm:$0xff] }
  0x16   :  { %609 = vmatpush.msra.mxu0 %v66_v10  ;;  %v61_v29 = vld [vmem:[%s11202_s0 + $0x30] sm:$0xff]  ;;  %v6625_v32 = vld [vmem:[%s11202_s0 + $0xc8] sm:$0xff]  ;;  %v6634_v34 = vld [vmem:[%s11207_s5 + $0x58] sm:$0xff] }
  0x17   :  { %484 = vperm.xlu0 %5650, %v6534_v11   ;;  %791 = vmatpush.msra.mxu2 %v94_v13  ;;  %v89_v31 = vld [vmem:[%s11202_s0 + $0x110] sm:$0xff]  ;;  %v60_v33 = vld [vmem:[%s11202_s0 + $0x28] sm:$0xff]  ;;  %v6642_v36 = vld [vmem:[%s11202_s0 + $0xc0] sm:$0xff] }
  0x18   :  { %610 = vmatpush.msra.mxu0 %v65_v15  ;;  %5619 = vmatpush.msra.mxu1 %v6577_v21  ;;  %v88_v35 = vld [vmem:[%s11202_s0 + $0x108] sm:$0xff]  ;;  %v59_v37 = vld [vmem:[%s11202_s0 + $0x20] sm:$0xff]  ;;  %v6655_v39 = vld [vmem:[%s11202_s0 + $0xb8] sm:$0xff] }
  0x19   :  { %792 = vmatpush.msra.mxu2 %v93_v16  ;;  %v87_v38 = vld [vmem:[%s11202_s0 + $0x100] sm:$0xff]  ;;  %469 = vperm.xlu2 %5652, %v6634_v34   ;;  %v58_v40 = vld [vmem:[%s11202_s0 + $0x18] sm:$0xff]  ;;  %v6664_v41 = vld [vmem:[%s11207_s5 + $0x30] sm:$0xff] }
  0x1a   :  { %611 = vmatpush.msra.mxu0 %v64_v18  ;;  %5620 = vmatpush.msra.mxu1 %v6590_v24  ;;  %v101_v42 = vld [vmem:[#allocation2 + $0x10] sm:$0xff]  ;;  %v6679_v45 = vld [vmem:[%s11207_s5 + $0x40] sm:$0xff]  ;;  %v6685_v46 = vld [vmem:[%s11202_s0 + $0xa8] sm:$0xff] }
  0x1b   :  { %793 = vmatpush.msra.mxu2 %v92_v20  ;;  %v6670_v43 = vld [vmem:[%s11202_s0 + $0xb0] sm:$0xff]  ;;  %v56_v47 = vld [vmem:[%s11202_s0 + $0x8] sm:$0xff]  ;;  %v75_v49 = vld [vmem:[%s11202_s0 + $0xa0] sm:$0xff] }
  0x1c   :  { %612 = vmatpush.msra.mxu0 %v63_v22  ;;  %5621 = vmatpush.msra.mxu1 %v6607_v28  ;;  %v57_v44 = vld [vmem:[%s11202_s0 + $0x10] sm:$0xff]  ;;  %v55_v50 = vld [vmem:[%s11202_s0] sm:$0xff]  ;;  %v74_v52 = vld [vmem:[%s11202_s0 + $0x98] sm:$0xff] }
  0x1d   :  { %794 = vmatpush.msra.mxu2 %v91_v23  ;;  %474 = vperm.xlu1 %5651, %v6616_v30   ;;  %v6695_v48 = vld [vmem:[%s11207_s5 + $0x50] sm:$0xff]  ;;  %v99_v51 = vld [vmem:[#allocation2] sm:$0xff]  ;;  %v6712_v53 = vld [vmem:[%s11207_s5 + $0x18] sm:$0xff] }
  0x1e   :  { %613 = vmatpush.msra.mxu0 %v62_v25  ;;  %5622 = vmatpush.msra.mxu1 %v6625_v32  ;;  %11615 = vst [vmem:[#allocation8_spill] sm:$0xff] %v6712_v53  ;;  %v104_v54 = vld [vmem:[#allocation2 + $0x28] sm:$0xff]  ;;  %v73_v55 = vld [vmem:[%s11202_s0 + $0x90] sm:$0xff]  ;;  %v6731_v58 = vld [vmem:[%s11207_s5 + $0x38] sm:$0xff] }
  0x1f   :  { %459 = vperm.xlu0 %5650, %v6598_v26   ;;  %795 = vmatpush.msra.mxu2 %v90_v27  ;;  %v6720_v56 = vld [vmem:[%s11207_s5 + $0x28] sm:$0xff]  ;;  %11617 = vst [vmem:[#allocation10_spill] sm:$0xff] %v6731_v58  ;;  %v71_v59 = vld [vmem:[%s11202_s0 + $0x80] sm:$0xff]  ;;  %v106_v60 = vld [vmem:[#allocation2 + $0x38] sm:$0xff] }
  0x20   :  { %614 = vmatpush.msra.mxu0 %v61_v29  ;;  %5623 = vmatpush.msra.mxu1 %v6642_v36  ;;  %11616 = vst [vmem:[#allocation9_spill] sm:$0xff] %v6720_v56  ;;  %v72_v57 = vld [vmem:[%s11202_s0 + $0x88] sm:$0xff]  ;;  %v102_v61 = vld [vmem:[#allocation2 + $0x18] sm:$0xff]  ;;  %v6743_v62 = vld [vmem:[%s11207_s5] sm:$0xff] }
  0x21   :  { %796 = vmatpush.msra.mxu2 %v89_v31  ;;  %464 = vperm.xlu2 %5652, %v6695_v48   ;;  %11618 = vst [vmem:[#allocation11_spill] sm:$0xff] %v6743_v62  ;;  %v107_v63 = vld [vmem:[#allocation2 + $0x40] sm:$0xff]  ;;  %v6749_v0 = vld [vmem:[%s11207_s5 + $0x10] sm:$0xff]  ;;  %v110_v5 = vld [vmem:[#allocation2 + $0x58] sm:$0xff] }
  0x22   :  { %615 = vmatpush.msra.mxu0 %v60_v33  ;;  %5624 = vmatpush.msra.mxu1 %v6655_v39  ;;  %11619 = vst [vmem:[#allocation12_spill] sm:$0xff] %v6749_v0  ;;  %v6757_v1 = vld [vmem:[%s11207_s5 + $0x20] sm:$0xff]  ;;  %v109_v3 = vld [vmem:[#allocation2 + $0x50] sm:$0xff]  ;;  %v6769_v6 = vld [vmem:[%s11207_s5 + $0x8] sm:$0xff] }
  0x23   :  { %797 = vmatpush.msra.mxu2 %v88_v35  ;;  %11620 = vst [vmem:[#allocation13_spill] sm:$0xff] %v6757_v1  ;;  %v105_v4 = vld [vmem:[#allocation2 + $0x30] sm:$0xff]  ;;  %v112_v7 = vld [vmem:[#allocation2 + $0x68] sm:$0xff]  ;;  %v115_v10 = vld [vmem:[#allocation2 + $0x80] sm:$0xff] }
  0x24   :  { %616 = vmatpush.msra.mxu0 %v59_v37  ;;  %5625 = vmatpush.msra.mxu1 %v6670_v43  ;;  %11621 = vst [vmem:[#allocation14_spill] sm:$0xff] %v6769_v6  ;;  %v108_v8 = vld [vmem:[#allocation2 + $0x48] sm:$0xff]  ;;  %v113_v9 = vld [vmem:[#allocation2 + $0x70] sm:$0xff]  ;;  %v114_v15 = vld [vmem:[#allocation2 + $0x78] sm:$0xff] }
  0x25   :  { %798 = vmatpush.msra.mxu2 %v87_v38  ;;  %454 = vperm.xlu1 %5651, %v6679_v45   ;;  %v116_v13 = vld [vmem:[#allocation2 + $0x88] sm:$0xff]  ;;  %v119_v16 = vld [vmem:[#allocation2 + $0xa0] sm:$0xff]  ;;  %v117_v18 = vld [vmem:[#allocation2 + $0x90] sm:$0xff] }
  0x26   :  { %617 = vmatpush.msra.mxu0 %v58_v40  ;;  %5376 = vmatmul.msk.f32.vlgmr.msra.gmra.mxu2 %vm532_vm0, %v101_v42  ;;  %v122_v20 = vld [vmem:[#allocation2 + $0xb8] sm:$0xff]  ;;  %v120_v22 = vld [vmem:[#allocation2 + $0xa8] sm:$0xff]  ;;  %v125_v23 = vld [vmem:[#allocation2 + $0xd0] sm:$0xff] }
  0x27   :  { %444 = vperm.xlu0 %5650, %v6664_v41   ;;  %5626 = vmatpush.msra.mxu1 %v6685_v46  ;;  %v123_v25 = vld [vmem:[#allocation2 + $0xc0] sm:$0xff]  ;;  %v128_v27 = vld [vmem:[#allocation2 + $0xe8] sm:$0xff]  ;;  %v126_v29 = vld [vmem:[#allocation2 + $0xd8] sm:$0xff] }
  0x28   :  { %618 = vmatpush.msra.mxu0 %v57_v44  ;;  %v131_v31 = vld [vmem:[#allocation2 + $0x100] sm:$0xff]  ;;  %v129_v33 = vld [vmem:[#allocation2 + $0xf0] sm:$0xff]  ;;  %v134_v35 = vld [vmem:[#allocation2 + $0x118] sm:$0xff] }
  0x29   :  { %5627 = vmatpush.msra.mxu1 %v75_v49  ;;  %449 = vperm.xlu2 %5652, %v6731_v58   ;;  %v132_v37 = vld [vmem:[#allocation2 + $0x108] sm:$0xff]  ;;  %v137_v38 = vld [vmem:[#allocation2 + $0x130] sm:$0xff]  ;;  %v135_v40 = vld [vmem:[#allocation2 + $0x120] sm:$0xff] }
  0x2a   :  { %619 = vmatpush.msra.mxu0 %v56_v47  ;;  %v140_v42 = vld [vmem:[#allocation2 + $0x148] sm:$0xff]  ;;  %v142_v44 = vld [vmem:[#allocation2 + $0x158] sm:$0xff]  ;;  %v143_v47 = vld [vmem:[#allocation2 + $0x160] sm:$0xff] }
  0x2b   :  { %5628 = vmatpush.msra.mxu1 %v74_v52 }
  0x2c   :  { %620 = vmatpush.msra.mxu0 %v55_v50  ;;  %v145_v50 = vld [vmem:[#allocation2 + $0x170] sm:$0xff] }
  0x2d   :  { %621 = vmatmul.f32.vlgmr.msra.gmra.mxu0 %v99_v51  ;;  %5629 = vmatpush.msra.mxu1 %v73_v55  ;;  %v141_v51 = vld [vmem:[#allocation2 + $0x150] sm:$0xff] }
  0x2e   :  { %694 = vmatpush.msrb.mxu0 %v6539_v12  ;;  %5377 = vmatmul.msk.f32.gmra.mxu2 %vm532_vm0, %v104_v54  ;;  %v111_v12 = vld [vmem:[#allocation2 + $0x60] sm:$0xff]  ;;  %v6801_v54 = vld [vmem:[%s11207_s5 + $0x88] sm:$0xff] }
  0x2f   :  { %429 = vperm.xlu0 %5650, %v6712_v53   ;;  %439 = vperm.xlu1 %5651, %v6720_v56   ;;  %11622 = vst [vmem:[#allocation15_spill] sm:$0xff] %v6801_v54 }
  0x30   :  { %695 = vmatpush.msrb.mxu0 %v6548_v14  ;;  %5630 = vmatpush.msra.mxu1 %v72_v57  ;;  %v118_v14 = vld [vmem:[#allocation2 + $0x98] sm:$0xff] }
  0x31   :  { %434 = vperm.xlu2 %5652, %v6757_v1  }
  0x32   :  { %696 = vmatpush.msrb.mxu0 %v6560_v17  ;;  %5631 = vmatpush.msra.mxu1 %v71_v59  ;;  %v121_v17 = vld [vmem:[#allocation2 + $0xb0] sm:$0xff] }
  0x33   :  { %716 = vmatmul.f32.vlgmr.msra.gmra.mxu1 %v106_v60  ;;  %v144_v60 = vld [vmem:[#allocation2 + $0x168] sm:$0xff] }
  0x34   :  { %697 = vmatpush.msrb.mxu0 %v6577_v21  ;;  %v124_v21 = vld [vmem:[#allocation2 + $0xc8] sm:$0xff] }
  0x35   :  { %624 = vmatmul.f32.gmra.mxu0 %v102_v61  ;;  %v149_v61 = vld [vmem:[#allocation2 + $0x190] sm:$0xff] }
  0x36   :  { %698 = vmatpush.msrb.mxu0 %v6590_v24  ;;  %5378 = vmatmul.msk.f32.gmra.mxu2 %vm532_vm0, %v107_v63  ;;  %v127_v24 = vld [vmem:[#allocation2 + $0xe0] sm:$0xff]  ;;  %v6820_v63 = vld [vmem:[%s11207_s5 + $0x98] sm:$0xff] }
  0x37   :  { %414 = vperm.xlu0 %5650, %v6743_v62   ;;  %424 = vperm.xlu1 %5651, %v6749_v0   ;;  %v11637_v0 = vmov 2  }
  0x38   :  { %699 = vmatpush.msrb.mxu0 %v6607_v28  ;;  %v130_v28 = vld [vmem:[#allocation2 + $0xf8] sm:$0xff] }
  0x39   :  { %419 = vperm.xlu2 %5652, %v6769_v6  }
  0x3a   :  { %700 = vmatpush.msrb.mxu0 %v6625_v32  ;;  %v133_v32 = vld [vmem:[#allocation2 + $0x110] sm:$0xff] }
  0x3b   :  { %719 = vmatmul.f32.gmra.mxu1 %v109_v3  ;;  %v6825_v3 = vld [vmem:[%s11207_s5 + $0x90] sm:$0xff] }
  0x3c   :  { %701 = vmatpush.msrb.mxu0 %v6642_v36  ;;  %v136_v36 = vld [vmem:[#allocation2 + $0x128] sm:$0xff]  ;;  %11624 = vst [vmem:[#allocation17_spill] sm:$0xff] %v6825_v3 }
  0x3d   :  { %627 = vmatmul.f32.gmra.mxu0 %v105_v4  ;;  %v151_v4 = vld [vmem:[#allocation2 + $0x1a0] sm:$0xff] }
  0x3e   :  { %702 = vmatpush.msrb.mxu0 %v6655_v39  ;;  %5379 = vmatmul.msk.f32.gmra.mxu2 %vm532_vm0, %v110_v5  ;;  %v139_v39 = vld [vmem:[#allocation2 + $0x140] sm:$0xff] }
  0x40   :  { %703 = vmatpush.msrb.mxu0 %v6670_v43  ;;  %v6786_v43 = vld [vmem:[%s11207_s5 + $0xb8] sm:$0xff] }
  0x41   :  { %529 = vperm.xlu1 %5651, %v6786_v43  }
  0x42   :  { %704 = vmatpush.msrb.mxu0 %v6685_v46  ;;  %v138_v46 = vld [vmem:[#allocation2 + $0x138] sm:$0xff] }
  0x43   :  { %722 = vmatmul.f32.gmra.mxu1 %v112_v7  ;;  %v147_v7 = vld [vmem:[#allocation2 + $0x180] sm:$0xff] }
  0x44   :  { %705 = vmatpush.msrb.mxu0 %v75_v49  ;;  %v6793_v49 = vld [vmem:[%s11207_s5 + $0xa0] sm:$0xff] }
  0x45   :  { %630 = vmatmul.f32.gmra.mxu0 %v108_v8 }
  0x46   :  { %706 = vmatpush.msrb.mxu0 %v74_v52  ;;  %5380 = vmatmul.msk.f32.gmra.mxu2 %vm532_vm0, %v113_v9  ;;  %v146_v52 = vld [vmem:[#allocation2 + $0x178] sm:$0xff]  ;;  %v152_v9 = vld [vmem:[#allocation2 + $0x1a8] sm:$0xff] }
  0x48   :  { %707 = vmatpush.msrb.mxu0 %v73_v55  ;;  %v6806_v55 = vld [vmem:[%s11207_s5 + $0xb0] sm:$0xff] }
  0x49   :  { %514 = vperm.xlu1 %5651, %v6793_v49   ;;  %524 = vperm.xlu2 %5652, %v6806_v55  }
  0x4a   :  { %708 = vmatpush.msrb.mxu0 %v72_v57  ;;  %v6811_v57 = vld [vmem:[%s11207_s5 + $0xa8] sm:$0xff] }
  0x4b   :  { %725 = vmatmul.f32.gmra.mxu1 %v115_v10  ;;  %11623 = vst [vmem:[#allocation16_spill] sm:$0xff] %v6811_v57  ;;  %519 = vperm.xlu0 %5650, %v6811_v57   ;;  %v6837_v10 = vld [vmem:[%s11207_s5 + $0x80] sm:$0xff] }
  0x4c   :  { %709 = vmatpush.msrb.mxu0 %v71_v59  ;;  %v148_v59 = vld [vmem:[#allocation2 + $0x188] sm:$0xff]  ;;  %11627 = vst [vmem:[#allocation20_spill] sm:$0xff] %v6837_v10 }
  0x4d   :  { %633 = vmatmul.f32.gmra.mxu0 %v111_v12 }
  0x4e   :  { %5381 = vmatmul.msk.f32.gmra.mxu2 %vm532_vm0, %v116_v13  ;;  %v154_v13 = vld [vmem:[#allocation2 + $0x1b8] sm:$0xff] }
  0x51   :  { %499 = vperm.xlu1 %5651, %v6801_v54   ;;  %509 = vperm.xlu2 %5652, %v6820_v63  }
  0x53   :  { %728 = vmatmul.f32.gmra.mxu1 %v118_v14  ;;  %504 = vperm.xlu0 %5650, %v6825_v3  }
  0x55   :  { %636 = vmatmul.f32.gmra.mxu0 %v114_v15  ;;  %v150_v15 = vld [vmem:[#allocation2 + $0x198] sm:$0xff] }
  0x56   :  { %5382 = vmatmul.msk.f32.gmra.mxu2 %vm532_vm0, %v119_v16 }
  0x59   :  { %494 = vperm.xlu2 %5652, %v6837_v10  }
  0x5b   :  { %731 = vmatmul.f32.gmra.mxu1 %v121_v17  ;;  %v155_v17 = vld [vmem:[#allocation2 + $0x1c0] sm:$0xff] }
  0x5d   :  { %639 = vmatmul.f32.gmra.mxu0 %v117_v18 }
  0x5e   :  { %5383 = vmatmul.msk.f32.gmra.mxu2 %vm532_vm0, %v122_v20  ;;  %v157_v20 = vld [vmem:[#allocation2 + $0x1d0] sm:$0xff] }
  0x63   :  { %734 = vmatmul.f32.gmra.mxu1 %v124_v21 }
  0x65   :  { %642 = vmatmul.f32.gmra.mxu0 %v120_v22  ;;  %v153_v22 = vld [vmem:[#allocation2 + $0x1b0] sm:$0xff] }
  0x66   :  { %5384 = vmatmul.msk.f32.gmra.mxu2 %vm532_vm0, %v125_v23 }
  0x6b   :  { %737 = vmatmul.f32.gmra.mxu1 %v127_v24  ;;  %v158_v24 = vld [vmem:[#allocation2 + $0x1d8] sm:$0xff] }
  0x6d   :  { %645 = vmatmul.f32.gmra.mxu0 %v123_v25 }
  0x6e   :  { %5385 = vmatmul.msk.f32.gmra.mxu2 %vm532_vm0, %v128_v27  ;;  %v160_v27 = vld [vmem:[#allocation2 + $0x1e8] sm:$0xff] }
  0x73   :  { %740 = vmatmul.f32.gmra.mxu1 %v130_v28 }
  0x75   :  { %648 = vmatmul.f32.gmra.mxu0 %v126_v29  ;;  %v156_v29 = vld [vmem:[#allocation2 + $0x1c8] sm:$0xff] }
  0x76   :  { %5386 = vmatmul.msk.f32.gmra.mxu2 %vm532_vm0, %v131_v31 }
  0x7b   :  { %743 = vmatmul.f32.gmra.mxu1 %v133_v32  ;;  %v161_v32 = vld [vmem:[#allocation2 + $0x1f0] sm:$0xff] }
  0x7d   :  { %651 = vmatmul.f32.gmra.mxu0 %v129_v33 }
  0x7e   :  { %5387 = vmatmul.msk.f32.gmra.mxu2 %vm532_vm0, %v134_v35  ;;  %v163_v35 = vld [vmem:[#allocation2 + $0x200] sm:$0xff] }
  0x83   :  { %746 = vmatmul.f32.gmra.mxu1 %v136_v36 }
  0x85   :  { %654 = vmatmul.f32.gmra.mxu0 %v132_v37  ;;  %v159_v37 = vld [vmem:[#allocation2 + $0x1e0] sm:$0xff] }
  0x86   :  { %5388 = vmatmul.msk.f32.gmra.mxu2 %vm532_vm0, %v137_v38  ;;  %v480_v62 = vpop.permute.xlu1 %479 }
  0x8b   :  { %749 = vmatmul.f32.gmra.mxu1 %v139_v39  ;;  %v164_v39 = vld [vmem:[#allocation2 + $0x208] sm:$0xff] }
  0x8d   :  { %657 = vmatmul.f32.gmra.mxu0 %v135_v40 }
  0x8e   :  { %5389 = vmatmul.msk.f32.gmra.mxu2 %vm532_vm0, %v140_v42  ;;  %v166_v42 = vld [vmem:[#allocation2 + $0x218] sm:$0xff] }
  0x93   :  { %752 = vmatmul.f32.gmra.mxu1 %v142_v44 }
  0x95   :  { %660 = vmatmul.f32.gmra.mxu0 %v138_v46  ;;  %v162_v46 = vld [vmem:[#allocation2 + $0x1f8] sm:$0xff] }
  0x96   :  { %5390 = vmatmul.msk.f32.gmra.mxu2 %vm532_vm0, %v143_v47 }
  0x9b   :  { %755 = vmatmul.f32.gmra.mxu1 %v145_v50  ;;  %v167_v50 = vld [vmem:[#allocation2 + $0x220] sm:$0xff] }
  0x9d   :  { %663 = vmatmul.f32.gmra.mxu0 %v141_v51 }
  0x9e   :  { %5391 = vmatmul.msk.f32.gmra.mxu2 %vm532_vm0, %v146_v52  ;;  %v169_v52 = vld [vmem:[#allocation2 + $0x230] sm:$0xff] }
  0xa3   :  { %758 = vmatmul.f32.gmra.mxu1 %v148_v59 }
  0xa5   :  { %666 = vmatmul.f32.gmra.mxu0 %v144_v60  ;;  %v165_v60 = vld [vmem:[#allocation2 + $0x210] sm:$0xff] }
  0xa6   :  { %5392 = vmatmul.msk.f32.gmra.mxu2 %vm532_vm0, %v149_v61 }
  0xa9   :  { %v6831_v8 = vpop.f32.mrf.mxu2 }
  0xaa   :  { %v6829_v5 = vpop.f32.mrf.mxu0  ;;  %11626 = vst [vmem:[#allocation19_spill] sm:$0xff] %v6831_v8  ;;  %v475_v8 = vpop.permute.xlu1 %474 }
  0xab   :  { %11625 = vst [vmem:[#allocation18_spill] sm:$0xff] %v6829_v5  ;;  %761 = vmatmul.f32.gmra.mxu1 %v151_v4  ;;  %v170_v4 = vld [vmem:[#allocation2 + $0x238] sm:$0xff] }
  0xad   :  { %669 = vmatmul.f32.gmra.mxu0 %v147_v7 }
  0xae   :  { %5393 = vmatmul.msk.f32.gmra.mxu2 %vm532_vm0, %v152_v9 }
  0xb0   :  { %v6840_v12 = vpop.f32.mrf.mxu1 }
  0xb1   :  { %11628 = vst [vmem:[#allocation21_spill] sm:$0xff] %v6840_v12  ;;  %v6844_v16 = vpop.f32.mrf.mxu2 }
  0xb2   :  { %v6842_v14 = vpop.f32.mrf.mxu0  ;;  %11630 = vst [vmem:[#allocation23_spill] sm:$0xff] %v6844_v16  ;;  %v470_v16 = vpop.permute.xlu2 %469 }
  0xb3   :  { %11629 = vst [vmem:[#allocation22_spill] sm:$0xff] %v6842_v14  ;;  %764 = vmatmul.f32.gmra.mxu1 %v154_v13  ;;  %v168_v13 = vld [vmem:[#allocation2 + $0x228] sm:$0xff] }
  0xb5   :  { %672 = vmatmul.f32.gmra.mxu0 %v150_v15 }
  0xb6   :  { %5394 = vmatmul.msk.f32.gmra.mxu2 %vm532_vm0, %v155_v17 }
  0xb8   :  { %v6847_v18 = vpop.f32.mrf.mxu1 }
  0xb9   :  { %11631 = vst [vmem:[#allocation24_spill] sm:$0xff] %v6847_v18  ;;  %v6851_v23 = vpop.f32.mrf.mxu2 }
  0xba   :  { %v6849_v21 = vpop.f32.mrf.mxu0  ;;  %11632 = vst [vmem:[#allocation25_spill] sm:$0xff] %v6851_v23  ;;  %v465_v5 = vpop.permute.xlu2 %464 }
  0xbb   :  { %767 = vmatmul.f32.gmra.mxu1 %v157_v20 }
  0xbd   :  { %675 = vmatmul.f32.gmra.mxu0 %v153_v22  ;;  %v100_v22 = vld [vmem:[#allocation2 + $0x8] sm:$0xff] }
  0xbe   :  { %5395 = vmatmul.msk.f32.gmra.mxu2 %vm532_vm0, %v158_v24 }
  0xc0   :  { %v6854_v25 = vpop.f32.mrf.mxu1 }
  0xc1   :  { %v6858_v31 = vpop.f32.mrf.mxu2 }
  0xc2   :  { %v6856_v28 = vpop.f32.mrf.mxu0  ;;  %11633 = vst [vmem:[#allocation26_spill] sm:$0xff] %v6858_v31 }
  0xc3   :  { %770 = vmatmul.f32.gmra.mxu1 %v160_v27  ;;  %v11213_v27 = vmov 1  }
  0xc4   :  { %5654 = vset.pattern.permute.xlu1 %v11213_v27  ;;  %5653 = vset.pattern.permute.xlu0 %v11213_v27 }
  0xc5   :  { %678 = vmatmul.f32.gmra.mxu0 %v156_v29  ;;  %2452 = vperm.xlu1 %5654, %v6534_v11  }
  0xc6   :  { %5396 = vmatmul.msk.f32.gmra.mxu2 %vm532_vm0, %v161_v32  ;;  %2456 = vperm.xlu0 %5653, %v6504_v2  }
  0xc7   :  { %5655 = vset.pattern.permute.xlu2 %v11213_v27 }
  0xc8   :  { %v6861_v33 = vpop.f32.mrf.mxu1  ;;  %2448 = vperm.xlu2 %5655, %v6569_v19  }
  0xc9   :  { %v6865_v38 = vpop.f32.mrf.mxu2 }
  0xca   :  { %v6863_v36 = vpop.f32.mrf.mxu0  ;;  %11634 = vst [vmem:[#allocation27_spill] sm:$0xff] %v6865_v38 }
  0xcb   :  { %773 = vmatmul.f32.gmra.mxu1 %v163_v35  ;;  %v103_v35 = vld [vmem:[#allocation2 + $0x20] sm:$0xff] }
  0xcd   :  { %681 = vmatmul.f32.gmra.mxu0 %v159_v37 }
  0xce   :  { %5397 = vmatmul.msk.f32.gmra.mxu2 %vm532_vm0, %v164_v39  ;;  %v11211_v39 = vmov 2   ;;  %2476 = vperm.xlu0 %5653, %v6793_v49  }
  0xcf   :  { %5656 = vset.pattern.permute.xlu1 %v11211_v39 }
  0xd0   :  { %v6868_v40 = vpop.f32.mrf.mxu1  ;;  %3172 = vperm.xlu1 %5656, %v6504_v2   ;;  %2444 = vperm.xlu2 %5655, %v6616_v30  }
  0xd1   :  { %v6872_v47 = vpop.f32.mrf.mxu2 }
  0xd2   :  { %v6870_v44 = vpop.f32.mrf.mxu0  ;;  %11635 = vst [vmem:[#allocation28_spill] sm:$0xff] %v6872_v47 }
  0xd3   :  { %776 = vmatmul.f32.gmra.mxu1 %v166_v42 }
  0xd5   :  { %684 = vmatmul.f32.gmra.mxu0 %v162_v46 }
  0xd6   :  { %5398 = vmatmul.msk.f32.gmra.mxu2 %vm532_vm0, %v167_v50  ;;  %2460 = vperm.xlu0 %5653, %v6837_v10  }
  0xd8   :  { %v6875_v51 = vpop.f32.mrf.mxu1  ;;  %5657 = vset.pattern.permute.xlu1 %v11213_v27  ;;  %5658 = vset.pattern.permute.xlu2 %v11211_v39 }
  0xd9   :  { %v6879_v61 = vpop.f32.mrf.mxu2  ;;  %2440 = vperm.xlu1 %5657, %v6634_v34   ;;  %3164 = vperm.xlu2 %5658, %v6569_v19  }
  0xda   :  { %v6877_v59 = vpop.f32.mrf.mxu0  ;;  %11636 = vst [vmem:[#allocation29_spill] sm:$0xff] %v6879_v61 }
  0xdb   :  { %779 = vmatmul.f32.gmra.mxu1 %v169_v52 }
  0xdd   :  { %687 = vmatmul.f32.gmra.mxu0 %v165_v60 }
  0xde   :  { %5399 = vmatmul.msk.f32.gmra.mxu2 %vm532_vm0, %v170_v4  ;;  %5669 = vset.pattern.permute.xlu0 %v11211_v39  ;;  %v490_v4 = vpop.permute.xlu0 %489 }
  0xdf   :  { %3168 = vperm.xlu0 %5669, %v6534_v11  }
  0xe0   :  { %v6882_v7 = vpop.f32.mrf.mxu1 }
  0xe1   :  { %v6886_v15 = vpop.f32.mrf.mxu2  ;;  %2436 = vperm.xlu1 %5657, %v6695_v48   ;;  %5659 = vset.pattern.permute.xlu2 %v11213_v27 }
  0xe2   :  { %v6884_v9 = vpop.f32.mrf.mxu0  ;;  %2488 = vperm.xlu2 %5659, %v6786_v43  }
  0xe5   :  { %690 = vmatmul.f32.gmra.mxu0 %v168_v13 }
  0xe6   :  { %v485_v11 = vpop.permute.xlu0 %484 }
  0xe7   :  { %3160 = vperm.xlu0 %5669, %v6616_v30   ;;  %v455_v30 = vpop.permute.xlu1 %454 }
  0xe8   :  { %v6888_v17 = vpop.f32.mrf.mxu1 }
  0xe9   :  { %v6892_v24 = vpop.f32.mrf.mxu2  ;;  %2432 = vperm.xlu1 %5657, %v6598_v26  }
  0xea   :  { %v6890_v20 = vpop.f32.mrf.mxu0  ;;  %2484 = vperm.xlu2 %5659, %v6806_v55  }
  0xed   :  { %710 = vmatmul.f32.vlgmr.msrb.gmra.mxu0 %v100_v22 }
  0xee   :  { %v460_v53 = vpop.permute.xlu0 %459 }
  0xef   :  { %3156 = vperm.xlu0 %5669, %v6634_v34  }
  0xf0   :  { %v6900_v29 = vpop.f32.mrf.mxu1 }
  0xf1   :  { %v6904_v37 = vpop.f32.mrf.mxu2  ;;  %2428 = vperm.xlu1 %5657, %v6679_v45  }
  0xf2   :  { %v6902_v32 = vpop.f32.mrf.mxu0  ;;  %2480 = vperm.xlu2 %5659, %v6811_v57  }
  0xf5   :  { %713 = vmatmul.f32.gmra.mxu0 %v103_v35 }
  0xf7   :  { %3152 = vperm.xlu0 %5669, %v6695_v48  }
  0xf8   :  { %v6910_v42 = vpop.f32.mrf.mxu1 }
  0xf9   :  { %v6912_v50 = vpop.f32.mrf.mxu2  ;;  %5660 = vset.pattern.permute.xlu1 %v11637_v0 }
  0xfa   :  { %v652_v46 = vpop.f32.mrf.mxu0  ;;  %3204 = vperm.xlu1 %5660, %v6786_v43   ;;  %2424 = vperm.xlu2 %5659, %v6731_v58   ;;  %v650_v43 = vadd.f32 %v6902_v32, %v460_v53 }
  0xff   :  { %3144 = vperm.xlu0 %5669, %v6679_v45  }
 0x100   :  { %v747_v52 = vpop.f32.mrf.mxu1 }
 0x101   :  { %v6919_v60 = vpop.f32.mrf.mxu2 }
 0x102   :  { %v655_v2 = vpop.f32.mrf.mxu0  ;;  %3148 = vperm.xlu1 %5660, %v6598_v26   ;;  %5661 = vset.pattern.permute.xlu2 %v11637_v0 }
 0x103   :  { %v656_v38 = vadd.f32 %v655_v2, %v470_v16  ;;  %3200 = vperm.xlu2 %5661, %v6806_v55   ;;  %v11650_v2 = vld [vmem:[#allocation21_spill] sm:$0xff] }
 0x107   :  { %3192 = vperm.xlu0 %5669, %v6793_v49  }
 0x108   :  { %v750_v13 = vpop.f32.mrf.mxu1 }
 0x109   :  { %v836_v35 = vpop.f32.mrf.mxu2 }
 0x10a   :  { %v658_v22 = vpop.f32.mrf.mxu0 }
 0x10b   :  { %v659_v56 = vadd.f32 %v658_v22, %v475_v8  ;;  %v739_v8 = vadd.f32 %v6888_v17, %v650_v43  ;;  %v11653_v22 = vld [vmem:[#allocation26_spill] sm:$0xff] }
 0x10d   :  { %v748_v18 = vadd.f32 %v747_v52, %v659_v56  ;;  %v647_v56 = vadd.f32 %v6890_v20, %v455_v30  ;;  %v11655_v30 = vld [vmem:[#allocation9_spill] sm:$0xff] }
 0x10f   :  { %v736_v16 = vadd.f32 %v6882_v7, %v647_v56  ;;  %3136 = vperm.xlu0 %5669, %v6664_v41  }
 0x110   :  { %v753_v19 = vpop.f32.mrf.mxu1 }
 0x111   :  { %v839_v39 = vpop.f32.mrf.mxu2 }
 0x112   :  { %v661_v10 = vpop.f32.mrf.mxu0 }
 0x113   :  { %v662_v3 = vadd.f32 %v661_v10, %v480_v62  ;;  %v445_v62 = vpop.permute.xlu0 %444  ;;  %v440_v10 = vpop.permute.xlu1 %439 }
 0x115   :  { %v751_v12 = vadd.f32 %v750_v13, %v662_v3 }
 0x117   :  { %v840_v58 = vadd.f32 %v839_v39, %v751_v12 }
 0x118   :  { %v756_v27 = vpop.f32.mrf.mxu1 }
 0x119   :  { %v842_v14 = vpop.f32.mrf.mxu2 }
 0x11a   :  { %v664_v6 = vpop.f32.mrf.mxu0 }
 0x11b   :  { %v665_v1 = vadd.f32 %v664_v6, %v485_v11  ;;  %v450_v6 = vpop.permute.xlu2 %449  ;;  %v653_v11 = vadd.f32 %v652_v46, %v465_v5  ;;  %v837_v5 = vadd.f32 %v836_v35, %v748_v18  ;;  %v430_v49 = vpop.permute.xlu0 %429 }
 0x11c   :  { %v644_v53 = vadd.f32 %v6884_v9, %v450_v6  ;;  %v825_v9 = vadd.f32 %v6892_v24, %v736_v16  ;;  %v425_v17 = vpop.permute.xlu1 %424  ;;  %v11657_v6 = vld [vmem:[#allocation25_spill] sm:$0xff]  ;;  %v11666_v16 = vld [vmem:[#allocation12_spill] sm:$0xff] }
 0x11d   :  { %v754_v31 = vadd.f32 %v753_v19, %v665_v1  ;;  %v742_v45 = vadd.f32 %v6900_v29, %v653_v11  ;;  %v629_v29 = vadd.f32 %v6849_v21, %v425_v17  ;;  %v11654_v19 = vld [vmem:[#allocation16_spill] sm:$0xff] }
 0x11f   :  { %v843_v61 = vadd.f32 %v842_v14, %v754_v31  ;;  %v641_v14 = vadd.f32 %v6877_v59, %v445_v62  ;;  %v638_v31 = vadd.f32 %v6870_v44, %v440_v10  ;;  %v11659_v62 = vld [vmem:[#allocation15_spill] sm:$0xff] }
 0x120   :  { %v6934_v54 = vpop.f32.mrf.mxu1  ;;  %3180 = vperm.xlu0 %5669, %v11659_v62  }
 0x121   :  { %11638 = vst [vmem:[#allocation30_spill] sm:$0xff] %v6934_v54  ;;  %v845_v34 = vpop.f32.mrf.mxu2  ;;  %v745_v54 = vadd.f32 %v6910_v42, %v656_v38  ;;  %v730_v7 = vadd.f32 %v6868_v40, %v641_v14  ;;  %v11648_v42 = vld [vmem:[#allocation28_spill] sm:$0xff] }
 0x122   :  { %v667_v23 = vpop.f32.mrf.mxu0 }
 0x123   :  { %v668_v57 = vadd.f32 %v667_v23, %v490_v4  ;;  %v834_v26 = vadd.f32 %v6919_v60, %v745_v54  ;;  %v831_v23 = vadd.f32 %v6912_v50, %v742_v45  ;;  %v435_v18 = vpop.permute.xlu2 %434  ;;  %v828_v54 = vadd.f32 %v6904_v37, %v739_v8  ;;  %v11645_v37 = vld [vmem:[#allocation29_spill] sm:$0xff]  ;;  %v11651_v4 = vld [vmem:[#allocation27_spill] sm:$0xff] }
 0x124   :  { %v819_v39 = vadd.f32 %v11645_v37, %v730_v7  ;;  %v718_v60 = vadd.f32 %v11650_v2, %v629_v29  ;;  %v11663_v8 = vld [vmem:[#allocation17_spill] sm:$0xff]  ;;  %v530_v7 = vpop.permute.xlu1 %529 }
 0x125   :  { %v757_v47 = vadd.f32 %v756_v27, %v668_v57  ;;  %v632_v27 = vadd.f32 %v6856_v28, %v430_v49 }
 0x126   :  { %v807_v11 = vadd.f32 %v11657_v6, %v718_v60 }
 0x127   :  { %v846_v48 = vadd.f32 %v845_v34, %v757_v47  ;;  %v11641_v47 = vmov 1  }
 0x128   :  { %v6941_v1 = vpop.f32.mrf.mxu1  ;;  %5662 = vset.pattern.permute.xlu1 %v11641_v47  ;;  %5663 = vset.pattern.permute.xlu2 %v11641_v47 }
 0x129   :  { %5678 = vtanh.f32 %v846_v48  ;;  %v6946_v3 = vpop.f32.mrf.mxu2  ;;  %2420 = vperm.xlu1 %5662, %v6664_v41   ;;  %2472 = vperm.xlu2 %5663, %v6820_v63  }
 0x12a   :  { %v6944_v57 = vpop.f32.mrf.mxu0  ;;  %5680 = vtanh.f32 %v843_v61  ;;  %3120 = vperm.xlu0 %5669, %v11666_v16  }
 0x12b   :  { %5682 = vtanh.f32 %v840_v58  ;;  %v733_v58 = vadd.f32 %v6875_v51, %v644_v53  ;;  %v635_v51 = vadd.f32 %v6863_v36, %v435_v18  ;;  %v727_v36 = vadd.f32 %v6861_v33, %v638_v31  ;;  %v11647_v33 = vld [vmem:[#allocation24_spill] sm:$0xff]  ;;  %v420_v31 = vpop.permute.xlu2 %419 }
 0x12c   :  { %5684 = vtanh.f32 %v837_v5  ;;  %v515_v37 = vpop.permute.xlu1 %514 }
 0x12d   :  { %5686 = vtanh.f32 %v834_v26  ;;  %v822_v40 = vadd.f32 %v6886_v15, %v733_v58  ;;  %v724_v32 = vadd.f32 %v6854_v25, %v635_v51  ;;  %v721_v15 = vadd.f32 %v11647_v33, %v632_v27  ;;  %v11664_v26 = vld [vmem:[#allocation10_spill] sm:$0xff]  ;;  %v415_v51 = vpop.permute.xlu0 %414 }
 0x12e   :  { %5688 = vtanh.f32 %v831_v23  ;;  %v816_v46 = vadd.f32 %v11648_v42, %v727_v36  ;;  %v11668_v36 = vld [vmem:[#allocation8_spill] sm:$0xff] }
 0x12f   :  { %v6955_v12 = vpop.eup %5678  ;;  %5690 = vtanh.f32 %v828_v54  ;;  %v813_v13 = vadd.f32 %v11651_v4, %v724_v32  ;;  %v810_v35 = vadd.f32 %v11653_v22, %v721_v15  ;;  %v11667_v54 = vld [vmem:[#allocation13_spill] sm:$0xff] }
 0x130   :  { %11639 = vst [vmem:[#allocation31_spill] sm:$0xff] %v6955_v12  ;;  %911 = vmatpush.msra.mxu3 %v6955_v12  ;;  %1967 = vmatpush.msrb.mxu2 %v6955_v12  ;;  %v6962_v55 = vpop.eup %5680  ;;  %v6967_v38 = vpop.f32.mrf.mxu1  ;;  %5692 = vtanh.f32 %v825_v9 }
 0x131   :  { %11640 = vst [vmem:[#allocation32_spill] sm:$0xff] %v6962_v55  ;;  %v6975_v61 = vpop.f32.mrf.mxu2  ;;  %v6977_v44 = vpop.eup %5682  ;;  %5694 = vtanh.f32 %v822_v40  ;;  %5664 = vset.pattern.permute.xlu1 %v11637_v0  ;;  %2416 = vperm.xlu2 %5663, %v11655_v30  }
 0x132   :  { %v6971_v59 = vpop.f32.mrf.mxu0  ;;  %912 = vmatpush.msra.mxu3 %v6962_v55  ;;  %1968 = vmatpush.msrb.mxu2 %v6962_v55  ;;  %11642 = vst [vmem:[#allocation33_spill] sm:$0xff] %v6977_v44  ;;  %v6986_v20 = vpop.eup %5684  ;;  %5696 = vtanh.f32 %v819_v39 }
 0x133   :  { %11643 = vst [vmem:[#allocation34_spill] sm:$0xff] %v6986_v20  ;;  %v6994_v24 = vpop.eup %5686  ;;  %5698 = vtanh.f32 %v816_v46  ;;  %3196 = vperm.xlu1 %5664, %v11654_v19   ;;  %v525_v17 = vpop.permute.xlu2 %524 }
 0x134   :  { %913 = vmatpush.msra.mxu3 %v6977_v44  ;;  %1969 = vmatpush.msrb.mxu2 %v6977_v44  ;;  %11644 = vst [vmem:[#allocation35_spill] sm:$0xff] %v6994_v24  ;;  %v7001_v28 = vpop.eup %5688  ;;  %5700 = vtanh.f32 %v813_v13  ;;  %v500_v6 = vpop.permute.xlu1 %499 }
 0x135   :  { %11646 = vst [vmem:[#allocation29_spill] sm:$0xff] %v7001_v28  ;;  %v7014_v52 = vpop.eup %5690  ;;  %5702 = vtanh.f32 %v810_v35  ;;  %v520_v40 = vpop.permute.xlu0 %519 }
 0x136   :  { %914 = vmatpush.msra.mxu3 %v6986_v20  ;;  %1970 = vmatpush.msrb.mxu2 %v6986_v20  ;;  %11649 = vst [vmem:[#allocation24_spill] sm:$0xff] %v7014_v52  ;;  %v7021_v41 = vpop.eup %5692  ;;  %5704 = vtanh.f32 %v807_v11 }
 0x137   :  { %11652 = vst [vmem:[#allocation28_spill] sm:$0xff] %v7021_v41  ;;  %v7028_v34 = vpop.eup %5694 }
 0x138   :  { %915 = vmatpush.msra.mxu3 %v6994_v24  ;;  %1971 = vmatpush.msrb.mxu2 %v6994_v24  ;;  %v7005_v50 = vpop.f32.mrf.mxu1  ;;  %11656 = vst [vmem:[#allocation21_spill] sm:$0xff] %v7028_v34  ;;  %v7033_v48 = vpop.eup %5696 }
 0x139   :  { %v7012_v25 = vpop.f32.mrf.mxu2  ;;  %11658 = vst [vmem:[#allocation27_spill] sm:$0xff] %v7033_v48  ;;  %v7040_v56 = vpop.eup %5698  ;;  %5666 = vset.pattern.permute.xlu2 %v11637_v0 }
 0x13a   :  { %v7008_v21 = vpop.f32.mrf.mxu0  ;;  %916 = vmatpush.msra.mxu3 %v7001_v28  ;;  %1972 = vmatpush.msrb.mxu2 %v7001_v28  ;;  %11660 = vst [vmem:[#allocation26_spill] sm:$0xff] %v7040_v56  ;;  %v7044_v5 = vpop.eup %5700 }
 0x13b   :  { %11661 = vst [vmem:[#allocation16_spill] sm:$0xff] %v7044_v5  ;;  %5665 = vset.pattern.permute.xlu1 %v11641_v47  ;;  %v7050_v53 = vpop.eup %5702  ;;  %3140 = vperm.xlu2 %5666, %v11664_v26   ;;  %v510_v39 = vpop.permute.xlu2 %509 }
 0x13c   :  { %917 = vmatpush.msra.mxu3 %v7014_v52  ;;  %1973 = vmatpush.msrb.mxu2 %v7014_v52  ;;  %11662 = vst [vmem:[#allocation9_spill] sm:$0xff] %v7050_v53  ;;  %v7056_v14 = vpop.eup %5704 }
 0x13d   :  { %2468 = vperm.xlu1 %5665, %v11663_v8   ;;  %11665 = vst [vmem:[#allocation25_spill] sm:$0xff] %v7056_v14  ;;  %v505_v4 = vpop.permute.xlu0 %504 }
 0x13e   :  { %918 = vmatpush.msra.mxu3 %v7021_v41  ;;  %1974 = vmatpush.msrb.mxu2 %v7021_v41  ;;  %v677_v11 = vadd.f32 %v7008_v21, %v505_v4 }
 0x140   :  { %919 = vmatpush.msra.mxu3 %v7028_v34  ;;  %1975 = vmatpush.msrb.mxu2 %v7028_v34  ;;  %v771_v45 = vpop.f32.mrf.mxu1 }
 0x141   :  { %v7038_v43 = vpop.f32.mrf.mxu2 }
 0x142   :  { %v679_v10 = vpop.f32.mrf.mxu0  ;;  %920 = vmatpush.msra.mxu3 %v7033_v48  ;;  %1976 = vmatpush.msrb.mxu2 %v7033_v48 }
 0x143   :  { %5667 = vset.pattern.permute.xlu2 %v11641_v47  ;;  %v680_v22 = vadd.f32 %v679_v10, %v510_v39 }
 0x144   :  { %921 = vmatpush.msra.mxu3 %v7040_v56  ;;  %1977 = vmatpush.msrb.mxu2 %v7040_v56 }
 0x145   :  { %2412 = vperm.xlu1 %5665, %v11667_v54   ;;  %2464 = vperm.xlu2 %5667, %v11659_v62  }
 0x146   :  { %922 = vmatpush.msra.mxu3 %v7044_v5  ;;  %1978 = vmatpush.msrb.mxu2 %v7044_v5 }
 0x148   :  { %923 = vmatpush.msra.mxu3 %v7050_v53  ;;  %1979 = vmatpush.msrb.mxu2 %v7050_v53  ;;  %v774_v58 = vpop.f32.mrf.mxu1 }
 0x149   :  { %v860_v18 = vpop.f32.mrf.mxu2 }
 0x14a   :  { %v682_v23 = vpop.f32.mrf.mxu0  ;;  %924 = vmatpush.msra.mxu3 %v7056_v14  ;;  %1980 = vmatpush.msrb.mxu2 %v7056_v14 }
 0x14b   :  { %v683_v2 = vadd.f32 %v682_v23, %v515_v37  ;;  %v769_v23 = vadd.f32 %v7005_v50, %v680_v22  ;;  %v11670_v50 = vld [vmem:[#allocation18_spill] sm:$0xff] }
 0x14c   :  { %v386_v22 = vld [vmem:[%s11206_s4 + $0x10] sm:$0xf] }
 0x14d   :  { %5668 = vset.pattern.permute.xlu1 %v11637_v0  ;;  %2408 = vperm.xlu2 %5667, %v11668_v36   ;;  %v772_v62 = vadd.f32 %v771_v45, %v683_v2  ;;  %v11683_v2 = vld [vmem:[#allocation11_spill] sm:$0xff] }
 0x14e   :  { %3188 = vperm.xlu1 %5668, %v6820_v63  }
 0x14f   :  { %v861_v21 = vadd.f32 %v860_v18, %v772_v62  ;;  %v11673_v18 = vld [vmem:[#allocation22_spill] sm:$0xff]  ;;  %v175_v62 = vld [vmem:[%s11204_s2 + $0x20] sm:$0xff] }
 0x150   :  { %v777_v27 = vpop.f32.mrf.mxu1 }
 0x151   :  { %v863_v49 = vpop.f32.mrf.mxu2 }
 0x152   :  { %v685_v9 = vpop.f32.mrf.mxu0 }
 0x153   :  { %v686_v15 = vadd.f32 %v685_v9, %v520_v40  ;;  %v495_v9 = vpop.permute.xlu2 %494 }
 0x154   :  { %v671_v45 = vadd.f32 %v6944_v57, %v495_v9  ;;  %v626_v57 = vadd.f32 %v11673_v18, %v420_v31  ;;  %v181_v9 = vld [vmem:[%s11204_s2 + $0x50] sm:$0xff]  ;;  %v186_v18 = vld [vmem:[%s11204_s2 + $0x78] sm:$0xff] }
 0x155   :  { %5670 = vset.pattern.permute.xlu2 %v11637_v0  ;;  %v775_v35 = vadd.f32 %v774_v58, %v686_v15  ;;  %v766_v58 = vadd.f32 %v6967_v38, %v677_v11  ;;  %v173_v11 = vld [vmem:[%s11204_s2 + $0x10] sm:$0xff] }
 0x156   :  { %3132 = vperm.xlu1 %5668, %v11655_v30   ;;  %3184 = vperm.xlu2 %5670, %v11663_v8   ;;  %v674_v8 = vadd.f32 %v6971_v59, %v500_v6  ;;  %v387_v6 = vld [vmem:[%s11206_s4 + $0x18] sm:$0xf] }
 0x158   :  { %v780_v46 = vpop.f32.mrf.mxu1 }
 0x159   :  { %v866_v32 = vpop.f32.mrf.mxu2 }
 0x15a   :  { %v688_v29 = vpop.f32.mrf.mxu0 }
 0x15b   :  { %v689_v33 = vadd.f32 %v688_v29, %v525_v17  ;;  %v864_v17 = vadd.f32 %v863_v49, %v775_v35  ;;  %v623_v49 = vadd.f32 %v11670_v50, %v415_v51  ;;  %v11674_v29 = vld [vmem:[#allocation14_spill] sm:$0xff]  ;;  %v6000_v35 = vld [vmem:[%s11207_s5] sm:$0xff] }
 0x15d   :  { %v778_v60 = vadd.f32 %v777_v27, %v689_v33  ;;  %v858_v27 = vadd.f32 %v7038_v43, %v769_v23  ;;  %v11678_v33 = vld [vmem:[#allocation23_spill] sm:$0xff]  ;;  %v185_v23 = vld [vmem:[%s11204_s2 + $0x70] sm:$0xff] }
 0x15e   :  { %5671 = vset.pattern.permute.xlu1 %v11641_v47  ;;  %3128 = vperm.xlu2 %5670, %v11667_v54   ;;  %v11671_v54 = vld [vmem:[#allocation30_spill] sm:$0xff] }
 0x15f   :  { %v867_v30 = vadd.f32 %v866_v32, %v778_v60  ;;  %2404 = vperm.xlu1 %5671, %v11666_v16   ;;  %v855_v16 = vadd.f32 %v7012_v25, %v766_v58  ;;  %v760_v40 = vadd.f32 %v11671_v54, %v671_v45  ;;  %v174_v58 = vld [vmem:[%s11204_s2 + $0x18] sm:$0xff]  ;;  %v184_v54 = vld [vmem:[%s11204_s2 + $0x68] sm:$0xff] }
 0x161   :  { %v869_v13 = vpop.f32.mrf.mxu2  ;;  %v849_v37 = vadd.f32 %v6946_v3, %v760_v40  ;;  %v11681_v3 = vld [vmem:[#allocation20_spill] sm:$0xff] }
 0x162   :  { %v691_v42 = vpop.f32.mrf.mxu0 }
 0x163   :  { %v692_v63 = vadd.f32 %v691_v42, %v530_v7  ;;  %v763_v7 = vadd.f32 %v6941_v1, %v674_v8  ;;  %v183_v8 = vld [vmem:[%s11204_s2 + $0x60] sm:$0xff] }
 0x165   :  { %v781_v19 = vadd.f32 %v780_v46, %v692_v63  ;;  %v852_v1 = vadd.f32 %v6975_v61, %v763_v7  ;;  %v11677_v61 = vld [vmem:[#allocation19_spill] sm:$0xff] }
 0x166   :  { %3124 = vperm.xlu2 %5670, %v11668_v36   ;;  %v178_v7 = vld [vmem:[%s11204_s2 + $0x38] sm:$0xff] }
 0x167   :  { %v870_v26 = vadd.f32 %v869_v13, %v781_v19  ;;  %2400 = vperm.xlu1 %5671, %v11674_v29   ;;  %v6456_v13 = vmov 3   ;;  %v385_v19 = vld [vmem:[%s11206_s4 + $0x8] sm:$0xff] }
 0x168   :  { %5675 = vset.pattern.permute.xlu0 %v6456_v13 }
 0x169   :  { %5706 = vtanh.f32 %v870_v26  ;;  %897 = vperm.xlu0 %5675, %v6000_v35   ;;  %v179_v26 = vld [vmem:[%s11204_s2 + $0x40] sm:$0xff] }
 0x16a   :  { %v711_v10 = vpop.f32.mrf.mxu0  ;;  %5708 = vtanh.f32 %v867_v30  ;;  %v177_v30 = vld [vmem:[%s11204_s2 + $0x30] sm:$0xff] }
 0x16b   :  { %5710 = vtanh.f32 %v864_v17  ;;  %v712_v43 = vadd.f32 %v711_v10, %v623_v49  ;;  %v187_v17 = vld [vmem:[%s11204_s2 + $0x80] sm:$0x3]  ;;  %v172_v10 = vld [vmem:[%s11204_s2 + $0x8] sm:$0xff]  ;;  %v182_v49 = vld [vmem:[%s11204_s2 + $0x58] sm:$0xff] }
 0x16c   :  { %5712 = vtanh.f32 %v861_v21  ;;  %v176_v21 = vld [vmem:[%s11204_s2 + $0x28] sm:$0xff] }
 0x16d   :  { %5714 = vtanh.f32 %v858_v27  ;;  %v801_v39 = vadd.f32 %v11677_v61, %v712_v43  ;;  %v180_v27 = vld [vmem:[%s11204_s2 + $0x48] sm:$0xff] }
 0x16e   :  { %5716 = vtanh.f32 %v855_v16  ;;  %5673 = vset.pattern.permute.xlu2 %v11641_v47  ;;  %v384_v47 = vld [vmem:[%s11206_s4] sm:$0xff] }
 0x16f   :  { %v7080_v59 = vpop.eup %5706  ;;  %5718 = vtanh.f32 %v852_v1  ;;  %5672 = vset.pattern.permute.xlu1 %v11637_v0  ;;  %2396 = vperm.xlu2 %5673, %v11683_v2   ;;  %v188_v1 = vld [vmem:[%s11204_s2 + $0x88] sm:$0x3] }
 0x170   :  { %11669 = vst [vmem:[#allocation15_spill] sm:$0xff] %v7080_v59  ;;  %2064 = vmatpush.msra.mxu0 %v7080_v59  ;;  %v7086_v38 = vpop.eup %5708  ;;  %3176 = vperm.xlu1 %5672, %v11681_v3  }
 0x171   :  { %11672 = vst [vmem:[#allocation17_spill] sm:$0xff] %v7086_v38  ;;  %v7093_v25 = vpop.eup %5710  ;;  %5677 = vset.pattern.permute.xlu0 %v11637_v0 }
 0x172   :  { %v714_v51 = vpop.f32.mrf.mxu0  ;;  %2065 = vmatpush.msra.mxu0 %v7086_v38  ;;  %11675 = vst [vmem:[#allocation10_spill] sm:$0xff] %v7093_v25  ;;  %v7097_v31 = vpop.eup %5712 }
 0x173   :  { %v715_v32 = vadd.f32 %v714_v51, %v626_v57  ;;  %11676 = vst [vmem:[#allocation12_spill] sm:$0xff] %v7097_v31  ;;  %v7102_v36 = vpop.eup %5714 }
 0x174   :  { %2066 = vmatpush.msra.mxu0 %v7093_v25  ;;  %11679 = vst [vmem:[#allocation13_spill] sm:$0xff] %v7102_v36  ;;  %v7105_v42 = vpop.eup %5716 }
 0x175   :  { %v804_v15 = vadd.f32 %v11678_v33, %v715_v32  ;;  %11680 = vst [vmem:[#allocation8_spill] sm:$0xff] %v7105_v42  ;;  %v7111_v46 = vpop.eup %5718 }
 0x176   :  { %2067 = vmatpush.msra.mxu0 %v7097_v31  ;;  %11682 = vst [vmem:[#allocation18_spill] sm:$0xff] %v7111_v46 }
 0x177   :  { %5720 = vtanh.f32 %v804_v15  ;;  %5674 = vset.pattern.permute.xlu2 %v11637_v0  ;;  %v171_v0 = vld [vmem:[%s11204_s2] sm:$0xff] }
 0x178   :  { %5722 = vtanh.f32 %v849_v37  ;;  %2068 = vmatpush.msra.mxu0 %v7102_v36  ;;  %3116 = vperm.xlu1 %5672, %v11674_v29  }
 0x179   :  { %5724 = vtanh.f32 %v801_v39  ;;  %3112 = vperm.xlu2 %5674, %v6000_v35  }
 0x17a   :  { %2069 = vmatpush.msra.mxu0 %v7105_v42 }
 0x17c   :  { %2070 = vmatpush.msra.mxu0 %v7111_v46 }
 0x17d   :  { %v7115_v60 = vpop.eup %5720 }
 0x17e   :  { %11684 = vst [vmem:[#allocation30_spill] sm:$0xff] %v7115_v60  ;;  %v7117_v63 = vpop.eup %5722  ;;  %925 = vmatpush.msra.mxu3 %v7115_v60  ;;  %1981 = vmatpush.msrb.mxu2 %v7115_v60 }
 0x17f   :  { %11685 = vst [vmem:[#allocation22_spill] sm:$0xff] %v7117_v63  ;;  %v7124_v4 = vpop.eup %5724  ;;  %2071 = vmatpush.msra.mxu0 %v7117_v63 }
 0x180   :  { %11686 = vst [vmem:[#allocation14_spill] sm:$0xff] %v7124_v4  ;;  %926 = vmatpush.msra.mxu3 %v7124_v4  ;;  %1982 = vmatpush.msrb.mxu2 %v7124_v4 }
 0x181   :  { %2780 = vmatpush.msrb.mxu0 %v7080_v59  ;;  %927 = vmatmul.f32.vlgmr.msra.gmra.mxu3 %v384_v47 }
 0x182   :  { %942 = vmatpush.msrb.mxu3 %v7080_v59  ;;  %2683 = vmatpush.msra.mxu2 %v6955_v12 }
 0x183   :  { %2781 = vmatpush.msrb.mxu0 %v7086_v38  ;;  %5676 = vset.pattern.permute.xlu1 %v6456_v13 }
 0x184   :  { %943 = vmatpush.msrb.mxu3 %v7086_v38  ;;  %2684 = vmatpush.msra.mxu2 %v6962_v55 }
 0x185   :  { %2782 = vmatpush.msrb.mxu0 %v7093_v25  ;;  %901 = vperm.xlu1 %5676, %v11674_v29  }
 0x186   :  { %944 = vmatpush.msrb.mxu3 %v7093_v25  ;;  %2685 = vmatpush.msra.mxu2 %v6977_v44 }
 0x187   :  { %2783 = vmatpush.msrb.mxu0 %v7097_v31 }
 0x188   :  { %945 = vmatpush.msrb.mxu3 %v7097_v31  ;;  %2686 = vmatpush.msra.mxu2 %v6986_v20 }
 0x189   :  { %2784 = vmatpush.msrb.mxu0 %v7102_v36  ;;  %930 = vmatmul.f32.gmra.mxu3 %v386_v22 }
 0x18a   :  { %946 = vmatpush.msrb.mxu3 %v7102_v36  ;;  %2687 = vmatpush.msra.mxu2 %v6994_v24 }
 0x18b   :  { %2785 = vmatpush.msrb.mxu0 %v7105_v42 }
 0x18c   :  { %947 = vmatpush.msrb.mxu3 %v7105_v42  ;;  %2688 = vmatpush.msra.mxu2 %v7001_v28 }
 0x18d   :  { %2786 = vmatpush.msrb.mxu0 %v7111_v46 }
 0x18e   :  { %948 = vmatpush.msrb.mxu3 %v7111_v46  ;;  %2689 = vmatpush.msra.mxu2 %v7014_v52 }
 0x18f   :  { %2787 = vmatpush.msrb.mxu0 %v7117_v63 }
 0x190   :  { %949 = vmatpush.msrb.mxu3 %v7117_v63  ;;  %2690 = vmatpush.msra.mxu2 %v7021_v41 }
 0x191   :  { %5400 = vmatmul.msk.f32.vlgmr.msrb.gmra.mxu3 %vm904_vm1, %v385_v19 }
 0x192   :  { %984 = vmatpush.msra.mxu3 %v6955_v12  ;;  %2691 = vmatpush.msra.mxu2 %v7028_v34 }
 0x194   :  { %985 = vmatpush.msra.mxu3 %v6962_v55  ;;  %2692 = vmatpush.msra.mxu2 %v7033_v48 }
 0x196   :  { %986 = vmatpush.msra.mxu3 %v6977_v44  ;;  %2693 = vmatpush.msra.mxu2 %v7040_v56 }
 0x198   :  { %987 = vmatpush.msra.mxu3 %v6986_v20  ;;  %2694 = vmatpush.msra.mxu2 %v7044_v5 }
 0x199   :  { %5401 = vmatmul.msk.f32.gmra.mxu3 %vm904_vm1, %v387_v6 }
 0x19a   :  { %988 = vmatpush.msra.mxu3 %v6994_v24  ;;  %2695 = vmatpush.msra.mxu2 %v7050_v53 }
 0x19c   :  { %989 = vmatpush.msra.mxu3 %v7001_v28  ;;  %2696 = vmatpush.msra.mxu2 %v7056_v14 }
 0x19e   :  { %990 = vmatpush.msra.mxu3 %v7014_v52  ;;  %2697 = vmatpush.msra.mxu2 %v7115_v60 }
 0x1a0   :  { %991 = vmatpush.msra.mxu3 %v7021_v41  ;;  %2698 = vmatpush.msra.mxu2 %v7124_v4 }
 0x1a2   :  { %992 = vmatpush.msra.mxu3 %v7028_v34 }
 0x1a4   :  { %993 = vmatpush.msra.mxu3 %v7033_v48 }
 0x1a6   :  { %994 = vmatpush.msra.mxu3 %v7040_v56 }
 0x1a8   :  { %995 = vmatpush.msra.mxu3 %v7044_v5 }
 0x1aa   :  { %996 = vmatpush.msra.mxu3 %v7050_v53 }
 0x1ac   :  { %997 = vmatpush.msra.mxu3 %v7056_v14 }
 0x1ae   :  { %998 = vmatpush.msra.mxu3 %v7115_v60 }
 0x1b0   :  { %999 = vmatpush.msra.mxu3 %v7124_v4 }
 0x1b1   :  { %1000 = vmatmul.f32.vlgmr.msra.gmra.mxu3 %v171_v0 }
 0x1b2   :  { %1036 = vmatpush.msrb.mxu3 %v7080_v59  ;;  %v7419_v59 = vld [vmem:[%s11202_s0 + $0x158] sm:$0xff] }
 0x1b3   :  { %11707 = vst [vmem:[#allocation52_spill] sm:$0xff] %v7419_v59 }
 0x1b4   :  { %1037 = vmatpush.msrb.mxu3 %v7086_v38 }
 0x1b6   :  { %1038 = vmatpush.msrb.mxu3 %v7093_v25 }
 0x1b8   :  { %1039 = vmatpush.msrb.mxu3 %v7097_v31 }
 0x1b9   :  { %1003 = vmatmul.f32.gmra.mxu3 %v173_v11 }
 0x1ba   :  { %1040 = vmatpush.msrb.mxu3 %v7102_v36  ;;  %v7412_v36 = vld [vmem:[%s11202_s0 + $0x138] sm:$0xff] }
 0x1bb   :  { %11706 = vst [vmem:[#allocation51_spill] sm:$0xff] %v7412_v36 }
 0x1bc   :  { %1041 = vmatpush.msrb.mxu3 %v7105_v42 }
 0x1be   :  { %1042 = vmatpush.msrb.mxu3 %v7111_v46 }
 0x1c0   :  { %1043 = vmatpush.msrb.mxu3 %v7117_v63  ;;  %v7397_v63 = vld [vmem:[%s11202_s0 + $0xf8] sm:$0xff] }
 0x1c1   :  { %1006 = vmatmul.f32.gmra.mxu3 %v175_v62  ;;  %11704 = vst [vmem:[#allocation49_spill] sm:$0xff] %v7397_v63 }
 0x1c9   :  { %1009 = vmatmul.f32.gmra.mxu3 %v177_v30 }
 0x1d1   :  { %1012 = vmatmul.f32.gmra.mxu3 %v179_v26 }
 0x1d9   :  { %1015 = vmatmul.f32.gmra.mxu3 %v181_v9 }
 0x1e1   :  { %1018 = vmatmul.f32.gmra.mxu3 %v183_v8 }
 0x1e9   :  { %1021 = vmatmul.f32.gmra.mxu3 %v185_v23 }
 0x1f1   :  { %1024 = vmatmul.f32.gmra.mxu3 %v187_v17 }
 0x1f9   :  { %5402 = vmatmul.msk.f32.vlgmr.msrb.gmra.mxu3 %vm904_vm1, %v172_v10 }
 0x201   :  { %5403 = vmatmul.msk.f32.gmra.mxu3 %vm904_vm1, %v174_v58 }
 0x204   :  { %v7242_v45 = vpop.f32.mrf.mxu3 }
 0x205   :  { %11687 = vst [vmem:[#allocation19_spill] sm:$0xff] %v7242_v45 }
 0x209   :  { %5404 = vmatmul.msk.f32.gmra.mxu3 %vm904_vm1, %v176_v21 }
 0x20c   :  { %v7251_v50 = vpop.f32.mrf.mxu3 }
 0x20d   :  { %11688 = vst [vmem:[#allocation23_spill] sm:$0xff] %v7251_v50 }
 0x211   :  { %5405 = vmatmul.msk.f32.gmra.mxu3 %vm904_vm1, %v178_v7 }
 0x214   :  { %v7258_v16 = vpop.f32.mrf.mxu3 }
 0x215   :  { %11689 = vst [vmem:[#allocation20_spill] sm:$0xff] %v7258_v16  ;;  %v7390_v16 = vld [vmem:[%s11202_s0 + $0xd8] sm:$0xff] }
 0x216   :  { %11703 = vst [vmem:[#allocation48_spill] sm:$0xff] %v7390_v16 }
 0x219   :  { %5406 = vmatmul.msk.f32.gmra.mxu3 %vm904_vm1, %v180_v27 }
 0x21c   :  { %v7264_v40 = vpop.f32.mrf.mxu3 }
 0x21d   :  { %11690 = vst [vmem:[#allocation11_spill] sm:$0xff] %v7264_v40 }
 0x221   :  { %5407 = vmatmul.msk.f32.gmra.mxu3 %vm904_vm1, %v182_v49 }
 0x229   :  { %5408 = vmatmul.msk.f32.gmra.mxu3 %vm904_vm1, %v184_v54 }
 0x231   :  { %5409 = vmatmul.msk.f32.gmra.mxu3 %vm904_vm1, %v186_v18 }
 0x234   :  { %v1001_v57 = vpop.f32.mrf.mxu3 }
 0x239   :  { %5410 = vmatmul.msk.f32.gmra.mxu3 %vm904_vm1, %v188_v1 }
 0x23c   :  { %v1004_v43 = vpop.f32.mrf.mxu3 }
 0x244   :  { %v1007_v29 = vpop.f32.mrf.mxu3 }
 0x24c   :  { %v1010_v51 = vpop.f32.mrf.mxu3 }
 0x254   :  { %v1013_v32 = vpop.f32.mrf.mxu3 }
 0x25c   :  { %v1016_v37 = vpop.f32.mrf.mxu3 }
 0x264   :  { %v1019_v61 = vpop.f32.mrf.mxu3 }
 0x26c   :  { %v1022_v39 = vpop.f32.mrf.mxu3 }
 0x274   :  { %v1025_v33 = vpop.f32.mrf.mxu3 }
 0x27c   :  { %v1045_v15 = vpop.f32.mrf.mxu3 }
 0x27d   :  { %v1046_v11 = vadd.f32 %v1045_v15, %v1001_v57 }
 0x27f   :  { %v1073_v10 = vsel %vm1072_vm2, %v1046_v11, -inf }
 0x284   :  { %v1048_v3 = vpop.f32.mrf.mxu3 }
 0x285   :  { %v1049_v9 = vadd.f32 %v1048_v3, %v1004_v43 }
 0x287   :  { %v1074_v57 = vsel %vm1072_vm2, %v1049_v9, -inf }
 0x28c   :  { %v1051_v2 = vpop.f32.mrf.mxu3 }
 0x28d   :  { %v1052_v8 = vadd.f32 %v1051_v2, %v1007_v29 }
 0x28f   :  { %v1075_v1 = vsel %vm1072_vm2, %v1052_v8, -inf }
 0x294   :  { %v1054_v47 = vpop.f32.mrf.mxu3 }
 0x295   :  { %v1055_v62 = vadd.f32 %v1054_v47, %v1010_v51 }
 0x297   :  { %v1076_v21 = vsel %vm1072_vm2, %v1055_v62, -inf }
 0x29c   :  { %v1057_v13 = vpop.f32.mrf.mxu3 }
 0x29d   :  { %v1058_v6 = vadd.f32 %v1057_v13, %v1013_v32 }
 0x29f   :  { %v1077_v23 = vsel %vm1072_vm2, %v1058_v6, -inf }
 0x2a0   :  { %v1078_v54 = vmax.f32 %v1073_v10, %v1077_v23 }
 0x2a4   :  { %v1060_v22 = vpop.f32.mrf.mxu3 }
 0x2a5   :  { %v1061_v30 = vadd.f32 %v1060_v22, %v1016_v37 }
 0x2a7   :  { %v1079_v7 = vsel %vm1072_vm2, %v1061_v30, -inf }
 0x2a8   :  { %v1080_v29 = vmax.f32 %v1074_v57, %v1079_v7 }
 0x2ac   :  { %v1063_v35 = vpop.f32.mrf.mxu3 }
 0x2ad   :  { %v1064_v26 = vadd.f32 %v1063_v35, %v1019_v61 }
 0x2af   :  { %v1081_v27 = vsel %vm1072_vm2, %v1064_v26, -inf }
 0x2b0   :  { %v1082_v51 = vmax.f32 %v1075_v1, %v1081_v27 }
 0x2b4   :  { %v1066_v19 = vpop.f32.mrf.mxu3 }
 0x2b5   :  { %v1067_v0 = vadd.f32 %v1066_v19, %v1022_v39 }
 0x2b7   :  { %v1083_v17 = vsel %vm1072_vm2, %v1067_v0, -inf }
 0x2b8   :  { %v1084_v18 = vmax.f32 %v1076_v21, %v1083_v17 }
 0x2ba   :  { %v1089_v37 = vmax.f32 %v1082_v51, %v1084_v18 }
 0x2bc   :  { %v1069_v58 = vpop.f32.mrf.mxu3 }
 0x2bd   :  { %v1070_v49 = vadd.f32 %v1069_v58, %v1025_v33 }
 0x2bf   :  { %v1086_v43 = vsel %vm1085_vm3, %v1070_v49, -inf }
 0x2c0   :  { %v1087_v32 = vmax.f32 %v1078_v54, %v1086_v43 }
 0x2c2   :  { %v1088_v61 = vmax.f32 %v1087_v32, %v1080_v29 }
 0x2c4   :  { %v1090_v39 = vmax.f32 %v1088_v61, %v1089_v37  ;;  %v7309_v61 = vld [vmem:[%s11202_s0 + $0x18] sm:$0xff] }
 0x2c5   :  { %11694 = vst [vmem:[#allocation39_spill] sm:$0xff] %v7309_v61 }
 0x2c6   :  { %v1091_v15 = vrot.slane %v1090_v39, 4 }
 0x2c8   :  { %v1092_v3 = vmax.f32 %v1090_v39, %v1091_v15  ;;  %v7316_v15 = vld [vmem:[%s11202_s0 + $0x38] sm:$0xff] }
 0x2c9   :  { %11695 = vst [vmem:[#allocation40_spill] sm:$0xff] %v7316_v15 }
 0x2ca   :  { %v1093_v2 = vrot.slane %v1092_v3, 2 }
 0x2cc   :  { %v1094_v47 = vmax.f32 %v1092_v3, %v1093_v2 }
 0x2ce   :  { %v1095_v13 = vrot.slane %v1094_v47, 1 }
 0x2d0   :  { %v1096_v33 = vmax.f32 %v1094_v47, %v1095_v13 }
 0x2d2   :  { %v1101_v22 = vsub.f32 %v1058_v6, %v1096_v33  ;;  %v1097_v35 = vsub.f32 %v1046_v11, %v1096_v33  ;;  %v1102_v19 = vsub.f32 %v1061_v30, %v1096_v33  ;;  %v1098_v23 = vsub.f32 %v1049_v9, %v1096_v33 }
 0x2d3   :  { %v1099_v10 = vsub.f32 %v1052_v8, %v1096_v33  ;;  %v1100_v58 = vsub.f32 %v1055_v62, %v1096_v33  ;;  %v1103_v7 = vsub.f32 %v1064_v26, %v1096_v33  ;;  %v1104_v54 = vsub.f32 %v1067_v0, %v1096_v33 }
 0x2d4   :  { %v1114_v17 = vmul.f32 1.442695, %v1101_v22  ;;  %v1106_v21 = vmul.f32 1.442695, %v1097_v35  ;;  %v1116_v27 = vmul.f32 1.442695, %v1102_v19  ;;  %v1105_v1 = vsub.f32 %v1070_v49, %v1096_v33 }
 0x2d5   :  { %v1108_v18 = vmul.f32 1.442695, %v1098_v23  ;;  %v1110_v57 = vmul.f32 1.442695, %v1099_v10  ;;  %v1112_v43 = vmul.f32 1.442695, %v1100_v58 }
 0x2d6   :  { %5726 = vpow2.f32 %v1114_v17  ;;  %v1118_v29 = vmul.f32 1.442695, %v1103_v7  ;;  %v1120_v6 = vmul.f32 1.442695, %v1104_v54  ;;  %v1122_v30 = vmul.f32 1.442695, %v1105_v1 }
 0x2d7   :  { %5728 = vpow2.f32 %v1106_v21  ;;  %v7332_v19 = vld [vmem:[%s11202_s0 + $0x58] sm:$0xff] }
 0x2d8   :  { %5730 = vpow2.f32 %v1116_v27  ;;  %11698 = vst [vmem:[#allocation43_spill] sm:$0xff] %v7332_v19  ;;  %v7344_v21 = vld [vmem:[%s11202_s0 + $0x78] sm:$0xff] }
 0x2d9   :  { %5732 = vpow2.f32 %v1108_v18  ;;  %11699 = vst [vmem:[#allocation44_spill] sm:$0xff] %v7344_v21  ;;  %v7351_v27 = vld [vmem:[%s11202_s0 + $0x98] sm:$0xff] }
 0x2da   :  { %5734 = vpow2.f32 %v1110_v57  ;;  %11700 = vst [vmem:[#allocation45_spill] sm:$0xff] %v7351_v27 }
 0x2db   :  { %5736 = vpow2.f32 %v1112_v43 }
 0x2dc   :  { %v7283_v11 = vpop.eup %5726  ;;  %5738 = vpow2.f32 %v1118_v29 }
 0x2dd   :  { %11691 = vst [vmem:[#allocation36_spill] sm:$0xff] %v7283_v11  ;;  %v7286_v62 = vperm.slane %v7283_v11, 1  ;;  %v7289_v0 = vperm.slane %v7283_v11, 2  ;;  %v1524_v26 = vrot.slane %v7283_v11, 1  ;;  %v7292_v9 = vpop.eup %5728  ;;  %5740 = vpow2.f32 %v1120_v6 }
 0x2de   :  { %11692 = vst [vmem:[#allocation37_spill] sm:$0xff] %v7292_v9  ;;  %v7295_v8 = vperm.slane %v7283_v11, 3  ;;  %v7298_v49 = vperm.slane %v7283_v11, 4  ;;  %v7301_v51 = vperm.slane %v7283_v11, 5  ;;  %v7303_v32 = vpop.eup %5730  ;;  %v11231_v37 = vrot.slane %v7283_v11, 2  ;;  %v7543_v9 = vld [vmem:[%s11202_s0 + $0xd0] sm:$0xff] }
 0x2df   :  { %11693 = vst [vmem:[#allocation38_spill] sm:$0xff] %v7303_v32  ;;  %v1514_v39 = vmul.f32 %v7309_v61, %v7286_v62  ;;  %v1519_v3 = vmul.f32 %v7316_v15, %v7289_v0  ;;  %v1526_v2 = vadd.f32 %v7283_v11, %v1524_v26  ;;  %v7321_v47 = vpop.eup %5732  ;;  %5742 = vpow2.f32 %v1122_v30 }
 0x2e0   :  { %11696 = vst [vmem:[#allocation41_spill] sm:$0xff] %v7321_v47  ;;  %v1546_v13 = vrot.slane %v7283_v11, 3  ;;  %v7325_v33 = vperm.slane %v7283_v11, 6  ;;  %v7327_v22 = vpop.eup %5734  ;;  %v1531_v23 = vmul.f32 %v7332_v19, %v7295_v8  ;;  %v1558_v10 = vrot.slane %v7283_v11, 4 }
 0x2e1   :  { %11697 = vst [vmem:[#allocation42_spill] sm:$0xff] %v7327_v22  ;;  %v1523_v35 = vadd.f32 %v1519_v3, %v1514_v39  ;;  %v1536_v17 = vadd.f32 %v1526_v2, %v11231_v37  ;;  %v7339_v58 = vpop.eup %5736  ;;  %v1541_v7 = vmul.f32 %v7344_v21, %v7298_v49  ;;  %v1553_v54 = vmul.f32 %v7351_v27, %v7301_v51  ;;  %v7372_v39 = vld [vmem:[%s11202_s0 + $0xb8] sm:$0xff] }
 0x2e2   :  { %v7356_v18 = vperm.slane %v7283_v11, 7  ;;  %v7359_v57 = vperm.slane %v7303_v32, 0  ;;  %v7361_v1 = vpop.eup %5738  ;;  %v1570_v6 = vrot.slane %v7283_v11, 5  ;;  %v7365_v30 = vperm.slane %v7303_v32, 1  ;;  %11702 = vst [vmem:[#allocation47_spill] sm:$0xff] %v7372_v39 }
 0x2e3   :  { %11701 = vst [vmem:[#allocation46_spill] sm:$0xff] %v7361_v1  ;;  %v1535_v43 = vadd.f32 %v1531_v23, %v1523_v35  ;;  %v1548_v29 = vadd.f32 %v1546_v13, %v1536_v17  ;;  %v7367_v26 = vpop.eup %5740  ;;  %v1565_v3 = vmul.f32 %v7372_v39, %v7325_v33  ;;  %v7377_v2 = vperm.slane %v7303_v32, 2 }
 0x2e4   :  { %v1617_v13 = vrot.slane %v7303_v32, 1  ;;  %v7381_v35 = vperm.slane %v7303_v32, 3  ;;  %v1582_v37 = vrot.slane %v7283_v11, 6  ;;  %v1595_v40 = vrot.slane %v7303_v32, 7  ;;  %11715 = vst [vmem:[#allocation60_spill] sm:$0xff] %v7543_v9 }
 0x2e5   :  { %v1545_v23 = vadd.f32 %v1541_v7, %v1535_v43  ;;  %v1560_v17 = vadd.f32 %v1558_v10, %v1548_v29  ;;  %v7385_v50 = vpop.eup %5742  ;;  %v1577_v45 = vmul.f32 %v7390_v16, %v7356_v18  ;;  %v1589_v10 = vmul.f32 %v7397_v63, %v7359_v57  ;;  %v7404_v7 = vld [vmem:[%s11202_s0 + $0x118] sm:$0xff] }
 0x2e6   :  { %11705 = vst [vmem:[#allocation50_spill] sm:$0xff] %v7404_v7  ;;  %v1602_v43 = vmul.f32 %v7404_v7, %v7365_v30  ;;  %v1629_v29 = vrot.slane %v7303_v32, 2  ;;  %v1612_v31 = vmul.f32 %v7412_v36, %v7377_v2  ;;  %v1624_v25 = vmul.f32 %v7419_v59, %v7381_v35 }
 0x2e7   :  { %v1557_v46 = vadd.f32 %v1553_v54, %v1545_v23  ;;  %v1572_v42 = vadd.f32 %v1570_v6, %v1560_v17  ;;  %v1652_v38 = vadd.f32 %v7303_v32, %v1617_v13  ;;  %v7425_v54 = vperm.slane %v7361_v1, 7 }
 0x2e8   :  { %v7428_v6 = vperm.slane %v7367_v26, 0  ;;  %v1779_v23 = vrot.slane %v7367_v26, 1  ;;  %v1672_v60 = vrot.slane %v7303_v32, 3  ;;  %v7433_v14 = vperm.slane %v7367_v26, 1 }
 0x2e9   :  { %v1569_v17 = vadd.f32 %v1565_v3, %v1557_v46  ;;  %v1584_v4 = vadd.f32 %v1582_v37, %v1572_v42  ;;  %v1768_v53 = vmul.f32 %v7309_v61, %v7425_v54  ;;  %v1791_v48 = vrot.slane %v7367_v26, 2 }
 0x2ea   :  { %v1773_v5 = vmul.f32 %v7316_v15, %v7428_v6  ;;  %v1781_v56 = vadd.f32 %v7361_v1, %v1779_v23  ;;  %v1685_v46 = vrot.slane %v7361_v1, 4  ;;  %v7443_v42 = vperm.slane %v7367_v26, 2 }
 0x2eb   :  { %v1581_v34 = vadd.f32 %v1577_v45, %v1569_v17  ;;  %v1597_v41 = vadd.f32 %v1595_v40, %v1584_v4  ;;  %v1786_v3 = vmul.f32 %v7332_v19, %v7433_v14  ;;  %v1803_v28 = vrot.slane %v7367_v26, 3 }
 0x2ec   :  { %v1777_v37 = vadd.f32 %v1773_v5, %v1768_v53  ;;  %v1793_v52 = vadd.f32 %v1791_v48, %v1781_v56  ;;  %v1662_v23 = vadd.f32 %v1652_v38, %v1629_v29  ;;  %v7450_v12 = vperm.slane %v7367_v26, 3 }
 0x2ed   :  { %v1593_v24 = vadd.f32 %v1589_v10, %v1581_v34  ;;  %v1607_v20 = vadd.f32 %v7303_v32, %v1597_v41  ;;  %v1798_v45 = vmul.f32 %v7344_v21, %v7443_v42  ;;  %v1815_v5 = vrot.slane %v7367_v26, 4 }
 0x2ee   :  { %v1790_v4 = vadd.f32 %v1786_v3, %v1777_v37  ;;  %v1805_v40 = vadd.f32 %v1803_v28, %v1793_v52  ;;  %v1810_v48 = vmul.f32 %v7351_v27, %v7450_v12  ;;  %v7458_v34 = vperm.slane %v7367_v26, 4  ;;  %v7670_v27 = vld [vmem:[%s11202_s0 + $0x108] sm:$0xff] }
 0x2ef   :  { %v1606_v53 = vadd.f32 %v1602_v43, %v1593_v24  ;;  %v1619_v17 = vadd.f32 %v1617_v13, %v1607_v20  ;;  %v1827_v38 = vrot.slane %v7367_v26, 5  ;;  %v7462_v10 = vperm.slane %v7367_v26, 5  ;;  %11724 = vst [vmem:[#allocation69_spill] sm:$0xff] %v7670_v27 }
 0x2f0   :  { %v1802_v41 = vadd.f32 %v1798_v45, %v1790_v4  ;;  %v1817_v56 = vadd.f32 %v1815_v5, %v1805_v40  ;;  %v1674_v28 = vadd.f32 %v1672_v60, %v1662_v23  ;;  %v1822_v24 = vmul.f32 %v7372_v39, %v7458_v34  ;;  %v7520_v4 = vld [vmem:[%s11202_s0 + $0x70] sm:$0xff] }
 0x2f1   :  { %v1616_v37 = vadd.f32 %v1612_v31, %v1606_v53  ;;  %v1631_v3 = vadd.f32 %v1629_v29, %v1619_v17  ;;  %v1839_v13 = vrot.slane %v7367_v26, 6  ;;  %v7468_v43 = vperm.slane %v7367_v26, 6  ;;  %11712 = vst [vmem:[#allocation57_spill] sm:$0xff] %v7520_v4 }
 0x2f2   :  { %v1814_v20 = vadd.f32 %v1810_v48, %v1802_v41  ;;  %v1829_v52 = vadd.f32 %v1827_v38, %v1817_v56  ;;  %v1834_v45 = vmul.f32 %v7390_v16, %v7462_v10  ;;  %v7474_v31 = vperm.slane %v7367_v26, 7 }
 0x2f3   :  { %5744 = vrcp.f32 %v1631_v3  ;;  %v1851_v23 = vrot.slane %v7367_v26, 7  ;;  %v7478_v40 = vperm.slane %v7385_v50, 0  ;;  %v1628_v5 = vadd.f32 %v1624_v25, %v1616_v37  ;;  %v7492_v3 = vld [vmem:[%s11202_s0 + $0x10] sm:$0xff] }
 0x2f4   :  { %v1826_v60 = vadd.f32 %v1822_v24, %v1814_v20  ;;  %v1841_v29 = vadd.f32 %v1839_v13, %v1829_v52  ;;  %v7480_v53 = vadd.f32 %v1685_v46, %v1674_v28  ;;  %v1846_v17 = vmul.f32 %v7397_v63, %v7468_v43  ;;  %11709 = vst [vmem:[#allocation54_spill] sm:$0xff] %v7492_v3  ;;  %v7503_v24 = vld [vmem:[%s11202_s0 + $0x30] sm:$0xff] }
 0x2f5   :  { %v7485_v48 = vperm.slane %v7385_v50, 1  ;;  %v1858_v38 = vmul.f32 %v7404_v7, %v7474_v31  ;;  %v1513_v25 = vmul.f32 %v7492_v3, %v7286_v62  ;;  %v1868_v46 = vmul.f32 %v7412_v36, %v7478_v40  ;;  %11710 = vst [vmem:[#allocation55_spill] sm:$0xff] %v7503_v24  ;;  %v7550_v36 = vld [vmem:[%s11202_s0 + $0xf0] sm:$0xff]  ;;  %v7600_v7 = vld [vmem:[%s11202_s0 + $0x8] sm:$0xff] }
 0x2f6   :  { %11708 = vst [vmem:[#allocation53_spill] sm:$0xff] %v7480_v53  ;;  %v1838_v41 = vadd.f32 %v1834_v45, %v1826_v60  ;;  %v1853_v56 = vadd.f32 %v1851_v23, %v1841_v29  ;;  %v1874_v37 = vrot.slane %v7385_v50, 1  ;;  %v1886_v28 = vrot.slane %v7385_v50, 2  ;;  %v7513_v60 = vld [vmem:[%s11202_s0 + $0x50] sm:$0xff] }
 0x2f7   :  { %v1518_v20 = vmul.f32 %v7503_v24, %v7289_v0  ;;  %v1881_v45 = vmul.f32 %v7419_v59, %v7485_v48  ;;  %11711 = vst [vmem:[#allocation56_spill] sm:$0xff] %v7513_v60  ;;  %v1530_v50 = vmul.f32 %v7513_v60, %v7295_v8  ;;  %v1576_v47 = vmul.f32 %v7543_v9, %v7356_v18 }
 0x2f8   :  { %v1850_v52 = vadd.f32 %v1846_v17, %v1838_v41  ;;  %v1863_v13 = vadd.f32 %v7367_v26, %v1853_v56  ;;  %v1540_v26 = vmul.f32 %v7520_v4, %v7298_v49  ;;  %v7527_v17 = vld [vmem:[%s11202_s0 + $0x90] sm:$0xff]  ;;  %11716 = vst [vmem:[#allocation61_spill] sm:$0xff] %v7550_v36  ;;  %v1766_v32 = vmul.f32 %v7600_v7, %v7425_v54 }
 0x2f9   :  { %v5745_v29 = vpop.eup %5744  ;;  %v1522_v23 = vadd.f32 %v1518_v20, %v1513_v25  ;;  %11713 = vst [vmem:[#allocation58_spill] sm:$0xff] %v7527_v17  ;;  %v1552_v41 = vmul.f32 %v7527_v17, %v7301_v51  ;;  %v7534_v56 = vld [vmem:[%s11202_s0 + $0xb0] sm:$0xff]  ;;  %v1600_v21 = vmul.f32 %v7670_v27, %v7365_v30 }
 0x2fa   :  { %11714 = vst [vmem:[#allocation59_spill] sm:$0xff] %v7534_v56  ;;  %v1564_v25 = vmul.f32 %v7534_v56, %v7325_v33  ;;  %v7538_v20 = vperm.slane %v5745_v29, 1  ;;  %v1862_v44 = vadd.f32 %v1858_v38, %v1850_v52  ;;  %v1876_v55 = vadd.f32 %v1874_v37, %v1863_v13 }
 0x2fb   :  { %v1534_v59 = vadd.f32 %v1530_v50, %v1522_v23  ;;  %v1588_v29 = vmul.f32 %v7550_v36, %v7359_v57  ;;  %v1767_v38 = vmul.f32 %v7492_v3, %v7425_v54  ;;  %v1772_v37 = vmul.f32 %v7503_v24, %v7428_v6  ;;  %v7564_v50 = vld [vmem:[%s11202_s0 + $0x110] sm:$0xff]  ;;  %11721 = vst [vmem:[#allocation66_spill] sm:$0xff] %v7600_v7 }
 0x2fc   :  { %v7559_v52 = vmul.f32 %v7538_v20, %v1628_v5  ;;  %v1872_v13 = vadd.f32 %v1868_v46, %v1862_v44  ;;  %v1888_v1 = vadd.f32 %v1886_v28, %v1876_v55  ;;  %11718 = vst [vmem:[#allocation63_spill] sm:$0xff] %v7564_v50  ;;  %v1601_v23 = vmul.f32 %v7564_v50, %v7365_v30  ;;  %v7571_v3 = vld [vmem:[%s11202_s0 + $0x130] sm:$0xff] }
 0x2fd   :  { %v1544_v53 = vadd.f32 %v1540_v26, %v1534_v59  ;;  %11719 = vst [vmem:[#allocation64_spill] sm:$0xff] %v7571_v3  ;;  %v1611_v5 = vmul.f32 %v7571_v3, %v7377_v2  ;;  %v1776_v24 = vadd.f32 %v1772_v37, %v1767_v38  ;;  %v1785_v55 = vmul.f32 %v7513_v60, %v7433_v14  ;;  %v7581_v44 = vld [vmem:[%s11202_s0 + $0x150] sm:$0xff] }
 0x2fe   :  { %11717 = vst [vmem:[#allocation62_spill] sm:$0xff] %v7559_v52  ;;  %2217 = vmatpush.msrb.mxu1 %v7559_v52  ;;  %5746 = vrcp.f32 %v1888_v1  ;;  %v7585_v59 = vmul.f32 %v7581_v44, %v7381_v35  ;;  %v1797_v46 = vmul.f32 %v7520_v4, %v7443_v42  ;;  %v1809_v28 = vmul.f32 %v7527_v17, %v7450_v12 }
 0x2ff   :  { %11720 = vst [vmem:[#allocation65_spill] sm:$0xff] %v7581_v44  ;;  %v1885_v26 = vadd.f32 %v1881_v45, %v1872_v13  ;;  %v1556_v38 = vadd.f32 %v1552_v41, %v1544_v53  ;;  %v1789_v37 = vadd.f32 %v1785_v55, %v1776_v24  ;;  %v1821_v1 = vmul.f32 %v7534_v56, %v7458_v34  ;;  %v7607_v53 = vld [vmem:[%s11202_s0 + $0x28] sm:$0xff] }
 0x300   :  { %v1833_v52 = vmul.f32 %v7543_v9, %v7462_v10  ;;  %v1845_v60 = vmul.f32 %v7550_v36, %v7468_v43  ;;  %v1512_v17 = vmul.f32 %v7600_v7, %v7286_v62  ;;  %11722 = vst [vmem:[#allocation67_spill] sm:$0xff] %v7607_v53  ;;  %v1517_v24 = vmul.f32 %v7607_v53, %v7289_v0  ;;  %v7622_v56 = vld [vmem:[%s11202_s0 + $0x48] sm:$0xff] }
 0x301   :  { %v1568_v45 = vadd.f32 %v1564_v25, %v1556_v38  ;;  %v1801_v41 = vadd.f32 %v1797_v46, %v1789_v37  ;;  %v1857_v13 = vmul.f32 %v7564_v50, %v7474_v31  ;;  %v1867_v55 = vmul.f32 %v7571_v3, %v7478_v40  ;;  %11723 = vst [vmem:[#allocation68_spill] sm:$0xff] %v7622_v56  ;;  %v7629_v46 = vld [vmem:[%s11202_s0 + $0x68] sm:$0xff] }
 0x302   :  { %v7617_v36 = vmul.f32 %v7581_v44, %v7485_v48  ;;  %v1521_v9 = vadd.f32 %v1517_v24, %v1512_v17  ;;  %v1529_v25 = vmul.f32 %v7622_v56, %v7295_v8  ;;  %v1539_v38 = vmul.f32 %v7629_v46, %v7298_v49  ;;  %v7636_v17 = vld [vmem:[%s11202_s0 + $0x88] sm:$0xff] }
 0x303   :  { %v1580_v37 = vadd.f32 %v1576_v47, %v1568_v45  ;;  %v1813_v44 = vadd.f32 %v1809_v28, %v1801_v41  ;;  %v1551_v24 = vmul.f32 %v7636_v17, %v7301_v51  ;;  %v7643_v3 = vld [vmem:[%s11202_s0 + $0xa8] sm:$0xff]  ;;  %v1771_v16 = vmul.f32 %v7607_v53, %v7428_v6 }
 0x304   :  { %v1563_v50 = vmul.f32 %v7643_v3, %v7325_v33  ;;  %v5747_v4 = vpop.eup %5746  ;;  %v1533_v11 = vadd.f32 %v1529_v25, %v1521_v9  ;;  %v7650_v47 = vld [vmem:[%s11202_s0 + $0xc8] sm:$0xff]  ;;  %v1796_v15 = vmul.f32 %v7629_v46, %v7443_v42 }
 0x305   :  { %v1575_v28 = vmul.f32 %v7650_v47, %v7356_v18  ;;  %v7657_v45 = vld [vmem:[%s11202_s0 + $0xe8] sm:$0xff]  ;;  %v7663_v9 = vperm.slane %v5747_v4, 7  ;;  %v1592_v25 = vadd.f32 %v1588_v29, %v1580_v37  ;;  %v1825_v63 = vadd.f32 %v1821_v1, %v1813_v44 }
 0x306   :  { %v1587_v41 = vmul.f32 %v7657_v45, %v7359_v57  ;;  %v1543_v39 = vadd.f32 %v1539_v38, %v1533_v11  ;;  %v7677_v7 = vld [vmem:[%s11202_s0 + $0x128] sm:$0xff]  ;;  %v1784_v29 = vmul.f32 %v7622_v56, %v7433_v14  ;;  %v1775_v38 = vadd.f32 %v1771_v16, %v1766_v32 }
 0x307   :  { %v1610_v4 = vmul.f32 %v7677_v7, %v7377_v2  ;;  %v7684_v11 = vmul.f32 %v7663_v9, %v1885_v26  ;;  %v1605_v44 = vadd.f32 %v1601_v23, %v1592_v25  ;;  %v1837_v1 = vadd.f32 %v1833_v52, %v1825_v63  ;;  %v7689_v53 = vld [vmem:[%s11202_s0 + $0x148] sm:$0xff] }
 0x308   :  { %v1555_v37 = vadd.f32 %v1551_v24, %v1543_v39  ;;  %v1622_v19 = vmul.f32 %v7689_v53, %v7381_v35  ;;  %v1808_v56 = vmul.f32 %v7636_v17, %v7450_v12  ;;  %v1788_v16 = vadd.f32 %v1784_v29, %v1775_v38  ;;  %v7707_v24 = vld [vmem:[%s11202_s0] sm:$0xff] }
 0x309   :  { %11725 = vst [vmem:[#allocation70_spill] sm:$0xff] %v7684_v11  ;;  %2314 = vmatpush.msra.mxu3 %v7684_v11  ;;  %v1615_v23 = vadd.f32 %v1611_v5, %v1605_v44  ;;  %v1849_v63 = vadd.f32 %v1845_v60, %v1837_v1  ;;  %v1820_v32 = vmul.f32 %v7643_v3, %v7458_v34 }
 0x30a   :  { %v1567_v39 = vadd.f32 %v1563_v50, %v1555_v37  ;;  %v1832_v52 = vmul.f32 %v7650_v47, %v7462_v10  ;;  %v1844_v26 = vmul.f32 %v7657_v45, %v7468_v43  ;;  %v1511_v5 = vmul.f32 %v7707_v24, %v7286_v62  ;;  %v7715_v50 = vld [vmem:[%s11202_s0 + $0x20] sm:$0xff] }
 0x30b   :  { %v1627_v60 = vadd.f32 %v7585_v59, %v1615_v23  ;;  %v1861_v25 = vadd.f32 %v1857_v13, %v1849_v63  ;;  %v1800_v29 = vadd.f32 %v1796_v15, %v1788_v16  ;;  %v1516_v44 = vmul.f32 %v7715_v50, %v7289_v0  ;;  %v7726_v62 = vld [vmem:[%s11202_s0 + $0x40] sm:$0xff] }
 0x30c   :  { %v1579_v1 = vadd.f32 %v1575_v28, %v1567_v39  ;;  %v1856_v38 = vmul.f32 %v7670_v27, %v7474_v31  ;;  %v1866_v37 = vmul.f32 %v7677_v7, %v7478_v40  ;;  %11726 = vst [vmem:[#allocation71_spill] sm:$0xff] %v7726_v62  ;;  %v1528_v15 = vmul.f32 %v7726_v62, %v7295_v8  ;;  %v7738_v16 = vld [vmem:[%s11202_s0 + $0x60] sm:$0xff] }
 0x30d   :  { %v7731_v59 = vmul.f32 %v7538_v20, %v1627_v60  ;;  %v1871_v13 = vadd.f32 %v1867_v55, %v1861_v25  ;;  %v1812_v0 = vadd.f32 %v1808_v56, %v1800_v29  ;;  %v1520_v28 = vadd.f32 %v1516_v44, %v1511_v5  ;;  %11728 = vst [vmem:[#allocation73_spill] sm:$0xff] %v7738_v16  ;;  %v7745_v8 = vld [vmem:[%s11202_s0 + $0x80] sm:$0xff] }
 0x30e   :  { %v1591_v23 = vadd.f32 %v1587_v41, %v1579_v1  ;;  %v1879_v63 = vmul.f32 %v7689_v53, %v7485_v48  ;;  %v1538_v39 = vmul.f32 %v7738_v16, %v7298_v49  ;;  %11729 = vst [vmem:[#allocation74_spill] sm:$0xff] %v7745_v8  ;;  %v1550_v56 = vmul.f32 %v7745_v8, %v7301_v51  ;;  %v7754_v60 = vld [vmem:[%s11202_s0 + $0xa0] sm:$0xff] }
 0x30f   :  { %11727 = vst [vmem:[#allocation72_spill] sm:$0xff] %v7731_v59  ;;  %2218 = vmatpush.msrb.mxu1 %v7731_v59  ;;  %v1884_v55 = vadd.f32 %v7617_v36, %v1871_v13  ;;  %v1824_v41 = vadd.f32 %v1820_v32, %v1812_v0  ;;  %v1532_v5 = vadd.f32 %v1528_v15, %v1520_v28  ;;  %v7761_v29 = vld [vmem:[%s11202_s0 + $0xc0] sm:$0xff]  ;;  %v11752_v59 = vld [vmem:[#allocation46_spill] sm:$0xff] }
 0x310   :  { %11730 = vst [vmem:[#allocation75_spill] sm:$0xff] %v7754_v60  ;;  %v1562_v49 = vmul.f32 %v7754_v60, %v7325_v33  ;;  %v1604_v25 = vadd.f32 %v1600_v21, %v1591_v23  ;;  %v1574_v51 = vmul.f32 %v7761_v29, %v7356_v18  ;;  %v7768_v36 = vld [vmem:[%s11202_s0 + $0xe0] sm:$0xff]  ;;  %v1765_v33 = vmul.f32 %v7707_v24, %v7425_v54 }
 0x311   :  { %11731 = vst [vmem:[#allocation76_spill] sm:$0xff] %v7761_v29  ;;  %v1586_v32 = vmul.f32 %v7768_v36, %v7359_v57  ;;  %v7775_v21 = vmul.f32 %v7663_v9, %v1884_v55  ;;  %v1836_v44 = vadd.f32 %v1832_v52, %v1824_v41  ;;  %v1542_v1 = vadd.f32 %v1538_v39, %v1532_v5  ;;  %v7782_v13 = vld [vmem:[%s11202_s0 + $0x100] sm:$0xff] }
 0x312   :  { %11732 = vst [vmem:[#allocation77_spill] sm:$0xff] %v7768_v36  ;;  %v1770_v15 = vmul.f32 %v7715_v50, %v7428_v6  ;;  %v1614_v18 = vadd.f32 %v1610_v4, %v1604_v25  ;;  %v1599_v57 = vmul.f32 %v7782_v13, %v7365_v30  ;;  %v7789_v54 = vld [vmem:[%s11202_s0 + $0x120] sm:$0xff]  ;;  %v1783_v23 = vmul.f32 %v7726_v62, %v7433_v14 }
 0x313   :  { %11733 = vst [vmem:[#allocation78_spill] sm:$0xff] %v7775_v21  ;;  %v1609_v52 = vmul.f32 %v7789_v54, %v7377_v2  ;;  %v7796_v6 = vld [vmem:[%s11202_s0 + $0x140] sm:$0xff]  ;;  %2315 = vmatpush.msra.mxu3 %v7775_v21  ;;  %v1848_v0 = vadd.f32 %v1844_v26, %v1836_v44  ;;  %v1554_v30 = vadd.f32 %v1550_v56, %v1542_v1  ;;  %v1406_v44 = vrot.slane %v7339_v58, 2 }
 0x314   :  { %11734 = vst [vmem:[#allocation79_spill] sm:$0xff] %v7782_v13  ;;  %v1621_v4 = vmul.f32 %v7796_v6, %v7381_v35  ;;  %v1774_v28 = vadd.f32 %v1770_v15, %v1765_v33  ;;  %v1626_v39 = vadd.f32 %v1622_v19, %v1614_v18  ;;  %v1795_v2 = vmul.f32 %v7738_v16, %v7443_v42  ;;  %v11738_v15 = vld [vmem:[#allocation40_spill] sm:$0xff] }
 0x315   :  { %11735 = vst [vmem:[#allocation80_spill] sm:$0xff] %v7789_v54  ;;  %v1807_v55 = vmul.f32 %v7745_v8, %v7450_v12  ;;  %v1819_v41 = vmul.f32 %v7754_v60, %v7458_v34  ;;  %v1860_v5 = vadd.f32 %v1856_v38, %v1848_v0  ;;  %v1566_v35 = vadd.f32 %v1562_v49, %v1554_v30  ;;  %v11739_v0 = vld [vmem:[#allocation43_spill] sm:$0xff]  ;;  %v11765_v60 = vld [vmem:[#allocation60_spill] sm:$0xff] }
 0x316   :  { %11736 = vst [vmem:[#allocation81_spill] sm:$0xff] %v7796_v6  ;;  %v1787_v25 = vadd.f32 %v1783_v23, %v1774_v28  ;;  %v1831_v26 = vmul.f32 %v7761_v29, %v7462_v10  ;;  %v7812_v56 = vmul.f32 %v7538_v20, %v1626_v39  ;;  %v1843_v14 = vmul.f32 %v7768_v36, %v7468_v43  ;;  %v11763_v36 = vld [vmem:[#allocation58_spill] sm:$0xff] }
 0x317   :  { %v11337_v19 = vrot.slane %v7327_v22, 1  ;;  %v7818_v42 = vperm.slane %v7327_v22, 6  ;;  %v1870_v12 = vadd.f32 %v1866_v37, %v1860_v5  ;;  %v1578_v33 = vadd.f32 %v1574_v51, %v1566_v35 }
 0x318   :  { %11737 = vst [vmem:[#allocation82_spill] sm:$0xff] %v7812_v56  ;;  %v1799_v34 = vadd.f32 %v1795_v2, %v1787_v25  ;;  %v7821_v38 = vperm.slane %v7327_v22, 7  ;;  %2219 = vmatpush.msrb.mxu1 %v7812_v56  ;;  %v7830_v49 = vperm.slane %v7339_v58, 0  ;;  %v7838_v23 = vperm.slane %v7339_v58, 1  ;;  %v11751_v56 = vld [vmem:[#allocation53_spill] sm:$0xff] }
 0x319   :  { %v1385_v10 = vmul.f32 %v7309_v61, %v7818_v42  ;;  %v1395_v43 = vadd.f32 %v7327_v22, %v11337_v19  ;;  %v1883_v37 = vadd.f32 %v1879_v63, %v1870_v12  ;;  %v1590_v51 = vadd.f32 %v1586_v32, %v1578_v33  ;;  %v11741_v32 = vld [vmem:[#allocation44_spill] sm:$0xff] }
 0x31a   :  { %v1811_v1 = vadd.f32 %v1807_v55, %v1799_v34  ;;  %v1390_v18 = vmul.f32 %v11738_v15, %v7821_v38  ;;  %v1400_v30 = vmul.f32 %v11739_v0, %v7830_v49  ;;  %v1418_v39 = vrot.slane %v7339_v58, 3 }
 0x31b   :  { %v1408_v28 = vadd.f32 %v1406_v44, %v1395_v43  ;;  %v7842_v2 = vmul.f32 %v7663_v9, %v1883_v37  ;;  %v1603_v5 = vadd.f32 %v1599_v57, %v1590_v51  ;;  %v1413_v55 = vmul.f32 %v11741_v32, %v7838_v23 }
 0x31c   :  { %v1823_v35 = vadd.f32 %v1819_v41, %v1811_v1  ;;  %v1394_v63 = vadd.f32 %v1390_v18, %v1385_v10  ;;  %v7847_v12 = vperm.slane %v7339_v58, 2  ;;  %v1430_v33 = vrot.slane %v7339_v58, 4  ;;  %v11742_v41 = vld [vmem:[#allocation45_spill] sm:$0xff] }
 0x31d   :  { %11740 = vst [vmem:[#allocation83_spill] sm:$0xff] %v7842_v2  ;;  %v1420_v25 = vadd.f32 %v1418_v39, %v1408_v28  ;;  %2316 = vmatpush.msra.mxu3 %v7842_v2  ;;  %v1613_v34 = vadd.f32 %v1609_v52, %v1603_v5  ;;  %v7852_v37 = vperm.slane %v7339_v58, 3  ;;  %v1855_v57 = vmul.f32 %v7782_v13, %v7474_v31 }
 0x31e   :  { %v1835_v43 = vadd.f32 %v1831_v26, %v1823_v35  ;;  %v1404_v44 = vadd.f32 %v1400_v30, %v1394_v63  ;;  %v1425_v10 = vmul.f32 %v11742_v41, %v7847_v12  ;;  %v1442_v1 = vrot.slane %v7339_v58, 5 }
 0x31f   :  { %v1432_v51 = vadd.f32 %v1430_v33, %v1420_v25  ;;  %v1625_v18 = vadd.f32 %v1621_v4, %v1613_v34  ;;  %v7860_v19 = vperm.slane %v7339_v58, 4  ;;  %v1865_v52 = vmul.f32 %v7789_v54, %v7478_v40  ;;  %v11744_v4 = vld [vmem:[#allocation47_spill] sm:$0xff] }
 0x320   :  { %v1847_v28 = vadd.f32 %v1843_v14, %v1835_v43  ;;  %v1417_v39 = vadd.f32 %v1413_v55, %v1404_v44  ;;  %v1454_v30 = vrot.slane %v7339_v58, 6  ;;  %v7866_v31 = vperm.slane %v7339_v58, 5 }
 0x321   :  { %v1444_v26 = vadd.f32 %v1442_v1, %v1432_v51  ;;  %v7869_v5 = vmul.f32 %v7538_v20, %v1625_v18  ;;  %v1437_v14 = vmul.f32 %v11744_v4, %v7852_v37  ;;  %v1878_v55 = vmul.f32 %v7796_v6, %v7485_v48  ;;  %v11745_v20 = vld [vmem:[#allocation48_spill] sm:$0xff]  ;;  %v11747_v18 = vld [vmem:[#allocation38_spill] sm:$0xff] }
 0x322   :  { %v1859_v35 = vadd.f32 %v1855_v57, %v1847_v28  ;;  %v1429_v63 = vadd.f32 %v1425_v10, %v1417_v39  ;;  %v1466_v40 = vrot.slane %v7339_v58, 7  ;;  %v7877_v33 = vperm.slane %v7339_v58, 6  ;;  %v11746_v57 = vld [vmem:[#allocation49_spill] sm:$0xff] }
 0x323   :  { %11743 = vst [vmem:[#allocation84_spill] sm:$0xff] %v7869_v5  ;;  %v1456_v25 = vadd.f32 %v1454_v30, %v1444_v26  ;;  %2220 = vmatpush.msrb.mxu1 %v7869_v5  ;;  %v1449_v44 = vmul.f32 %v11745_v20, %v7860_v19  ;;  %v1461_v10 = vmul.f32 %v11746_v57, %v7866_v31  ;;  %v7885_v1 = vperm.slane %v7339_v58, 7  ;;  %v11748_v30 = vld [vmem:[#allocation36_spill] sm:$0xff] }
 0x324   :  { %v1869_v34 = vadd.f32 %v1865_v52, %v1859_v35  ;;  %v1441_v43 = vadd.f32 %v1437_v14, %v1429_v63  ;;  %v1488_v48 = vrot.slane %v7339_v58, 1  ;;  %v7889_v28 = vperm.slane %v11747_v18, 4  ;;  %v11749_v63 = vld [vmem:[#allocation50_spill] sm:$0xff] }
 0x325   :  { %v1468_v51 = vadd.f32 %v1466_v40, %v1456_v25  ;;  %v7892_v52 = vperm.slane %v11748_v30, 0  ;;  %v7895_v35 = vperm.slane %v11747_v18, 5  ;;  %v1473_v14 = vmul.f32 %v11749_v63, %v7877_v33 }
 0x326   :  { %v1882_v39 = vadd.f32 %v1878_v55, %v1869_v34  ;;  %v1453_v26 = vadd.f32 %v1449_v44, %v1441_v43  ;;  %v1642_v40 = vmul.f32 %v7309_v61, %v7889_v28  ;;  %v7903_v5 = vperm.slane %v11747_v18, 6 }
 0x327   :  { %v1478_v25 = vadd.f32 %v7339_v58, %v1468_v51  ;;  %v1647_v43 = vmul.f32 %v11738_v15, %v7895_v35  ;;  %v7911_v44 = vperm.slane %v11747_v18, 7  ;;  %v11753_v2 = vrot.slane %v11752_v59, 5  ;;  %v11754_v51 = vld [vmem:[#allocation51_spill] sm:$0xff] }
 0x328   :  { %v7906_v55 = vmul.f32 %v7663_v9, %v1882_v39  ;;  %v1465_v34 = vadd.f32 %v1461_v10, %v1453_v26  ;;  %v1483_v21 = vmul.f32 %v11754_v51, %v7885_v1  ;;  %v7919_v22 = vperm.slane %v11752_v59, 0 }
 0x329   :  { %v1699_v58 = vadd.f32 %v11753_v2, %v11751_v56  ;;  %v1490_v11 = vadd.f32 %v1488_v48, %v1478_v25  ;;  %v1651_v10 = vadd.f32 %v1647_v43, %v1642_v40  ;;  %v1657_v39 = vmul.f32 %v11739_v0, %v7903_v5 }
 0x32a   :  { %11750 = vst [vmem:[#allocation38_spill] sm:$0xff] %v7906_v55  ;;  %2317 = vmatpush.msra.mxu3 %v7906_v55  ;;  %v1477_v9 = vadd.f32 %v1473_v14, %v1465_v34  ;;  %v7925_v18 = vperm.slane %v11752_v59, 1  ;;  %v11755_v26 = vrot.slane %v11748_v30, 2  ;;  %v7930_v2 = vperm.slane %v11752_v59, 2  ;;  %v11756_v14 = vld [vmem:[#allocation52_spill] sm:$0xff] }
 0x32b   :  { %v1709_v48 = vrot.slane %v11752_v59, 6  ;;  %v7934_v25 = vperm.slane %v11752_v59, 3  ;;  %v1495_v40 = vmul.f32 %v11756_v14, %v7892_v52  ;;  %v1661_v34 = vadd.f32 %v1657_v39, %v1651_v10 }
 0x32c   :  { %v1503_v56 = vadd.f32 %v11755_v26, %v1490_v11  ;;  %v1487_v55 = vadd.f32 %v1483_v21, %v1477_v9  ;;  %v1667_v43 = vmul.f32 %v11741_v32, %v7911_v44  ;;  %v1721_v11 = vrot.slane %v11752_v59, 7 }
 0x32d   :  { %v1711_v0 = vadd.f32 %v1709_v48, %v1699_v58  ;;  %v7942_v30 = vperm.slane %v11752_v59, 4  ;;  %v1679_v15 = vmul.f32 %v11742_v41, %v7919_v22  ;;  %v1692_v21 = vmul.f32 %v11744_v4, %v7925_v18  ;;  %v11760_v4 = vld [vmem:[#allocation55_spill] sm:$0xff] }
 0x32e   :  { %5748 = vrcp.f32 %v1503_v56  ;;  %v1671_v26 = vadd.f32 %v1667_v43, %v1661_v34  ;;  %v7949_v9 = vperm.slane %v11752_v59, 5  ;;  %v1704_v10 = vmul.f32 %v11745_v20, %v7930_v2  ;;  %v11759_v43 = vld [vmem:[#allocation54_spill] sm:$0xff] }
 0x32f   :  { %11757 = vst [vmem:[#allocation36_spill] sm:$0xff] %v7942_v30  ;;  %v1716_v58 = vmul.f32 %v11746_v57, %v7934_v25  ;;  %v1723_v39 = vadd.f32 %v1721_v11, %v1711_v0  ;;  %v7956_v56 = vperm.slane %v11752_v59, 6  ;;  %v1499_v48 = vadd.f32 %v1495_v40, %v1487_v55  ;;  %v11761_v40 = vld [vmem:[#allocation56_spill] sm:$0xff] }
 0x330   :  { %v1683_v34 = vadd.f32 %v1679_v15, %v1671_v26  ;;  %v1384_v41 = vmul.f32 %v11759_v43, %v7818_v42  ;;  %v1389_v32 = vmul.f32 %v11760_v4, %v7821_v38  ;;  %v1728_v61 = vmul.f32 %v11749_v63, %v7942_v30  ;;  %v11762_v63 = vld [vmem:[#allocation57_spill] sm:$0xff] }
 0x331   :  { %11758 = vst [vmem:[#allocation53_spill] sm:$0xff] %v7956_v56  ;;  %v1733_v20 = vadd.f32 %v11752_v59, %v1723_v39  ;;  %v1743_v6 = vrot.slane %v11752_v59, 1  ;;  %v1755_v0 = vrot.slane %v11752_v59, 2  ;;  %v1738_v55 = vmul.f32 %v11754_v51, %v7949_v9 }
 0x332   :  { %v1696_v11 = vadd.f32 %v1692_v21, %v1683_v34  ;;  %v1393_v15 = vadd.f32 %v1389_v32, %v1384_v41  ;;  %v1399_v26 = vmul.f32 %v11761_v40, %v7830_v49  ;;  %v1750_v13 = vmul.f32 %v11756_v14, %v7956_v56  ;;  %v11764_v32 = vld [vmem:[#allocation59_spill] sm:$0xff] }
 0x333   :  { %v1745_v54 = vadd.f32 %v1743_v6, %v1733_v20  ;;  %v1412_v39 = vmul.f32 %v11762_v63, %v7838_v23  ;;  %v1424_v29 = vmul.f32 %v11763_v36, %v7847_v12  ;;  %v1436_v41 = vmul.f32 %v11764_v32, %v7852_v37 }
 0x334   :  { %v5749_v57 = vpop.eup %5748  ;;  %v1708_v21 = vadd.f32 %v1704_v10, %v1696_v11  ;;  %v1403_v34 = vadd.f32 %v1399_v26, %v1393_v15  ;;  %v1448_v6 = vmul.f32 %v11765_v60, %v7860_v19  ;;  %v1641_v20 = vmul.f32 %v11759_v43, %v7889_v28  ;;  %v11767_v10 = vld [vmem:[#allocation61_spill] sm:$0xff] }
 0x335   :  { %v7977_v59 = vperm.slane %v5749_v57, 6  ;;  %v1757_v51 = vadd.f32 %v1755_v0, %v1745_v54  ;;  %v1646_v14 = vmul.f32 %v11760_v4, %v7895_v35  ;;  %v1460_v11 = vmul.f32 %v11767_v10, %v7866_v31  ;;  %v11768_v54 = vld [vmem:[#allocation63_spill] sm:$0xff] }
 0x336   :  { %v1720_v57 = vadd.f32 %v1716_v58, %v1708_v21  ;;  %v1416_v16 = vadd.f32 %v1412_v39, %v1403_v34  ;;  %v1472_v0 = vmul.f32 %v11768_v54, %v7877_v33  ;;  %v1656_v26 = vmul.f32 %v11761_v40, %v7903_v5  ;;  %v11770_v58 = vld [vmem:[#allocation65_spill] sm:$0xff] }
 0x337   :  { %v7988_v8 = vmul.f32 %v7977_v59, %v1499_v48  ;;  %5750 = vrcp.f32 %v1757_v51  ;;  %v1650_v15 = vadd.f32 %v1646_v14, %v1641_v20  ;;  %v11769_v48 = vld [vmem:[#allocation64_spill] sm:$0xff]  ;;  %v1494_v39 = vmul.f32 %v11770_v58, %v7892_v52 }
 0x338   :  { %v1732_v43 = vadd.f32 %v1728_v61, %v1720_v57  ;;  %v1428_v4 = vadd.f32 %v1424_v29, %v1416_v16  ;;  %v1482_v62 = vmul.f32 %v11769_v48, %v7885_v1  ;;  %v1666_v51 = vmul.f32 %v11762_v63, %v7911_v44  ;;  %v11771_v16 = vld [vmem:[#allocation66_spill] sm:$0xff] }
 0x339   :  { %11766 = vst [vmem:[#allocation46_spill] sm:$0xff] %v7988_v8  ;;  %2221 = vmatpush.msrb.mxu1 %v7988_v8  ;;  %v1660_v21 = vadd.f32 %v1656_v26, %v1650_v15  ;;  %v1678_v14 = vmul.f32 %v11763_v36, %v7919_v22  ;;  %v1691_v34 = vmul.f32 %v11764_v32, %v7925_v18  ;;  %v11772_v36 = vld [vmem:[#allocation67_spill] sm:$0xff] }
 0x33a   :  { %v1742_v20 = vadd.f32 %v1738_v55, %v1732_v43  ;;  %v1440_v8 = vadd.f32 %v1436_v41, %v1428_v4  ;;  %v1703_v61 = vmul.f32 %v11765_v60, %v7930_v2  ;;  %v1383_v29 = vmul.f32 %v11771_v16, %v7818_v42  ;;  %v11773_v55 = vld [vmem:[#allocation68_spill] sm:$0xff] }
 0x33b   :  { %v1670_v57 = vadd.f32 %v1666_v51, %v1660_v21  ;;  %v1715_v15 = vmul.f32 %v11767_v10, %v7934_v25  ;;  %v1727_v26 = vmul.f32 %v11768_v54, %v7942_v30  ;;  %v1388_v63 = vmul.f32 %v11772_v36, %v7821_v38 }
 0x33c   :  { %v1452_v40 = vadd.f32 %v1448_v6, %v1440_v8  ;;  %v1737_v4 = vmul.f32 %v11769_v48, %v7949_v9  ;;  %v1749_v43 = vmul.f32 %v11770_v58, %v7956_v56  ;;  %v1398_v41 = vmul.f32 %v11773_v55, %v7830_v49 }
 0x33d   :  { %v5751_v21 = vpop.eup %5750  ;;  %v1754_v51 = vadd.f32 %v1750_v13, %v1742_v20  ;;  %v1682_v60 = vadd.f32 %v1678_v14, %v1670_v57  ;;  %v1392_v10 = vadd.f32 %v1388_v63, %v1383_v29  ;;  %v1411_v54 = vmul.f32 %v7629_v46, %v7838_v23 }
 0x33e   :  { %v8025_v32 = vperm.slane %v5751_v21, 4  ;;  %v1464_v30 = vadd.f32 %v1460_v11, %v1452_v40  ;;  %v1423_v8 = vmul.f32 %v7636_v17, %v7847_v12  ;;  %v1435_v6 = vmul.f32 %v7643_v3, %v7852_v37 }
 0x33f   :  { %v1695_v58 = vadd.f32 %v1691_v34, %v1682_v60  ;;  %v1402_v48 = vadd.f32 %v1398_v41, %v1392_v10  ;;  %v1447_v56 = vmul.f32 %v7650_v47, %v7860_v19  ;;  %v1640_v13 = vmul.f32 %v11771_v16, %v7889_v28 }
 0x340   :  { %v8036_v63 = vmul.f32 %v8025_v32, %v1754_v51  ;;  %v1476_v14 = vadd.f32 %v1472_v0, %v1464_v30  ;;  %v1459_v40 = vmul.f32 %v7657_v45, %v7866_v31  ;;  %v1645_v11 = vmul.f32 %v11772_v36, %v7895_v35 }
 0x341   :  { %v1707_v20 = vadd.f32 %v1703_v61, %v1695_v58  ;;  %v1415_v29 = vadd.f32 %v1411_v54, %v1402_v48  ;;  %v1471_v60 = vmul.f32 %v7670_v27, %v7877_v33  ;;  %v1481_v10 = vmul.f32 %v7677_v7, %v7885_v1 }
 0x342   :  { %11774 = vst [vmem:[#allocation66_spill] sm:$0xff] %v8036_v63  ;;  %2318 = vmatpush.msra.mxu3 %v8036_v63  ;;  %v1486_v34 = vadd.f32 %v1482_v62, %v1476_v14  ;;  %v1493_v30 = vmul.f32 %v7689_v53, %v7892_v52  ;;  %v1649_v0 = vadd.f32 %v1645_v11, %v1640_v13 }
 0x343   :  { %v1655_v57 = vmul.f32 %v11773_v55, %v7903_v5  ;;  %v1719_v41 = vadd.f32 %v1715_v15, %v1707_v20  ;;  %v1427_v21 = vadd.f32 %v1423_v8, %v1415_v29  ;;  %v1665_v54 = vmul.f32 %v7629_v46, %v7911_v44  ;;  %v11776_v29 = vld [vmem:[#allocation36_spill] sm:$0xff] }
 0x344   :  { %v1677_v48 = vmul.f32 %v7636_v17, %v7919_v22  ;;  %v1498_v58 = vadd.f32 %v1494_v39, %v1486_v34  ;;  %v1690_v62 = vmul.f32 %v7643_v3, %v7925_v18  ;;  %v1702_v51 = vmul.f32 %v7650_v47, %v7930_v2 }
 0x345   :  { %v1659_v61 = vadd.f32 %v1655_v57, %v1649_v0  ;;  %v1731_v13 = vadd.f32 %v1727_v26, %v1719_v41  ;;  %v1439_v14 = vadd.f32 %v1435_v6, %v1427_v21  ;;  %v1382_v15 = vmul.f32 %v7707_v24, %v7818_v42  ;;  %v11777_v6 = vld [vmem:[#allocation71_spill] sm:$0xff]  ;;  %v11778_v21 = vld [vmem:[#allocation53_spill] sm:$0xff] }
 0x346   :  { %v1387_v8 = vmul.f32 %v7715_v50, %v7821_v38  ;;  %v8064_v11 = vmul.f32 %v7977_v59, %v1498_v58  ;;  %v1714_v39 = vmul.f32 %v7657_v45, %v7934_v25  ;;  %v1726_v34 = vmul.f32 %v7670_v27, %v11776_v29  ;;  %v11779_v58 = vld [vmem:[#allocation73_spill] sm:$0xff] }
 0x347   :  { %v1669_v20 = vadd.f32 %v1665_v54, %v1659_v61  ;;  %v1741_v0 = vadd.f32 %v1737_v4, %v1731_v13  ;;  %v1451_v57 = vadd.f32 %v1447_v56, %v1439_v14  ;;  %v1397_v41 = vmul.f32 %v11777_v6, %v7830_v49  ;;  %v11780_v56 = vld [vmem:[#allocation74_spill] sm:$0xff]  ;;  %v11781_v49 = vld [vmem:[#allocation75_spill] sm:$0xff] }
 0x348   :  { %11775 = vst [vmem:[#allocation67_spill] sm:$0xff] %v8064_v11  ;;  %v1391_v26 = vadd.f32 %v1387_v8, %v1382_v15  ;;  %2222 = vmatpush.msrb.mxu1 %v8064_v11  ;;  %v1736_v38 = vmul.f32 %v7677_v7, %v7949_v9  ;;  %v1748_v54 = vmul.f32 %v7689_v53, %v11778_v21 }
 0x349   :  { %v1681_v42 = vadd.f32 %v1677_v48, %v1669_v20  ;;  %v1410_v61 = vmul.f32 %v11779_v58, %v7838_v23  ;;  %v1753_v63 = vadd.f32 %v1749_v43, %v1741_v0  ;;  %v1463_v27 = vadd.f32 %v1459_v40, %v1451_v57  ;;  %v11782_v48 = vld [vmem:[#allocation76_spill] sm:$0xff] }
 0x34a   :  { %v1401_v4 = vadd.f32 %v1397_v41, %v1391_v26  ;;  %v1422_v13 = vmul.f32 %v11780_v56, %v7847_v12  ;;  %v1434_v15 = vmul.f32 %v11781_v49, %v7852_v37  ;;  %v1446_v8 = vmul.f32 %v11782_v48, %v7860_v19  ;;  %v11783_v12 = vld [vmem:[#allocation77_spill] sm:$0xff]  ;;  %v11784_v37 = vld [vmem:[#allocation79_spill] sm:$0xff]  ;;  %v11785_v19 = vld [vmem:[#allocation80_spill] sm:$0xff] }
 0x34b   :  { %v1694_v14 = vadd.f32 %v1690_v62, %v1681_v42  ;;  %v1639_v20 = vmul.f32 %v7707_v24, %v7889_v28  ;;  %v8088_v11 = vmul.f32 %v8025_v32, %v1753_v63  ;;  %v1475_v23 = vadd.f32 %v1471_v60, %v1463_v27 }
 0x34c   :  { %v1414_v43 = vadd.f32 %v1410_v61, %v1401_v4  ;;  %v1644_v40 = vmul.f32 %v7715_v50, %v7895_v35  ;;  %v1458_v62 = vmul.f32 %v11783_v12, %v7866_v31  ;;  %v1470_v57 = vmul.f32 %v11784_v37, %v7877_v33  ;;  %v11786_v35 = vld [vmem:[#allocation81_spill] sm:$0xff] }
 0x34d   :  { %v1706_v0 = vadd.f32 %v1702_v51, %v1694_v14  ;;  %v1480_v26 = vmul.f32 %v11785_v19, %v7885_v1  ;;  %2319 = vmatpush.msra.mxu3 %v8088_v11  ;;  %v1485_v28 = vadd.f32 %v1481_v10, %v1475_v23  ;;  %v1654_v27 = vmul.f32 %v11777_v6, %v7903_v5 }
 0x34e   :  { %v1426_v63 = vadd.f32 %v1422_v13, %v1414_v43  ;;  %v1648_v41 = vadd.f32 %v1644_v40, %v1639_v20  ;;  %v1492_v51 = vmul.f32 %v11786_v35, %v7892_v52  ;;  %v1664_v31 = vmul.f32 %v11779_v58, %v7911_v44  ;;  %v11788_v43 = vld [vmem:[#allocation39_spill] sm:$0xff] }
 0x34f   :  { %v1718_v60 = vadd.f32 %v1714_v39, %v1706_v0  ;;  %v1676_v33 = vmul.f32 %v11780_v56, %v7919_v22  ;;  %v1497_v42 = vadd.f32 %v1493_v30, %v1485_v28  ;;  %v1689_v10 = vmul.f32 %v11781_v49, %v7925_v18  ;;  %v11787_v39 = vld [vmem:[#allocation41_spill] sm:$0xff]  ;;  %v11789_v0 = vld [vmem:[#allocation40_spill] sm:$0xff] }
 0x350   :  { %v1438_v1 = vadd.f32 %v1434_v15, %v1426_v63  ;;  %v1658_v61 = vadd.f32 %v1654_v27, %v1648_v41  ;;  %v1701_v5 = vmul.f32 %v11782_v48, %v7930_v2  ;;  %v1234_v13 = vrot.slane %v11787_v39, 1 }
 0x351   :  { %v1730_v4 = vadd.f32 %v1726_v34, %v1718_v60  ;;  %v1246_v52 = vrot.slane %v11787_v39, 2  ;;  %v8114_v14 = vmul.f32 %v7977_v59, %v1497_v42  ;;  %v8117_v22 = vperm.slane %v11787_v39, 3 }
 0x352   :  { %v1450_v44 = vadd.f32 %v1446_v8, %v1438_v1  ;;  %v1668_v20 = vadd.f32 %v1664_v31, %v1658_v61  ;;  %v8120_v15 = vperm.slane %v11787_v39, 4  ;;  %v1269_v18 = vadd.f32 %v11787_v39, %v1234_v13 }
 0x353   :  { %v1740_v30 = vadd.f32 %v1736_v38, %v1730_v4  ;;  %v8126_v2 = vperm.slane %v11787_v39, 5  ;;  %2223 = vmatpush.msrb.mxu1 %v8114_v14  ;;  %v1713_v8 = vmul.f32 %v11783_v12, %v7934_v25  ;;  %v1259_v38 = vmul.f32 %v11788_v43, %v8117_v22 }
 0x354   :  { %v1462_v34 = vadd.f32 %v1458_v62, %v1450_v44  ;;  %v1680_v23 = vadd.f32 %v1676_v33, %v1668_v20  ;;  %v1264_v28 = vmul.f32 %v11789_v0, %v8120_v15  ;;  %v1279_v63 = vadd.f32 %v1269_v18, %v1246_v52  ;;  %v11790_v33 = vld [vmem:[#allocation43_spill] sm:$0xff]  ;;  %v11791_v20 = vld [vmem:[#allocation44_spill] sm:$0xff]  ;;  %v11792_v18 = vld [vmem:[#allocation42_spill] sm:$0xff] }
 0x355   :  { %v1752_v40 = vadd.f32 %v1748_v54, %v1740_v30  ;;  %v8138_v41 = vperm.slane %v11787_v39, 6  ;;  %v1725_v62 = vmul.f32 %v11784_v37, %v11776_v29  ;;  %v1289_v25 = vrot.slane %v11787_v39, 3 }
 0x356   :  { %v1474_v27 = vadd.f32 %v1470_v57, %v1462_v34  ;;  %v1693_v60 = vadd.f32 %v1689_v10, %v1680_v23  ;;  %v1268_v54 = vadd.f32 %v1264_v28, %v1259_v38  ;;  %v1274_v42 = vmul.f32 %v11790_v33, %v8126_v2 }
 0x357   :  { %v8144_v31 = vmul.f32 %v8025_v32, %v1752_v40  ;;  %v8149_v1 = vperm.slane %v11787_v39, 7  ;;  %v1291_v44 = vadd.f32 %v1289_v25, %v1279_v63  ;;  %v1301_v57 = vrot.slane %v11787_v39, 4  ;;  %v11793_v40 = vld [vmem:[#allocation45_spill] sm:$0xff]  ;;  %v11794_v25 = vld [vmem:[#allocation47_spill] sm:$0xff] }
 0x358   :  { %v1484_v61 = vadd.f32 %v1480_v26, %v1474_v27  ;;  %v1705_v4 = vadd.f32 %v1701_v5, %v1693_v60  ;;  %v1735_v29 = vmul.f32 %v11785_v19, %v7949_v9  ;;  %v1278_v10 = vadd.f32 %v1274_v42, %v1268_v54 }
 0x359   :  { %2320 = vmatpush.msra.mxu3 %v8144_v31  ;;  %v1284_v30 = vmul.f32 %v11791_v20, %v8138_v41  ;;  %v8158_v34 = vperm.slane %v11792_v18, 0  ;;  %v1303_v38 = vadd.f32 %v1301_v57, %v1291_v44  ;;  %v1314_v26 = vrot.slane %v11792_v18, 5  ;;  %v11795_v57 = vld [vmem:[#allocation48_spill] sm:$0xff] }
 0x35a   :  { %v1496_v23 = vadd.f32 %v1492_v51, %v1484_v61  ;;  %v1717_v43 = vadd.f32 %v1713_v8, %v1705_v4  ;;  %v1296_v0 = vmul.f32 %v11793_v40, %v8149_v1  ;;  %v8164_v28 = vperm.slane %v11792_v18, 1 }
 0x35b   :  { %v1288_v5 = vadd.f32 %v1284_v30, %v1278_v10  ;;  %v1326_v9 = vrot.slane %v11792_v18, 6  ;;  %v1316_v60 = vadd.f32 %v1314_v26, %v1303_v38  ;;  %v8171_v51 = vperm.slane %v11792_v18, 2  ;;  %v11796_v30 = vld [vmem:[#allocation54_spill] sm:$0xff]  ;;  %v11797_v38 = vld [vmem:[#allocation49_spill] sm:$0xff] }
 0x35c   :  { %v8168_v63 = vmul.f32 %v7977_v59, %v1496_v23  ;;  %v1729_v27 = vadd.f32 %v1725_v62, %v1717_v43  ;;  %v1308_v54 = vmul.f32 %v11794_v25, %v8158_v34  ;;  %v8176_v33 = vperm.slane %v11792_v18, 3 }
 0x35d   :  { %v1300_v8 = vadd.f32 %v1296_v0, %v1288_v5  ;;  %v8179_v42 = vperm.slane %v11792_v18, 4  ;;  %v1747_v59 = vmul.f32 %v11786_v35, %v11778_v21  ;;  %v1328_v62 = vadd.f32 %v1326_v9, %v1316_v60  ;;  %v11798_v21 = vld [vmem:[#allocation55_spill] sm:$0xff]  ;;  %v11799_v0 = vld [vmem:[#allocation50_spill] sm:$0xff] }
 0x35e   :  { %2224 = vmatpush.msrb.mxu1 %v8168_v63  ;;  %v1739_v61 = vadd.f32 %v1735_v29, %v1729_v27  ;;  %v1338_v4 = vrot.slane %v11792_v18, 7  ;;  %v1321_v10 = vmul.f32 %v11795_v57, %v8164_v28  ;;  %v8188_v20 = vperm.slane %v11792_v18, 5  ;;  %v11800_v27 = vld [vmem:[#allocation51_spill] sm:$0xff] }
 0x35f   :  { %v1312_v44 = vadd.f32 %v1308_v54, %v1300_v8  ;;  %v1258_v23 = vmul.f32 %v11796_v30, %v8117_v22  ;;  %v1333_v29 = vmul.f32 %v11797_v38, %v8171_v51  ;;  %v1263_v5 = vmul.f32 %v11798_v21, %v8120_v15  ;;  %v11803_v30 = vld [vmem:[#allocation57_spill] sm:$0xff]  ;;  %v11804_v21 = vld [vmem:[#allocation58_spill] sm:$0xff] }
 0x360   :  { %v1751_v43 = vadd.f32 %v1747_v59, %v1739_v61  ;;  %v1340_v26 = vadd.f32 %v1338_v4, %v1328_v62  ;;  %v1345_v9 = vmul.f32 %v11799_v0, %v8176_v33  ;;  %v1355_v60 = vmul.f32 %v11800_v27, %v8179_v42  ;;  %v11801_v59 = vld [vmem:[#allocation56_spill] sm:$0xff]  ;;  %v11808_v27 = vld [vmem:[#allocation70_spill] sm:$0xff] }
 0x361   :  { %v1325_v40 = vadd.f32 %v1321_v10, %v1312_v44  ;;  %v1372_v8 = vrot.slane %v11792_v18, 2  ;;  %v1267_v61 = vadd.f32 %v1263_v5, %v1258_v23  ;;  %v1273_v62 = vmul.f32 %v11801_v59, %v8126_v2  ;;  %v238_v4 = vld [vmem:[#allocation4 + $0x180] sm:$0xff] }
 0x362   :  { %v8202_v25 = vmul.f32 %v8025_v32, %v1751_v43  ;;  %v1350_v54 = vadd.f32 %v11792_v18, %v1340_v26  ;;  %v11802_v44 = vld [vmem:[#allocation52_spill] sm:$0xff]  ;;  %v1283_v38 = vmul.f32 %v11803_v30, %v8138_v41  ;;  %v1295_v0 = vmul.f32 %v11804_v21, %v8149_v1  ;;  %1983 = vmatmul.f32.vlgmr.msrb.gmra.mxu2 %v238_v4  ;;  %v11806_v26 = vld [vmem:[#allocation59_spill] sm:$0xff] }
 0x363   :  { %v1337_v57 = vadd.f32 %v1333_v29, %v1325_v40  ;;  %v1367_v10 = vmul.f32 %v11802_v44, %v8188_v20  ;;  %v11805_v32 = vrot.slane %v11792_v18, 1  ;;  %v1277_v43 = vadd.f32 %v1273_v62, %v1267_v61  ;;  %v11807_v29 = vld [vmem:[#allocation60_spill] sm:$0xff]  ;;  %v11809_v44 = vld [vmem:[#allocation61_spill] sm:$0xff]  ;;  %v11810_v62 = vld [vmem:[#allocation63_spill] sm:$0xff] }
 0x364   :  { %2321 = vmatpush.msra.mxu3 %v8202_v25  ;;  %v1307_v5 = vmul.f32 %v11806_v26, %v8158_v34  ;;  %v1320_v40 = vmul.f32 %v11807_v29, %v8164_v28  ;;  %v1332_v30 = vmul.f32 %v11809_v44, %v8171_v51  ;;  %v1257_v4 = vmul.f32 %v11771_v16, %v8117_v22 }
 0x365   :  { %v1362_v23 = vadd.f32 %v11805_v32, %v1350_v54  ;;  %v1349_v59 = vadd.f32 %v1345_v9, %v1337_v57  ;;  %v1262_v18 = vmul.f32 %v11772_v36, %v8120_v15  ;;  %v1287_v61 = vadd.f32 %v1283_v38, %v1277_v43  ;;  %v11811_v32 = vld [vmem:[#allocation64_spill] sm:$0xff]  ;;  %v11813_v9 = vld [vmem:[#allocation65_spill] sm:$0xff] }
 0x366   :  { %3030 = vmatpush.msrb.mxu3 %v11808_v27  ;;  %v1344_v21 = vmul.f32 %v11810_v62, %v8176_v33  ;;  %v1354_v26 = vmul.f32 %v11811_v32, %v8179_v42  ;;  %v11812_v27 = vld [vmem:[#allocation78_spill] sm:$0xff]  ;;  %v1366_v57 = vmul.f32 %v11813_v9, %v8188_v20  ;;  %v1272_v16 = vmul.f32 %v11773_v55, %v8126_v2 }
 0x367   :  { %v1374_v54 = vadd.f32 %v1372_v8, %v1362_v23  ;;  %v1359_v29 = vadd.f32 %v1355_v60, %v1349_v59  ;;  %v1266_v44 = vadd.f32 %v1262_v18, %v1257_v4  ;;  %v1299_v36 = vadd.f32 %v1295_v0, %v1287_v61  ;;  %v11814_v23 = vld [vmem:[#allocation83_spill] sm:$0xff]  ;;  %v11815_v0 = vld [vmem:[#allocation69_spill] sm:$0xff] }
 0x368   :  { %3031 = vmatpush.msrb.mxu3 %v11812_v27  ;;  %v1282_v8 = vmul.f32 %v7629_v46, %v8138_v41  ;;  %v1294_v38 = vmul.f32 %v7636_v17, %v8149_v1  ;;  %v1306_v43 = vmul.f32 %v7643_v3, %v8158_v34  ;;  %v1319_v59 = vmul.f32 %v7650_v47, %v8164_v28  ;;  %v11818_v27 = vld [vmem:[#allocation37_spill] sm:$0xff] }
 0x369   :  { %5752 = vrcp.f32 %v1374_v54  ;;  %v1276_v60 = vadd.f32 %v1272_v16, %v1266_v44  ;;  %v1331_v55 = vmul.f32 %v7657_v45, %v8171_v51  ;;  %v1311_v4 = vadd.f32 %v1307_v5, %v1299_v36  ;;  %v11816_v45 = vld [vmem:[#allocation38_spill] sm:$0xff] }
 0x36a   :  { %3032 = vmatpush.msrb.mxu3 %v11814_v23  ;;  %v1343_v18 = vmul.f32 %v11815_v0, %v8176_v33  ;;  %v1256_v46 = vmul.f32 %v7707_v24, %v8117_v22  ;;  %v1261_v17 = vmul.f32 %v7715_v50, %v8120_v15  ;;  %v1371_v54 = vadd.f32 %v1367_v10, %v1359_v29  ;;  %v11817_v15 = vld [vmem:[#allocation66_spill] sm:$0xff] }
 0x36b   :  { %v1286_v61 = vadd.f32 %v1282_v8, %v1276_v60  ;;  %v1353_v3 = vmul.f32 %v7677_v7, %v8179_v42  ;;  %v8257_v47 = vmul.f32 %v7689_v53, %v8188_v20  ;;  %v1324_v5 = vadd.f32 %v1320_v40, %v1311_v4 }
 0x36c   :  { %3033 = vmatpush.msrb.mxu3 %v11816_v45  ;;  %v1265_v62 = vadd.f32 %v1261_v17, %v1256_v46  ;;  %v1271_v32 = vmul.f32 %v11777_v6, %v8126_v2  ;;  %v1281_v24 = vmul.f32 %v11779_v58, %v8138_v41  ;;  %v1293_v22 = vmul.f32 %v11780_v56, %v8149_v1 }
 0x36d   :  { %v1298_v50 = vadd.f32 %v1294_v38, %v1286_v61  ;;  %v1305_v7 = vmul.f32 %v11781_v49, %v8158_v34  ;;  %v1318_v53 = vmul.f32 %v11782_v48, %v8164_v28  ;;  %v1336_v40 = vadd.f32 %v1332_v30, %v1324_v5  ;;  %v6045_v34 = vld [vmem:[%s11202_s0 + $0x18] sm:$0xff] }
 0x36e   :  { %3034 = vmatpush.msrb.mxu3 %v11817_v15  ;;  %v1275_v29 = vadd.f32 %v1271_v32, %v1265_v62  ;;  %v8272_v6 = vperm.slane %v11818_v27, 0  ;;  %v8275_v58 = vperm.slane %v11818_v27, 1  ;;  %v1139_v41 = vrot.slane %v11818_v27, 1  ;;  %v6046_v30 = vld [vmem:[%s11202_s0 + $0x38] sm:$0xff]  ;;  %v190_v62 = vld [vmem:[#allocation4 + $0x8] sm:$0xff] }
 0x36f   :  { %v5753_v10 = vpop.eup %5752  ;;  %v1310_v56 = vadd.f32 %v1306_v43, %v1298_v50  ;;  %v8281_v49 = vperm.slane %v11818_v27, 2  ;;  %v1348_v48 = vadd.f32 %v1344_v21, %v1336_v40  ;;  %v6047_v21 = vld [vmem:[%s11202_s0 + $0x58] sm:$0xff]  ;;  %v1151_v60 = vrot.slane %v11818_v27, 2  ;;  %5435 = vmatmul.msk.f32.vlgmr.msra.gmra.mxu3 %vm904_vm1, %v190_v62 }
 0x370   :  { %v8277_v2 = vperm.slane %v5753_v10, 3  ;;  %3035 = vmatpush.msrb.mxu3 %v8088_v11  ;;  %v1285_v1 = vadd.f32 %v1281_v24, %v1275_v29  ;;  %v1128_v28 = vmul.f32 %v6045_v34, %v8272_v6  ;;  %v1133_v9 = vmul.f32 %v6046_v30, %v8275_v58  ;;  %v6057_v62 = vld [vmem:[%s11202_s0 + $0x118] sm:$0xff] }
 0x371   :  { %v1323_v16 = vadd.f32 %v1319_v59, %v1310_v56  ;;  %v1141_v11 = vadd.f32 %v11818_v27, %v1139_v41  ;;  %v1146_v36 = vmul.f32 %v6047_v21, %v8281_v49  ;;  %v1358_v8 = vadd.f32 %v1354_v26, %v1348_v48  ;;  %v6050_v56 = vld [vmem:[%s11202_s0 + $0xb8] sm:$0xff] }
 0x372   :  { %v8293_v44 = vmul.f32 %v8277_v2, %v1371_v54  ;;  %3036 = vmatpush.msrb.mxu3 %v8144_v31  ;;  %v1297_v38 = vadd.f32 %v1293_v22, %v1285_v1  ;;  %v1137_v23 = vadd.f32 %v1133_v9, %v1128_v28  ;;  %v8304_v59 = vperm.slane %v11818_v27, 3  ;;  %v239_v28 = vld [vmem:[#allocation4 + $0x188] sm:$0xff] }
 0x373   :  { %v1335_v43 = vadd.f32 %v1331_v55, %v1323_v16  ;;  %v1163_v4 = vrot.slane %v11818_v27, 3  ;;  %v8308_v0 = vperm.slane %v11818_v27, 4  ;;  %v1370_v46 = vadd.f32 %v1366_v57, %v1358_v8  ;;  %v6048_v55 = vld [vmem:[%s11202_s0 + $0x78] sm:$0xff]  ;;  %5411 = vmatmul.msk.f32.vlgmr.msra.gmra.mxu0 %vm904_vm1, %v239_v28 }
 0x374   :  { %2225 = vmatpush.msrb.mxu1 %v8293_v44  ;;  %3037 = vmatpush.msrb.mxu3 %v8202_v25  ;;  %v1309_v31 = vadd.f32 %v1305_v7, %v1297_v38  ;;  %v1150_v26 = vadd.f32 %v1146_v36, %v1137_v23  ;;  %v1153_v17 = vadd.f32 %v1151_v60, %v1141_v11  ;;  %v1175_v5 = vrot.slane %v11818_v27, 4  ;;  %v6052_v36 = vld [vmem:[%s11202_s0 + $0x10] sm:$0xff]  ;;  %v241_v28 = vld [vmem:[#allocation4 + $0x198] sm:$0xff] }
 0x375   :  { %v1347_v54 = vadd.f32 %v1343_v18, %v1335_v43  ;;  %v1330_v61 = vmul.f32 %v11783_v12, %v8171_v51  ;;  %v1158_v45 = vmul.f32 %v6048_v55, %v8304_v59  ;;  %v8319_v32 = vmul.f32 %v8277_v2, %v1370_v46  ;;  %v6049_v18 = vld [vmem:[%s11202_s0 + $0x98] sm:$0xff]  ;;  %v6053_v38 = vld [vmem:[%s11202_s0 + $0x30] sm:$0xff] }
 0x376   :  { %v1322_v25 = vadd.f32 %v1318_v53, %v1309_v31  ;;  %v1165_v57 = vadd.f32 %v1163_v4, %v1153_v17  ;;  %v8322_v24 = vperm.slane %v11818_v27, 5  ;;  %v1170_v50 = vmul.f32 %v6049_v18, %v8308_v0  ;;  %v6055_v46 = vld [vmem:[%s11202_s0 + $0x50] sm:$0xff] }
 0x377   :  { %v1357_v12 = vadd.f32 %v1353_v3, %v1347_v54  ;;  %v1162_v51 = vadd.f32 %v1158_v45, %v1150_v26  ;;  %v8330_v22 = vperm.slane %v11818_v27, 6  ;;  %2226 = vmatpush.msrb.mxu1 %v8319_v32  ;;  %v1342_v53 = vmul.f32 %v11784_v37, %v8176_v33  ;;  %v6056_v45 = vld [vmem:[%s11202_s0 + $0x70] sm:$0xff] }
 0x378   :  { %v1334_v7 = vadd.f32 %v1330_v61, %v1322_v25  ;;  %v1177_v15 = vadd.f32 %v1175_v5, %v1165_v57  ;;  %v1187_v10 = vrot.slane %v11818_v27, 5  ;;  %v1352_v40 = vmul.f32 %v11785_v19, %v8179_v42  ;;  %v6051_v19 = vld [vmem:[%s11202_s0 + $0xd8] sm:$0xff]  ;;  %v240_v61 = vld [vmem:[#allocation4 + $0x190] sm:$0xff] }
 0x379   :  { %v1369_v3 = vadd.f32 %v8257_v47, %v1357_v12  ;;  %v1174_v29 = vadd.f32 %v1170_v50, %v1162_v51  ;;  %v1182_v41 = vmul.f32 %v6050_v56, %v8322_v24  ;;  %v1199_v34 = vrot.slane %v11818_v27, 6  ;;  %1986 = vmatmul.f32.gmra.mxu2 %v240_v61  ;;  %v6058_v12 = vld [vmem:[%s11202_s0 + $0x8] sm:$0xff]  ;;  %v6059_v50 = vld [vmem:[%s11202_s0 + $0x90] sm:$0xff] }
 0x37a   :  { %v1346_v48 = vadd.f32 %v1342_v53, %v1334_v7  ;;  %v1189_v1 = vadd.f32 %v1187_v10, %v1177_v15  ;;  %v8345_v37 = vperm.slane %v11818_v27, 7  ;;  %v1194_v42 = vmul.f32 %v6051_v19, %v8330_v22  ;;  %v6060_v53 = vld [vmem:[%s11202_s0 + $0x28] sm:$0xff]  ;;  %v6064_v19 = vld [vmem:[%s11202_s0 + $0xd0] sm:$0xff] }
 0x37b   :  { %v8348_v33 = vmul.f32 %v8277_v2, %v1369_v3  ;;  %v1186_v47 = vadd.f32 %v1182_v41, %v1174_v29  ;;  %v1364_v9 = vmul.f32 %v11786_v35, %v8188_v20  ;;  %v1211_v11 = vrot.slane %v11818_v27, 7  ;;  %v6054_v27 = vld [vmem:[%s11202_s0 + $0xf8] sm:$0xff]  ;;  %v6061_v29 = vld [vmem:[%s11202_s0 + $0xb0] sm:$0xff]  ;;  %5412 = vmatmul.msk.f32.gmra.mxu0 %vm904_vm1, %v241_v28 }
 0x37c   :  { %v1356_v30 = vadd.f32 %v1352_v40, %v1346_v48  ;;  %v1201_v16 = vadd.f32 %v1199_v34, %v1189_v1  ;;  %v1127_v8 = vmul.f32 %v6052_v36, %v8272_v6  ;;  %v1132_v35 = vmul.f32 %v6053_v38, %v8275_v58  ;;  %v192_v3 = vld [vmem:[#allocation4 + $0x18] sm:$0xff]  ;;  %v6062_v48 = vld [vmem:[%s11202_s0 + $0x48] sm:$0xff] }
 0x37d   :  { %2227 = vmatpush.msrb.mxu1 %v8348_v33  ;;  %v1198_v21 = vadd.f32 %v1194_v42, %v1186_v47  ;;  %v1206_v23 = vmul.f32 %v6054_v27, %v8345_v37  ;;  %v8372_v43 = vperm.slane %v11787_v39, 0  ;;  %v1145_v31 = vmul.f32 %v6055_v46, %v8281_v49  ;;  %5436 = vmatmul.msk.f32.gmra.mxu3 %vm904_vm1, %v192_v3  ;;  %v6068_v27 = vld [vmem:[%s11202_s0 + $0xf0] sm:$0xff]  ;;  %v6076_v3 = vld [vmem:[%s11202_s0 + $0xc8] sm:$0xff] }
 0x37e   :  { %v1368_v20 = vadd.f32 %v1364_v9, %v1356_v30  ;;  %v1213_v60 = vadd.f32 %v1211_v11, %v1201_v16  ;;  %v1136_v4 = vadd.f32 %v1132_v35, %v1127_v8  ;;  %v1157_v5 = vmul.f32 %v6056_v45, %v8304_v59  ;;  %v6065_v16 = vld [vmem:[%s11202_s0 + $0x68] sm:$0xff]  ;;  %v6067_v8 = vld [vmem:[%s11202_s0 + $0x20] sm:$0xff] }
 0x37f   :  { %v1210_v17 = vadd.f32 %v1206_v23, %v1198_v21  ;;  %v8392_v25 = vperm.slane %v11787_v39, 1  ;;  %v1126_v51 = vmul.f32 %v6058_v12, %v8272_v6  ;;  %v1169_v7 = vmul.f32 %v6059_v50, %v8308_v0  ;;  %v242_v35 = vld [vmem:[#allocation4 + $0x1a0] sm:$0xff] }
 0x380   :  { %v8379_v26 = vmul.f32 %v8277_v2, %v1368_v20  ;;  %v1223_v54 = vadd.f32 %v11787_v39, %v1213_v60  ;;  %v1149_v55 = vadd.f32 %v1145_v31, %v1136_v4  ;;  %v1218_v2 = vmul.f32 %v6057_v62, %v8372_v43  ;;  %v6073_v62 = vld [vmem:[%s11202_s0 + $0xa8] sm:$0xff]  ;;  %v6075_v50 = vld [vmem:[%s11202_s0 + $0x60] sm:$0xff] }
 0x381   :  { %v1131_v15 = vmul.f32 %v6060_v53, %v8275_v58  ;;  %v1181_v56 = vmul.f32 %v6061_v29, %v8322_v24  ;;  %v1144_v1 = vmul.f32 %v6062_v48, %v8281_v49  ;;  %v8424_v47 = vperm.slane %v11787_v39, 2  ;;  %v6066_v39 = vld [vmem:[%s11202_s0] sm:$0xff]  ;;  %1989 = vmatmul.f32.gmra.mxu2 %v242_v35  ;;  %v194_v53 = vld [vmem:[#allocation4 + $0x28] sm:$0xff]  ;;  %v6077_v29 = vld [vmem:[%s11202_s0 + $0x150] sm:$0xff] }
 0x382   :  { %2228 = vmatpush.msrb.mxu1 %v8379_v26  ;;  %v1236_v57 = vadd.f32 %v1234_v13, %v1223_v54  ;;  %v1161_v18 = vadd.f32 %v1157_v5, %v1149_v55  ;;  %v1222_v13 = vadd.f32 %v1218_v2, %v1210_v17  ;;  %v1193_v42 = vmul.f32 %v6064_v19, %v8330_v22  ;;  %v6071_v17 = vld [vmem:[%s11202_s0 + $0x40] sm:$0xff]  ;;  %v6072_v55 = vld [vmem:[%s11202_s0 + $0x110] sm:$0xff] }
 0x383   :  { %v1135_v41 = vadd.f32 %v1131_v15, %v1126_v51  ;;  %v1156_v11 = vmul.f32 %v6065_v16, %v8304_v59  ;;  %v1125_v21 = vmul.f32 %v6066_v39, %v8272_v6  ;;  %v1130_v38 = vmul.f32 %v6067_v8, %v8275_v58  ;;  %v6069_v6 = vld [vmem:[%s11202_s0 + $0x88] sm:$0xff]  ;;  %v6070_v58 = vld [vmem:[%s11202_s0 + $0x158] sm:$0xff]  ;;  %v244_v16 = vld [vmem:[#allocation4 + $0x1b0] sm:$0xff] }
 0x384   :  { %v1248_v10 = vadd.f32 %v1246_v52, %v1236_v57  ;;  %v1173_v40 = vadd.f32 %v1169_v7, %v1161_v18  ;;  %v6063_v52 = vld [vmem:[%s11202_s0 + $0x138] sm:$0xff]  ;;  %v1205_v23 = vmul.f32 %v6068_v27, %v8345_v37  ;;  %v1168_v4 = vmul.f32 %v6069_v6, %v8308_v0  ;;  %v6083_v27 = vld [vmem:[%s11202_s0 + $0x128] sm:$0xff]  ;;  %v6084_v6 = vld [vmem:[%s11202_s0 + $0xe0] sm:$0xff] }
 0x385   :  { %v1228_v34 = vmul.f32 %v6063_v52, %v8392_v25  ;;  %v1148_v9 = vadd.f32 %v1144_v1, %v1135_v41  ;;  %v1241_v46 = vmul.f32 %v6070_v58, %v8424_v47  ;;  %v1134_v31 = vadd.f32 %v1130_v38, %v1125_v21  ;;  %5437 = vmatmul.msk.f32.gmra.mxu3 %vm904_vm1, %v194_v53  ;;  %v6078_v41 = vld [vmem:[%s11202_s0 + $0x80] sm:$0xff]  ;;  %v243_v1 = vld [vmem:[#allocation4 + $0x1a8] sm:$0xff]  ;;  %v196_v58 = vld [vmem:[#allocation4 + $0x38] sm:$0xff] }
 0x386   :  { %5754 = vrcp.f32 %v1248_v10  ;;  %v1185_v30 = vadd.f32 %v1181_v56, %v1173_v40  ;;  %v1143_v54 = vmul.f32 %v6071_v17, %v8281_v49  ;;  %v1217_v45 = vmul.f32 %v6072_v55, %v8372_v43  ;;  %v6074_v49 = vld [vmem:[%s11202_s0 + $0x130] sm:$0xff]  ;;  %5413 = vmatmul.msk.f32.gmra.mxu0 %vm904_vm1, %v243_v1  ;;  %v6081_v21 = vld [vmem:[%s11202_s0 + $0x108] sm:$0xff]  ;;  %v6082_v38 = vld [vmem:[%s11202_s0 + $0xc0] sm:$0xff] }
 0x387   :  { %v1232_v36 = vadd.f32 %v1228_v34, %v1222_v13  ;;  %v1160_v60 = vadd.f32 %v1156_v11, %v1148_v9  ;;  %v1180_v2 = vmul.f32 %v6073_v62, %v8322_v24  ;;  %v1227_v51 = vmul.f32 %v6074_v49, %v8392_v25  ;;  %v6080_v9 = vld [vmem:[%s11202_s0 + $0xa0] sm:$0xff]  ;;  %v248_v53 = vld [vmem:[#allocation4 + $0x1d0] sm:$0xff]  ;;  %v251_v1 = vld [vmem:[#allocation4 + $0x1e8] sm:$0xff] }
 0x388   :  { %v1197_v20 = vadd.f32 %v1193_v42, %v1185_v30  ;;  %v1147_v18 = vadd.f32 %v1143_v54, %v1134_v31  ;;  %v1155_v7 = vmul.f32 %v6075_v50, %v8304_v59  ;;  %v1192_v40 = vmul.f32 %v6076_v3, %v8330_v22  ;;  %v6079_v42 = vld [vmem:[%s11202_s0 + $0xe8] sm:$0xff]  ;;  %v6086_v54 = vld [vmem:[%s11202_s0 + $0x100] sm:$0xff] }
 0x389   :  { %v1172_v5 = vadd.f32 %v1168_v4, %v1160_v60  ;;  %v1245_v12 = vadd.f32 %v1241_v46, %v1232_v36  ;;  %v1240_v56 = vmul.f32 %v6077_v29, %v8424_v47  ;;  %v1167_v48 = vmul.f32 %v6078_v41, %v8308_v0  ;;  %1992 = vmatmul.f32.gmra.mxu2 %v244_v16  ;;  %v6085_v46 = vld [vmem:[%s11202_s0 + $0x148] sm:$0xff]  ;;  %v11820_v3 = vld [vmem:[#allocation72_spill] sm:$0xff]  ;;  %v191_v29 = vld [vmem:[#allocation4 + $0x10] sm:$0xff] }
 0x38a   :  { %v1209_v61 = vadd.f32 %v1205_v23, %v1197_v20  ;;  %v1159_v59 = vadd.f32 %v1155_v7, %v1147_v18  ;;  %v1204_v28 = vmul.f32 %v6079_v42, %v8345_v37  ;;  %v1179_v0 = vmul.f32 %v6080_v9, %v8322_v24  ;;  %v198_v18 = vld [vmem:[#allocation4 + $0x48] sm:$0xff]  ;;  %v189_v7 = vld [vmem:[#allocation4] sm:$0xff]  ;;  %v204_v42 = vld [vmem:[#allocation4 + $0x78] sm:$0xff] }
 0x38b   :  { %v1184_v10 = vadd.f32 %v1180_v2, %v1172_v5  ;;  %v1216_v36 = vmul.f32 %v6081_v21, %v8372_v43  ;;  %v1191_v35 = vmul.f32 %v6082_v38, %v8330_v22  ;;  %v1226_v23 = vmul.f32 %v6083_v27, %v8392_v25  ;;  %v6087_v5 = vld [vmem:[%s11202_s0 + $0x120] sm:$0xff]  ;;  %v202_v41 = vld [vmem:[#allocation4 + $0x68] sm:$0xff]  ;;  %v256_v9 = vld [vmem:[#allocation4 + $0x210] sm:$0xff] }
 0x38c   :  { %v5755_v57 = vpop.eup %5754  ;;  %v1221_v13 = vadd.f32 %v1217_v45, %v1209_v61  ;;  %v1171_v30 = vadd.f32 %v1167_v48, %v1159_v59  ;;  %v1203_v4 = vmul.f32 %v6084_v6, %v8345_v37  ;;  %v1239_v31 = vmul.f32 %v6085_v46, %v8424_v47  ;;  %v245_v37 = vld [vmem:[#allocation4 + $0x1b8] sm:$0xff]  ;;  %v246_v2 = vld [vmem:[#allocation4 + $0x1c0] sm:$0xff]  ;;  %v11823_v59 = vld [vmem:[#allocation46_spill] sm:$0xff] }
 0x38d   :  { %v8475_v15 = vperm.slane %v5755_v57, 0  ;;  %v1196_v19 = vadd.f32 %v1192_v40, %v1184_v10  ;;  %5438 = vmatmul.msk.f32.gmra.mxu3 %vm904_vm1, %v196_v58  ;;  %v1215_v61 = vmul.f32 %v6086_v54, %v8372_v43  ;;  %v1225_v62 = vmul.f32 %v6087_v5, %v8392_v25  ;;  %v6088_v43 = vld [vmem:[%s11202_s0 + $0x140] sm:$0xff]  ;;  %v247_v25 = vld [vmem:[#allocation4 + $0x1c8] sm:$0xff]  ;;  %v200_v10 = vld [vmem:[#allocation4 + $0x58] sm:$0xff] }
 0x38e   :  { %v1231_v34 = vadd.f32 %v1227_v51, %v1221_v13  ;;  %v1183_v8 = vadd.f32 %v1179_v0, %v1171_v30  ;;  %5414 = vmatmul.msk.f32.gmra.mxu0 %vm904_vm1, %v245_v37  ;;  %v1238_v49 = vmul.f32 %v6088_v43, %v8424_v47  ;;  %v11819_v13 = vld [vmem:[#allocation62_spill] sm:$0xff]  ;;  %v249_v47 = vld [vmem:[#allocation4 + $0x1d8] sm:$0xff]  ;;  %v210_v16 = vld [vmem:[#allocation4 + $0xa8] sm:$0xff] }
 0x38f   :  { %v8491_v52 = vmul.f32 %v8475_v15, %v1245_v12  ;;  %v1208_v39 = vadd.f32 %v1204_v28, %v1196_v19  ;;  %v11821_v40 = vld [vmem:[#allocation82_spill] sm:$0xff]  ;;  %v11824_v48 = vld [vmem:[#allocation67_spill] sm:$0xff]  ;;  %v205_v27 = vld [vmem:[#allocation4 + $0x80] sm:$0xff] }
 0x390   :  { %v1244_v11 = vadd.f32 %v1240_v56, %v1231_v34  ;;  %v1195_v60 = vadd.f32 %v1191_v35, %v1183_v8  ;;  %v11822_v56 = vld [vmem:[#allocation84_spill] sm:$0xff]  ;;  %v252_v19 = vld [vmem:[#allocation4 + $0x1f0] sm:$0xff]  ;;  %v253_v28 = vld [vmem:[#allocation4 + $0x1f8] sm:$0xff] }
 0x391   :  { %2229 = vmatpush.msrb.mxu1 %v8491_v52  ;;  %v1220_v20 = vadd.f32 %v1216_v36, %v1208_v39  ;;  %1995 = vmatmul.f32.gmra.mxu2 %v246_v2  ;;  %v193_v34 = vld [vmem:[#allocation4 + $0x20] sm:$0xff]  ;;  %v195_v30 = vld [vmem:[#allocation4 + $0x30] sm:$0xff]  ;;  %v212_v36 = vld [vmem:[#allocation4 + $0xb8] sm:$0xff] }
 0x392   :  { %v8512_v24 = vmul.f32 %v8475_v15, %v1244_v11  ;;  %v1207_v17 = vadd.f32 %v1203_v4, %v1195_v60  ;;  %v199_v0 = vld [vmem:[#allocation4 + $0x50] sm:$0xff]  ;;  %v259_v11 = vld [vmem:[#allocation4 + $0x228] sm:$0xff]  ;;  %v201_v39 = vld [vmem:[#allocation4 + $0x60] sm:$0xff] }
 0x393   :  { %v1230_v22 = vadd.f32 %v1226_v23, %v1220_v20  ;;  %v260_v21 = vld [vmem:[#allocation4 + $0x230] sm:$0xff]  ;;  %v261_v8 = vld [vmem:[#allocation4 + $0x238] sm:$0xff]  ;;  %v262_v35 = vld [vmem:[#allocation4 + $0x240] sm:$0xff] }
 0x394   :  { %2230 = vmatpush.msrb.mxu1 %v8512_v24  ;;  %v1219_v45 = vadd.f32 %v1215_v61, %v1207_v17  ;;  %v203_v38 = vld [vmem:[#allocation4 + $0x70] sm:$0xff]  ;;  %v263_v20 = vld [vmem:[#allocation4 + $0x248] sm:$0xff]  ;;  %v216_v60 = vld [vmem:[#allocation4 + $0xd8] sm:$0xff] }
 0x395   :  { %v1243_v55 = vadd.f32 %v1239_v31, %v1230_v22  ;;  %5439 = vmatmul.msk.f32.gmra.mxu3 %vm904_vm1, %v198_v18  ;;  %v264_v23 = vld [vmem:[#allocation4 + $0x250] sm:$0xff]  ;;  %v265_v6 = vld [vmem:[#allocation4 + $0x258] sm:$0xff]  ;;  %v266_v58 = vld [vmem:[#allocation4 + $0x260] sm:$0xff] }
 0x396   :  { %v1229_v12 = vadd.f32 %v1225_v62, %v1219_v45  ;;  %5415 = vmatmul.msk.f32.gmra.mxu0 %vm904_vm1, %v247_v25  ;;  %v207_v4 = vld [vmem:[#allocation4 + $0x90] sm:$0xff]  ;;  %v218_v22 = vld [vmem:[#allocation4 + $0xe8] sm:$0xff]  ;;  %v209_v31 = vld [vmem:[#allocation4 + $0xa0] sm:$0xff] }
 0x397   :  { %v1252_v57 = vmul.f32 %v8475_v15, %v1243_v55  ;;  %v267_v46 = vld [vmem:[#allocation4 + $0x268] sm:$0xff]  ;;  %v268_v17 = vld [vmem:[#allocation4 + $0x270] sm:$0xff]  ;;  %v220_v54 = vld [vmem:[#allocation4 + $0xf8] sm:$0xff] }
 0x398   :  { %v1242_v51 = vadd.f32 %v1238_v49, %v1229_v12  ;;  %v269_v61 = vld [vmem:[#allocation4 + $0x278] sm:$0xff]  ;;  %v211_v37 = vld [vmem:[#allocation4 + $0xb0] sm:$0xff]  ;;  %v270_v55 = vld [vmem:[#allocation4 + $0x280] sm:$0xff] }
 0x399   :  { %2231 = vmatpush.msrb.mxu1 %v1252_v57  ;;  %1998 = vmatmul.f32.gmra.mxu2 %v248_v53  ;;  %v222_v45 = vld [vmem:[#allocation4 + $0x108] sm:$0xff]  ;;  %v213_v5 = vld [vmem:[#allocation4 + $0xc0] sm:$0xff]  ;;  %v272_v2 = vld [vmem:[#allocation4 + $0x290] sm:$0xff] }
 0x39a   :  { %v1251_v50 = vmul.f32 %v8475_v15, %v1242_v51  ;;  %v250_v15 = vld [vmem:[#allocation4 + $0x1e0] sm:$0xff]  ;;  %v271_v62 = vld [vmem:[#allocation4 + $0x288] sm:$0xff]  ;;  %v273_v25 = vld [vmem:[#allocation4 + $0x298] sm:$0xff] }
 0x39b   :  { %v217_v51 = vld [vmem:[#allocation4 + $0xe0] sm:$0xff] }
 0x39c   :  { %2232 = vmatpush.msrb.mxu1 %v1251_v50 }
 0x39d   :  { %2233 = vmatmul.f32.vlgmr.msrb.gmra.mxu1 %v189_v7  ;;  %5440 = vmatmul.msk.f32.gmra.mxu3 %vm904_vm1, %v200_v10  ;;  %v224_v7 = vld [vmem:[#allocation4 + $0x118] sm:$0xff]  ;;  %v274_v10 = vld [vmem:[#allocation4 + $0x2a0] sm:$0xff] }
 0x39e   :  { %2933 = vmatpush.msra.mxu1 %v11819_v13  ;;  %5416 = vmatmul.msk.f32.gmra.mxu0 %vm904_vm1, %v249_v47  ;;  %v219_v13 = vld [vmem:[#allocation4 + $0xf0] sm:$0xff] }
 0x3a0   :  { %2934 = vmatpush.msra.mxu1 %v11820_v3 }
 0x3a1   :  { %2001 = vmatmul.f32.gmra.mxu2 %v250_v15 }
 0x3a2   :  { %2935 = vmatpush.msra.mxu1 %v11821_v40  ;;  %v226_v40 = vld [vmem:[#allocation4 + $0x128] sm:$0xff] }
 0x3a4   :  { %2936 = vmatpush.msra.mxu1 %v11822_v56 }
 0x3a5   :  { %2236 = vmatmul.f32.gmra.mxu1 %v191_v29  ;;  %5441 = vmatmul.msk.f32.gmra.mxu3 %vm904_vm1, %v202_v41  ;;  %v275_v29 = vld [vmem:[#allocation4 + $0x2a8] sm:$0xff]  ;;  %v276_v41 = vld [vmem:[#allocation4 + $0x2b0] sm:$0xff] }
 0x3a6   :  { %2937 = vmatpush.msra.mxu1 %v11823_v59  ;;  %5417 = vmatmul.msk.f32.gmra.mxu0 %vm904_vm1, %v251_v1  ;;  %v221_v59 = vld [vmem:[#allocation4 + $0x100] sm:$0xff] }
 0x3a8   :  { %2938 = vmatpush.msra.mxu1 %v11824_v48 }
 0x3a9   :  { %2004 = vmatmul.f32.gmra.mxu2 %v252_v19  ;;  %v277_v19 = vld [vmem:[#allocation4 + $0x2b8] sm:$0xff] }
 0x3aa   :  { %2939 = vmatpush.msra.mxu1 %v8114_v14  ;;  %v254_v14 = vld [vmem:[#allocation4 + $0x200] sm:$0xff] }
 0x3ac   :  { %2940 = vmatpush.msra.mxu1 %v8168_v63  ;;  %v206_v63 = vld [vmem:[#allocation4 + $0x88] sm:$0xff] }
 0x3ad   :  { %2239 = vmatmul.f32.gmra.mxu1 %v193_v34  ;;  %5442 = vmatmul.msk.f32.gmra.mxu3 %vm904_vm1, %v204_v42  ;;  %v228_v34 = vld [vmem:[#allocation4 + $0x138] sm:$0xff] }
 0x3ae   :  { %2941 = vmatpush.msra.mxu1 %v8293_v44  ;;  %5418 = vmatmul.msk.f32.gmra.mxu0 %vm904_vm1, %v253_v28  ;;  %v255_v44 = vld [vmem:[#allocation4 + $0x208] sm:$0xff] }
 0x3b0   :  { %2942 = vmatpush.msra.mxu1 %v8319_v32  ;;  %v197_v32 = vld [vmem:[#allocation4 + $0x40] sm:$0xff] }
 0x3b1   :  { %2007 = vmatmul.f32.gmra.mxu2 %v254_v14  ;;  %v223_v14 = vld [vmem:[#allocation4 + $0x110] sm:$0xff] }
 0x3b2   :  { %2943 = vmatpush.msra.mxu1 %v8348_v33  ;;  %v208_v33 = vld [vmem:[#allocation4 + $0x98] sm:$0xff] }
 0x3b4   :  { %2944 = vmatpush.msra.mxu1 %v8379_v26  ;;  %v257_v26 = vld [vmem:[#allocation4 + $0x218] sm:$0xff] }
 0x3b5   :  { %2242 = vmatmul.f32.gmra.mxu1 %v195_v30  ;;  %5443 = vmatmul.msk.f32.gmra.mxu3 %vm904_vm1, %v206_v63 }
 0x3b6   :  { %2945 = vmatpush.msra.mxu1 %v8491_v52  ;;  %5419 = vmatmul.msk.f32.gmra.mxu0 %vm904_vm1, %v255_v44  ;;  %v258_v52 = vld [vmem:[#allocation4 + $0x220] sm:$0xff] }
 0x3b7   :  { %v278_v44 = vld [vmem:[#allocation4 + $0x2c0] sm:$0xff] }
 0x3b8   :  { %2946 = vmatpush.msra.mxu1 %v8512_v24  ;;  %v214_v24 = vld [vmem:[#allocation4 + $0xc8] sm:$0xff] }
 0x3b9   :  { %2010 = vmatmul.f32.gmra.mxu2 %v256_v9 }
 0x3ba   :  { %2947 = vmatpush.msra.mxu1 %v1252_v57  ;;  %v215_v57 = vld [vmem:[#allocation4 + $0xd0] sm:$0xff] }
 0x3bc   :  { %2948 = vmatpush.msra.mxu1 %v1251_v50 }
 0x3bd   :  { %2245 = vmatmul.f32.gmra.mxu1 %v197_v32  ;;  %5444 = vmatmul.msk.f32.gmra.mxu3 %vm904_vm1, %v208_v33  ;;  %v230_v33 = vld [vmem:[#allocation4 + $0x148] sm:$0xff] }
 0x3be   :  { %5420 = vmatmul.msk.f32.gmra.mxu0 %vm904_vm1, %v257_v26 }
 0x3c1   :  { %2013 = vmatmul.f32.gmra.mxu2 %v258_v52 }
 0x3c5   :  { %2248 = vmatmul.f32.gmra.mxu1 %v199_v0  ;;  %5445 = vmatmul.msk.f32.gmra.mxu3 %vm904_vm1, %v210_v16  ;;  %v279_v0 = vld [vmem:[#allocation4 + $0x2c8] sm:$0xff] }
 0x3c6   :  { %5421 = vmatmul.msk.f32.gmra.mxu0 %vm904_vm1, %v259_v11 }
 0x3c9   :  { %2016 = vmatmul.f32.gmra.mxu2 %v260_v21 }
 0x3cd   :  { %2251 = vmatmul.f32.gmra.mxu1 %v201_v39  ;;  %5446 = vmatmul.msk.f32.gmra.mxu3 %vm904_vm1, %v212_v36  ;;  %v225_v39 = vld [vmem:[#allocation4 + $0x120] sm:$0xff]  ;;  %v280_v36 = vld [vmem:[#allocation4 + $0x2d0] sm:$0xff] }
 0x3ce   :  { %5422 = vmatmul.msk.f32.gmra.mxu0 %vm904_vm1, %v261_v8 }
 0x3d1   :  { %2019 = vmatmul.f32.gmra.mxu2 %v262_v35  ;;  %v232_v35 = vld [vmem:[#allocation4 + $0x158] sm:$0xff] }
 0x3d5   :  { %2254 = vmatmul.f32.gmra.mxu1 %v203_v38  ;;  %5447 = vmatmul.msk.f32.gmra.mxu3 %vm904_vm1, %v214_v24 }
 0x3d6   :  { %5423 = vmatmul.msk.f32.gmra.mxu0 %vm904_vm1, %v263_v20  ;;  %v281_v20 = vld [vmem:[#allocation4 + $0x2d8] sm:$0xff] }
 0x3d9   :  { %2022 = vmatmul.f32.gmra.mxu2 %v264_v23 }
 0x3dd   :  { %2257 = vmatmul.f32.gmra.mxu1 %v205_v27  ;;  %5448 = vmatmul.msk.f32.gmra.mxu3 %vm904_vm1, %v216_v60 }
 0x3de   :  { %5424 = vmatmul.msk.f32.gmra.mxu0 %vm904_vm1, %v265_v6  ;;  %v227_v6 = vld [vmem:[#allocation4 + $0x130] sm:$0xff] }
 0x3e1   :  { %2025 = vmatmul.f32.gmra.mxu2 %v266_v58  ;;  %v282_v58 = vld [vmem:[#allocation4 + $0x2e0] sm:$0xff] }
 0x3e5   :  { %2260 = vmatmul.f32.gmra.mxu1 %v207_v4  ;;  %5449 = vmatmul.msk.f32.gmra.mxu3 %vm904_vm1, %v218_v22  ;;  %v8583_v12 = vpop.f32.mrf.mxu2 }
 0x3e6   :  { %5425 = vmatmul.msk.f32.gmra.mxu0 %vm904_vm1, %v267_v46 }
 0x3e9   :  { %2028 = vmatmul.f32.gmra.mxu2 %v268_v17 }
 0x3ed   :  { %2263 = vmatmul.f32.gmra.mxu1 %v209_v31  ;;  %5450 = vmatmul.msk.f32.gmra.mxu3 %vm904_vm1, %v220_v54  ;;  %v234_v31 = vld [vmem:[#allocation4 + $0x168] sm:$0xff] }
 0x3ee   :  { %5426 = vmatmul.msk.f32.gmra.mxu0 %vm904_vm1, %v269_v61  ;;  %v283_v54 = vld [vmem:[#allocation4 + $0x2e8] sm:$0xff] }
 0x3f0   :  { %v8585_v43 = vpop.f32.mrf.mxu0 }
 0x3f1   :  { %2031 = vmatmul.f32.gmra.mxu2 %v270_v55 }
 0x3f2   :  { %v8587_v49 = vpop.f32.mrf.mxu3 }
 0x3f5   :  { %2266 = vmatmul.f32.gmra.mxu1 %v211_v37  ;;  %5451 = vmatmul.msk.f32.gmra.mxu3 %vm904_vm1, %v222_v45  ;;  %v229_v45 = vld [vmem:[#allocation4 + $0x140] sm:$0xff] }
 0x3f6   :  { %5427 = vmatmul.msk.f32.gmra.mxu0 %vm904_vm1, %v271_v62  ;;  %v284_v62 = vld [vmem:[#allocation4 + $0x2f0] sm:$0xff] }
 0x3f8   :  { %v2076_v50 = vpop.f32.mrf.mxu0 }
 0x3f9   :  { %2034 = vmatmul.f32.gmra.mxu2 %v272_v2 }
 0x3fc   :  { %v1987_v18 = vpop.f32.mrf.mxu2 }
 0x3fd   :  { %2269 = vmatmul.f32.gmra.mxu1 %v213_v5  ;;  %5452 = vmatmul.msk.f32.gmra.mxu3 %vm904_vm1, %v224_v7  ;;  %v2077_v28 = vadd.f32 %v2076_v50, %v1987_v18  ;;  %v285_v50 = vld [vmem:[#allocation4 + $0x2f8] sm:$0xff] }
 0x3fe   :  { %5428 = vmatmul.msk.f32.gmra.mxu0 %vm904_vm1, %v273_v25 }
 0x400   :  { %v2326_v53 = vpop.f32.mrf.mxu3 }
 0x401   :  { %2037 = vmatmul.f32.gmra.mxu2 %v274_v10 }
 0x403   :  { %v2079_v47 = vpop.f32.mrf.mxu0 }
 0x404   :  { %v1990_v3 = vpop.f32.mrf.mxu2 }
 0x405   :  { %2272 = vmatmul.f32.gmra.mxu1 %v215_v57  ;;  %5453 = vmatmul.msk.f32.gmra.mxu3 %vm904_vm1, %v226_v40  ;;  %v2080_v16 = vadd.f32 %v2079_v47, %v1990_v3  ;;  %v336_v3 = vld [vmem:[#allocation4 + $0x480] sm:$0xff] }
 0x406   :  { %5429 = vmatmul.msk.f32.gmra.mxu0 %vm904_vm1, %v275_v29  ;;  %v288_v29 = vld [vmem:[#allocation4 + $0x308] sm:$0xff] }
 0x408   :  { %v2329_v15 = vpop.f32.mrf.mxu3 }
 0x409   :  { %2040 = vmatmul.f32.gmra.mxu2 %v276_v41 }
 0x40b   :  { %v2082_v1 = vpop.f32.mrf.mxu0 }
 0x40c   :  { %v1993_v48 = vpop.f32.mrf.mxu2 }
 0x40d   :  { %2275 = vmatmul.f32.gmra.mxu1 %v217_v51  ;;  %5454 = vmatmul.msk.f32.gmra.mxu3 %vm904_vm1, %v228_v34  ;;  %v2083_v23 = vadd.f32 %v2082_v1, %v1993_v48  ;;  %v236_v51 = vld [vmem:[#allocation4 + $0x178] sm:$0xff]  ;;  %v233_v34 = vld [vmem:[#allocation4 + $0x160] sm:$0xff] }
 0x40e   :  { %5430 = vmatmul.msk.f32.gmra.mxu0 %vm904_vm1, %v277_v19 }
 0x410   :  { %v2332_v42 = vpop.f32.mrf.mxu3 }
 0x411   :  { %2043 = vmatmul.f32.gmra.mxu2 %v278_v44  ;;  %v339_v44 = vld [vmem:[#allocation4 + $0x498] sm:$0xff] }
 0x413   :  { %v2085_v9 = vpop.f32.mrf.mxu0 }
 0x414   :  { %v1996_v32 = vpop.f32.mrf.mxu2 }
 0x415   :  { %2278 = vmatmul.f32.gmra.mxu1 %v219_v13  ;;  %5455 = vmatmul.msk.f32.gmra.mxu3 %vm904_vm1, %v230_v33  ;;  %v2086_v37 = vadd.f32 %v2085_v9, %v1996_v32  ;;  %v231_v13 = vld [vmem:[#allocation4 + $0x150] sm:$0xff] }
 0x416   :  { %5431 = vmatmul.msk.f32.gmra.mxu0 %vm904_vm1, %v279_v0  ;;  %v235_v0 = vld [vmem:[#allocation4 + $0x170] sm:$0xff] }
 0x418   :  { %v2335_v52 = vpop.f32.mrf.mxu3 }
 0x419   :  { %2046 = vmatmul.f32.gmra.mxu2 %v280_v36 }
 0x41a   :  { %v8593_v56 = vpop.f32.mrf.mxu1 }
 0x41b   :  { %v2088_v38 = vpop.f32.mrf.mxu0 }
 0x41c   :  { %v1999_v8 = vpop.f32.mrf.mxu2 }
 0x41d   :  { %2281 = vmatmul.f32.gmra.mxu1 %v221_v59  ;;  %5456 = vmatmul.msk.f32.gmra.mxu3 %vm904_vm1, %v232_v35  ;;  %v2089_v25 = vadd.f32 %v2088_v38, %v1999_v8  ;;  %v337_v59 = vld [vmem:[#allocation4 + $0x488] sm:$0xff] }
 0x41e   :  { %5432 = vmatmul.msk.f32.gmra.mxu0 %vm904_vm1, %v281_v20  ;;  %v341_v8 = vld [vmem:[#allocation4 + $0x4a8] sm:$0xff] }
 0x420   :  { %v2338_v27 = vpop.f32.mrf.mxu3 }
 0x421   :  { %2049 = vmatmul.f32.gmra.mxu2 %v282_v58  ;;  %v294_v58 = vld [vmem:[#allocation4 + $0x338] sm:$0xff] }
 0x422   :  { %v2237_v30 = vpop.f32.mrf.mxu1 }
 0x423   :  { %v2238_v63 = vadd.f32 %v2237_v30, %v2077_v28  ;;  %v2091_v46 = vpop.f32.mrf.mxu0 }
 0x424   :  { %v2002_v22 = vpop.f32.mrf.mxu2 }
 0x425   :  { %v8597_v26 = vadd.f32 %v2326_v53, %v2238_v63  ;;  %2284 = vmatmul.f32.gmra.mxu1 %v223_v14  ;;  %5457 = vmatmul.msk.f32.gmra.mxu3 %vm904_vm1, %v234_v31  ;;  %v2092_v48 = vadd.f32 %v2091_v46, %v2002_v22  ;;  %v290_v14 = vld [vmem:[#allocation4 + $0x318] sm:$0xff] }
 0x426   :  { %5433 = vmatmul.msk.f32.gmra.mxu0 %vm904_vm1, %v283_v54  ;;  %v343_v46 = vld [vmem:[#allocation4 + $0x4b8] sm:$0xff] }
 0x428   :  { %v2341_v61 = vpop.f32.mrf.mxu3 }
 0x429   :  { %2052 = vmatmul.f32.gmra.mxu2 %v284_v62 }
 0x42a   :  { %v2240_v11 = vpop.f32.mrf.mxu1 }
 0x42b   :  { %v2241_v21 = vadd.f32 %v2240_v11, %v2080_v16  ;;  %v2094_v57 = vpop.f32.mrf.mxu0  ;;  %v340_v16 = vld [vmem:[#allocation4 + $0x4a0] sm:$0xff] }
 0x42c   :  { %v2005_v2 = vpop.f32.mrf.mxu2 }
 0x42d   :  { %v8601_v24 = vadd.f32 %v2329_v15, %v2241_v21  ;;  %2287 = vmatmul.f32.gmra.mxu1 %v225_v39  ;;  %5458 = vmatmul.msk.f32.gmra.mxu3 %vm904_vm1, %v236_v51  ;;  %v2095_v9 = vadd.f32 %v2094_v57, %v2005_v2  ;;  %v292_v21 = vld [vmem:[#allocation4 + $0x328] sm:$0xff] }
 0x42e   :  { %5434 = vmatmul.msk.f32.gmra.mxu0 %vm904_vm1, %v285_v50  ;;  %v296_v2 = vld [vmem:[#allocation4 + $0x348] sm:$0xff] }
 0x42f   :  { %v345_v51 = vld [vmem:[#allocation4 + $0x4c8] sm:$0xff] }
 0x430   :  { %v2344_v7 = vpop.f32.mrf.mxu3 }
 0x431   :  { %2699 = vmatmul.f32.vlgmr.msra.gmra.mxu2 %v336_v3 }
 0x432   :  { %v2243_v60 = vpop.f32.mrf.mxu1 }
 0x433   :  { %v2244_v4 = vadd.f32 %v2243_v60, %v2083_v23  ;;  %v2097_v40 = vpop.f32.mrf.mxu0  ;;  %v342_v60 = vld [vmem:[#allocation4 + $0x4b0] sm:$0xff] }
 0x434   :  { %v2008_v47 = vpop.f32.mrf.mxu2 }
 0x435   :  { %v8605_v17 = vadd.f32 %v2332_v42, %v2244_v4  ;;  %2290 = vmatmul.f32.gmra.mxu1 %v227_v6  ;;  %5483 = vmatmul.msk.f32.vlgmr.msrb.gmra.mxu3 %vm904_vm1, %v288_v29  ;;  %v338_v42 = vld [vmem:[#allocation4 + $0x490] sm:$0xff]  ;;  %v2098_v35 = vadd.f32 %v2097_v40, %v2008_v47  ;;  %v298_v40 = vld [vmem:[#allocation4 + $0x358] sm:$0xff] }
 0x436   :  { %5459 = vmatmul.msk.f32.vlgmr.msrb.gmra.mxu0 %vm904_vm1, %v337_v59  ;;  %v347_v59 = vld [vmem:[#allocation4 + $0x4d8] sm:$0xff] }
 0x438   :  { %v2347_v41 = vpop.f32.mrf.mxu3 }
 0x439   :  { %2702 = vmatmul.f32.gmra.mxu2 %v338_v42  ;;  %v348_v42 = vld [vmem:[#allocation4 + $0x4e0] sm:$0xff] }
 0x43a   :  { %v2246_v55 = vpop.f32.mrf.mxu1 }
 0x43b   :  { %v2247_v5 = vadd.f32 %v2246_v55, %v2086_v37  ;;  %v2100_v30 = vpop.f32.mrf.mxu0  ;;  %v289_v37 = vld [vmem:[#allocation4 + $0x310] sm:$0xff] }
 0x43c   :  { %v2011_v28 = vpop.f32.mrf.mxu2 }
 0x43d   :  { %v8609_v18 = vadd.f32 %v2335_v52, %v2247_v5  ;;  %2293 = vmatmul.f32.gmra.mxu1 %v229_v45  ;;  %5484 = vmatmul.msk.f32.gmra.mxu3 %vm904_vm1, %v290_v14  ;;  %v2101_v54 = vadd.f32 %v2100_v30, %v2011_v28  ;;  %v344_v45 = vld [vmem:[#allocation4 + $0x4c0] sm:$0xff]  ;;  %v300_v14 = vld [vmem:[#allocation4 + $0x368] sm:$0xff] }
 0x43e   :  { %5460 = vmatmul.msk.f32.gmra.mxu0 %vm904_vm1, %v339_v44 }
 0x440   :  { %v2350_v32 = vpop.f32.mrf.mxu3 }
 0x441   :  { %2705 = vmatmul.f32.gmra.mxu2 %v340_v16 }
 0x442   :  { %v2249_v53 = vpop.f32.mrf.mxu1 }
 0x443   :  { %v2250_v10 = vadd.f32 %v2249_v53, %v2089_v25  ;;  %v2103_v39 = vpop.f32.mrf.mxu0  ;;  %v291_v53 = vld [vmem:[#allocation4 + $0x320] sm:$0xff] }
 0x444   :  { %v2014_v11 = vpop.f32.mrf.mxu2 }
 0x445   :  { %v8613_v15 = vadd.f32 %v2338_v27, %v2250_v10  ;;  %2296 = vmatmul.f32.gmra.mxu1 %v231_v13  ;;  %5485 = vmatmul.msk.f32.gmra.mxu3 %vm904_vm1, %v292_v21  ;;  %v287_v27 = vld [vmem:[#allocation4 + $0x300] sm:$0xff]  ;;  %v346_v10 = vld [vmem:[#allocation4 + $0x4d0] sm:$0xff] }
 0x446   :  { %5461 = vmatmul.msk.f32.gmra.mxu0 %vm904_vm1, %v341_v8  ;;  %v302_v8 = vld [vmem:[#allocation4 + $0x378] sm:$0xff] }
 0x448   :  { %v2353_v38 = vpop.f32.mrf.mxu3 }
 0x449   :  { %2708 = vmatmul.f32.gmra.mxu2 %v342_v60  ;;  %v297_v60 = vld [vmem:[#allocation4 + $0x350] sm:$0xff] }
 0x44a   :  { %v2252_v1 = vpop.f32.mrf.mxu1 }
 0x44b   :  { %v2253_v19 = vadd.f32 %v2252_v1, %v2092_v48  ;;  %v2106_v4 = vpop.f32.mrf.mxu0 }
 0x44c   :  { %v2017_v6 = vpop.f32.mrf.mxu2 }
 0x44d   :  { %v8617_v63 = vadd.f32 %v2341_v61, %v2253_v19  ;;  %2299 = vmatmul.f32.gmra.mxu1 %v233_v34  ;;  %5486 = vmatmul.msk.f32.gmra.mxu3 %vm904_vm1, %v294_v58  ;;  %v2107_v48 = vadd.f32 %v2106_v4, %v2017_v6  ;;  %v293_v34 = vld [vmem:[#allocation4 + $0x330] sm:$0xff]  ;;  %v352_v4 = vld [vmem:[#allocation4 + $0x500] sm:$0xff] }
 0x44e   :  { %5462 = vmatmul.msk.f32.gmra.mxu0 %vm904_vm1, %v343_v46 }
 0x450   :  { %v2356_v31 = vpop.f32.mrf.mxu3 }
 0x451   :  { %2711 = vmatmul.f32.gmra.mxu2 %v344_v45 }
 0x452   :  { %v2255_v33 = vpop.f32.mrf.mxu1 }
 0x453   :  { %v2256_v52 = vadd.f32 %v2255_v33, %v2095_v9  ;;  %v2109_v62 = vpop.f32.mrf.mxu0 }
 0x454   :  { %v2020_v5 = vpop.f32.mrf.mxu2 }
 0x455   :  { %v8621_v36 = vadd.f32 %v2344_v7, %v2256_v52  ;;  %2302 = vmatmul.f32.gmra.mxu1 %v235_v0  ;;  %5487 = vmatmul.msk.f32.gmra.mxu3 %vm904_vm1, %v296_v2  ;;  %v2104_v7 = vadd.f32 %v2103_v39, %v2014_v11  ;;  %v2110_v33 = vadd.f32 %v2109_v62, %v2020_v5  ;;  %v295_v52 = vld [vmem:[#allocation4 + $0x340] sm:$0xff]  ;;  %v350_v11 = vld [vmem:[#allocation4 + $0x4f0] sm:$0xff] }
 0x456   :  { %5463 = vmatmul.msk.f32.gmra.mxu0 %vm904_vm1, %v345_v51  ;;  %v299_v5 = vld [vmem:[#allocation4 + $0x360] sm:$0xff]  ;;  %v354_v2 = vld [vmem:[#allocation4 + $0x510] sm:$0xff] }
 0x458   :  { %v2359_v50 = vpop.f32.mrf.mxu3 }
 0x459   :  { %2714 = vmatmul.f32.gmra.mxu2 %v346_v10 }
 0x45a   :  { %v2258_v20 = vpop.f32.mrf.mxu1 }
 0x45b   :  { %v2259_v23 = vadd.f32 %v2258_v20, %v2098_v35  ;;  %v2112_v47 = vpop.f32.mrf.mxu0  ;;  %v351_v35 = vld [vmem:[#allocation4 + $0x4f8] sm:$0xff] }
 0x45c   :  { %v2023_v3 = vpop.f32.mrf.mxu2 }
 0x45d   :  { %v8625_v22 = vadd.f32 %v2347_v41, %v2259_v23  ;;  %2949 = vmatmul.f32.vlgmr.msra.gmra.mxu1 %v287_v27  ;;  %5488 = vmatmul.msk.f32.gmra.mxu3 %vm904_vm1, %v298_v40  ;;  %v2113_v27 = vadd.f32 %v2112_v47, %v2023_v3  ;;  %v301_v47 = vld [vmem:[#allocation4 + $0x370] sm:$0xff] }
 0x45e   :  { %5464 = vmatmul.msk.f32.gmra.mxu0 %vm904_vm1, %v347_v59  ;;  %v356_v59 = vld [vmem:[#allocation4 + $0x520] sm:$0xff] }
 0x460   :  { %v2362_v41 = vpop.f32.mrf.mxu3 }
 0x461   :  { %2717 = vmatmul.f32.gmra.mxu2 %v348_v42 }
 0x462   :  { %v2261_v61 = vpop.f32.mrf.mxu1 }
 0x463   :  { %v2262_v55 = vadd.f32 %v2261_v61, %v2101_v54  ;;  %v2115_v30 = vpop.f32.mrf.mxu0  ;;  %v353_v61 = vld [vmem:[#allocation4 + $0x508] sm:$0xff] }
 0x464   :  { %v2026_v28 = vpop.f32.mrf.mxu2 }
 0x465   :  { %v8629_v57 = vadd.f32 %v2350_v32, %v2262_v55  ;;  %2952 = vmatmul.f32.gmra.mxu1 %v289_v37  ;;  %v349_v32 = vld [vmem:[#allocation4 + $0x4e8] sm:$0xff]  ;;  %5489 = vmatmul.msk.f32.gmra.mxu3 %vm904_vm1, %v300_v14  ;;  %v2116_v55 = vadd.f32 %v2115_v30, %v2026_v28  ;;  %v8657_v28 = vpop.permute.xlu2 %2448 }
 0x466   :  { %5465 = vmatmul.msk.f32.gmra.mxu0 %vm904_vm1, %v349_v32  ;;  %11825 = vst [vmem:[#allocation68_spill] sm:$0xff] %v8657_v28 }
 0x468   :  { %v2365_v9 = vpop.f32.mrf.mxu3 }
 0x469   :  { %2720 = vmatmul.f32.gmra.mxu2 %v350_v11 }
 0x46a   :  { %v2264_v25 = vpop.f32.mrf.mxu1 }
 0x46b   :  { %v2265_v13 = vadd.f32 %v2264_v25, %v2104_v7  ;;  %v2118_v21 = vpop.f32.mrf.mxu0  ;;  %v355_v25 = vld [vmem:[#allocation4 + $0x518] sm:$0xff] }
 0x46c   :  { %v2029_v39 = vpop.f32.mrf.mxu2 }
 0x46d   :  { %v8633_v29 = vadd.f32 %v2353_v38, %v2265_v13  ;;  %2955 = vmatmul.f32.gmra.mxu1 %v291_v53  ;;  %5490 = vmatmul.msk.f32.gmra.mxu3 %vm904_vm1, %v302_v8  ;;  %v2119_v13 = vadd.f32 %v2118_v21, %v2029_v39  ;;  %v359_v39 = vld [vmem:[#allocation4 + $0x538] sm:$0xff] }
 0x46e   :  { %5466 = vmatmul.msk.f32.gmra.mxu0 %vm904_vm1, %v351_v35 }
 0x470   :  { %v2368_v20 = vpop.f32.mrf.mxu3 }
 0x471   :  { %2723 = vmatmul.f32.gmra.mxu2 %v352_v4  ;;  %v360_v4 = vld [vmem:[#allocation4 + $0x540] sm:$0xff] }
 0x472   :  { %v2267_v1 = vpop.f32.mrf.mxu1 }
 0x473   :  { %v2268_v19 = vadd.f32 %v2267_v1, %v2107_v48  ;;  %v2121_v46 = vpop.f32.mrf.mxu0  ;;  %v308_v48 = vld [vmem:[#allocation4 + $0x3a8] sm:$0xff] }
 0x474   :  { %v2032_v58 = vpop.f32.mrf.mxu2 }
 0x475   :  { %v8637_v44 = vadd.f32 %v2356_v31, %v2268_v19  ;;  %2958 = vmatmul.f32.gmra.mxu1 %v293_v34  ;;  %v304_v31 = vld [vmem:[#allocation4 + $0x388] sm:$0xff]  ;;  %v2122_v19 = vadd.f32 %v2121_v46, %v2032_v58 }
 0x476   :  { %5491 = vmatmul.msk.f32.gmra.mxu3 %vm904_vm1, %v304_v31  ;;  %5467 = vmatmul.msk.f32.gmra.mxu0 %vm904_vm1, %v353_v61  ;;  %v357_v34 = vld [vmem:[#allocation4 + $0x528] sm:$0xff] }
 0x477   :  { %v312_v46 = vld [vmem:[#allocation4 + $0x3c8] sm:$0xff] }
 0x478   :  { %v2371_v37 = vpop.f32.mrf.mxu3  ;;  %v361_v61 = vld [vmem:[#allocation4 + $0x548] sm:$0xff] }
 0x479   :  { %2726 = vmatmul.f32.gmra.mxu2 %v354_v2  ;;  %v307_v2 = vld [vmem:[#allocation4 + $0x3a0] sm:$0xff] }
 0x47a   :  { %v2270_v0 = vpop.f32.mrf.mxu1 }
 0x47b   :  { %v2271_v16 = vadd.f32 %v2270_v0, %v2110_v33  ;;  %v2124_v51 = vpop.f32.mrf.mxu0  ;;  %v358_v0 = vld [vmem:[#allocation4 + $0x530] sm:$0xff] }
 0x47c   :  { %v2035_v53 = vpop.f32.mrf.mxu2 }
 0x47d   :  { %v8641_v38 = vadd.f32 %v2359_v50, %v2271_v16  ;;  %2961 = vmatmul.f32.gmra.mxu1 %v295_v52  ;;  %v306_v50 = vld [vmem:[#allocation4 + $0x398] sm:$0xff]  ;;  %v2125_v21 = vadd.f32 %v2124_v51, %v2035_v53 }
 0x47e   :  { %5492 = vmatmul.msk.f32.gmra.mxu3 %vm904_vm1, %v306_v50  ;;  %5468 = vmatmul.msk.f32.gmra.mxu0 %vm904_vm1, %v355_v25  ;;  %v310_v16 = vld [vmem:[#allocation4 + $0x3b8] sm:$0xff]  ;;  %v362_v50 = vld [vmem:[#allocation4 + $0x550] sm:$0xff] }
 0x47f   :  { %v314_v53 = vld [vmem:[#allocation4 + $0x3d8] sm:$0xff] }
 0x480   :  { %v2374_v10 = vpop.f32.mrf.mxu3 }
 0x481   :  { %2729 = vmatmul.f32.gmra.mxu2 %v356_v59 }
 0x482   :  { %v2273_v23 = vpop.f32.mrf.mxu1 }
 0x483   :  { %v2274_v6 = vadd.f32 %v2273_v23, %v2113_v27  ;;  %v305_v23 = vld [vmem:[#allocation4 + $0x390] sm:$0xff] }
 0x484   :  { %v2038_v42 = vpop.f32.mrf.mxu2 }
 0x485   :  { %v8645_v54 = vadd.f32 %v2362_v41, %v2274_v6  ;;  %2964 = vmatmul.f32.gmra.mxu1 %v297_v60  ;;  %v2127_v41 = vpop.f32.mrf.mxu0  ;;  %v8663_v60 = vpop.permute.xlu2 %2444 }
 0x486   :  { %5493 = vmatmul.msk.f32.gmra.mxu3 %vm904_vm1, %v308_v48  ;;  %5469 = vmatmul.msk.f32.gmra.mxu0 %vm904_vm1, %v357_v34  ;;  %v2128_v30 = vadd.f32 %v2127_v41, %v2038_v42  ;;  %11827 = vst [vmem:[#allocation71_spill] sm:$0xff] %v8663_v60  ;;  %v309_v34 = vld [vmem:[#allocation4 + $0x3b0] sm:$0xff]  ;;  %v364_v42 = vld [vmem:[#allocation4 + $0x560] sm:$0xff] }
 0x488   :  { %v2377_v14 = vpop.f32.mrf.mxu3 }
 0x489   :  { %2732 = vmatmul.f32.gmra.mxu2 %v358_v0 }
 0x48a   :  { %v2276_v45 = vpop.f32.mrf.mxu1 }
 0x48b   :  { %v2277_v62 = vadd.f32 %v2276_v45, %v2116_v55 }
 0x48c   :  { %v2041_v8 = vpop.f32.mrf.mxu2 }
 0x48d   :  { %v8649_v7 = vadd.f32 %v2365_v9, %v2277_v62  ;;  %2967 = vmatmul.f32.gmra.mxu1 %v299_v5  ;;  %v303_v9 = vld [vmem:[#allocation4 + $0x380] sm:$0xff]  ;;  %v2130_v52 = vpop.f32.mrf.mxu0 }
 0x48e   :  { %5494 = vmatmul.msk.f32.gmra.mxu3 %vm904_vm1, %v310_v16  ;;  %5470 = vmatmul.msk.f32.gmra.mxu0 %vm904_vm1, %v359_v39  ;;  %v2131_v35 = vadd.f32 %v2130_v52, %v2041_v8  ;;  %v311_v8 = vld [vmem:[#allocation4 + $0x3c0] sm:$0xff] }
 0x491   :  { %2735 = vmatmul.f32.gmra.mxu2 %v360_v4  ;;  %v367_v4 = vld [vmem:[#allocation4 + $0x578] sm:$0xff] }
 0x492   :  { %v2279_v3 = vpop.f32.mrf.mxu1 }
 0x493   :  { %v2280_v40 = vadd.f32 %v2279_v3, %v2119_v13  ;;  %v8671_v13 = vpop.permute.xlu2 %3164  ;;  %v363_v3 = vld [vmem:[#allocation4 + $0x558] sm:$0xff] }
 0x494   :  { %v2044_v55 = vpop.f32.mrf.mxu2  ;;  %11830 = vst [vmem:[#allocation74_spill] sm:$0xff] %v8671_v13 }
 0x495   :  { %v8653_v1 = vadd.f32 %v2368_v20, %v2280_v40  ;;  %2970 = vmatmul.f32.gmra.mxu1 %v301_v47  ;;  %v2380_v20 = vpop.f32.mrf.mxu3  ;;  %v2133_v58 = vpop.f32.mrf.mxu0 }
 0x496   :  { %5495 = vmatmul.msk.f32.gmra.mxu3 %vm904_vm1, %v312_v46  ;;  %5471 = vmatmul.msk.f32.gmra.mxu0 %vm904_vm1, %v361_v61  ;;  %v2134_v45 = vadd.f32 %v2133_v58, %v2044_v55 }
 0x499   :  { %2738 = vmatmul.f32.gmra.mxu2 %v362_v50  ;;  %v368_v50 = vld [vmem:[#allocation4 + $0x580] sm:$0xff] }
 0x49a   :  { %v2282_v32 = vpop.f32.mrf.mxu1 }
 0x49b   :  { %v2283_v33 = vadd.f32 %v2282_v32, %v2122_v19  ;;  %v316_v32 = vld [vmem:[#allocation4 + $0x3e8] sm:$0xff] }
 0x49c   :  { %v2047_v40 = vpop.f32.mrf.mxu2 }
 0x49d   :  { %v8659_v11 = vadd.f32 %v2371_v37, %v2283_v33  ;;  %2973 = vmatmul.f32.gmra.mxu1 %v303_v9  ;;  %v8667_v37 = vpop.permute.xlu1 %2452  ;;  %v2383_v5 = vpop.f32.mrf.mxu3  ;;  %v365_v9 = vld [vmem:[#allocation4 + $0x568] sm:$0xff] }
 0x49e   :  { %11829 = vst [vmem:[#allocation73_spill] sm:$0xff] %v8667_v37  ;;  %v2136_v25 = vpop.f32.mrf.mxu0  ;;  %5496 = vmatmul.msk.f32.gmra.mxu3 %vm904_vm1, %v314_v53  ;;  %5472 = vmatmul.msk.f32.gmra.mxu0 %vm904_vm1, %v363_v3  ;;  %v8683_v33 = vpop.permute.xlu2 %2488  ;;  %v369_v3 = vld [vmem:[#allocation4 + $0x588] sm:$0xff] }
 0x49f   :  { %11826 = vst [vmem:[#allocation36_spill] sm:$0xff] %v8659_v11  ;;  %v2137_v59 = vadd.f32 %v2136_v25, %v2047_v40  ;;  %v320_v25 = vld [vmem:[#allocation4 + $0x408] sm:$0xff]  ;;  %v323_v11 = vld [vmem:[#allocation4 + $0x420] sm:$0xff] }
 0x4a0   :  { %11834 = vst [vmem:[#allocation79_spill] sm:$0xff] %v8683_v33  ;;  %v380_v33 = vld [vmem:[#allocation4 + $0x5e0] sm:$0xff] }
 0x4a1   :  { %2741 = vmatmul.f32.gmra.mxu2 %v364_v42 }
 0x4a2   :  { %v2285_v27 = vpop.f32.mrf.mxu1 }
 0x4a3   :  { %v2286_v6 = vadd.f32 %v2285_v27, %v2125_v21  ;;  %v366_v27 = vld [vmem:[#allocation4 + $0x570] sm:$0xff] }
 0x4a4   :  { %v2050_v0 = vpop.f32.mrf.mxu2 }
 0x4a5   :  { %v8665_v31 = vadd.f32 %v2374_v10, %v2286_v6  ;;  %2976 = vmatmul.f32.gmra.mxu1 %v305_v23  ;;  %v8677_v47 = vpop.permute.xlu1 %3172  ;;  %v2386_v41 = vpop.f32.mrf.mxu3  ;;  %v318_v23 = vld [vmem:[#allocation4 + $0x3f8] sm:$0xff] }
 0x4a6   :  { %11832 = vst [vmem:[#allocation76_spill] sm:$0xff] %v8677_v47  ;;  %5497 = vmatmul.msk.f32.gmra.mxu3 %vm904_vm1, %v316_v32  ;;  %5473 = vmatmul.msk.f32.gmra.mxu0 %vm904_vm1, %v365_v9  ;;  %v8691_v46 = vpop.permute.xlu2 %2484  ;;  %v371_v9 = vld [vmem:[#allocation4 + $0x598] sm:$0xff] }
 0x4a7   :  { %11828 = vst [vmem:[#allocation53_spill] sm:$0xff] %v8665_v31 }
 0x4a8   :  { %11837 = vst [vmem:[#allocation41_spill] sm:$0xff] %v8691_v46  ;;  %v332_v46 = vld [vmem:[#allocation4 + $0x468] sm:$0xff] }
 0x4a9   :  { %2744 = vmatmul.f32.gmra.mxu2 %v366_v27 }
 0x4aa   :  { %v2288_v62 = vpop.f32.mrf.mxu1 }
 0x4ab   :  { %v2289_v51 = vadd.f32 %v2288_v62, %v2128_v30  ;;  %v2139_v30 = vpop.f32.mrf.mxu0 }
 0x4ac   :  { %v2140_v52 = vadd.f32 %v2139_v30, %v2050_v0  ;;  %v2053_v58 = vpop.f32.mrf.mxu2 }
 0x4ad   :  { %v8673_v10 = vadd.f32 %v2377_v14, %v2289_v51  ;;  %2979 = vmatmul.f32.gmra.mxu1 %v307_v2  ;;  %v2389_v16 = vpop.f32.mrf.mxu3  ;;  %v8685_v39 = vpop.permute.xlu1 %2440  ;;  %v313_v2 = vld [vmem:[#allocation4 + $0x3d0] sm:$0xff] }
 0x4ae   :  { %11835 = vst [vmem:[#allocation80_spill] sm:$0xff] %v8685_v39  ;;  %5498 = vmatmul.msk.f32.gmra.mxu3 %vm904_vm1, %v318_v23  ;;  %5474 = vmatmul.msk.f32.gmra.mxu0 %vm904_vm1, %v367_v4  ;;  %v8705_v42 = vpop.permute.xlu2 %2480  ;;  %v372_v23 = vld [vmem:[#allocation4 + $0x5a0] sm:$0xff] }
 0x4af   :  { %11831 = vst [vmem:[#allocation75_spill] sm:$0xff] %v8673_v10  ;;  %v378_v10 = vld [vmem:[#allocation4 + $0x5d0] sm:$0xff] }
 0x4b0   :  { %11843 = vst [vmem:[#allocation45_spill] sm:$0xff] %v8705_v42  ;;  %v325_v42 = vld [vmem:[#allocation4 + $0x430] sm:$0xff] }
 0x4b1   :  { %2747 = vmatmul.f32.gmra.mxu2 %v368_v50 }
 0x4b2   :  { %v2291_v48 = vpop.f32.mrf.mxu1 }
 0x4b3   :  { %v2292_v19 = vadd.f32 %v2291_v48, %v2131_v35 }
 0x4b4   :  { %v8701_v40 = vpop.f32.mrf.mxu2 }
 0x4b5   :  { %v8679_v14 = vadd.f32 %v2380_v20, %v2292_v19  ;;  %2982 = vmatmul.f32.gmra.mxu1 %v309_v34  ;;  %v2142_v20 = vpop.f32.mrf.mxu0  ;;  %v2392_v55 = vpop.f32.mrf.mxu3  ;;  %11841 = vst [vmem:[#allocation44_spill] sm:$0xff] %v8701_v40  ;;  %v315_v34 = vld [vmem:[#allocation4 + $0x3e0] sm:$0xff]  ;;  %v370_v19 = vld [vmem:[#allocation4 + $0x590] sm:$0xff] }
 0x4b6   :  { %v2143_v61 = vadd.f32 %v2142_v20, %v2053_v58  ;;  %v8693_v51 = vpop.permute.xlu1 %2436  ;;  %5499 = vmatmul.msk.f32.gmra.mxu3 %vm904_vm1, %v320_v25  ;;  %5475 = vmatmul.msk.f32.gmra.mxu0 %vm904_vm1, %v369_v3  ;;  %v8721_v58 = vpop.permute.xlu2 %2424  ;;  %v319_v3 = vld [vmem:[#allocation4 + $0x400] sm:$0xff] }
 0x4b7   :  { %11833 = vst [vmem:[#allocation77_spill] sm:$0xff] %v8679_v14  ;;  %v327_v14 = vld [vmem:[#allocation4 + $0x440] sm:$0xff] }
 0x4b8   :  { %11838 = vst [vmem:[#allocation39_spill] sm:$0xff] %v8693_v51 }
 0x4b9   :  { %2750 = vmatmul.f32.gmra.mxu2 %v370_v19  ;;  %11850 = vst [vmem:[#allocation51_spill] sm:$0xff] %v8721_v58  ;;  %v375_v19 = vld [vmem:[#allocation4 + $0x5b8] sm:$0xff] }
 0x4ba   :  { %v2294_v21 = vpop.f32.mrf.mxu1 }
 0x4bb   :  { %v2295_v35 = vadd.f32 %v2294_v21, %v2134_v45 }
 0x4bd   :  { %v8687_v6 = vadd.f32 %v2383_v5, %v2295_v35  ;;  %2985 = vmatmul.f32.gmra.mxu1 %v311_v8  ;;  %v8695_v5 = vpop.f32.mrf.mxu0  ;;  %v8703_v48 = vpop.f32.mrf.mxu3 }
 0x4be   :  { %11839 = vst [vmem:[#allocation40_spill] sm:$0xff] %v8695_v5  ;;  %v8711_v21 = vpop.permute.xlu1 %2432  ;;  %5476 = vmatmul.msk.f32.gmra.mxu0 %vm904_vm1, %v371_v9  ;;  %v8715_v8 = vpop.f32.mrf.mxu2  ;;  %v331_v5 = vld [vmem:[#allocation4 + $0x460] sm:$0xff] }
 0x4bf   :  { %11836 = vst [vmem:[#allocation81_spill] sm:$0xff] %v8687_v6 }
 0x4c0   :  { %11842 = vst [vmem:[#allocation42_spill] sm:$0xff] %v8703_v48  ;;  %v382_v48 = vld [vmem:[#allocation4 + $0x5f0] sm:$0xff] }
 0x4c1   :  { %11846 = vst [vmem:[#allocation54_spill] sm:$0xff] %v8711_v21  ;;  %2753 = vmatmul.f32.gmra.mxu2 %v372_v23  ;;  %v376_v23 = vld [vmem:[#allocation4 + $0x5c0] sm:$0xff] }
 0x4c2   :  { %v2297_v62 = vpop.f32.mrf.mxu1  ;;  %11847 = vst [vmem:[#allocation49_spill] sm:$0xff] %v8715_v8 }
 0x4c3   :  { %v2298_v45 = vadd.f32 %v2297_v62, %v2137_v59 }
 0x4c5   :  { %v8697_v53 = vadd.f32 %v2386_v41, %v2298_v45  ;;  %2988 = vmatmul.f32.gmra.mxu1 %v313_v2  ;;  %v8707_v32 = vpop.f32.mrf.mxu0  ;;  %v322_v41 = vld [vmem:[#allocation4 + $0x418] sm:$0xff]  ;;  %v8717_v35 = vpop.f32.mrf.mxu3  ;;  %v373_v2 = vld [vmem:[#allocation4 + $0x5a8] sm:$0xff] }
 0x4c6   :  { %11844 = vst [vmem:[#allocation47_spill] sm:$0xff] %v8707_v32  ;;  %5500 = vmatmul.msk.f32.gmra.mxu3 %vm904_vm1, %v322_v41  ;;  %5477 = vmatmul.msk.f32.gmra.mxu0 %vm904_vm1, %v373_v2  ;;  %v8727_v45 = vpop.permute.xlu1 %2428  ;;  %v8729_v50 = vpop.f32.mrf.mxu2  ;;  %v328_v2 = vld [vmem:[#allocation4 + $0x448] sm:$0xff] }
 0x4c7   :  { %11840 = vst [vmem:[#allocation43_spill] sm:$0xff] %v8697_v53 }
 0x4c8   :  { %11848 = vst [vmem:[#allocation55_spill] sm:$0xff] %v8717_v35 }
 0x4c9   :  { %11852 = vst [vmem:[#allocation52_spill] sm:$0xff] %v8727_v45 }
 0x4ca   :  { %v2300_v59 = vpop.f32.mrf.mxu1  ;;  %11853 = vst [vmem:[#allocation57_spill] sm:$0xff] %v8729_v50 }
 0x4cb   :  { %v2301_v30 = vadd.f32 %v2300_v59, %v2140_v52  ;;  %v317_v52 = vld [vmem:[#allocation4 + $0x3f0] sm:$0xff] }
 0x4cc   :  { %v374_v59 = vld [vmem:[#allocation4 + $0x5b0] sm:$0xff] }
 0x4cd   :  { %v8709_v0 = vadd.f32 %v2389_v16, %v2301_v30  ;;  %2991 = vmatmul.f32.gmra.mxu1 %v315_v34  ;;  %v8719_v4 = vpop.f32.mrf.mxu0  ;;  %v324_v16 = vld [vmem:[#allocation4 + $0x428] sm:$0xff]  ;;  %2756 = vmatmul.f32.gmra.mxu2 %v374_v59  ;;  %v8739_v30 = vpop.permute.xlu2 %3200 }
 0x4ce   :  { %11849 = vst [vmem:[#allocation50_spill] sm:$0xff] %v8719_v4  ;;  %5501 = vmatmul.msk.f32.gmra.mxu3 %vm904_vm1, %v324_v16  ;;  %5478 = vmatmul.msk.f32.gmra.mxu0 %vm904_vm1, %v375_v19  ;;  %v8741_v41 = vpop.f32.mrf.mxu2 }
 0x4cf   :  { %11845 = vst [vmem:[#allocation48_spill] sm:$0xff] %v8709_v0  ;;  %v8785_v0 = vpop.permute.xlu0 %2456 }
 0x4d0   :  { %11857 = vst [vmem:[#allocation70_spill] sm:$0xff] %v8739_v30 }
 0x4d1   :  { %11858 = vst [vmem:[#allocation61_spill] sm:$0xff] %v8741_v41 }
 0x4d2   :  { %v2303_v27 = vpop.f32.mrf.mxu1  ;;  %11877 = vst [vmem:[#allocation88_spill] sm:$0xff] %v8785_v0 }
 0x4d3   :  { %v2304_v20 = vadd.f32 %v2303_v27, %v2143_v61  ;;  %v8731_v61 = vpop.f32.mrf.mxu3  ;;  %v8745_v27 = vpop.permute.xlu1 %3204 }
 0x4d4   :  { %11854 = vst [vmem:[#allocation58_spill] sm:$0xff] %v8731_v61 }
 0x4d5   :  { %v8723_v62 = vadd.f32 %v2392_v55, %v2304_v20  ;;  %2994 = vmatmul.f32.gmra.mxu1 %v317_v52  ;;  %v8735_v34 = vpop.f32.mrf.mxu0  ;;  %v326_v55 = vld [vmem:[#allocation4 + $0x438] sm:$0xff]  ;;  %11860 = vst [vmem:[#allocation64_spill] sm:$0xff] %v8745_v27  ;;  %v321_v20 = vld [vmem:[#allocation4 + $0x410] sm:$0xff]  ;;  %2759 = vmatmul.f32.gmra.mxu2 %v376_v23 }
 0x4d6   :  { %11856 = vst [vmem:[#allocation60_spill] sm:$0xff] %v8735_v34  ;;  %5502 = vmatmul.msk.f32.gmra.mxu3 %vm904_vm1, %v326_v55  ;;  %v8753_v59 = vpop.f32.mrf.mxu2  ;;  %v8755_v55 = vpop.permute.xlu2 %2472  ;;  %v379_v23 = vld [vmem:[#allocation4 + $0x5d8] sm:$0xff] }
 0x4d7   :  { %11851 = vst [vmem:[#allocation56_spill] sm:$0xff] %v8723_v62 }
 0x4d8   :  { %11863 = vst [vmem:[#allocation83_spill] sm:$0xff] %v8753_v59 }
 0x4d9   :  { %11864 = vst [vmem:[#allocation69_spill] sm:$0xff] %v8755_v55 }
 0x4da   :  { %v8733_v25 = vpop.f32.mrf.mxu1 }
 0x4db   :  { %11855 = vst [vmem:[#allocation59_spill] sm:$0xff] %v8733_v25  ;;  %v8743_v9 = vpop.f32.mrf.mxu3  ;;  %v8761_v31 = vpop.permute.xlu1 %3148 }
 0x4dc   :  { %11859 = vst [vmem:[#allocation63_spill] sm:$0xff] %v8743_v9 }
 0x4dd   :  { %2997 = vmatmul.f32.gmra.mxu1 %v319_v3  ;;  %v8749_v16 = vpop.f32.mrf.mxu0  ;;  %v377_v3 = vld [vmem:[#allocation4 + $0x5c8] sm:$0xff]  ;;  %11867 = vst [vmem:[#allocation37_spill] sm:$0xff] %v8761_v31  ;;  %2762 = vmatmul.f32.gmra.mxu2 %v378_v10 }
 0x4de   :  { %11862 = vst [vmem:[#allocation65_spill] sm:$0xff] %v8749_v16  ;;  %5503 = vmatmul.msk.f32.gmra.mxu3 %vm904_vm1, %v328_v2  ;;  %5479 = vmatmul.msk.f32.gmra.mxu0 %vm904_vm1, %v377_v3  ;;  %v8767_v2 = vpop.f32.mrf.mxu2  ;;  %v8773_v53 = vpop.permute.xlu2 %2416 }
 0x4df   :  { %11869 = vst [vmem:[#allocation72_spill] sm:$0xff] %v8767_v2 }
 0x4e0   :  { %11872 = vst [vmem:[#allocation46_spill] sm:$0xff] %v8773_v53 }
 0x4e2   :  { %v8747_v52 = vpop.f32.mrf.mxu1 }
 0x4e3   :  { %11861 = vst [vmem:[#allocation78_spill] sm:$0xff] %v8747_v52  ;;  %v8757_v19 = vpop.f32.mrf.mxu3  ;;  %v8777_v10 = vpop.permute.xlu1 %2420  ;;  %v329_v52 = vld [vmem:[#allocation4 + $0x450] sm:$0xff] }
 0x4e4   :  { %11865 = vst [vmem:[#allocation38_spill] sm:$0xff] %v8757_v19  ;;  %v8803_v19 = vpop.permute.xlu0 %2476 }
 0x4e5   :  { %3000 = vmatmul.f32.gmra.mxu1 %v321_v20  ;;  %v8763_v30 = vpop.f32.mrf.mxu0  ;;  %v330_v20 = vld [vmem:[#allocation4 + $0x458] sm:$0xff]  ;;  %2765 = vmatmul.f32.gmra.mxu2 %v380_v33  ;;  %11874 = vst [vmem:[#allocation85_spill] sm:$0xff] %v8777_v10 }
 0x4e6   :  { %11868 = vst [vmem:[#allocation62_spill] sm:$0xff] %v8763_v30  ;;  %5504 = vmatmul.msk.f32.gmra.mxu3 %vm904_vm1, %v330_v20  ;;  %5480 = vmatmul.msk.f32.gmra.mxu0 %vm904_vm1, %v379_v23  ;;  %v8781_v20 = vpop.f32.mrf.mxu2  ;;  %v334_v33 = vld [vmem:[#allocation4 + $0x478] sm:$0xff] }
 0x4e7   :  { %11875 = vst [vmem:[#allocation86_spill] sm:$0xff] %v8781_v20 }
 0x4e8   :  { %11884 = vst [vmem:[#allocation95_spill] sm:$0xff] %v8803_v19 }
 0x4ea   :  { %v8759_v27 = vpop.f32.mrf.mxu1 }
 0x4eb   :  { %11866 = vst [vmem:[#allocation66_spill] sm:$0xff] %v8759_v27  ;;  %v8769_v3 = vpop.f32.mrf.mxu3 }
 0x4ec   :  { %11870 = vst [vmem:[#allocation82_spill] sm:$0xff] %v8769_v3 }
 0x4ed   :  { %3003 = vmatmul.f32.gmra.mxu1 %v323_v11  ;;  %v8775_v62 = vpop.f32.mrf.mxu0  ;;  %v381_v11 = vld [vmem:[#allocation4 + $0x5e8] sm:$0xff]  ;;  %2768 = vmatmul.f32.gmra.mxu2 %v382_v48 }
 0x4ee   :  { %11873 = vst [vmem:[#allocation67_spill] sm:$0xff] %v8775_v62  ;;  %5505 = vmatmul.msk.f32.gmra.mxu3 %vm904_vm1, %v332_v46  ;;  %5481 = vmatmul.msk.f32.gmra.mxu0 %vm904_vm1, %v381_v11  ;;  %v383_v46 = vld [vmem:[#allocation4 + $0x5f8] sm:$0xff]  ;;  %v8795_v11 = vpop.permute.xlu1 %3196  ;;  %v8797_v61 = vpop.f32.mrf.mxu2 }
 0x4ef   :  { %11881 = vst [vmem:[#allocation92_spill] sm:$0xff] %v8795_v11 }
 0x4f2   :  { %v8771_v6 = vpop.f32.mrf.mxu1 }
 0x4f3   :  { %11871 = vst [vmem:[#allocation84_spill] sm:$0xff] %v8771_v6  ;;  %v8783_v23 = vpop.f32.mrf.mxu3  ;;  %v333_v6 = vld [vmem:[#allocation4 + $0x470] sm:$0xff] }
 0x4f4   :  { %11876 = vst [vmem:[#allocation87_spill] sm:$0xff] %v8783_v23 }
 0x4f5   :  { %3006 = vmatmul.f32.gmra.mxu1 %v325_v42  ;;  %v8789_v35 = vpop.f32.mrf.mxu0  ;;  %v8791_v42 = vpop.permute.xlu2 %3140 }
 0x4f6   :  { %11879 = vst [vmem:[#allocation90_spill] sm:$0xff] %v8789_v35  ;;  %5506 = vmatmul.msk.f32.gmra.mxu3 %vm904_vm1, %v334_v33  ;;  %5482 = vmatmul.msk.f32.gmra.mxu0 %vm904_vm1, %v383_v46  ;;  %v8809_v48 = vpop.f32.mrf.mxu2  ;;  %v8813_v46 = vpop.permute.xlu1 %2468 }
 0x4f7   :  { %11880 = vst [vmem:[#allocation91_spill] sm:$0xff] %v8791_v42  ;;  %v8819_v42 = vpop.permute.xlu0 %2460 }
 0x4f8   :  { %11887 = vst [vmem:[#allocation98_spill] sm:$0xff] %v8813_v46 }
 0x4f9   :  { %11889 = vst [vmem:[#allocation100_spill] sm:$0xff] %v8819_v42 }
 0x4fa   :  { %v8787_v55 = vpop.f32.mrf.mxu1 }
 0x4fb   :  { %11878 = vst [vmem:[#allocation89_spill] sm:$0xff] %v8787_v55  ;;  %v8799_v25 = vpop.f32.mrf.mxu3 }
 0x4fc   :  { %11882 = vst [vmem:[#allocation93_spill] sm:$0xff] %v8799_v25 }
 0x4fd   :  { %3009 = vmatmul.f32.gmra.mxu1 %v327_v14  ;;  %v8805_v27 = vpop.f32.mrf.mxu0  ;;  %v8807_v14 = vpop.permute.xlu2 %2464 }
 0x4fe   :  { %11885 = vst [vmem:[#allocation96_spill] sm:$0xff] %v8807_v14  ;;  %v8821_v19 = vpop.f32.mrf.mxu2  ;;  %v8829_v32 = vpop.permute.xlu1 %2412 }
 0x4ff   :  { %11893 = vst [vmem:[#allocation104_spill] sm:$0xff] %v8829_v32  ;;  %v8833_v8 = vpop.permute.xlu0 %3168 }
 0x500   :  { %11894 = vst [vmem:[#allocation105_spill] sm:$0xff] %v8833_v8 }
 0x502   :  { %v8801_v9 = vpop.f32.mrf.mxu1 }
 0x503   :  { %11883 = vst [vmem:[#allocation94_spill] sm:$0xff] %v8801_v9  ;;  %v8811_v33 = vpop.f32.mrf.mxu3 }
 0x504   :  { %11886 = vst [vmem:[#allocation97_spill] sm:$0xff] %v8811_v33 }
 0x505   :  { %3012 = vmatmul.f32.gmra.mxu1 %v329_v52  ;;  %v8817_v40 = vpop.f32.mrf.mxu0  ;;  %v8823_v3 = vpop.permute.xlu2 %2408 }
 0x506   :  { %11890 = vst [vmem:[#allocation101_spill] sm:$0xff] %v8823_v3  ;;  %v8835_v23 = vpop.f32.mrf.mxu2  ;;  %v8845_v50 = vpop.permute.xlu1 %3188 }
 0x507   :  { %11898 = vst [vmem:[#allocation109_spill] sm:$0xff] %v8845_v50  ;;  %v8851_v9 = vpop.permute.xlu0 %3160 }
 0x508   :  { %11900 = vst [vmem:[#allocation111_spill] sm:$0xff] %v8851_v9 }
 0x50a   :  { %v8815_v11 = vpop.f32.mrf.mxu1 }
 0x50b   :  { %11888 = vst [vmem:[#allocation99_spill] sm:$0xff] %v8815_v11  ;;  %v8825_v52 = vpop.f32.mrf.mxu3 }
 0x50c   :  { %11891 = vst [vmem:[#allocation102_spill] sm:$0xff] %v8825_v52  ;;  %v2074_v52 = vadd.f32 %v8585_v43, %v8583_v12 }
 0x50d   :  { %3015 = vmatmul.f32.gmra.mxu1 %v331_v5  ;;  %v8831_v46 = vpop.f32.mrf.mxu0  ;;  %v8841_v55 = vpop.permute.xlu2 %3184 }
 0x50e   :  { %11897 = vst [vmem:[#allocation108_spill] sm:$0xff] %v8841_v55  ;;  %v8847_v31 = vpop.f32.mrf.mxu2  ;;  %v8857_v33 = vpop.permute.xlu1 %3132 }
 0x50f   :  { %11903 = vst [vmem:[#allocation114_spill] sm:$0xff] %v8857_v33  ;;  %v8863_v59 = vpop.permute.xlu0 %3156  ;;  %v2235_v33 = vadd.f32 %v8593_v56, %v2074_v52 }
 0x510   :  { %11904 = vst [vmem:[#allocation115_spill] sm:$0xff] %v8863_v59 }
 0x511   :  { %v2324_v59 = vadd.f32 %v8587_v49, %v2235_v33  ;;  %v2494_v49 = vadd.f32 %v8823_v3, %v8605_v17  ;;  %v2498_v17 = vadd.f32 %v8721_v58, %v8621_v36 }
 0x512   :  { %v8827_v14 = vpop.f32.mrf.mxu1 }
 0x513   :  { %11892 = vst [vmem:[#allocation103_spill] sm:$0xff] %v8827_v14  ;;  %v8837_v5 = vpop.f32.mrf.mxu3 }
 0x514   :  { %11895 = vst [vmem:[#allocation106_spill] sm:$0xff] %v8837_v5 }
 0x515   :  { %3018 = vmatmul.f32.gmra.mxu1 %v333_v6  ;;  %v8843_v4 = vpop.f32.mrf.mxu0  ;;  %v8855_v41 = vpop.permute.xlu2 %3128 }
 0x516   :  { %11902 = vst [vmem:[#allocation113_spill] sm:$0xff] %v8855_v41  ;;  %v2736_v11 = vpop.f32.mrf.mxu2  ;;  %v8871_v2 = vpop.permute.xlu1 %2404  ;;  %v11959_v3 = vld [vmem:[#allocation114_spill] sm:$0xff] }
 0x517   :  { %11906 = vst [vmem:[#allocation117_spill] sm:$0xff] %v8871_v2  ;;  %v2493_v52 = vadd.f32 %v8871_v2, %v8601_v24  ;;  %v2518_v2 = vmul.f32 0.5, %v2494_v49  ;;  %v2502_v49 = vadd.f32 %v8685_v39, %v8637_v44 }
 0x51a   :  { %v8839_v42 = vpop.f32.mrf.mxu1 }
 0x51b   :  { %11896 = vst [vmem:[#allocation107_spill] sm:$0xff] %v8839_v42  ;;  %v8849_v25 = vpop.f32.mrf.mxu3  ;;  %v8876_v42 = vpop.permute.xlu0 %3152 }
 0x51c   :  { %11899 = vst [vmem:[#allocation110_spill] sm:$0xff] %v8849_v25  ;;  %v2495_v25 = vadd.f32 %v8829_v32, %v8609_v18  ;;  %v2500_v18 = vadd.f32 %v8711_v21, %v8629_v57  ;;  %v2503_v57 = vadd.f32 %v8663_v60, %v8641_v38  ;;  %v2823_v38 = vadd.f32 %v8843_v4, %v8847_v31  ;;  %v11939_v21 = vld [vmem:[#allocation50_spill] sm:$0xff] }
 0x51d   :  { %v2825_v34 = vpop.f32.mrf.mxu0  ;;  %v8865_v47 = vpop.permute.xlu2 %3124  ;;  %11907 = vst [vmem:[#allocation118_spill] sm:$0xff] %v8876_v42 }
 0x51e   :  { %11905 = vst [vmem:[#allocation116_spill] sm:$0xff] %v8865_v47  ;;  %v2739_v14 = vpop.f32.mrf.mxu2  ;;  %v8883_v43 = vpop.permute.xlu1 %2400 }
 0x51f   :  { %11909 = vst [vmem:[#allocation120_spill] sm:$0xff] %v8883_v43  ;;  %v2492_v56 = vadd.f32 %v8883_v43, %v8597_v26  ;;  %v2497_v26 = vadd.f32 %v8777_v10, %v8617_v63  ;;  %v2522_v10 = vmul.f32 0.5, %v2498_v17  ;;  %v2504_v17 = vadd.f32 %v8657_v28, %v8645_v54 }
 0x521   :  { %v2516_v35 = vmul.f32 0.5, %v2492_v56  ;;  %v2521_v63 = vmul.f32 0.5, %v2497_v26 }
 0x522   :  { %v8853_v6 = vpop.f32.mrf.mxu1 }
 0x523   :  { %11901 = vst [vmem:[#allocation112_spill] sm:$0xff] %v8853_v6  ;;  %v8859_v16 = vpop.f32.mrf.mxu3  ;;  %v8894_v33 = vpop.permute.xlu0 %3144 }
 0x524   :  { %11910 = vst [vmem:[#allocation121_spill] sm:$0xff] %v8894_v33 }
 0x525   :  { %v2828_v50 = vpop.f32.mrf.mxu0  ;;  %v8879_v62 = vpop.permute.xlu2 %2396 }
 0x526   :  { %v2742_v9 = vpop.f32.mrf.mxu2  ;;  %11908 = vst [vmem:[#allocation119_spill] sm:$0xff] %v8879_v62  ;;  %v2491_v20 = vadd.f32 %v8879_v62, %v2324_v59  ;;  %v2496_v59 = vadd.f32 %v8773_v53, %v8613_v15  ;;  %v2517_v62 = vmul.f32 0.5, %v2493_v52  ;;  %v2501_v15 = vadd.f32 %v8693_v51, %v8633_v29  ;;  %v11955_v53 = vld [vmem:[#allocation38_spill] sm:$0xff] }
 0x527   :  { %v2829_v36 = vadd.f32 %v2828_v50, %v2739_v14  ;;  %v2526_v50 = vmul.f32 0.5, %v2502_v49 }
 0x528   :  { %v2515_v42 = vmul.f32 0.5, %v2491_v20  ;;  %v2519_v20 = vmul.f32 0.5, %v2495_v25  ;;  %v2520_v56 = vmul.f32 0.5, %v2496_v59  ;;  %v2524_v25 = vmul.f32 0.5, %v2500_v18 }
 0x529   :  { %v2525_v29 = vmul.f32 0.5, %v2501_v15 }
 0x52a   :  { %v8861_v55 = vpop.f32.mrf.mxu1  ;;  %5756 = vtanh.f32 %v2515_v42 }
 0x52b   :  { %v8869_v30 = vpop.f32.mrf.mxu3  ;;  %5758 = vtanh.f32 %v2516_v35  ;;  %v2826_v35 = vadd.f32 %v2825_v34, %v2736_v11  ;;  %v8922_v44 = vpop.permute.xlu0 %3192 }
 0x52c   :  { %5760 = vtanh.f32 %v2517_v62  ;;  %v2505_v62 = vadd.f32 %v8667_v37, %v8649_v7  ;;  %11911 = vst [vmem:[#allocation122_spill] sm:$0xff] %v8922_v44  ;;  %v2527_v7 = vmul.f32 0.5, %v2503_v57  ;;  %v11951_v37 = vld [vmem:[#allocation40_spill] sm:$0xff] }
 0x52d   :  { %v2831_v5 = vpop.f32.mrf.mxu0  ;;  %5762 = vtanh.f32 %v2518_v2 }
 0x52e   :  { %v2745_v6 = vpop.f32.mrf.mxu2  ;;  %v2832_v42 = vadd.f32 %v2831_v5, %v2742_v9  ;;  %5764 = vtanh.f32 %v2519_v20  ;;  %v2506_v9 = vadd.f32 %v8785_v0, %v8653_v1  ;;  %v11950_v0 = vld [vmem:[#allocation44_spill] sm:$0xff] }
 0x52f   :  { %5766 = vtanh.f32 %v2520_v56  ;;  %v2529_v56 = vmul.f32 0.5, %v2505_v62 }
 0x530   :  { %v8920_v26 = vpop.eup %5756  ;;  %5768 = vtanh.f32 %v2521_v63  ;;  %v2530_v15 = vmul.f32 0.5, %v2506_v9 }
 0x531   :  { %v8926_v14 = vpop.eup %5758  ;;  %5770 = vtanh.f32 %v2522_v10  ;;  %v2820_v10 = vadd.f32 %v8831_v46, %v8835_v23 }
 0x532   :  { %v8873_v41 = vpop.f32.mrf.mxu1  ;;  %v8930_v5 = vpop.eup %5760  ;;  %5772 = vtanh.f32 %v2524_v25 }
 0x533   :  { %v8881_v47 = vpop.f32.mrf.mxu3  ;;  %v8936_v1 = vpop.eup %5762  ;;  %5774 = vtanh.f32 %v2525_v29  ;;  %v2984_v63 = vadd.f32 %v8873_v41, %v2823_v38  ;;  %v11913_v29 = vld [vmem:[#allocation112_spill] sm:$0xff] }
 0x534   :  { %v8941_v4 = vpop.eup %5764  ;;  %5776 = vtanh.f32 %v2526_v50  ;;  %v11914_v50 = vld [vmem:[#allocation110_spill] sm:$0xff] }
 0x535   :  { %v8886_v13 = vpop.f32.mrf.mxu0  ;;  %v8945_v54 = vpop.eup %5766  ;;  %5778 = vtanh.f32 %v2527_v7  ;;  %v3073_v9 = vadd.f32 %v11914_v50, %v2984_v63  ;;  %v11923_v63 = vld [vmem:[#allocation62_spill] sm:$0xff] }
 0x536   :  { %v8916_v59 = vpop.f32.mrf.mxu2  ;;  %v2835_v23 = vadd.f32 %v8886_v13, %v2745_v6  ;;  %5780 = vtanh.f32 %v2529_v56  ;;  %v11912_v6 = vld [vmem:[#allocation90_spill] sm:$0xff]  ;;  %v11920_v56 = vld [vmem:[#allocation107_spill] sm:$0xff] }
 0x537   :  { %5782 = vtanh.f32 %v2530_v15  ;;  %v2811_v57 = vadd.f32 %v11912_v6, %v8797_v61 }
 0x53a   :  { %v2986_v12 = vpop.f32.mrf.mxu1 }
 0x53b   :  { %v8902_v24 = vpop.f32.mrf.mxu3  ;;  %v2987_v20 = vadd.f32 %v2986_v12, %v2826_v35  ;;  %v2817_v12 = vadd.f32 %v8817_v40, %v8821_v19  ;;  %v2814_v40 = vadd.f32 %v8805_v27, %v8809_v48  ;;  %v8970_v48 = vpop.permute.xlu0 %3136 }
 0x53c   :  { %11916 = vst [vmem:[#allocation90_spill] sm:$0xff] %v8970_v48 }
 0x53d   :  { %v8910_v52 = vpop.f32.mrf.mxu0  ;;  %v2978_v62 = vadd.f32 %v11913_v29, %v2817_v12  ;;  %v2975_v61 = vadd.f32 %v11920_v56, %v2814_v40  ;;  %v11922_v12 = vld [vmem:[#allocation72_spill] sm:$0xff]  ;;  %v11925_v29 = vld [vmem:[#allocation102_spill] sm:$0xff] }
 0x53e   :  { %v11927_v40 = vld [vmem:[#allocation76_spill] sm:$0xff] }
 0x53f   :  { %v3067_v50 = vadd.f32 %v11925_v29, %v2978_v62 }
 0x542   :  { %v2989_v43 = vpop.f32.mrf.mxu1 }
 0x543   :  { %v2990_v34 = vadd.f32 %v2989_v43, %v2829_v36  ;;  %v8934_v18 = vpop.f32.mrf.mxu3  ;;  %v2499_v43 = vadd.f32 %v8727_v45, %v8625_v22  ;;  %v2528_v36 = vmul.f32 0.5, %v2504_v17  ;;  %v3076_v22 = vadd.f32 %v8859_v16, %v2987_v20  ;;  %v11919_v17 = vld [vmem:[#allocation111_spill] sm:$0xff]  ;;  %v11954_v45 = vld [vmem:[#allocation66_spill] sm:$0xff] }
 0x545   :  { %v3079_v49 = vadd.f32 %v8869_v30, %v2990_v34  ;;  %v8952_v46 = vpop.f32.mrf.mxu0  ;;  %v2981_v30 = vadd.f32 %v8861_v55, %v2820_v10  ;;  %v2523_v19 = vmul.f32 0.5, %v2499_v43  ;;  %5784 = vtanh.f32 %v2528_v36  ;;  %v11917_v55 = vld [vmem:[#allocation86_spill] sm:$0xff] }
 0x546   :  { %v3219_v20 = vadd.f32 %v11919_v17, %v3076_v22  ;;  %v11921_v10 = vld [vmem:[#allocation106_spill] sm:$0xff]  ;;  %v11926_v22 = vld [vmem:[#allocation115_spill] sm:$0xff] }
 0x54a   :  { %v2992_v2 = vpop.f32.mrf.mxu1 }
 0x54b   :  { %v2993_v11 = vadd.f32 %v2992_v2, %v2832_v42  ;;  %v8957_v42 = vpop.f32.mrf.mxu2  ;;  %v11915_v2 = vld [vmem:[#allocation74_spill] sm:$0xff]  ;;  %v8981_v36 = vpop.f32.mrf.mxu3 }
 0x54c   :  { %v3220_v38 = vadd.f32 %v11915_v2, %v3079_v49  ;;  %v2805_v49 = vadd.f32 %v11923_v63, %v11922_v12 }
 0x54d   :  { %v3082_v31 = vadd.f32 %v8881_v47, %v2993_v11  ;;  %v8954_v47 = vpop.eup %5768  ;;  %v11918_v11 = vld [vmem:[#allocation67_spill] sm:$0xff] }
 0x54e   :  { %v8959_v25 = vpop.eup %5770  ;;  %v2808_v7 = vadd.f32 %v11918_v11, %v11917_v55  ;;  %v3218_v55 = vadd.f32 %v11926_v22, %v3073_v9  ;;  %v11928_v11 = vld [vmem:[#allocation83_spill] sm:$0xff] }
 0x54f   :  { %v3221_v13 = vadd.f32 %v8833_v8, %v3082_v31  ;;  %v5773_v41 = vpop.eup %5772  ;;  %v3070_v31 = vadd.f32 %v11921_v10, %v2981_v30  ;;  %v11931_v10 = vld [vmem:[#allocation97_spill] sm:$0xff]  ;;  %v11941_v8 = vld [vmem:[#allocation87_spill] sm:$0xff] }
 0x550   :  { %v5775_v16 = vpop.eup %5774  ;;  %v3064_v12 = vadd.f32 %v11931_v10, %v2975_v61  ;;  %v8993_v29 = vadd.f32 1.0, %v5773_v41  ;;  %v11935_v61 = vld [vmem:[#allocation94_spill] sm:$0xff] }
 0x551   :  { %v5777_v27 = vpop.eup %5776  ;;  %5786 = vtanh.f32 %v3221_v13  ;;  %v8995_v9 = vadd.f32 1.0, %v5775_v16 }
 0x552   :  { %v2995_v35 = vpop.f32.mrf.mxu1  ;;  %v5779_v15 = vpop.eup %5778  ;;  %5788 = vtanh.f32 %v2523_v19  ;;  %v11930_v19 = vld [vmem:[#allocation99_spill] sm:$0xff]  ;;  %v3215_v28 = vadd.f32 %v8894_v33, %v3064_v12 }
 0x553   :  { %v2996_v34 = vadd.f32 %v2995_v35, %v2835_v23  ;;  %v11924_v23 = vld [vmem:[#allocation103_spill] sm:$0xff]  ;;  %v5781_v35 = vpop.eup %5780  ;;  %5790 = vtanh.f32 %v3220_v38  ;;  %v2969_v56 = vadd.f32 %v11930_v19, %v2808_v7  ;;  %v11937_v19 = vld [vmem:[#allocation37_spill] sm:$0xff]  ;;  %v2575_v16 = vadd.f32 1.0, %v5779_v15 }
 0x554   :  { %v2972_v6 = vadd.f32 %v11924_v23, %v2811_v57  ;;  %v5783_v13 = vpop.eup %5782  ;;  %5792 = vtanh.f32 %v3219_v20  ;;  %v11932_v57 = vld [vmem:[#allocation118_spill] sm:$0xff]  ;;  %v8991_v23 = vpop.f32.mrf.mxu0  ;;  %v2577_v38 = vadd.f32 1.0, %v5781_v35  ;;  %v3216_v10 = vadd.f32 %v11937_v19, %v3067_v50  ;;  %v11938_v35 = vld [vmem:[#allocation57_spill] sm:$0xff]  ;;  %v11953_v33 = vld [vmem:[#allocation31_spill] sm:$0xff] }
 0x555   :  { %v3085_v43 = vadd.f32 %v8902_v24, %v2996_v34  ;;  %v11929_v24 = vld [vmem:[#allocation65_spill] sm:$0xff]  ;;  %v3217_v63 = vadd.f32 %v11932_v57, %v3070_v31  ;;  %v5785_v62 = vpop.eup %5784  ;;  %v9001_v20 = vpop.f32.mrf.mxu2  ;;  %v2574_v57 = vadd.f32 1.0, %v5777_v27  ;;  %v2578_v17 = vadd.f32 1.0, %v5783_v13  ;;  %v11944_v27 = vld [vmem:[#allocation47_spill] sm:$0xff]  ;;  %v11945_v13 = vld [vmem:[#allocation32_spill] sm:$0xff] }
 0x556   :  { %v2802_v34 = vadd.f32 %v11929_v24, %v11928_v11  ;;  %v2966_v24 = vadd.f32 %v11935_v61, %v2805_v49  ;;  %v11936_v31 = vld [vmem:[#allocation93_spill] sm:$0xff]  ;;  %v2796_v2 = vadd.f32 %v11939_v21, %v11938_v35  ;;  %v3058_v60 = vadd.f32 %v11941_v8, %v2969_v56  ;;  %v9016_v21 = vpop.permute.xlu1 %3176  ;;  %v11947_v35 = vld [vmem:[#allocation84_spill] sm:$0xff]  ;;  %v11949_v56 = vld [vmem:[#allocation91_spill] sm:$0xff] }
 0x557   :  { %v3222_v30 = vadd.f32 %v11927_v40, %v3085_v43  ;;  %v11933_v43 = vld [vmem:[#allocation61_spill] sm:$0xff]  ;;  %v11934_v40 = vld [vmem:[#allocation60_spill] sm:$0xff]  ;;  %v5787_v7 = vpop.eup %5786  ;;  %v2576_v50 = vadd.f32 1.0, %v5785_v62  ;;  %11946 = vst [vmem:[#allocation110_spill] sm:$0xff] %v9016_v21  ;;  %v2790_v62 = vadd.f32 %v11951_v37, %v11950_v0 }
 0x558   :  { %v2799_v22 = vadd.f32 %v11934_v40, %v11933_v43  ;;  %v5789_v41 = vpop.eup %5788  ;;  %v11940_v43 = vld [vmem:[#allocation89_spill] sm:$0xff]  ;;  %v2957_v58 = vadd.f32 %v11954_v45, %v2796_v2 }
 0x559   :  { %5794 = vtanh.f32 %v3222_v30  ;;  %v3061_v30 = vadd.f32 %v11936_v31, %v2972_v6  ;;  %v5791_v40 = vpop.eup %5790  ;;  %v2963_v51 = vadd.f32 %v11940_v43, %v2802_v34  ;;  %v9011_v6 = vpop.permute.xlu0 %3180  ;;  %v11943_v61 = vld [vmem:[#allocation49_spill] sm:$0xff]  ;;  %v3269_v31 = vsub.f32 %v5787_v7, %v11945_v13  ;;  %v11948_v43 = vld [vmem:[#allocation82_spill] sm:$0xff] }
 0x55a   :  { %v8999_v11 = vpop.f32.mrf.mxu1  ;;  %5796 = vtanh.f32 %v3218_v55  ;;  %v5793_v49 = vpop.eup %5792  ;;  %11942 = vst [vmem:[#allocation112_spill] sm:$0xff] %v9011_v6  ;;  %v2601_v55 = vmul.f32 0.5, %v2577_v38  ;;  %v2793_v15 = vadd.f32 %v11944_v27, %v11943_v61  ;;  %v2960_v34 = vadd.f32 %v11947_v35, %v2799_v22  ;;  %v11952_v38 = vld [vmem:[#allocation33_spill] sm:$0xff] }
 0x55b   :  { %5798 = vtanh.f32 %v3217_v63  ;;  %v3055_v8 = vadd.f32 %v11948_v43, %v2966_v24  ;;  %v3214_v12 = vadd.f32 %v11949_v56, %v3061_v30  ;;  %v2602_v63 = vmul.f32 0.5, %v2578_v17  ;;  %v9025_v27 = vpop.f32.mrf.mxu3  ;;  %v11958_v56 = vld [vmem:[#allocation63_spill] sm:$0xff] }
 0x55c   :  { %5800 = vtanh.f32 %v3216_v10  ;;  %v3268_v39 = vsub.f32 %v5791_v40, %v11952_v38  ;;  %v3052_v22 = vadd.f32 %v11955_v53, %v2963_v51  ;;  %v3213_v24 = vadd.f32 %v8970_v48, %v3058_v60  ;;  %v11956_v10 = vld [vmem:[#allocation34_spill] sm:$0xff]  ;;  %v9036_v45 = vpop.f32.mrf.mxu0  ;;  %v11960_v60 = vld [vmem:[#allocation35_spill] sm:$0xff] }
 0x55d   :  { %5802 = vtanh.f32 %v3215_v28  ;;  %v2600_v30 = vmul.f32 0.5, %v2576_v50  ;;  %v3267_v17 = vsub.f32 %v5793_v49, %v11956_v10  ;;  %v3293_v35 = vmul.f32 %v3269_v31, %v2601_v55  ;;  %v11957_v40 = vld [vmem:[#allocation78_spill] sm:$0xff]  ;;  %v9042_v49 = vpop.f32.mrf.mxu2  ;;  %v11962_v55 = vld [vmem:[#allocation59_spill] sm:$0xff] }
 0x55e   :  { %v3049_v32 = vadd.f32 %v11958_v56, %v2960_v34  ;;  %v3212_v21 = vadd.f32 %v11959_v3, %v3055_v8  ;;  %5804 = vtanh.f32 %v3214_v12  ;;  %v2599_v51 = vmul.f32 0.5, %v2575_v16  ;;  %v11964_v34 = vld [vmem:[#allocation113_spill] sm:$0xff] }
 0x55f   :  { %v5795_v19 = vpop.eup %5794  ;;  %v3292_v53 = vmul.f32 %v3268_v39, %v2600_v30  ;;  %v2951_v31 = vadd.f32 %v11962_v55, %v2790_v62  ;;  %v3211_v56 = vadd.f32 %v11964_v34, %v3052_v22  ;;  %5806 = vtanh.f32 %v3213_v24  ;;  %v11965_v12 = vld [vmem:[#allocation29_spill] sm:$0xff]  ;;  %v11967_v30 = vld [vmem:[#allocation55_spill] sm:$0xff]  ;;  %v11970_v24 = vld [vmem:[#allocation24_spill] sm:$0xff] }
 0x560   :  { %v3270_v61 = vsub.f32 %v5795_v19, %v11953_v33  ;;  %v5797_v7 = vpop.eup %5796  ;;  %v2954_v19 = vadd.f32 %v11957_v40, %v2793_v15  ;;  %v11963_v15 = vld [vmem:[#allocation58_spill] sm:$0xff]  ;;  %v2598_v8 = vmul.f32 0.5, %v2574_v57  ;;  %v3291_v16 = vmul.f32 %v3267_v17, %v2599_v51 }
 0x561   :  { %v5799_v0 = vpop.eup %5798  ;;  %v3266_v28 = vsub.f32 %v5797_v7, %v11960_v60  ;;  %v9049_v7 = vadd.f32 %v11945_v13, %v3293_v35  ;;  %5808 = vtanh.f32 %v3212_v21  ;;  %v9055_v22 = vpop.permute.xlu0 %3120  ;;  %v2597_v57 = vmul.f32 0.5, %v8995_v9  ;;  %v11973_v21 = vld [vmem:[#allocation42_spill] sm:$0xff] }
 0x562   :  { %v3294_v43 = vmul.f32 %v3270_v61, %v2602_v63  ;;  %v9031_v37 = vpop.f32.mrf.mxu1  ;;  %v5801_v50 = vpop.eup %5800  ;;  %v3046_v63 = vadd.f32 %v11963_v15, %v2957_v58  ;;  %v3265_v61 = vsub.f32 %v5799_v0, %v11965_v12  ;;  %v3043_v62 = vadd.f32 %v11967_v30, %v2954_v19  ;;  %11969 = vst [vmem:[#allocation107_spill] sm:$0xff] %v9055_v22 }
 0x563   :  { %11966 = vst [vmem:[#allocation67_spill] sm:$0xff] %v9049_v7  ;;  %v5803_v39 = vpop.eup %5802  ;;  %v3264_v17 = vsub.f32 %v5801_v50, %v11970_v24  ;;  %v3290_v0 = vmul.f32 %v3266_v28, %v2598_v8  ;;  %v9060_v13 = vadd.f32 %v11952_v38, %v3292_v53  ;;  %v9064_v35 = vpop.permute.xlu1 %3116  ;;  %v3040_v40 = vadd.f32 %v11973_v21, %v2951_v31  ;;  %v11975_v38 = vld [vmem:[#allocation28_spill] sm:$0xff]  ;;  %v11981_v21 = vld [vmem:[#allocation26_spill] sm:$0xff] }
 0x564   :  { %v9040_v2 = vadd.f32 %v11953_v33, %v3294_v43  ;;  %v2571_v33 = vadd.f32 1.0, %v5789_v41  ;;  %v11968_v43 = vld [vmem:[#allocation116_spill] sm:$0xff]  ;;  %v5805_v41 = vpop.eup %5804  ;;  %11972 = vst [vmem:[#allocation72_spill] sm:$0xff] %v9064_v35  ;;  %v9068_v19 = vpop.permute.xlu2 %3112  ;;  %v3209_v9 = vadd.f32 %v9055_v22, %v3046_v63  ;;  %5810 = vtanh.f32 %v3211_v56  ;;  %v11977_v56 = vld [vmem:[#allocation21_spill] sm:$0xff] }
 0x565   :  { %v3210_v58 = vadd.f32 %v11968_v43, %v3049_v32  ;;  %11971 = vst [vmem:[#allocation106_spill] sm:$0xff] %v9060_v13  ;;  %v2570_v32 = vadd.f32 1.0, %v8959_v25  ;;  %v2596_v51 = vmul.f32 0.5, %v8993_v29  ;;  %v3263_v28 = vsub.f32 %v5803_v39, %v11975_v38  ;;  %v9080_v25 = vpop.f32.mrf.mxu3  ;;  %v5807_v31 = vpop.eup %5806 }
 0x566   :  { %11961 = vst [vmem:[#allocation86_spill] sm:$0xff] %v9040_v2  ;;  %3327 = vmatpush.msrb.mxu2 %v9040_v2  ;;  %3373 = vmatpush.msrb.mxu1 %v9040_v2  ;;  %v3289_v53 = vmul.f32 %v3265_v61, %v2597_v57  ;;  %v9074_v50 = vadd.f32 %v11956_v10, %v3291_v16  ;;  %v2569_v15 = vadd.f32 1.0, %v8954_v47  ;;  %v2595_v29 = vmul.f32 0.5, %v2571_v33  ;;  %v9092_v47 = vpop.f32.mrf.mxu0  ;;  %v11979_v33 = vld [vmem:[#allocation27_spill] sm:$0xff] }
 0x567   :  { %11974 = vst [vmem:[#allocation62_spill] sm:$0xff] %v9068_v19  ;;  %v3208_v63 = vadd.f32 %v9064_v35, %v3043_v62  ;;  %5812 = vtanh.f32 %v3210_v58  ;;  %v3262_v8 = vsub.f32 %v5805_v41, %v11977_v56  ;;  %v3288_v61 = vmul.f32 %v3264_v17, %v2596_v51  ;;  %v5809_v16 = vpop.eup %5808 }
 0x568   :  { %3328 = vmatpush.msrb.mxu2 %v9049_v7  ;;  %3374 = vmatpush.msrb.mxu1 %v9049_v7  ;;  %11976 = vst [vmem:[#allocation103_spill] sm:$0xff] %v9074_v50  ;;  %v9086_v10 = vadd.f32 %v11960_v60, %v3290_v0  ;;  %v2568_v39 = vadd.f32 1.0, %v8945_v54  ;;  %v3207_v30 = vadd.f32 %v9068_v19, %v3040_v40  ;;  %5814 = vtanh.f32 %v3209_v9  ;;  %v9100_v60 = vpop.f32.mrf.mxu2 }
 0x569   :  { %v2594_v62 = vmul.f32 0.5, %v2570_v32  ;;  %v3261_v58 = vsub.f32 %v5807_v31, %v11979_v33  ;;  %v3287_v57 = vmul.f32 %v3263_v28, %v2595_v29  ;;  %v9096_v17 = vadd.f32 %v11965_v12, %v3289_v53  ;;  %v11983_v53 = vld [vmem:[#allocation16_spill] sm:$0xff] }
 0x56a   :  { %v9076_v55 = vpop.f32.mrf.mxu1  ;;  %3329 = vmatpush.msrb.mxu2 %v9060_v13  ;;  %3375 = vmatpush.msrb.mxu1 %v9060_v13  ;;  %11978 = vst [vmem:[#allocation102_spill] sm:$0xff] %v9086_v10  ;;  %v5811_v0 = vpop.eup %5810  ;;  %v2567_v54 = vadd.f32 1.0, %v8941_v4  ;;  %5816 = vtanh.f32 %v3208_v63  ;;  %v2593_v41 = vmul.f32 0.5, %v2569_v15  ;;  %v3260_v40 = vsub.f32 %v5809_v16, %v11981_v21 }
 0x56b   :  { %11980 = vst [vmem:[#allocation83_spill] sm:$0xff] %v9096_v17  ;;  %v3286_v32 = vmul.f32 %v3262_v8, %v2594_v62  ;;  %v9105_v9 = vadd.f32 %v11970_v24, %v3288_v61  ;;  %v2566_v51 = vadd.f32 1.0, %v8936_v1  ;;  %5818 = vtanh.f32 %v3207_v30  ;;  %v11985_v61 = vld [vmem:[#allocation9_spill] sm:$0xff] }
 0x56c   :  { %3330 = vmatpush.msrb.mxu2 %v9074_v50  ;;  %3376 = vmatpush.msrb.mxu1 %v9074_v50  ;;  %v2592_v28 = vmul.f32 0.5, %v2568_v39  ;;  %v3259_v31 = vsub.f32 %v5811_v0, %v11983_v53  ;;  %v3285_v4 = vmul.f32 %v3261_v58, %v2593_v41  ;;  %v9112_v15 = vadd.f32 %v11975_v38, %v3287_v57  ;;  %v11987_v57 = vld [vmem:[#allocation25_spill] sm:$0xff] }
 0x56d   :  { %11982 = vst [vmem:[#allocation65_spill] sm:$0xff] %v9105_v9  ;;  %v5813_v12 = vpop.eup %5812  ;;  %v2565_v29 = vadd.f32 1.0, %v8930_v5  ;;  %v2591_v8 = vmul.f32 0.5, %v2567_v54  ;;  %v9121_v39 = vadd.f32 %v11977_v56, %v3286_v32  ;;  %v9125_v38 = vpop.f32.mrf.mxu3  ;;  %v2564_v62 = vadd.f32 1.0, %v8926_v14 }
 0x56e   :  { %3331 = vmatpush.msrb.mxu2 %v9086_v10  ;;  %3377 = vmatpush.msrb.mxu1 %v9086_v10  ;;  %11984 = vst [vmem:[#allocation99_spill] sm:$0xff] %v9112_v15  ;;  %v5815_v24 = vpop.eup %5814  ;;  %v3258_v1 = vsub.f32 %v5813_v12, %v11985_v61  ;;  %v3284_v16 = vmul.f32 %v3260_v40, %v2592_v28  ;;  %v2590_v58 = vmul.f32 0.5, %v2566_v51  ;;  %v2563_v41 = vadd.f32 1.0, %v8920_v26  ;;  %v2852_v40 = vpop.f32.mrf.mxu0  ;;  %v11989_v12 = vld [vmem:[#allocation30_spill] sm:$0xff] }
 0x56f   :  { %11986 = vst [vmem:[#allocation97_spill] sm:$0xff] %v9121_v39  ;;  %v3257_v0 = vsub.f32 %v5815_v24, %v11987_v57  ;;  %v3283_v5 = vmul.f32 %v3259_v31, %v2591_v8  ;;  %v9130_v54 = vadd.f32 %v11979_v33, %v3285_v4  ;;  %v2589_v32 = vmul.f32 0.5, %v2565_v29  ;;  %v11991_v31 = vld [vmem:[#allocation14_spill] sm:$0xff] }
 0x570   :  { %3332 = vmatpush.msrb.mxu2 %v9096_v17  ;;  %3378 = vmatpush.msrb.mxu1 %v9096_v17  ;;  %v5817_v30 = vpop.eup %5816  ;;  %v3282_v48 = vmul.f32 %v3258_v1, %v2590_v58  ;;  %v9137_v14 = vadd.f32 %v11981_v21, %v3284_v16  ;;  %v2763_v33 = vpop.f32.mrf.mxu2  ;;  %v2588_v51 = vmul.f32 0.5, %v2564_v62  ;;  %v2587_v29 = vmul.f32 0.5, %v2563_v41 }
 0x571   :  { %11988 = vst [vmem:[#allocation61_spill] sm:$0xff] %v9130_v54  ;;  %v5819_v56 = vpop.eup %5818  ;;  %v3256_v28 = vsub.f32 %v5817_v30, %v11989_v12  ;;  %v3281_v24 = vmul.f32 %v3257_v0, %v2589_v32  ;;  %v9143_v8 = vadd.f32 %v11983_v53, %v3283_v5  ;;  %v6089_v0 = vld [vmem:[%s11204_s2] sm:$0xff]  ;;  %v11997_v32 = vld [vmem:[#allocation77_spill] sm:$0xff]  ;;  %v2844_v34 = vadd.f32 %v8991_v23, %v9001_v20 }
 0x572   :  { %v9114_v63 = vpop.f32.mrf.mxu1  ;;  %3333 = vmatpush.msrb.mxu2 %v9105_v9  ;;  %3379 = vmatpush.msrb.mxu1 %v9105_v9  ;;  %11990 = vst [vmem:[#allocation60_spill] sm:$0xff] %v9137_v14  ;;  %v3255_v4 = vsub.f32 %v5819_v56, %v11991_v31  ;;  %v9148_v1 = vadd.f32 %v11985_v61, %v3282_v48  ;;  %v6090_v5 = vld [vmem:[%s11206_s4] sm:$0xff] }
 0x573   :  { %11992 = vst [vmem:[#allocation94_spill] sm:$0xff] %v9143_v8  ;;  %v3280_v21 = vmul.f32 %v3256_v28, %v2588_v51  ;;  %v9153_v30 = vadd.f32 %v11987_v57, %v3281_v24  ;;  %v2853_v56 = vadd.f32 %v2852_v40, %v2763_v33  ;;  %v2850_v51 = vadd.f32 %v9092_v47, %v9100_v60  ;;  %v12000_v24 = vld [vmem:[#allocation41_spill] sm:$0xff] }
 0x574   :  { %3334 = vmatpush.msrb.mxu2 %v9112_v15  ;;  %3380 = vmatpush.msrb.mxu1 %v9112_v15  ;;  %11993 = vst [vmem:[#allocation93_spill] sm:$0xff] %v9148_v1  ;;  %v3279_v16 = vmul.f32 %v3255_v4, %v2587_v29  ;;  %v11999_v4 = vld [vmem:[#allocation48_spill] sm:$0xff]  ;;  %v2847_v40 = vadd.f32 %v9036_v45, %v9042_v49  ;;  %v12004_v47 = vld [vmem:[#allocation45_spill] sm:$0xff]  ;;  %v6091_v45 = vld [vmem:[%s11204_s2 + $0x10] sm:$0xff] }
 0x575   :  { %11994 = vst [vmem:[#allocation57_spill] sm:$0xff] %v9153_v30  ;;  %v3102_v53 = vpop.f32.mrf.mxu3  ;;  %v9158_v62 = vadd.f32 %v11989_v12, %v3280_v21  ;;  %v11998_v12 = vld [vmem:[#allocation69_spill] sm:$0xff]  ;;  %v2513_v29 = vadd.f32 %v12000_v24, %v11999_v4  ;;  %v12001_v21 = vld [vmem:[#allocation56_spill] sm:$0xff]  ;;  %v2841_v23 = vadd.f32 %v8952_v46, %v8957_v42  ;;  %v12008_v46 = vld [vmem:[#allocation75_spill] sm:$0xff] }
 0x576   :  { %3335 = vmatpush.msrb.mxu2 %v9121_v39  ;;  %3381 = vmatpush.msrb.mxu1 %v9121_v39  ;;  %v2855_v48 = vpop.f32.mrf.mxu0  ;;  %v9163_v61 = vadd.f32 %v11991_v31, %v3279_v16  ;;  %v2510_v28 = vadd.f32 %v11998_v12, %v11997_v32  ;;  %v12002_v16 = vld [vmem:[#allocation79_spill] sm:$0xff]  ;;  %v12005_v49 = vld [vmem:[#allocation81_spill] sm:$0xff]  ;;  %v3008_v20 = vadd.f32 %v9114_v63, %v2847_v40  ;;  %v12009_v42 = vld [vmem:[#allocation98_spill] sm:$0xff] }
 0x577   :  { %11995 = vst [vmem:[#allocation50_spill] sm:$0xff] %v9158_v62  ;;  %v12003_v32 = vld [vmem:[#allocation43_spill] sm:$0xff]  ;;  %v2537_v24 = vmul.f32 0.5, %v2513_v29  ;;  %v2509_v63 = vadd.f32 %v12009_v42, %v12008_v46 }
 0x578   :  { %3336 = vmatpush.msrb.mxu2 %v9130_v54  ;;  %3382 = vmatpush.msrb.mxu1 %v9130_v54  ;;  %11996 = vst [vmem:[#allocation89_spill] sm:$0xff] %v9163_v61  ;;  %v2766_v57 = vpop.f32.mrf.mxu2  ;;  %v2512_v60 = vadd.f32 %v12004_v47, %v12003_v32 }
 0x579   :  { %v2856_v41 = vadd.f32 %v2855_v48, %v2766_v57  ;;  %v2534_v57 = vmul.f32 0.5, %v2510_v28 }
 0x57a   :  { %v3010_v26 = vpop.f32.mrf.mxu1  ;;  %3337 = vmatpush.msrb.mxu2 %v9137_v14  ;;  %3383 = vmatpush.msrb.mxu1 %v9137_v14 }
 0x57b   :  { %v3011_v12 = vadd.f32 %v3010_v26, %v2850_v51  ;;  %v6092_v26 = vld [vmem:[%s11206_s4 + $0x10] sm:$0xf]  ;;  %5820 = vtanh.f32 %v2534_v57 }
 0x57c   :  { %3338 = vmatpush.msrb.mxu2 %v9143_v8  ;;  %3384 = vmatpush.msrb.mxu1 %v9143_v8  ;;  %5822 = vtanh.f32 %v2537_v24 }
 0x57d   :  { %v3105_v31 = vpop.f32.mrf.mxu3  ;;  %v3100_v29 = vadd.f32 %v9125_v38, %v3011_v12  ;;  %v3097_v38 = vadd.f32 %v9080_v25, %v3008_v20  ;;  %v12010_v12 = vld [vmem:[#allocation92_spill] sm:$0xff] }
 0x57e   :  { %3339 = vmatpush.msrb.mxu2 %v9148_v1  ;;  %3385 = vmatpush.msrb.mxu1 %v9148_v1  ;;  %v2858_v4 = vpop.f32.mrf.mxu0  ;;  %v12016_v20 = vld [vmem:[#allocation64_spill] sm:$0xff] }
 0x57f   :  { %v3227_v57 = vadd.f32 %v8922_v44, %v3100_v29  ;;  %v6157_v44 = vld [vmem:[#allocation4 + $0x2e8] sm:$0xff] }
 0x580   :  { %3340 = vmatpush.msrb.mxu2 %v9153_v30  ;;  %3386 = vmatpush.msrb.mxu1 %v9153_v30  ;;  %v2769_v3 = vpop.f32.mrf.mxu2 }
 0x581   :  { %v2859_v51 = vadd.f32 %v2858_v4, %v2769_v3  ;;  %v5821_v25 = vpop.eup %5820 }
 0x582   :  { %v3013_v58 = vpop.f32.mrf.mxu1  ;;  %3341 = vmatpush.msrb.mxu2 %v9158_v62  ;;  %3387 = vmatpush.msrb.mxu1 %v9158_v62 }
 0x583   :  { %v3014_v33 = vadd.f32 %v3013_v58, %v2853_v56  ;;  %v12006_v58 = vld [vmem:[#allocation95_spill] sm:$0xff] }
 0x584   :  { %3342 = vmatpush.msrb.mxu2 %v9163_v61  ;;  %3388 = vmatpush.msrb.mxu1 %v9163_v61  ;;  %v2511_v56 = vadd.f32 %v12006_v58, %v12005_v49  ;;  %v12014_v49 = vld [vmem:[#allocation100_spill] sm:$0xff] }
 0x585   :  { %3389 = vmatmul.f32.vlgmr.msrb.gmra.mxu1 %v6089_v0  ;;  %3343 = vmatmul.f32.vlgmr.msrb.gmra.mxu2 %v6090_v5  ;;  %v2514_v0 = vadd.f32 %v12002_v16, %v12001_v21  ;;  %v3103_v28 = vadd.f32 %v3102_v53, %v3014_v33  ;;  %v3108_v40 = vpop.f32.mrf.mxu3  ;;  %v3002_v33 = vadd.f32 %v9031_v37, %v2841_v23  ;;  %v6093_v37 = vld [vmem:[%s11204_s2 + $0x20] sm:$0xff]  ;;  %v12015_v23 = vld [vmem:[#allocation109_spill] sm:$0xff] }
 0x586   :  { %4282 = vmatpush.msra.mxu2 %v9040_v2  ;;  %v2535_v53 = vmul.f32 0.5, %v2511_v56 }
 0x587   :  { %v3228_v24 = vadd.f32 %v12010_v12, %v3103_v28 }
 0x588   :  { %4283 = vmatpush.msra.mxu2 %v9049_v7 }
 0x58a   :  { %4284 = vmatpush.msra.mxu2 %v9060_v13  ;;  %v3016_v5 = vpop.f32.mrf.mxu1 }
 0x58b   :  { %v3017_v48 = vadd.f32 %v3016_v5, %v2856_v41  ;;  %v2538_v41 = vmul.f32 0.5, %v2514_v0  ;;  %v2838_v0 = vadd.f32 %v8910_v52, %v8916_v59  ;;  %v3005_v5 = vadd.f32 %v9076_v55, %v2844_v34  ;;  %v12011_v59 = vld [vmem:[#allocation53_spill] sm:$0xff]  ;;  %v12012_v34 = vld [vmem:[#allocation96_spill] sm:$0xff] }
 0x58c   :  { %4285 = vmatpush.msra.mxu2 %v9074_v50  ;;  %v2508_v55 = vadd.f32 %v12012_v34, %v12011_v59 }
 0x58d   :  { %v3106_v21 = vadd.f32 %v3105_v31, %v3017_v48  ;;  %3392 = vmatmul.f32.gmra.mxu1 %v6091_v45  ;;  %3346 = vmatmul.f32.gmra.mxu2 %v6092_v26  ;;  %v2536_v31 = vmul.f32 0.5, %v2512_v60  ;;  %v12007_v48 = vld [vmem:[#allocation70_spill] sm:$0xff]  ;;  %5824 = vtanh.f32 %v2538_v41  ;;  %v2999_v60 = vadd.f32 %v8999_v11, %v2838_v0  ;;  %v12013_v45 = vld [vmem:[#allocation36_spill] sm:$0xff]  ;;  %v5823_v26 = vpop.eup %5822 }
 0x58e   :  { %4286 = vmatpush.msra.mxu2 %v9086_v10  ;;  %v3094_v4 = vadd.f32 %v9025_v27, %v3005_v5  ;;  %v2507_v56 = vadd.f32 %v12014_v49, %v12013_v45  ;;  %v2533_v41 = vmul.f32 0.5, %v2509_v63  ;;  %v3091_v11 = vadd.f32 %v8981_v36, %v3002_v33  ;;  %v12017_v0 = vld [vmem:[#allocation108_spill] sm:$0xff]  ;;  %v9539_v49 = vld [vmem:[%s11202_s0 + $0x118] sm:$0xff] }
 0x58f   :  { %v3229_v32 = vadd.f32 %v12007_v48, %v3106_v21  ;;  %5826 = vtanh.f32 %v2536_v31  ;;  %v3226_v27 = vadd.f32 %v12015_v23, %v3097_v38  ;;  %v2532_v31 = vmul.f32 0.5, %v2508_v55  ;;  %v12019_v55 = vld [vmem:[#allocation17_spill] sm:$0xff]  ;;  %12054 = vst [vmem:[#allocation9_spill] sm:$0xff] %v9539_v49 }
 0x590   :  { %4287 = vmatpush.msra.mxu2 %v9096_v17  ;;  %v3088_v29 = vadd.f32 %v8934_v18, %v2999_v60  ;;  %v3225_v5 = vadd.f32 %v12017_v0, %v3094_v4  ;;  %v2531_v46 = vmul.f32 0.5, %v2507_v56  ;;  %v3224_v63 = vadd.f32 %v9011_v6, %v3091_v11  ;;  %v12018_v18 = vld [vmem:[#allocation110_spill] sm:$0xff] }
 0x591   :  { %5828 = vtanh.f32 %v3229_v32  ;;  %v12020_v56 = vld [vmem:[#allocation10_spill] sm:$0xff] }
 0x592   :  { %4288 = vmatpush.msra.mxu2 %v9105_v9  ;;  %v3019_v3 = vpop.f32.mrf.mxu1  ;;  %5830 = vtanh.f32 %v2535_v53  ;;  %v3223_v38 = vadd.f32 %v12018_v18, %v3088_v29  ;;  %v12022_v29 = vld [vmem:[#allocation12_spill] sm:$0xff]  ;;  %v9518_v18 = vld [vmem:[%s11202_s0 + $0xd8] sm:$0xff] }
 0x593   :  { %v3020_v52 = vadd.f32 %v3019_v3, %v2859_v51  ;;  %5832 = vtanh.f32 %v3228_v24  ;;  %v5825_v51 = vpop.eup %5824  ;;  %v2585_v3 = vadd.f32 1.0, %v5823_v26  ;;  %v6094_v24 = vld [vmem:[%s11204_s2 + $0x30] sm:$0xff]  ;;  %v12021_v26 = vld [vmem:[#allocation15_spill] sm:$0xff]  ;;  %12052 = vst [vmem:[#allocation26_spill] sm:$0xff] %v9518_v18 }
 0x594   :  { %4289 = vmatpush.msra.mxu2 %v9112_v15  ;;  %5834 = vtanh.f32 %v3227_v57 }
 0x595   :  { %v3109_v21 = vadd.f32 %v3108_v40, %v3020_v52  ;;  %3395 = vmatmul.f32.gmra.mxu1 %v6093_v37  ;;  %v5827_v32 = vpop.eup %5826  ;;  %v2586_v40 = vadd.f32 1.0, %v5825_v51  ;;  %v2609_v37 = vmul.f32 0.5, %v2585_v3 }
 0x596   :  { %4290 = vmatpush.msra.mxu2 %v9121_v39  ;;  %v2584_v59 = vadd.f32 1.0, %v5827_v32 }
 0x597   :  { %v3230_v28 = vadd.f32 %v12016_v20, %v3109_v21  ;;  %v5829_v36 = vpop.eup %5828  ;;  %v2610_v45 = vmul.f32 0.5, %v2586_v40  ;;  %v12023_v40 = vld [vmem:[#allocation13_spill] sm:$0xff] }
 0x598   :  { %4291 = vmatpush.msra.mxu2 %v9130_v54  ;;  %v5831_v53 = vpop.eup %5830  ;;  %v3277_v57 = vsub.f32 %v5829_v36, %v12019_v55 }
 0x599   :  { %5836 = vtanh.f32 %v3230_v28  ;;  %v5833_v33 = vpop.eup %5832  ;;  %v2583_v4 = vadd.f32 1.0, %v5831_v53  ;;  %v2582_v28 = vadd.f32 1.0, %v5821_v25 }
 0x59a   :  { %4292 = vmatpush.msra.mxu2 %v9137_v14  ;;  %5838 = vtanh.f32 %v2533_v41  ;;  %v5835_v52 = vpop.eup %5834  ;;  %v3276_v41 = vsub.f32 %v5833_v33, %v12020_v56  ;;  %v3301_v32 = vmul.f32 %v3277_v57, %v2609_v37 }
 0x59b   :  { %5840 = vtanh.f32 %v3226_v27  ;;  %v2607_v3 = vmul.f32 0.5, %v2583_v4  ;;  %v2606_v57 = vmul.f32 0.5, %v2582_v28 }
 0x59c   :  { %4293 = vmatpush.msra.mxu2 %v9143_v8  ;;  %5842 = vtanh.f32 %v2532_v31  ;;  %v2608_v31 = vmul.f32 0.5, %v2584_v59  ;;  %v9259_v4 = vadd.f32 %v12019_v55, %v3301_v32  ;;  %v12029_v55 = vld [vmem:[#allocation22_spill] sm:$0xff] }
 0x59d   :  { %5844 = vtanh.f32 %v3225_v5  ;;  %3398 = vmatmul.f32.gmra.mxu1 %v6094_v24  ;;  %v3275_v5 = vsub.f32 %v5835_v52, %v12022_v29  ;;  %v6096_v52 = vld [vmem:[%s11204_s2 + $0x40] sm:$0xff] }
 0x59e   :  { %4294 = vmatpush.msra.mxu2 %v9148_v1  ;;  %5846 = vtanh.f32 %v2531_v46  ;;  %v3300_v24 = vmul.f32 %v3276_v41, %v2608_v31  ;;  %12026 = vst [vmem:[#allocation49_spill] sm:$0xff] %v9259_v4 }
 0x59f   :  { %v5837_v60 = vpop.eup %5836  ;;  %5848 = vtanh.f32 %v3224_v63 }
 0x5a0   :  { %4295 = vmatpush.msra.mxu2 %v9153_v30  ;;  %v5839_v21 = vpop.eup %5838  ;;  %v3278_v11 = vsub.f32 %v5837_v60, %v12021_v26  ;;  %5850 = vtanh.f32 %v3223_v38  ;;  %v6095_v38 = vld [vmem:[#allocation4 + $0x180] sm:$0xff] }
 0x5a1   :  { %v5841_v27 = vpop.eup %5840  ;;  %v2581_v63 = vadd.f32 1.0, %v5839_v21  ;;  %v12025_v21 = vld [vmem:[#allocation8_spill] sm:$0xff] }
 0x5a2   :  { %4296 = vmatpush.msra.mxu2 %v9158_v62  ;;  %v5843_v51 = vpop.eup %5842  ;;  %v3302_v46 = vmul.f32 %v3278_v11, %v2610_v45  ;;  %v3274_v33 = vsub.f32 %v5841_v27, %v12023_v40  ;;  %v3299_v45 = vmul.f32 %v3275_v5, %v2607_v3  ;;  %v12027_v27 = vld [vmem:[#allocation18_spill] sm:$0xff] }
 0x5a3   :  { %v5845_v36 = vpop.eup %5844  ;;  %v2580_v59 = vadd.f32 1.0, %v5843_v51  ;;  %v2605_v11 = vmul.f32 0.5, %v2581_v63  ;;  %v6097_v3 = vld [vmem:[%s11204_s2 + $0x50] sm:$0xff] }
 0x5a4   :  { %4297 = vmatpush.msra.mxu2 %v9163_v61  ;;  %v5847_v53 = vpop.eup %5846  ;;  %v9252_v25 = vadd.f32 %v12021_v26, %v3302_v46  ;;  %v3273_v37 = vsub.f32 %v5845_v36, %v12025_v21  ;;  %v3298_v31 = vmul.f32 %v3274_v33, %v2606_v57  ;;  %v9265_v46 = vadd.f32 %v12020_v56, %v3300_v24  ;;  %v6102_v57 = vld [vmem:[#allocation4 + $0x1a0] sm:$0xff] }
 0x5a5   :  { %4298 = vmatmul.f32.vlgmr.msra.gmra.mxu2 %v6095_v38  ;;  %v5849_v60 = vpop.eup %5848  ;;  %3401 = vmatmul.f32.gmra.mxu1 %v6096_v52  ;;  %v2579_v26 = vadd.f32 1.0, %v5847_v53  ;;  %v2604_v28 = vmul.f32 0.5, %v2580_v59  ;;  %v9271_v36 = vadd.f32 %v12022_v29, %v3299_v45  ;;  %v6098_v29 = vld [vmem:[#allocation4 + $0x190] sm:$0xff]  ;;  %v6100_v59 = vld [vmem:[%s11204_s2 + $0x8] sm:$0xff]  ;;  %v6101_v52 = vld [vmem:[%s11204_s2 + $0x60] sm:$0xff] }
 0x5a6   :  { %12024 = vst [vmem:[#allocation87_spill] sm:$0xff] %v9252_v25  ;;  %3358 = vmatpush.msra.mxu0 %v9252_v25  ;;  %3425 = vmatpush.msra.mxu3 %v9252_v25  ;;  %v5851_v41 = vpop.eup %5850  ;;  %v3272_v51 = vsub.f32 %v5849_v60, %v12027_v27  ;;  %v3297_v32 = vmul.f32 %v3273_v37, %v2605_v11  ;;  %v6099_v60 = vld [vmem:[%s11206_s4 + $0x8] sm:$0xff]  ;;  %v6104_v37 = vld [vmem:[%s11204_s2 + $0x18] sm:$0xff]  ;;  %v6105_v45 = vld [vmem:[%s11204_s2 + $0x70] sm:$0xff] }
 0x5a7   :  { %12028 = vst [vmem:[#allocation47_spill] sm:$0xff] %v9265_v46  ;;  %v3271_v5 = vsub.f32 %v5851_v41, %v12029_v55  ;;  %v2603_v63 = vmul.f32 0.5, %v2579_v26  ;;  %v9276_v56 = vadd.f32 %v12023_v40, %v3298_v31  ;;  %v6106_v41 = vld [vmem:[#allocation4 + $0x1b0] sm:$0xff]  ;;  %v6107_v26 = vld [vmem:[%s11204_s2 + $0x28] sm:$0xff]  ;;  %v6108_v11 = vld [vmem:[%s11204_s2 + $0x80] sm:$0x3] }
 0x5a8   :  { %3359 = vmatpush.msra.mxu0 %v9259_v4  ;;  %3426 = vmatpush.msra.mxu3 %v9259_v4  ;;  %12030 = vst [vmem:[#allocation32_spill] sm:$0xff] %v9271_v36  ;;  %v3296_v53 = vmul.f32 %v3272_v51, %v2604_v28  ;;  %v9284_v24 = vadd.f32 %v12025_v21, %v3297_v32  ;;  %v6103_v21 = vld [vmem:[%s11206_s4 + $0x18] sm:$0xf]  ;;  %v6110_v51 = vld [vmem:[#allocation4 + $0x1c0] sm:$0xff]  ;;  %v6115_v32 = vld [vmem:[#allocation4 + $0x1a8] sm:$0xff] }
 0x5a9   :  { %12031 = vst [vmem:[#allocation84_spill] sm:$0xff] %v9276_v56  ;;  %v3295_v33 = vmul.f32 %v3271_v5, %v2603_v63  ;;  %v6111_v31 = vld [vmem:[%s11204_s2 + $0x38] sm:$0xff]  ;;  %v6114_v5 = vld [vmem:[%s11204_s2 + $0x48] sm:$0xff]  ;;  %v6116_v63 = vld [vmem:[#allocation4 + $0x1e0] sm:$0xff] }
 0x5aa   :  { %3360 = vmatpush.msra.mxu0 %v9265_v46  ;;  %3427 = vmatpush.msra.mxu3 %v9265_v46  ;;  %12032 = vst [vmem:[#allocation82_spill] sm:$0xff] %v9284_v24  ;;  %v9289_v40 = vadd.f32 %v12027_v27, %v3296_v53  ;;  %v6109_v27 = vld [vmem:[#allocation4 + $0x188] sm:$0xff]  ;;  %v6112_v28 = vld [vmem:[#allocation4 + $0x198] sm:$0xff] }
 0x5ab   :  { %v9294_v38 = vadd.f32 %v12029_v55, %v3295_v33  ;;  %v6113_v55 = vld [vmem:[#allocation4 + $0x1d0] sm:$0xff]  ;;  %v6117_v53 = vld [vmem:[%s11204_s2 + $0x58] sm:$0xff]  ;;  %v6120_v33 = vld [vmem:[%s11204_s2 + $0x68] sm:$0xff] }
 0x5ac   :  { %3361 = vmatpush.msra.mxu0 %v9271_v36  ;;  %3428 = vmatpush.msra.mxu3 %v9271_v36  ;;  %12033 = vst [vmem:[#allocation44_spill] sm:$0xff] %v9289_v40 }
 0x5ad   :  { %3404 = vmatmul.f32.gmra.mxu1 %v6097_v3  ;;  %4301 = vmatmul.f32.gmra.mxu2 %v6098_v29  ;;  %12034 = vst [vmem:[#allocation40_spill] sm:$0xff] %v9294_v38  ;;  %v6118_v3 = vld [vmem:[#allocation4 + $0x1b8] sm:$0xff]  ;;  %v6119_v29 = vld [vmem:[#allocation4 + $0x1f0] sm:$0xff] }
 0x5ae   :  { %3362 = vmatpush.msra.mxu0 %v9276_v56  ;;  %3429 = vmatpush.msra.mxu3 %v9276_v56 }
 0x5b0   :  { %3363 = vmatpush.msra.mxu0 %v9284_v24  ;;  %3430 = vmatpush.msra.mxu3 %v9284_v24 }
 0x5b2   :  { %3364 = vmatpush.msra.mxu0 %v9289_v40  ;;  %3431 = vmatpush.msra.mxu3 %v9289_v40 }
 0x5b4   :  { %3365 = vmatpush.msra.mxu0 %v9294_v38  ;;  %3432 = vmatpush.msra.mxu3 %v9294_v38 }
 0x5b5   :  { %5507 = vmatmul.msk.f32.vlgmr.msra.gmra.mxu0 %vm904_vm1, %v6099_v60  ;;  %5509 = vmatmul.msk.f32.vlgmr.msra.gmra.mxu3 %vm904_vm1, %v6100_v59  ;;  %v6121_v60 = vld [vmem:[#allocation4 + $0x1c8] sm:$0xff]  ;;  %v6122_v59 = vld [vmem:[#allocation4 + $0x200] sm:$0xff] }
 0x5b6   :  { %4379 = vmatpush.msrb.mxu0 %v9252_v25  ;;  %3407 = vmatmul.f32.gmra.mxu1 %v6101_v52  ;;  %v6123_v52 = vld [vmem:[%s11204_s2 + $0x78] sm:$0xff]  ;;  %v9668_v25 = vld [vmem:[%s11202_s0 + $0xb0] sm:$0xff] }
 0x5b7   :  { %4304 = vmatmul.f32.gmra.mxu2 %v6102_v57  ;;  %v6124_v57 = vld [vmem:[#allocation4 + $0x1d8] sm:$0xff]  ;;  %12064 = vst [vmem:[#allocation53_spill] sm:$0xff] %v9668_v25 }
 0x5b8   :  { %4380 = vmatpush.msrb.mxu0 %v9259_v4 }
 0x5ba   :  { %4381 = vmatpush.msrb.mxu0 %v9265_v46 }
 0x5bc   :  { %4382 = vmatpush.msrb.mxu0 %v9271_v36 }
 0x5bd   :  { %5508 = vmatmul.msk.f32.gmra.mxu0 %vm904_vm1, %v6103_v21  ;;  %5510 = vmatmul.msk.f32.gmra.mxu3 %vm904_vm1, %v6104_v37  ;;  %v6125_v21 = vld [vmem:[#allocation4 + $0x210] sm:$0xff]  ;;  %v6126_v37 = vld [vmem:[%s11204_s2 + $0x88] sm:$0x3] }
 0x5be   :  { %4383 = vmatpush.msrb.mxu0 %v9276_v56  ;;  %3410 = vmatmul.f32.gmra.mxu1 %v6105_v45  ;;  %v6127_v45 = vld [vmem:[#allocation4 + $0x1e8] sm:$0xff] }
 0x5bf   :  { %4307 = vmatmul.f32.gmra.mxu2 %v6106_v41  ;;  %v6128_v41 = vld [vmem:[#allocation4 + $0x220] sm:$0xff] }
 0x5c0   :  { %4384 = vmatpush.msrb.mxu0 %v9284_v24 }
 0x5c2   :  { %4385 = vmatpush.msrb.mxu0 %v9289_v40 }
 0x5c4   :  { %4386 = vmatpush.msrb.mxu0 %v9294_v38 }
 0x5c5   :  { %5511 = vmatmul.msk.f32.gmra.mxu3 %vm904_vm1, %v6107_v26  ;;  %5518 = vmatmul.msk.f32.vlgmr.msrb.gmra.mxu0 %vm904_vm1, %v6109_v27  ;;  %v6129_v26 = vld [vmem:[#allocation4 + $0x1f8] sm:$0xff]  ;;  %v6131_v27 = vld [vmem:[#allocation4 + $0x208] sm:$0xff] }
 0x5c6   :  { %4758 = vmatpush.msra.mxu0 %v9040_v2  ;;  %3413 = vmatmul.f32.gmra.mxu1 %v6108_v11  ;;  %v6130_v11 = vld [vmem:[#allocation4 + $0x230] sm:$0xff] }
 0x5c7   :  { %4310 = vmatmul.f32.gmra.mxu2 %v6110_v51  ;;  %v6132_v51 = vld [vmem:[#allocation4 + $0x240] sm:$0xff] }
 0x5c8   :  { %4759 = vmatpush.msra.mxu0 %v9049_v7 }
 0x5ca   :  { %4760 = vmatpush.msra.mxu0 %v9060_v13 }
 0x5cc   :  { %4761 = vmatpush.msra.mxu0 %v9074_v50 }
 0x5cd   :  { %5512 = vmatmul.msk.f32.gmra.mxu3 %vm904_vm1, %v6111_v31  ;;  %5519 = vmatmul.msk.f32.gmra.mxu0 %vm904_vm1, %v6112_v28  ;;  %v6133_v31 = vld [vmem:[#allocation4 + $0x218] sm:$0xff]  ;;  %v6134_v28 = vld [vmem:[#allocation4 + $0x250] sm:$0xff] }
 0x5ce   :  { %4762 = vmatpush.msra.mxu0 %v9086_v10 }
 0x5cf   :  { %4313 = vmatmul.f32.gmra.mxu2 %v6113_v55  ;;  %v6135_v55 = vld [vmem:[#allocation4 + $0x228] sm:$0xff] }
 0x5d0   :  { %4763 = vmatpush.msra.mxu0 %v9096_v17 }
 0x5d2   :  { %4764 = vmatpush.msra.mxu0 %v9105_v9 }
 0x5d4   :  { %4765 = vmatpush.msra.mxu0 %v9112_v15 }
 0x5d5   :  { %5513 = vmatmul.msk.f32.gmra.mxu3 %vm904_vm1, %v6114_v5  ;;  %5520 = vmatmul.msk.f32.gmra.mxu0 %vm904_vm1, %v6115_v32  ;;  %v6136_v5 = vld [vmem:[#allocation4 + $0x260] sm:$0xff]  ;;  %v6137_v32 = vld [vmem:[#allocation4 + $0x238] sm:$0xff] }
 0x5d6   :  { %4766 = vmatpush.msra.mxu0 %v9121_v39 }
 0x5d7   :  { %4316 = vmatmul.f32.gmra.mxu2 %v6116_v63  ;;  %v6138_v63 = vld [vmem:[#allocation4 + $0x270] sm:$0xff] }
 0x5d8   :  { %4767 = vmatpush.msra.mxu0 %v9130_v54 }
 0x5da   :  { %4768 = vmatpush.msra.mxu0 %v9137_v14 }
 0x5dc   :  { %4769 = vmatpush.msra.mxu0 %v9143_v8 }
 0x5dd   :  { %5514 = vmatmul.msk.f32.gmra.mxu3 %vm904_vm1, %v6117_v53  ;;  %5521 = vmatmul.msk.f32.gmra.mxu0 %vm904_vm1, %v6118_v3  ;;  %v6139_v3 = vld [vmem:[#allocation4 + $0x248] sm:$0xff] }
 0x5de   :  { %4770 = vmatpush.msra.mxu0 %v9148_v1 }
 0x5df   :  { %4319 = vmatmul.f32.gmra.mxu2 %v6119_v29  ;;  %v6140_v29 = vld [vmem:[#allocation4 + $0x280] sm:$0xff] }
 0x5e0   :  { %4771 = vmatpush.msra.mxu0 %v9153_v30 }
 0x5e2   :  { %4772 = vmatpush.msra.mxu0 %v9158_v62 }
 0x5e4   :  { %4773 = vmatpush.msra.mxu0 %v9163_v61 }
 0x5e5   :  { %5515 = vmatmul.msk.f32.gmra.mxu3 %vm904_vm1, %v6120_v33  ;;  %5522 = vmatmul.msk.f32.gmra.mxu0 %vm904_vm1, %v6121_v60  ;;  %v6141_v33 = vld [vmem:[#allocation4 + $0x258] sm:$0xff]  ;;  %v6142_v60 = vld [vmem:[#allocation4 + $0x290] sm:$0xff] }
 0x5e7   :  { %4322 = vmatmul.f32.gmra.mxu2 %v6122_v59 }
 0x5ed   :  { %5516 = vmatmul.msk.f32.gmra.mxu3 %vm904_vm1, %v6123_v52  ;;  %5523 = vmatmul.msk.f32.gmra.mxu0 %vm904_vm1, %v6124_v57  ;;  %v6143_v52 = vld [vmem:[#allocation4 + $0x268] sm:$0xff]  ;;  %v6144_v57 = vld [vmem:[#allocation4 + $0x2a0] sm:$0xff] }
 0x5ef   :  { %4325 = vmatmul.f32.gmra.mxu2 %v6125_v21 }
 0x5f5   :  { %5517 = vmatmul.msk.f32.gmra.mxu3 %vm904_vm1, %v6126_v37  ;;  %5524 = vmatmul.msk.f32.gmra.mxu0 %vm904_vm1, %v6127_v45  ;;  %v6145_v45 = vld [vmem:[#allocation4 + $0x278] sm:$0xff] }
 0x5f7   :  { %4328 = vmatmul.f32.gmra.mxu2 %v6128_v41  ;;  %v6146_v41 = vld [vmem:[#allocation4 + $0x2b0] sm:$0xff] }
 0x5fd   :  { %5525 = vmatmul.msk.f32.gmra.mxu0 %vm904_vm1, %v6129_v26 }
 0x5ff   :  { %4331 = vmatmul.f32.gmra.mxu2 %v6130_v11 }
 0x602   :  { %v3390_v53 = vpop.f32.mrf.mxu1 }
 0x605   :  { %5526 = vmatmul.msk.f32.gmra.mxu0 %vm904_vm1, %v6131_v27  ;;  %v6147_v27 = vld [vmem:[#allocation4 + $0x288] sm:$0xff] }
 0x607   :  { %4334 = vmatmul.f32.gmra.mxu2 %v6132_v51  ;;  %v6148_v51 = vld [vmem:[#allocation4 + $0x2c0] sm:$0xff] }
 0x60a   :  { %v3393_v59 = vpop.f32.mrf.mxu1 }
 0x60d   :  { %5527 = vmatmul.msk.f32.gmra.mxu0 %vm904_vm1, %v6133_v31 }
 0x60f   :  { %4337 = vmatmul.f32.gmra.mxu2 %v6134_v28 }
 0x612   :  { %v3396_v37 = vpop.f32.mrf.mxu1 }
 0x615   :  { %5528 = vmatmul.msk.f32.gmra.mxu0 %vm904_vm1, %v6135_v55  ;;  %v6149_v55 = vld [vmem:[#allocation4 + $0x298] sm:$0xff] }
 0x617   :  { %4340 = vmatmul.f32.gmra.mxu2 %v6136_v5  ;;  %v6150_v5 = vld [vmem:[#allocation4 + $0x2d0] sm:$0xff] }
 0x61a   :  { %v3399_v11 = vpop.f32.mrf.mxu1 }
 0x61d   :  { %5529 = vmatmul.msk.f32.gmra.mxu0 %vm904_vm1, %v6137_v32 }
 0x61f   :  { %4343 = vmatmul.f32.gmra.mxu2 %v6138_v63  ;;  %v9395_v63 = vpop.f32.mrf.mxu2 }
 0x620   :  { %12035 = vst [vmem:[#allocation33_spill] sm:$0xff] %v9395_v63  ;;  %v6156_v63 = vld [vmem:[#allocation4 + $0x2d8] sm:$0xff] }
 0x622   :  { %v3402_v28 = vpop.f32.mrf.mxu1 }
 0x625   :  { %5530 = vmatmul.msk.f32.gmra.mxu0 %vm904_vm1, %v6139_v3  ;;  %v6151_v3 = vld [vmem:[#allocation4 + $0x2a8] sm:$0xff] }
 0x627   :  { %4346 = vmatmul.f32.gmra.mxu2 %v6140_v29  ;;  %v6152_v29 = vld [vmem:[#allocation4 + $0x2e0] sm:$0xff] }
 0x62d   :  { %5531 = vmatmul.msk.f32.gmra.mxu0 %vm904_vm1, %v6141_v33 }
 0x62f   :  { %4349 = vmatmul.f32.gmra.mxu2 %v6142_v60  ;;  %v3405_v60 = vpop.f32.mrf.mxu1 }
 0x632   :  { %v9403_v0 = vpop.f32.mrf.mxu0 }
 0x633   :  { %12037 = vst [vmem:[#allocation66_spill] sm:$0xff] %v9403_v0 }
 0x635   :  { %5532 = vmatmul.msk.f32.gmra.mxu0 %vm904_vm1, %v6143_v52  ;;  %v6153_v52 = vld [vmem:[#allocation4 + $0x2b8] sm:$0xff] }
 0x637   :  { %4352 = vmatmul.f32.gmra.mxu2 %v6144_v57  ;;  %v9399_v57 = vpop.f32.mrf.mxu2 }
 0x638   :  { %v3434_v21 = vpop.f32.mrf.mxu3  ;;  %12036 = vst [vmem:[#allocation31_spill] sm:$0xff] %v9399_v57 }
 0x63d   :  { %5533 = vmatmul.msk.f32.gmra.mxu0 %vm904_vm1, %v6145_v45  ;;  %v6154_v45 = vld [vmem:[#allocation4 + $0x2f0] sm:$0xff] }
 0x63f   :  { %4355 = vmatmul.f32.gmra.mxu2 %v6146_v41 }
 0x640   :  { %v3437_v26 = vpop.f32.mrf.mxu3 }
 0x641   :  { %v3438_v34 = vadd.f32 %v3437_v26, %v3393_v59 }
 0x645   :  { %5534 = vmatmul.msk.f32.gmra.mxu0 %vm904_vm1, %v6147_v27  ;;  %v3408_v27 = vpop.f32.mrf.mxu1 }
 0x647   :  { %4358 = vmatmul.f32.gmra.mxu2 %v6148_v51  ;;  %v6155_v51 = vld [vmem:[#allocation4 + $0x2c8] sm:$0xff] }
 0x648   :  { %v3440_v31 = vpop.f32.mrf.mxu3 }
 0x64d   :  { %5535 = vmatmul.msk.f32.gmra.mxu0 %vm904_vm1, %v6149_v55 }
 0x64f   :  { %4361 = vmatmul.f32.gmra.mxu2 %v6150_v5  ;;  %v3411_v5 = vpop.f32.mrf.mxu1 }
 0x650   :  { %v3443_v32 = vpop.f32.mrf.mxu3 }
 0x651   :  { %v3444_v20 = vadd.f32 %v3443_v32, %v3399_v11 }
 0x655   :  { %5536 = vmatmul.msk.f32.gmra.mxu0 %vm904_vm1, %v6151_v3 }
 0x657   :  { %4364 = vmatmul.f32.gmra.mxu2 %v6152_v29 }
 0x658   :  { %v3446_v33 = vpop.f32.mrf.mxu3 }
 0x659   :  { %v3447_v29 = vadd.f32 %v3446_v33, %v3402_v28  ;;  %v3464_v33 = vsel %vm1072_vm2, %v3444_v20, -inf }
 0x65b   :  { %v3465_v12 = vsel %vm1072_vm2, %v3447_v29, -inf }
 0x65d   :  { %5537 = vmatmul.msk.f32.gmra.mxu0 %vm904_vm1, %v6153_v52  ;;  %v3435_v52 = vadd.f32 %v3434_v21, %v3390_v53 }
 0x65f   :  { %4367 = vmatmul.f32.gmra.mxu2 %v6154_v45  ;;  %v3414_v45 = vpop.f32.mrf.mxu1 }
 0x660   :  { %v3449_v41 = vpop.f32.mrf.mxu3 }
 0x661   :  { %v3450_v57 = vadd.f32 %v3449_v41, %v3405_v60 }
 0x663   :  { %v3467_v53 = vsel %vm1072_vm2, %v3450_v57, -inf }
 0x665   :  { %5538 = vmatmul.msk.f32.gmra.mxu0 %vm904_vm1, %v6155_v51  ;;  %v3441_v51 = vadd.f32 %v3440_v31, %v3396_v37 }
 0x667   :  { %v3463_v59 = vsel %vm1072_vm2, %v3441_v51, -inf }
 0x668   :  { %v3452_v55 = vpop.f32.mrf.mxu3 }
 0x669   :  { %v3453_v23 = vadd.f32 %v3452_v55, %v3408_v27  ;;  %v9415_v27 = vpop.f32.mrf.mxu0 }
 0x66a   :  { %12038 = vst [vmem:[#allocation38_spill] sm:$0xff] %v9415_v27 }
 0x66b   :  { %v3469_v21 = vsel %vm1072_vm2, %v3453_v23, -inf }
 0x66c   :  { %v3470_v31 = vmax.f32 %v3463_v59, %v3469_v21 }
 0x66d   :  { %5539 = vmatmul.msk.f32.gmra.mxu0 %vm904_vm1, %v6156_v63  ;;  %v3461_v63 = vsel %vm1072_vm2, %v3435_v52, -inf }
 0x66e   :  { %v3466_v32 = vmax.f32 %v3461_v63, %v3465_v12 }
 0x670   :  { %v3455_v3 = vpop.f32.mrf.mxu3 }
 0x671   :  { %v3456_v6 = vadd.f32 %v3455_v3, %v3411_v5  ;;  %v6158_v3 = vld [vmem:[#allocation4 + $0x2f8] sm:$0xff] }
 0x673   :  { %v3471_v42 = vsel %vm1072_vm2, %v3456_v6, -inf }
 0x674   :  { %v3472_v60 = vmax.f32 %v3464_v33, %v3471_v42 }
 0x675   :  { %5540 = vmatmul.msk.f32.gmra.mxu0 %vm904_vm1, %v6157_v44  ;;  %v3462_v44 = vsel %vm1072_vm2, %v3438_v34, -inf }
 0x676   :  { %v3468_v26 = vmax.f32 %v3462_v44, %v3467_v53  ;;  %v3476_v55 = vmax.f32 %v3470_v31, %v3472_v60 }
 0x678   :  { %v3458_v28 = vpop.f32.mrf.mxu3 }
 0x679   :  { %v3459_v11 = vadd.f32 %v3458_v28, %v3414_v45 }
 0x67b   :  { %v3473_v37 = vsel %vm1085_vm3, %v3459_v11, -inf }
 0x67c   :  { %v3474_v41 = vmax.f32 %v3466_v32, %v3473_v37 }
 0x67d   :  { %5541 = vmatmul.msk.f32.gmra.mxu0 %vm904_vm1, %v6158_v3  ;;  %v9448_v3 = vld [vmem:[%s11202_s0 + $0x18] sm:$0xff] }
 0x67e   :  { %v3475_v5 = vmax.f32 %v3474_v41, %v3468_v26  ;;  %12043 = vst [vmem:[#allocation59_spill] sm:$0xff] %v9448_v3 }
 0x680   :  { %v3477_v0 = vmax.f32 %v3475_v5, %v3476_v55 }
 0x682   :  { %v3478_v45 = vrot.slane %v3477_v0, 4 }
 0x684   :  { %v3479_v12 = vmax.f32 %v3477_v0, %v3478_v45 }
 0x686   :  { %v3480_v42 = vrot.slane %v3479_v12, 2 }
 0x688   :  { %v3481_v63 = vmax.f32 %v3479_v12, %v3480_v42  ;;  %v9455_v12 = vld [vmem:[%s11202_s0 + $0x38] sm:$0xff] }
 0x689   :  { %12044 = vst [vmem:[#allocation58_spill] sm:$0xff] %v9455_v12 }
 0x68a   :  { %v3482_v28 = vrot.slane %v3481_v63, 1 }
 0x68c   :  { %v3483_v33 = vmax.f32 %v3481_v63, %v3482_v28 }
 0x68e   :  { %v3488_v48 = vsub.f32 %v3447_v29, %v3483_v33  ;;  %v3484_v58 = vsub.f32 %v3435_v52, %v3483_v33  ;;  %v3489_v47 = vsub.f32 %v3450_v57, %v3483_v33  ;;  %v3486_v53 = vsub.f32 %v3441_v51, %v3483_v33 }
 0x68f   :  { %v3490_v32 = vsub.f32 %v3453_v23, %v3483_v33  ;;  %v3491_v44 = vsub.f32 %v3456_v6, %v3483_v33  ;;  %v3492_v60 = vsub.f32 %v3459_v11, %v3483_v33  ;;  %v3485_v41 = vsub.f32 %v3438_v34, %v3483_v33 }
 0x690   :  { %v3501_v21 = vmul.f32 1.442695, %v3488_v48  ;;  %v3493_v59 = vmul.f32 1.442695, %v3484_v58  ;;  %v3503_v37 = vmul.f32 1.442695, %v3489_v47  ;;  %v3487_v55 = vsub.f32 %v3444_v20, %v3483_v33 }
 0x691   :  { %v3497_v26 = vmul.f32 1.442695, %v3486_v53  ;;  %v3505_v31 = vmul.f32 1.442695, %v3490_v32  ;;  %v3507_v0 = vmul.f32 1.442695, %v3491_v44 }
 0x692   :  { %5852 = vpow2.f32 %v3501_v21  ;;  %v3509_v5 = vmul.f32 1.442695, %v3492_v60  ;;  %v9420_v57 = vmul.f32 1.442695, %v3485_v41  ;;  %v9422_v48 = vmul.f32 1.442695, %v3487_v55 }
 0x693   :  { %5854 = vpow2.f32 %v3493_v59  ;;  %v9466_v53 = vld [vmem:[%s11202_s0 + $0x58] sm:$0xff] }
 0x694   :  { %5856 = vpow2.f32 %v3503_v37  ;;  %12040 = vst [vmem:[#allocation78_spill] sm:$0xff] %v9420_v57  ;;  %v9473_v32 = vld [vmem:[%s11202_s0 + $0x78] sm:$0xff] }
 0x695   :  { %5858 = vpow2.f32 %v3497_v26  ;;  %12046 = vst [vmem:[#allocation55_spill] sm:$0xff] %v9466_v53  ;;  %v9488_v41 = vld [vmem:[%s11202_s0 + $0x98] sm:$0xff] }
 0x696   :  { %5860 = vpow2.f32 %v3505_v31  ;;  %12047 = vst [vmem:[#allocation24_spill] sm:$0xff] %v9473_v32 }
 0x697   :  { %5862 = vpow2.f32 %v3507_v0  ;;  %12049 = vst [vmem:[#allocation28_spill] sm:$0xff] %v9488_v41 }
 0x698   :  { %v9418_v29 = vpop.eup %5852  ;;  %5864 = vpow2.f32 %v3509_v5 }
 0x699   :  { %12039 = vst [vmem:[#allocation34_spill] sm:$0xff] %v9418_v29  ;;  %v9425_v6 = vperm.slane %v9418_v29, 1  ;;  %v9428_v47 = vperm.slane %v9418_v29, 2  ;;  %v3911_v58 = vrot.slane %v9418_v29, 1  ;;  %v9431_v34 = vpop.eup %5854  ;;  %v11440_v23 = vrot.slane %v9418_v29, 2 }
 0x69a   :  { %12041 = vst [vmem:[#allocation63_spill] sm:$0xff] %v9431_v34  ;;  %v9435_v20 = vperm.slane %v9418_v29, 3  ;;  %v9438_v52 = vperm.slane %v9418_v29, 4  ;;  %v9441_v51 = vperm.slane %v9418_v29, 5  ;;  %v9443_v11 = vpop.eup %5856  ;;  %v3933_v28 = vrot.slane %v9418_v29, 3 }
 0x69b   :  { %12042 = vst [vmem:[#allocation35_spill] sm:$0xff] %v9443_v11  ;;  %v3901_v45 = vmul.f32 %v9448_v3, %v9425_v6  ;;  %v3906_v42 = vmul.f32 %v9455_v12, %v9428_v47  ;;  %v3913_v63 = vadd.f32 %v9418_v29, %v3911_v58  ;;  %v9461_v33 = vpop.eup %5858  ;;  %v3945_v59 = vrot.slane %v9418_v29, 4  ;;  %v9500_v58 = vld [vmem:[%s11202_s0 + $0xb8] sm:$0xff] }
 0x69c   :  { %12045 = vst [vmem:[#allocation29_spill] sm:$0xff] %v9461_v33  ;;  %v3918_v21 = vmul.f32 %v9466_v53, %v9435_v20  ;;  %v3928_v44 = vmul.f32 %v9473_v32, %v9438_v52  ;;  %v9479_v60 = vperm.slane %v9418_v29, 6  ;;  %v9481_v37 = vpop.eup %5860  ;;  %v3940_v55 = vmul.f32 %v9488_v41, %v9441_v51 }
 0x69d   :  { %12048 = vst [vmem:[#allocation42_spill] sm:$0xff] %v9481_v37  ;;  %v3910_v26 = vadd.f32 %v3906_v42, %v3901_v45  ;;  %v3923_v31 = vadd.f32 %v3913_v63, %v11440_v23  ;;  %v9493_v0 = vperm.slane %v9418_v29, 7  ;;  %v9495_v5 = vpop.eup %5862  ;;  %v3957_v42 = vrot.slane %v9418_v29, 5 }
 0x69e   :  { %12050 = vst [vmem:[#allocation21_spill] sm:$0xff] %v9500_v58  ;;  %v3952_v45 = vmul.f32 %v9500_v58, %v9479_v60  ;;  %v3969_v63 = vrot.slane %v9418_v29, 6  ;;  %v9507_v23 = vperm.slane %v9443_v11, 0  ;;  %v9509_v27 = vpop.eup %5864  ;;  %v3982_v17 = vrot.slane %v9443_v11, 7 }
 0x69f   :  { %v3922_v16 = vadd.f32 %v3918_v21, %v3910_v26  ;;  %v3935_v9 = vadd.f32 %v3933_v28, %v3923_v31  ;;  %v9513_v10 = vperm.slane %v9443_v11, 1  ;;  %v3964_v50 = vmul.f32 %v9518_v18, %v9493_v0  ;;  %v9532_v31 = vld [vmem:[%s11202_s0 + $0xf8] sm:$0xff] }
 0x6a0   :  { %v9523_v13 = vperm.slane %v9443_v11, 2  ;;  %v4004_v2 = vrot.slane %v9443_v11, 1  ;;  %v9527_v28 = vperm.slane %v9443_v11, 3  ;;  %12053 = vst [vmem:[#allocation16_spill] sm:$0xff] %v9532_v31  ;;  %v3976_v7 = vmul.f32 %v9532_v31, %v9507_v23 }
 0x6a1   :  { %12051 = vst [vmem:[#allocation27_spill] sm:$0xff] %v9513_v10  ;;  %v3932_v21 = vadd.f32 %v3928_v44, %v3922_v16  ;;  %v3947_v26 = vadd.f32 %v3945_v59, %v3935_v9  ;;  %v3989_v15 = vmul.f32 %v9539_v49, %v9513_v10  ;;  %v9546_v9 = vld [vmem:[%s11202_s0 + $0x138] sm:$0xff]  ;;  %v4016_v39 = vrot.slane %v9443_v11, 2 }
 0x6a2   :  { %12055 = vst [vmem:[#allocation25_spill] sm:$0xff] %v9546_v9  ;;  %v3999_v16 = vmul.f32 %v9546_v9, %v9523_v13  ;;  %v9553_v44 = vld [vmem:[%s11202_s0 + $0x158] sm:$0xff]  ;;  %v4039_v54 = vadd.f32 %v9443_v11, %v4004_v2  ;;  %v4059_v1 = vrot.slane %v9443_v11, 3  ;;  %v9561_v30 = vperm.slane %v9481_v37, 7 }
 0x6a3   :  { %12056 = vst [vmem:[#allocation30_spill] sm:$0xff] %v9553_v44  ;;  %v4011_v59 = vmul.f32 %v9553_v44, %v9527_v28  ;;  %v3944_v14 = vadd.f32 %v3940_v55, %v3932_v21  ;;  %v3959_v8 = vadd.f32 %v3957_v42, %v3947_v26  ;;  %v9564_v62 = vperm.slane %v9495_v5, 0 }
 0x6a4   :  { %v4049_v43 = vadd.f32 %v4039_v54, %v4016_v39  ;;  %v4166_v22 = vrot.slane %v9495_v5, 1  ;;  %v9568_v61 = vperm.slane %v9495_v5, 1  ;;  %v4072_v38 = vrot.slane %v9481_v37, 4 }
 0x6a5   :  { %v3956_v35 = vadd.f32 %v3952_v45, %v3944_v14  ;;  %v3971_v19 = vadd.f32 %v3969_v63, %v3959_v8  ;;  %v4155_v55 = vmul.f32 %v9448_v3, %v9561_v30  ;;  %v4160_v21 = vmul.f32 %v9455_v12, %v9564_v62 }
 0x6a6   :  { %12057 = vst [vmem:[#allocation14_spill] sm:$0xff] %v9568_v61  ;;  %v4061_v42 = vadd.f32 %v4059_v1, %v4049_v43  ;;  %v4168_v54 = vadd.f32 %v9481_v37, %v4166_v22  ;;  %v4178_v26 = vrot.slane %v9495_v5, 2  ;;  %v4173_v56 = vmul.f32 %v9466_v53, %v9568_v61  ;;  %v9675_v37 = vld [vmem:[%s11202_s0 + $0xd0] sm:$0xff] }
 0x6a7   :  { %v3968_v40 = vadd.f32 %v3964_v50, %v3956_v35  ;;  %v3984_v24 = vadd.f32 %v3982_v17, %v3971_v19  ;;  %v9580_v14 = vperm.slane %v9495_v5, 2  ;;  %v4164_v8 = vadd.f32 %v4160_v21, %v4155_v55  ;;  %12065 = vst [vmem:[#allocation36_spill] sm:$0xff] %v9675_v37 }
 0x6a8   :  { %v4180_v45 = vadd.f32 %v4178_v26, %v4168_v54  ;;  %v4190_v63 = vrot.slane %v9495_v5, 3  ;;  %v9584_v43 = vperm.slane %v9495_v5, 3  ;;  %v9587_v36 = vadd.f32 %v4072_v38, %v4061_v42 }
 0x6a9   :  { %v3980_v1 = vadd.f32 %v3976_v7, %v3968_v40  ;;  %v3994_v22 = vadd.f32 %v9443_v11, %v3984_v24  ;;  %v4185_v35 = vmul.f32 %v9473_v32, %v9580_v14  ;;  %v4177_v19 = vadd.f32 %v4173_v56, %v4164_v8 }
 0x6aa   :  { %12058 = vst [vmem:[#allocation77_spill] sm:$0xff] %v9587_v36  ;;  %v4192_v50 = vadd.f32 %v4190_v63, %v4180_v45  ;;  %v4202_v17 = vrot.slane %v9495_v5, 4  ;;  %v9593_v55 = vperm.slane %v9495_v5, 4  ;;  %v4197_v26 = vmul.f32 %v9488_v41, %v9584_v43 }
 0x6ab   :  { %v3993_v21 = vadd.f32 %v3989_v15, %v3980_v1  ;;  %v4006_v54 = vadd.f32 %v4004_v2, %v3994_v22  ;;  %v9598_v7 = vperm.slane %v9495_v5, 5  ;;  %v4189_v24 = vadd.f32 %v4185_v35, %v4177_v19 }
 0x6ac   :  { %v4204_v40 = vadd.f32 %v4202_v17, %v4192_v50  ;;  %v4209_v38 = vmul.f32 %v9500_v58, %v9593_v55  ;;  %v4214_v56 = vrot.slane %v9495_v5, 5  ;;  %v4226_v45 = vrot.slane %v9495_v5, 6 }
 0x6ad   :  { %v4003_v42 = vadd.f32 %v3999_v16, %v3993_v21  ;;  %v4018_v8 = vadd.f32 %v4016_v39, %v4006_v54  ;;  %v9605_v15 = vperm.slane %v9495_v5, 6  ;;  %v4201_v2 = vadd.f32 %v4197_v26, %v4189_v24  ;;  %v9629_v24 = vld [vmem:[%s11202_s0 + $0x10] sm:$0xff] }
 0x6ae   :  { %v4216_v63 = vadd.f32 %v4214_v56, %v4204_v40  ;;  %v4221_v1 = vmul.f32 %v9518_v18, %v9598_v7  ;;  %v9610_v22 = vperm.slane %v9495_v5, 7  ;;  %v4238_v19 = vrot.slane %v9495_v5, 7  ;;  %12059 = vst [vmem:[#allocation48_spill] sm:$0xff] %v9629_v24 }
 0x6af   :  { %v4015_v35 = vadd.f32 %v4011_v59, %v4003_v42  ;;  %5866 = vrcp.f32 %v4018_v8  ;;  %v9614_v16 = vperm.slane %v9509_v27, 0  ;;  %v4213_v39 = vadd.f32 %v4209_v38, %v4201_v2  ;;  %v9637_v8 = vld [vmem:[%s11202_s0 + $0x30] sm:$0xff] }
 0x6b0   :  { %v4228_v50 = vadd.f32 %v4226_v45, %v4216_v63  ;;  %v4233_v17 = vmul.f32 %v9532_v31, %v9605_v15  ;;  %v4245_v21 = vmul.f32 %v9539_v49, %v9610_v22  ;;  %v4261_v26 = vrot.slane %v9509_v27, 1  ;;  %12060 = vst [vmem:[#allocation56_spill] sm:$0xff] %v9637_v8  ;;  %v9646_v63 = vld [vmem:[%s11202_s0 + $0x50] sm:$0xff] }
 0x6b1   :  { %v4255_v54 = vmul.f32 %v9546_v9, %v9614_v16  ;;  %v9624_v59 = vperm.slane %v9509_v27, 1  ;;  %v3900_v40 = vmul.f32 %v9629_v24, %v9425_v6  ;;  %v4225_v38 = vadd.f32 %v4221_v1, %v4213_v39  ;;  %12061 = vst [vmem:[#allocation43_spill] sm:$0xff] %v9646_v63  ;;  %v9660_v39 = vld [vmem:[%s11202_s0 + $0x90] sm:$0xff] }
 0x6b2   :  { %v4240_v56 = vadd.f32 %v4238_v19, %v4228_v50  ;;  %v4273_v42 = vrot.slane %v9509_v27, 2  ;;  %v3905_v45 = vmul.f32 %v9637_v8, %v9428_v47  ;;  %v3917_v1 = vmul.f32 %v9646_v63, %v9435_v20  ;;  %v9653_v27 = vld [vmem:[%s11202_s0 + $0x70] sm:$0xff]  ;;  %12063 = vst [vmem:[#allocation75_spill] sm:$0xff] %v9660_v39 }
 0x6b3   :  { %v4268_v2 = vmul.f32 %v9553_v44, %v9624_v59  ;;  %12062 = vst [vmem:[#allocation81_spill] sm:$0xff] %v9653_v27  ;;  %v3927_v19 = vmul.f32 %v9653_v27, %v9438_v52  ;;  %v3939_v50 = vmul.f32 %v9660_v39, %v9441_v51  ;;  %v4237_v46 = vadd.f32 %v4233_v17, %v4225_v38  ;;  %v9689_v38 = vld [vmem:[%s11202_s0 + $0x110] sm:$0xff] }
 0x6b4   :  { %v4250_v34 = vadd.f32 %v9495_v5, %v4240_v56  ;;  %v3909_v4 = vadd.f32 %v3905_v45, %v3900_v40  ;;  %v3951_v57 = vmul.f32 %v9668_v25, %v9479_v60  ;;  %v3963_v17 = vmul.f32 %v9675_v37, %v9493_v0  ;;  %v9682_v5 = vld [vmem:[%s11202_s0 + $0xf0] sm:$0xff]  ;;  %12067 = vst [vmem:[#allocation10_spill] sm:$0xff] %v9689_v38 }
 0x6b5   :  { %v5867_v36 = vpop.eup %5866  ;;  %12066 = vst [vmem:[#allocation17_spill] sm:$0xff] %v9682_v5  ;;  %v3975_v40 = vmul.f32 %v9682_v5, %v9507_v23  ;;  %v9693_v56 = vmul.f32 %v9689_v38, %v9513_v10  ;;  %v9698_v45 = vld [vmem:[%s11202_s0 + $0x130] sm:$0xff]  ;;  %v4249_v49 = vadd.f32 %v4245_v21, %v4237_v46  ;;  %v4154_v58 = vmul.f32 %v9629_v24, %v9561_v30 }
 0x6b6   :  { %12068 = vst [vmem:[#allocation15_spill] sm:$0xff] %v9698_v45  ;;  %v9702_v44 = vmul.f32 %v9698_v45, %v9523_v13  ;;  %v9704_v9 = vperm.slane %v5867_v36, 1  ;;  %v4263_v11 = vadd.f32 %v4261_v26, %v4250_v34  ;;  %v3921_v29 = vadd.f32 %v3917_v1, %v3909_v4  ;;  %v9709_v31 = vld [vmem:[%s11202_s0 + $0x150] sm:$0xff] }
 0x6b7   :  { %12069 = vst [vmem:[#allocation12_spill] sm:$0xff] %v9709_v31  ;;  %v9713_v18 = vmul.f32 %v9709_v31, %v9527_v28  ;;  %v4159_v41 = vmul.f32 %v9637_v8, %v9564_v62  ;;  %v4172_v46 = vmul.f32 %v9646_v63, %v9568_v61  ;;  %v4259_v36 = vadd.f32 %v4255_v54, %v4249_v49 }
 0x6b8   :  { %v9722_v4 = vmul.f32 %v9704_v9, %v4015_v35  ;;  %v4275_v34 = vadd.f32 %v4273_v42, %v4263_v11  ;;  %v3931_v21 = vadd.f32 %v3927_v19, %v3921_v29  ;;  %v4184_v1 = vmul.f32 %v9653_v27, %v9580_v14  ;;  %v9748_v42 = vld [vmem:[%s11202_s0 + $0x8] sm:$0xff] }
 0x6b9   :  { %v4163_v26 = vadd.f32 %v4159_v41, %v4154_v58  ;;  %v4196_v32 = vmul.f32 %v9660_v39, %v9584_v43  ;;  %v4208_v24 = vmul.f32 %v9668_v25, %v9593_v55  ;;  %v4272_v8 = vadd.f32 %v4268_v2, %v4259_v36  ;;  %12071 = vst [vmem:[#allocation8_spill] sm:$0xff] %v9748_v42  ;;  %v9755_v19 = vld [vmem:[%s11202_s0 + $0x28] sm:$0xff] }
 0x6ba   :  { %12070 = vst [vmem:[#allocation13_spill] sm:$0xff] %v9722_v4  ;;  %4460 = vmatpush.msra.mxu1 %v9722_v4  ;;  %5868 = vrcp.f32 %v4275_v34  ;;  %v3943_v63 = vadd.f32 %v3939_v50, %v3931_v21  ;;  %v4220_v49 = vmul.f32 %v9675_v37, %v9598_v7  ;;  %v4232_v29 = vmul.f32 %v9682_v5, %v9605_v15  ;;  %v9762_v50 = vld [vmem:[%s11202_s0 + $0x48] sm:$0xff] }
 0x6bb   :  { %v4176_v11 = vadd.f32 %v4172_v46, %v4163_v26  ;;  %v4244_v41 = vmul.f32 %v9689_v38, %v9610_v22  ;;  %v9739_v58 = vmul.f32 %v9698_v45, %v9614_v16  ;;  %v9743_v54 = vmul.f32 %v9709_v31, %v9624_v59  ;;  %12072 = vst [vmem:[#allocation18_spill] sm:$0xff] %v9755_v19  ;;  %v9769_v36 = vld [vmem:[%s11202_s0 + $0x68] sm:$0xff] }
 0x6bc   :  { %v3955_v35 = vadd.f32 %v3951_v57, %v3943_v63  ;;  %v3899_v2 = vmul.f32 %v9748_v42, %v9425_v6  ;;  %v3904_v57 = vmul.f32 %v9755_v19, %v9428_v47  ;;  %12073 = vst [vmem:[#allocation22_spill] sm:$0xff] %v9762_v50  ;;  %v3916_v46 = vmul.f32 %v9762_v50, %v9435_v20  ;;  %v9776_v21 = vld [vmem:[%s11202_s0 + $0x88] sm:$0xff] }
 0x6bd   :  { %v4188_v63 = vadd.f32 %v4184_v1, %v4176_v11  ;;  %v3926_v34 = vmul.f32 %v9769_v36, %v9438_v52  ;;  %v3938_v26 = vmul.f32 %v9776_v21, %v9441_v51  ;;  %v9783_v4 = vld [vmem:[%s11202_s0 + $0xa8] sm:$0xff]  ;;  %v4153_v27 = vmul.f32 %v9748_v42, %v9561_v30 }
 0x6be   :  { %v3967_v1 = vadd.f32 %v3963_v17, %v3955_v35  ;;  %v3908_v11 = vadd.f32 %v3904_v57, %v3899_v2  ;;  %v3950_v31 = vmul.f32 %v9783_v4, %v9479_v60  ;;  %v9790_v45 = vld [vmem:[%s11202_s0 + $0xc8] sm:$0xff]  ;;  %v4158_v53 = vmul.f32 %v9755_v19, %v9564_v62 }
 0x6bf   :  { %v3962_v38 = vmul.f32 %v9790_v45, %v9493_v0  ;;  %v4200_v5 = vadd.f32 %v4196_v32, %v4188_v63  ;;  %v9797_v17 = vld [vmem:[%s11202_s0 + $0xe8] sm:$0xff]  ;;  %v4195_v19 = vmul.f32 %v9776_v21, %v9584_v43  ;;  %v4207_v42 = vmul.f32 %v9783_v4, %v9593_v55 }
 0x6c0   :  { %v3974_v35 = vmul.f32 %v9797_v17, %v9507_v23  ;;  %v9804_v2 = vld [vmem:[%s11202_s0 + $0x108] sm:$0xff]  ;;  %v5869_v37 = vpop.eup %5868  ;;  %v3979_v25 = vadd.f32 %v3975_v40, %v3967_v1  ;;  %v3920_v39 = vadd.f32 %v3916_v46, %v3908_v11  ;;  %v4171_v40 = vmul.f32 %v9762_v50, %v9568_v61 }
 0x6c1   :  { %v9808_v57 = vmul.f32 %v9804_v2, %v9513_v10  ;;  %v9813_v32 = vld [vmem:[%s11202_s0 + $0x128] sm:$0xff]  ;;  %v9823_v12 = vperm.slane %v5869_v37, 7  ;;  %v4212_v3 = vadd.f32 %v4208_v24, %v4200_v5  ;;  %v4162_v11 = vadd.f32 %v4158_v53, %v4153_v27 }
 0x6c2   :  { %12074 = vst [vmem:[#allocation123_spill] sm:$0xff] %v9813_v32  ;;  %v9817_v63 = vmul.f32 %v9813_v32, %v9523_v13  ;;  %v9828_v10 = vld [vmem:[%s11202_s0 + $0x148] sm:$0xff]  ;;  %v3992_v46 = vadd.f32 %v9693_v56, %v3979_v25  ;;  %v3930_v1 = vadd.f32 %v3926_v34, %v3920_v39  ;;  %v4183_v37 = vmul.f32 %v9769_v36, %v9580_v14  ;;  %v9869_v34 = vld [vmem:[%s11202_s0 + $0x20] sm:$0xff] }
 0x6c3   :  { %12076 = vst [vmem:[#allocation125_spill] sm:$0xff] %v9828_v10  ;;  %v9840_v24 = vmul.f32 %v9823_v12, %v4272_v8  ;;  %v4224_v5 = vadd.f32 %v4220_v49, %v4212_v3  ;;  %v4175_v61 = vadd.f32 %v4171_v40, %v4162_v11  ;;  %v4219_v25 = vmul.f32 %v9790_v45, %v9598_v7  ;;  %v9883_v40 = vld [vmem:[%s11202_s0 + $0x40] sm:$0xff] }
 0x6c4   :  { %12075 = vst [vmem:[#allocation124_spill] sm:$0xff] %v9817_v63  ;;  %v9832_v63 = vmul.f32 %v9828_v10, %v9527_v28  ;;  %v3942_v50 = vadd.f32 %v3938_v26, %v3930_v1  ;;  %5870 = vpow2.f32 %v9422_v48  ;;  %v4231_v53 = vmul.f32 %v9797_v17, %v9605_v15  ;;  %v9862_v48 = vld [vmem:[%s11202_s0] sm:$0xff] }
 0x6c5   :  { %12078 = vst [vmem:[#allocation127_spill] sm:$0xff] %v9840_v24  ;;  %4557 = vmatpush.msrb.mxu2 %v9840_v24  ;;  %5632 = vmatpush.msrb.mxu3 %v9840_v24  ;;  %v4236_v3 = vadd.f32 %v4232_v29, %v4224_v5  ;;  %v4243_v8 = vmul.f32 %v9804_v2, %v9610_v22  ;;  %v9898_v1 = vld [vmem:[%s11202_s0 + $0x80] sm:$0xff] }
 0x6c6   :  { %12077 = vst [vmem:[#allocation126_spill] sm:$0xff] %v9832_v63  ;;  %v4002_v63 = vadd.f32 %v9702_v44, %v3992_v46  ;;  %v3954_v27 = vadd.f32 %v3950_v31, %v3942_v50  ;;  %v4187_v39 = vadd.f32 %v4183_v37, %v4175_v61  ;;  %v4253_v56 = vmul.f32 %v9813_v32, %v9614_v16  ;;  %v9890_v46 = vld [vmem:[%s11202_s0 + $0x60] sm:$0xff] }
 0x6c7   :  { %v4248_v49 = vadd.f32 %v4244_v41, %v4236_v3  ;;  %12079 = vst [vmem:[#allocation128_spill] sm:$0xff] %v9862_v48  ;;  %v3898_v29 = vmul.f32 %v9862_v48, %v9425_v6  ;;  %v3903_v61 = vmul.f32 %v9869_v34, %v9428_v47  ;;  %v4266_v26 = vmul.f32 %v9828_v10, %v9624_v59  ;;  %v9905_v11 = vld [vmem:[%s11202_s0 + $0xa0] sm:$0xff] }
 0x6c8   :  { %v4014_v44 = vadd.f32 %v9713_v18, %v4002_v63  ;;  %12080 = vst [vmem:[#allocation129_spill] sm:$0xff] %v9869_v34  ;;  %v11552_v18 = vrot.slane %v9461_v33, 1  ;;  %v3966_v41 = vadd.f32 %v3962_v38, %v3954_v27  ;;  %v4199_v50 = vadd.f32 %v4195_v19, %v4187_v39  ;;  %v9915_v5 = vld [vmem:[%s11202_s0 + $0xc0] sm:$0xff]  ;;  %v12089_v39 = vld [vmem:[#allocation27_spill] sm:$0xff] }
 0x6c9   :  { %v4258_v6 = vadd.f32 %v9739_v58, %v4248_v49  ;;  %v3907_v63 = vadd.f32 %v3903_v61, %v3898_v29  ;;  %12082 = vst [vmem:[#allocation131_spill] sm:$0xff] %v9883_v40  ;;  %v3915_v47 = vmul.f32 %v9883_v40, %v9435_v20  ;;  %v3925_v38 = vmul.f32 %v9890_v46, %v9438_v52  ;;  %v9922_v3 = vld [vmem:[%s11202_s0 + $0xe0] sm:$0xff] }
 0x6ca   :  { %v9875_v31 = vmul.f32 %v9704_v9, %v4014_v44  ;;  %12083 = vst [vmem:[#allocation132_spill] sm:$0xff] %v9890_v46  ;;  %v3978_v58 = vadd.f32 %v3974_v35, %v3966_v41  ;;  %v4211_v19 = vadd.f32 %v4207_v42, %v4199_v50  ;;  %v3937_v20 = vmul.f32 %v9898_v1, %v9441_v51  ;;  %v9909_v37 = vpop.eup %5870  ;;  %v9930_v27 = vld [vmem:[%s11202_s0 + $0x100] sm:$0xff] }
 0x6cb   :  { %12084 = vst [vmem:[#allocation133_spill] sm:$0xff] %v9898_v1  ;;  %v3949_v52 = vmul.f32 %v9905_v11, %v9479_v60  ;;  %v4271_v42 = vadd.f32 %v9743_v54, %v4258_v6  ;;  %v3919_v35 = vadd.f32 %v3915_v47, %v3907_v63  ;;  %v3961_v51 = vmul.f32 %v9915_v5, %v9493_v0  ;;  %v12092_v41 = vld [vmem:[#allocation124_spill] sm:$0xff]  ;;  %v12094_v47 = vld [vmem:[#allocation14_spill] sm:$0xff] }
 0x6cc   :  { %12081 = vst [vmem:[#allocation130_spill] sm:$0xff] %v9875_v31  ;;  %4461 = vmatpush.msra.mxu1 %v9875_v31  ;;  %v3973_v60 = vmul.f32 %v9922_v3, %v9507_v23  ;;  %v3991_v44 = vadd.f32 %v9808_v57, %v3978_v58  ;;  %v4223_v54 = vadd.f32 %v4219_v25, %v4211_v19  ;;  %v9942_v23 = vld [vmem:[%s11202_s0 + $0x120] sm:$0xff]  ;;  %v9963_v58 = vperm.slane %v9461_v33, 6 }
 0x6cd   :  { %12085 = vst [vmem:[#allocation134_spill] sm:$0xff] %v9905_v11  ;;  %v3986_v49 = vmul.f32 %v9930_v27, %v12089_v39  ;;  %v4152_v0 = vmul.f32 %v9862_v48, %v9561_v30  ;;  %v9937_v29 = vmul.f32 %v9823_v12, %v4271_v42  ;;  %v3929_v61 = vadd.f32 %v3925_v38, %v3919_v35  ;;  %v9952_v30 = vld [vmem:[%s11202_s0 + $0x140] sm:$0xff]  ;;  %v12095_v19 = vld [vmem:[#allocation126_spill] sm:$0xff] }
 0x6ce   :  { %12086 = vst [vmem:[#allocation135_spill] sm:$0xff] %v9915_v5  ;;  %v3996_v57 = vmul.f32 %v9942_v23, %v9523_v13  ;;  %v4157_v25 = vmul.f32 %v9869_v34, %v9564_v62  ;;  %v4001_v50 = vadd.f32 %v12092_v41, %v3991_v44  ;;  %v4235_v6 = vadd.f32 %v4231_v53, %v4223_v54 }
 0x6cf   :  { %12087 = vst [vmem:[#allocation136_spill] sm:$0xff] %v9922_v3  ;;  %v4008_v63 = vmul.f32 %v9952_v30, %v9527_v28  ;;  %v4170_v38 = vmul.f32 %v9883_v40, %v12094_v47  ;;  %4558 = vmatpush.msrb.mxu2 %v9937_v29  ;;  %5633 = vmatpush.msrb.mxu3 %v9937_v29  ;;  %v12098_v47 = vld [vmem:[#allocation58_spill] sm:$0xff] }
 0x6d0   :  { %12088 = vst [vmem:[#allocation137_spill] sm:$0xff] %v9930_v27  ;;  %v3941_v13 = vadd.f32 %v3937_v20, %v3929_v61  ;;  %v4161_v62 = vadd.f32 %v4157_v25, %v4152_v0  ;;  %v4182_v53 = vmul.f32 %v9890_v46, %v9580_v14  ;;  %v4013_v42 = vadd.f32 %v12095_v19, %v4001_v50 }
 0x6d1   :  { %12090 = vst [vmem:[#allocation27_spill] sm:$0xff] %v9937_v29  ;;  %v4247_v35 = vadd.f32 %v4243_v8, %v4235_v6  ;;  %v4194_v28 = vmul.f32 %v9898_v1, %v9584_v43  ;;  %v4206_v44 = vmul.f32 %v9905_v11, %v9593_v55  ;;  %v4218_v20 = vmul.f32 %v9915_v5, %v9598_v7  ;;  %v12097_v43 = vld [vmem:[#allocation59_spill] sm:$0xff] }
 0x6d2   :  { %12091 = vst [vmem:[#allocation138_spill] sm:$0xff] %v9942_v23  ;;  %v3953_v54 = vadd.f32 %v3949_v52, %v3941_v13  ;;  %v4174_v39 = vadd.f32 %v4170_v38, %v4161_v62  ;;  %v4230_v14 = vmul.f32 %v9922_v3, %v9605_v15  ;;  %v9975_v0 = vmul.f32 %v9704_v9, %v4013_v42 }
 0x6d3   :  { %12093 = vst [vmem:[#allocation124_spill] sm:$0xff] %v9952_v30  ;;  %v4257_v61 = vadd.f32 %v4253_v56, %v4247_v35  ;;  %v4242_v8 = vmul.f32 %v9930_v27, %v9610_v22  ;;  %v3772_v25 = vmul.f32 %v12097_v43, %v9963_v58  ;;  %v9982_v52 = vperm.slane %v9461_v33, 7 }
 0x6d4   :  { %12096 = vst [vmem:[#allocation14_spill] sm:$0xff] %v9975_v0  ;;  %v3965_v41 = vadd.f32 %v3961_v51, %v3953_v54  ;;  %v4186_v55 = vadd.f32 %v4182_v53, %v4174_v39  ;;  %v3782_v7 = vadd.f32 %v9461_v33, %v11552_v18  ;;  %4462 = vmatpush.msra.mxu1 %v9975_v0  ;;  %v9991_v22 = vperm.slane %v9909_v37, 0 }
 0x6d5   :  { %v4270_v15 = vadd.f32 %v4266_v26, %v4257_v61  ;;  %v4252_v56 = vmul.f32 %v9942_v23, %v9614_v16  ;;  %v3793_v50 = vrot.slane %v9909_v37, 2  ;;  %v3777_v38 = vmul.f32 %v12098_v47, %v9982_v52  ;;  %v12100_v26 = vld [vmem:[#allocation55_spill] sm:$0xff] }
 0x6d6   :  { %v3977_v51 = vadd.f32 %v3973_v60, %v3965_v41  ;;  %v4198_v6 = vadd.f32 %v4194_v28, %v4186_v55  ;;  %v9997_v13 = vperm.slane %v9909_v37, 1  ;;  %v3787_v53 = vmul.f32 %v12100_v26, %v9991_v22 }
 0x6d7   :  { %v10000_v62 = vmul.f32 %v9823_v12, %v4270_v15  ;;  %v3795_v16 = vadd.f32 %v3793_v50, %v3782_v7  ;;  %v3805_v19 = vrot.slane %v9909_v37, 3  ;;  %v3781_v54 = vadd.f32 %v3777_v38, %v3772_v25  ;;  %v12101_v25 = vld [vmem:[#allocation24_spill] sm:$0xff] }
 0x6d8   :  { %v3990_v42 = vadd.f32 %v3986_v49, %v3977_v51  ;;  %v4210_v35 = vadd.f32 %v4206_v44, %v4198_v6  ;;  %v10006_v60 = vperm.slane %v9909_v37, 2  ;;  %v4265_v28 = vmul.f32 %v9952_v30, %v9624_v59  ;;  %v12102_v15 = vld [vmem:[#allocation28_spill] sm:$0xff]  ;;  %v10095_v30 = vpop.f32.mrf.mxu2 }
 0x6d9   :  { %12099 = vst [vmem:[#allocation126_spill] sm:$0xff] %v10000_v62  ;;  %4559 = vmatpush.msrb.mxu2 %v10000_v62  ;;  %5634 = vmatpush.msrb.mxu3 %v10000_v62  ;;  %v3807_v39 = vadd.f32 %v3805_v19, %v3795_v16  ;;  %v3817_v61 = vrot.slane %v9909_v37, 4  ;;  %v10014_v41 = vperm.slane %v9909_v37, 3  ;;  %v3791_v44 = vadd.f32 %v3787_v53, %v3781_v54 }
 0x6da   :  { %v4000_v55 = vadd.f32 %v3996_v57, %v3990_v42  ;;  %v4222_v49 = vadd.f32 %v4218_v20, %v4210_v35  ;;  %v3800_v7 = vmul.f32 %v12101_v25, %v9997_v13  ;;  %v3812_v50 = vmul.f32 %v12102_v15, %v10006_v60  ;;  %v12103_v57 = vld [vmem:[#allocation21_spill] sm:$0xff] }
 0x6db   :  { %v3819_v51 = vadd.f32 %v3817_v61, %v3807_v39  ;;  %v3829_v6 = vrot.slane %v9909_v37, 5  ;;  %v10022_v59 = vperm.slane %v9909_v37, 4  ;;  %v10025_v18 = vperm.slane %v9909_v37, 5 }
 0x6dc   :  { %v4012_v38 = vadd.f32 %v4008_v63, %v4000_v55  ;;  %v4234_v16 = vadd.f32 %v4230_v14, %v4222_v49  ;;  %v3804_v19 = vadd.f32 %v3800_v7, %v3791_v44  ;;  %v3824_v20 = vmul.f32 %v12103_v57, %v10014_v41  ;;  %v12105_v63 = vld [vmem:[#allocation26_spill] sm:$0xff]  ;;  %v12106_v49 = vld [vmem:[#allocation16_spill] sm:$0xff] }
 0x6dd   :  { %v3831_v53 = vadd.f32 %v3829_v6, %v3819_v51  ;;  %v3841_v42 = vrot.slane %v9909_v37, 6  ;;  %v10031_v35 = vperm.slane %v9909_v37, 6  ;;  %v3836_v14 = vmul.f32 %v12105_v63, %v10022_v59  ;;  %12117 = vst [vmem:[#allocation16_spill] sm:$0xff] %v10095_v30  ;;  %v12121_v30 = vld [vmem:[#allocation81_spill] sm:$0xff] }
 0x6de   :  { %v10034_v54 = vmul.f32 %v9704_v9, %v4012_v38  ;;  %v4246_v39 = vadd.f32 %v4242_v8, %v4234_v16  ;;  %v3816_v61 = vadd.f32 %v3812_v50, %v3804_v19  ;;  %v3848_v44 = vmul.f32 %v12106_v49, %v10025_v18  ;;  %v12107_v9 = vld [vmem:[#allocation34_spill] sm:$0xff]  ;;  %v12108_v8 = vld [vmem:[#allocation35_spill] sm:$0xff]  ;;  %v12110_v19 = vld [vmem:[#allocation9_spill] sm:$0xff] }
 0x6df   :  { %v3843_v55 = vadd.f32 %v3841_v42, %v3831_v53  ;;  %v3853_v7 = vrot.slane %v9909_v37, 7  ;;  %v10042_v51 = vperm.slane %v9909_v37, 7  ;;  %v10046_v38 = vperm.slane %v12107_v9, 0 }
 0x6e0   :  { %12104 = vst [vmem:[#allocation24_spill] sm:$0xff] %v10034_v54  ;;  %4463 = vmatpush.msra.mxu1 %v10034_v54  ;;  %v4256_v6 = vadd.f32 %v4252_v56, %v4246_v39  ;;  %v3828_v0 = vadd.f32 %v3824_v20, %v3816_v61  ;;  %v10049_v50 = vperm.slane %v12108_v8, 4  ;;  %v3860_v53 = vmul.f32 %v12110_v19, %v10031_v35  ;;  %v12111_v61 = vld [vmem:[#allocation25_spill] sm:$0xff] }
 0x6e1   :  { %v3855_v16 = vadd.f32 %v3853_v7, %v3843_v55  ;;  %v10054_v42 = vperm.slane %v12108_v8, 5  ;;  %v10057_v31 = vperm.slane %v12108_v8, 6  ;;  %v3875_v56 = vrot.slane %v9909_v37, 1 }
 0x6e2   :  { %12109 = vst [vmem:[#allocation21_spill] sm:$0xff] %v10049_v50  ;;  %v4269_v62 = vadd.f32 %v4265_v28, %v4256_v6  ;;  %v3840_v54 = vadd.f32 %v3836_v14, %v3828_v0  ;;  %v4029_v20 = vmul.f32 %v12097_v43, %v10049_v50  ;;  %v3870_v55 = vmul.f32 %v12111_v61, %v10042_v51  ;;  %v12113_v28 = vld [vmem:[#allocation30_spill] sm:$0xff] }
 0x6e3   :  { %v3865_v39 = vadd.f32 %v9909_v37, %v3855_v16  ;;  %v4034_v7 = vmul.f32 %v12098_v47, %v10054_v42  ;;  %v10068_v29 = vperm.slane %v12108_v8, 7  ;;  %v3882_v14 = vmul.f32 %v12113_v28, %v10046_v38  ;;  %v12114_v6 = vld [vmem:[#allocation42_spill] sm:$0xff] }
 0x6e4   :  { %v10071_v24 = vmul.f32 %v9823_v12, %v4269_v62  ;;  %v3852_v0 = vadd.f32 %v3848_v44, %v3840_v54  ;;  %v10076_v33 = vperm.slane %v12114_v6, 0  ;;  %v4044_v43 = vmul.f32 %v12100_v26, %v10057_v31 }
 0x6e5   :  { %v3877_v37 = vadd.f32 %v3875_v56, %v3865_v39  ;;  %v4038_v16 = vadd.f32 %v4034_v7, %v4029_v20  ;;  %v4084_v47 = vrot.slane %v12114_v6, 5  ;;  %v4054_v62 = vmul.f32 %v12101_v25, %v10068_v29  ;;  %v12116_v39 = vld [vmem:[#allocation77_spill] sm:$0xff] }
 0x6e6   :  { %12112 = vst [vmem:[#allocation26_spill] sm:$0xff] %v10071_v24  ;;  %4560 = vmatpush.msrb.mxu2 %v10071_v24  ;;  %5635 = vmatpush.msrb.mxu3 %v10071_v24  ;;  %v3864_v12 = vadd.f32 %v3860_v53, %v3852_v0  ;;  %v10086_v54 = vperm.slane %v12114_v6, 1  ;;  %v10089_v44 = vperm.slane %v12114_v6, 2  ;;  %v12115_v8 = vrot.slane %v12107_v9, 2 }
 0x6e7   :  { %v4048_v20 = vadd.f32 %v4044_v43, %v4038_v16  ;;  %v4086_v7 = vadd.f32 %v4084_v47, %v12116_v39  ;;  %v4096_v26 = vrot.slane %v12114_v6, 6  ;;  %v4066_v25 = vmul.f32 %v12102_v15, %v10076_v33 }
 0x6e8   :  { %v3890_v56 = vadd.f32 %v12115_v8, %v3877_v37  ;;  %v3874_v53 = vadd.f32 %v3870_v55, %v3864_v12  ;;  %v10100_v0 = vperm.slane %v12114_v6, 3  ;;  %v4108_v24 = vrot.slane %v12114_v6, 7 }
 0x6e9   :  { %v4058_v23 = vadd.f32 %v4054_v62, %v4048_v20  ;;  %v4098_v9 = vadd.f32 %v4096_v26, %v4086_v7  ;;  %v10104_v43 = vperm.slane %v12114_v6, 4  ;;  %v4079_v37 = vmul.f32 %v12103_v57, %v10086_v54  ;;  %v12118_v57 = vld [vmem:[#allocation48_spill] sm:$0xff] }
 0x6ea   :  { %5872 = vrcp.f32 %v3890_v56  ;;  %v3886_v47 = vadd.f32 %v3882_v14, %v3874_v53  ;;  %v4091_v55 = vmul.f32 %v12105_v63, %v10089_v44  ;;  %v10111_v16 = vperm.slane %v12114_v6, 5  ;;  %v12119_v63 = vld [vmem:[#allocation56_spill] sm:$0xff] }
 0x6eb   :  { %v4070_v12 = vadd.f32 %v4066_v25, %v4058_v23  ;;  %v4103_v8 = vmul.f32 %v12106_v49, %v10100_v0  ;;  %v4110_v56 = vadd.f32 %v4108_v24, %v4098_v9  ;;  %v10116_v26 = vperm.slane %v12114_v6, 6  ;;  %v12120_v25 = vld [vmem:[#allocation43_spill] sm:$0xff] }
 0x6ec   :  { %v4115_v14 = vmul.f32 %v12110_v19, %v10104_v43  ;;  %v4130_v62 = vrot.slane %v12114_v6, 1  ;;  %v3771_v20 = vmul.f32 %v12118_v57, %v9963_v58  ;;  %v3776_v39 = vmul.f32 %v12119_v63, %v9982_v52 }
 0x6ed   :  { %v4083_v7 = vadd.f32 %v4079_v37, %v4070_v12  ;;  %v4120_v23 = vadd.f32 %v12114_v6, %v4110_v56  ;;  %v4125_v24 = vmul.f32 %v12111_v61, %v10111_v16  ;;  %v4142_v49 = vrot.slane %v12114_v6, 2  ;;  %v12122_v12 = vld [vmem:[#allocation75_spill] sm:$0xff]  ;;  %v12123_v61 = vld [vmem:[#allocation53_spill] sm:$0xff] }
 0x6ee   :  { %v4137_v53 = vmul.f32 %v12113_v28, %v10116_v26  ;;  %v3780_v19 = vadd.f32 %v3776_v39, %v3771_v20  ;;  %v3786_v9 = vmul.f32 %v12120_v25, %v9991_v22  ;;  %v3799_v15 = vmul.f32 %v12121_v30, %v9997_v13  ;;  %v12124_v28 = vld [vmem:[#allocation36_spill] sm:$0xff]  ;;  %v12125_v39 = vld [vmem:[#allocation17_spill] sm:$0xff] }
 0x6ef   :  { %v4095_v3 = vadd.f32 %v4091_v55, %v4083_v7  ;;  %v4132_v37 = vadd.f32 %v4130_v62, %v4120_v23  ;;  %v3811_v56 = vmul.f32 %v12122_v12, %v10006_v60  ;;  %v3823_v5 = vmul.f32 %v12123_v61, %v10014_v41  ;;  %v12126_v55 = vld [vmem:[#allocation10_spill] sm:$0xff]  ;;  %v10149_v23 = vpop.f32.mrf.mxu2 }
 0x6f0   :  { %v5873_v27 = vpop.eup %5872  ;;  %v3790_v11 = vadd.f32 %v3786_v9, %v3780_v19  ;;  %v3835_v20 = vmul.f32 %v12124_v28, %v10022_v59  ;;  %v3847_v1 = vmul.f32 %v12125_v39, %v10025_v18  ;;  %v3859_v62 = vmul.f32 %v12126_v55, %v10031_v35  ;;  %12127 = vst [vmem:[#allocation34_spill] sm:$0xff] %v10149_v23  ;;  %v12129_v9 = vld [vmem:[#allocation15_spill] sm:$0xff] }
 0x6f1   :  { %v10139_v6 = vperm.slane %v5873_v27, 6  ;;  %v4107_v46 = vadd.f32 %v4103_v8, %v4095_v3  ;;  %v4144_v40 = vadd.f32 %v4142_v49, %v4132_v37  ;;  %v4028_v7 = vmul.f32 %v12118_v57, %v10049_v50  ;;  %v12130_v8 = vld [vmem:[#allocation12_spill] sm:$0xff] }
 0x6f2   :  { %v3803_v19 = vadd.f32 %v3799_v15, %v3790_v11  ;;  %v3869_v34 = vmul.f32 %v12129_v9, %v10042_v51  ;;  %v4033_v48 = vmul.f32 %v12119_v63, %v10054_v42  ;;  %v3881_v49 = vmul.f32 %v12130_v8, %v10046_v38 }
 0x6f3   :  { %v10152_v27 = vmul.f32 %v10139_v6, %v3886_v47  ;;  %v4119_v3 = vadd.f32 %v4115_v14, %v4107_v46  ;;  %5874 = vrcp.f32 %v4144_v40  ;;  %v4043_v37 = vmul.f32 %v12120_v25, %v10057_v31 }
 0x6f4   :  { %v3815_v23 = vadd.f32 %v3811_v56, %v3803_v19  ;;  %v4037_v47 = vadd.f32 %v4033_v48, %v4028_v7  ;;  %v4053_v11 = vmul.f32 %v12121_v30, %v10068_v29  ;;  %v4065_v15 = vmul.f32 %v12122_v12, %v10076_v33  ;;  %v12131_v56 = vld [vmem:[#allocation8_spill] sm:$0xff] }
 0x6f5   :  { %12128 = vst [vmem:[#allocation35_spill] sm:$0xff] %v10152_v27  ;;  %4464 = vmatpush.msra.mxu1 %v10152_v27  ;;  %v4129_v57 = vadd.f32 %v4125_v24, %v4119_v3  ;;  %v4078_v40 = vmul.f32 %v12123_v61, %v10086_v54  ;;  %v4090_v46 = vmul.f32 %v12124_v28, %v10089_v44  ;;  %v12132_v28 = vld [vmem:[#allocation18_spill] sm:$0xff] }
 0x6f6   :  { %v4102_v14 = vmul.f32 %v12125_v39, %v10100_v0  ;;  %v3827_v25 = vadd.f32 %v3823_v5, %v3815_v23  ;;  %v4047_v27 = vadd.f32 %v4043_v37, %v4037_v47  ;;  %v4114_v48 = vmul.f32 %v12126_v55, %v10104_v43  ;;  %v12133_v23 = vld [vmem:[#allocation22_spill] sm:$0xff] }
 0x6f7   :  { %v3770_v7 = vmul.f32 %v12131_v56, %v9963_v58  ;;  %v4141_v19 = vadd.f32 %v4137_v53, %v4129_v57  ;;  %v4124_v24 = vmul.f32 %v12129_v9, %v10111_v16  ;;  %v10181_v3 = vmul.f32 %v12130_v8, %v10116_v26  ;;  %v10205_v63 = vpop.f32.mrf.mxu2 }
 0x6f8   :  { %v3775_v61 = vmul.f32 %v12132_v28, %v9982_v52  ;;  %v3839_v39 = vadd.f32 %v3835_v20, %v3827_v25  ;;  %v4057_v5 = vadd.f32 %v4053_v11, %v4047_v27  ;;  %v3785_v37 = vmul.f32 %v12133_v23, %v9991_v22  ;;  %12134 = vst [vmem:[#allocation9_spill] sm:$0xff] %v10205_v63 }
 0x6f9   :  { %v3798_v47 = vmul.f32 %v9769_v36, %v9997_v13  ;;  %v5875_v55 = vpop.eup %5874  ;;  %v3810_v53 = vmul.f32 %v9776_v21, %v10006_v60  ;;  %v3822_v8 = vmul.f32 %v9783_v4, %v10014_v41  ;;  %v3834_v9 = vmul.f32 %v9790_v45, %v10022_v59 }
 0x6fa   :  { %v3779_v57 = vadd.f32 %v3775_v61, %v3770_v7  ;;  %v10195_v12 = vperm.slane %v5875_v55, 4  ;;  %v3851_v25 = vadd.f32 %v3847_v1, %v3839_v39  ;;  %v4069_v20 = vadd.f32 %v4065_v15, %v4057_v5 }
 0x6fb   :  { %v3846_v27 = vmul.f32 %v9797_v17, %v10025_v18  ;;  %v3858_v61 = vmul.f32 %v9804_v2, %v10031_v35  ;;  %v4027_v7 = vmul.f32 %v12131_v56, %v10049_v50  ;;  %v4032_v30 = vmul.f32 %v12132_v28, %v10054_v42  ;;  %v12136_v50 = vld [vmem:[#allocation78_spill] sm:$0xff] }
 0x6fc   :  { %v3789_v11 = vadd.f32 %v3785_v37, %v3779_v57  ;;  %v10208_v55 = vmul.f32 %v10195_v12, %v4141_v19  ;;  %v3863_v1 = vadd.f32 %v3859_v62, %v3851_v25  ;;  %v4082_v39 = vadd.f32 %v4078_v40, %v4069_v20 }
 0x6fd   :  { %v3868_v15 = vmul.f32 %v9813_v32, %v10042_v51  ;;  %v3880_v37 = vmul.f32 %v9828_v10, %v10046_v38  ;;  %v4036_v57 = vadd.f32 %v4032_v30, %v4027_v7  ;;  %v4042_v56 = vmul.f32 %v12133_v23, %v10057_v31 }
 0x6fe   :  { %12135 = vst [vmem:[#allocation25_spill] sm:$0xff] %v10208_v55  ;;  %v3802_v5 = vadd.f32 %v3798_v47, %v3789_v11  ;;  %5876 = vpow2.f32 %v12136_v50  ;;  %4561 = vmatpush.msrb.mxu2 %v10208_v55  ;;  %5636 = vmatpush.msrb.mxu3 %v10208_v55  ;;  %v3873_v19 = vadd.f32 %v3869_v34, %v3863_v1  ;;  %v12143_v55 = vld [vmem:[#allocation133_spill] sm:$0xff] }
 0x6ff   :  { %v4094_v62 = vadd.f32 %v4090_v46, %v4082_v39  ;;  %v4052_v40 = vmul.f32 %v9769_v36, %v10068_v29  ;;  %v4046_v47 = vadd.f32 %v4042_v56, %v4036_v57  ;;  %v4064_v20 = vmul.f32 %v9776_v21, %v10076_v33  ;;  %v12137_v56 = vld [vmem:[#allocation128_spill] sm:$0xff] }
 0x700   :  { %v3814_v25 = vadd.f32 %v3810_v53, %v3802_v5  ;;  %v4077_v30 = vmul.f32 %v9783_v4, %v10086_v54  ;;  %v3885_v11 = vadd.f32 %v3881_v49, %v3873_v19  ;;  %v4089_v50 = vmul.f32 %v9790_v45, %v10089_v44 }
 0x701   :  { %v4106_v7 = vadd.f32 %v4102_v14, %v4094_v62  ;;  %v4101_v34 = vmul.f32 %v9797_v17, %v10100_v0  ;;  %v4056_v1 = vadd.f32 %v4052_v40, %v4046_v47  ;;  %v4113_v53 = vmul.f32 %v9804_v2, %v10104_v43  ;;  %v12139_v14 = vld [vmem:[#allocation129_spill] sm:$0xff]  ;;  %v12140_v40 = vld [vmem:[#allocation131_spill] sm:$0xff] }
 0x702   :  { %v3826_v46 = vadd.f32 %v3822_v8, %v3814_v25  ;;  %v3769_v39 = vmul.f32 %v12137_v56, %v9963_v58  ;;  %v10234_v5 = vmul.f32 %v10139_v6, %v3885_v11  ;;  %v4123_v49 = vmul.f32 %v9813_v32, %v10111_v16  ;;  %v12142_v11 = vld [vmem:[#allocation132_spill] sm:$0xff]  ;;  %v10255_v32 = vpop.f32.mrf.mxu2 }
 0x703   :  { %v4118_v57 = vadd.f32 %v4114_v48, %v4106_v7  ;;  %v3774_v19 = vmul.f32 %v12139_v14, %v9982_v52  ;;  %v4068_v63 = vadd.f32 %v4064_v20, %v4056_v1  ;;  %v4135_v8 = vmul.f32 %v9828_v10, %v10116_v26  ;;  %v12145_v10 = vld [vmem:[#allocation135_spill] sm:$0xff]  ;;  %12146 = vst [vmem:[#allocation77_spill] sm:$0xff] %v10255_v32  ;;  %v12169_v32 = vld [vmem:[#allocation53_spill] sm:$0xff] }
 0x704   :  { %12138 = vst [vmem:[#allocation30_spill] sm:$0xff] %v10234_v5  ;;  %v3838_v62 = vadd.f32 %v3834_v9, %v3826_v46  ;;  %v3784_v25 = vmul.f32 %v12140_v40, %v9991_v22  ;;  %v10244_v47 = vpop.eup %5876  ;;  %4465 = vmatpush.msra.mxu1 %v10234_v5  ;;  %v3797_v7 = vmul.f32 %v12142_v11, %v9997_v13  ;;  %v12144_v46 = vld [vmem:[#allocation134_spill] sm:$0xff]  ;;  %v12148_v13 = vld [vmem:[#allocation137_spill] sm:$0xff] }
 0x705   :  { %12141 = vst [vmem:[#allocation42_spill] sm:$0xff] %v10244_v47  ;;  %v4128_v58 = vadd.f32 %v4124_v24, %v4118_v57  ;;  %v3778_v48 = vadd.f32 %v3774_v19, %v3769_v39  ;;  %v3809_v52 = vmul.f32 %v12143_v55, %v10006_v60  ;;  %v4081_v20 = vadd.f32 %v4077_v30, %v4068_v63  ;;  %v12147_v39 = vld [vmem:[#allocation136_spill] sm:$0xff]  ;;  %v12149_v63 = vld [vmem:[#allocation21_spill] sm:$0xff] }
 0x706   :  { %v3850_v9 = vadd.f32 %v3846_v27, %v3838_v62  ;;  %v3821_v1 = vmul.f32 %v12144_v46, %v10014_v41  ;;  %v3833_v22 = vmul.f32 %v12145_v10, %v10022_v59  ;;  %v3845_v57 = vmul.f32 %v12147_v39, %v10025_v18  ;;  %v12151_v18 = vld [vmem:[#allocation124_spill] sm:$0xff] }
 0x707   :  { %v4140_v5 = vadd.f32 %v10181_v3, %v4128_v58  ;;  %v3788_v24 = vadd.f32 %v3784_v25, %v3778_v48  ;;  %v3857_v19 = vmul.f32 %v12148_v13, %v10031_v35  ;;  %v4093_v27 = vadd.f32 %v4089_v50, %v4081_v20  ;;  %v12150_v3 = vld [vmem:[#allocation138_spill] sm:$0xff] }
 0x708   :  { %v3862_v60 = vadd.f32 %v3858_v61, %v3850_v9  ;;  %v4026_v30 = vmul.f32 %v12137_v56, %v12149_v63  ;;  %v4031_v41 = vmul.f32 %v12139_v14, %v10054_v42  ;;  %v3867_v25 = vmul.f32 %v12150_v3, %v10042_v51  ;;  %v12153_v63 = vld [vmem:[#allocation59_spill] sm:$0xff] }
 0x709   :  { %v10267_v59 = vmul.f32 %v10195_v12, %v4140_v5  ;;  %v3801_v62 = vadd.f32 %v3797_v7, %v3788_v24  ;;  %v3879_v58 = vmul.f32 %v12151_v18, %v10046_v38  ;;  %v4105_v35 = vadd.f32 %v4101_v34, %v4093_v27 }
 0x70a   :  { %v3872_v48 = vadd.f32 %v3868_v15, %v3862_v60  ;;  %v4035_v61 = vadd.f32 %v4031_v41, %v4026_v30  ;;  %v4041_v50 = vmul.f32 %v12140_v40, %v10057_v31  ;;  %v4051_v5 = vmul.f32 %v12142_v11, %v10068_v29  ;;  %v10309_v30 = vpop.f32.mrf.mxu2 }
 0x70b   :  { %4562 = vmatpush.msrb.mxu2 %v10267_v59  ;;  %5637 = vmatpush.msrb.mxu3 %v10267_v59  ;;  %v3813_v42 = vadd.f32 %v3809_v52, %v3801_v62  ;;  %v4063_v51 = vmul.f32 %v12143_v55, %v10076_v33  ;;  %v11607_v7 = vrot.slane %v10244_v47, 1  ;;  %v4117_v15 = vadd.f32 %v4113_v53, %v4105_v35  ;;  %v12155_v62 = vld [vmem:[#allocation58_spill] sm:$0xff] }
 0x70c   :  { %v3884_v38 = vadd.f32 %v3880_v37, %v3872_v48  ;;  %v4045_v34 = vadd.f32 %v4041_v50, %v4035_v61  ;;  %v4076_v9 = vmul.f32 %v12144_v46, %v10086_v54  ;;  %v4088_v20 = vmul.f32 %v12145_v10, %v10089_v44  ;;  %12154 = vst [vmem:[#allocation22_spill] sm:$0xff] %v10309_v30 }
 0x70d   :  { %v3825_v31 = vadd.f32 %v3821_v1, %v3813_v42  ;;  %v4100_v52 = vmul.f32 %v12147_v39, %v10100_v0  ;;  %v11606_v29 = vrot.slane %v10244_v47, 2  ;;  %v4127_v33 = vadd.f32 %v4123_v49, %v4117_v15 }
 0x70e   :  { %v10290_v24 = vmul.f32 %v10139_v6, %v3884_v38  ;;  %v4055_v60 = vadd.f32 %v4051_v5, %v4045_v34  ;;  %v10293_v37 = vperm.slane %v10244_v47, 3  ;;  %v10296_v54 = vperm.slane %v10244_v47, 4 }
 0x70f   :  { %v3837_v53 = vadd.f32 %v3833_v22, %v3825_v31  ;;  %v3656_v44 = vadd.f32 %v10244_v47, %v11607_v7  ;;  %v10302_v0 = vperm.slane %v10244_v47, 5  ;;  %v4139_v1 = vadd.f32 %v4135_v8, %v4127_v33 }
 0x710   :  { %12152 = vst [vmem:[#allocation18_spill] sm:$0xff] %v10290_v24  ;;  %4466 = vmatpush.msra.mxu1 %v10290_v24  ;;  %v4067_v27 = vadd.f32 %v4063_v51, %v4055_v60  ;;  %v4112_v49 = vmul.f32 %v12148_v13, %v10104_v43  ;;  %v3646_v22 = vmul.f32 %v12153_v63, %v10293_v37  ;;  %v10316_v61 = vperm.slane %v10244_v47, 6  ;;  %v12156_v51 = vld [vmem:[#allocation55_spill] sm:$0xff]  ;;  %v12170_v24 = vld [vmem:[#allocation36_spill] sm:$0xff] }
 0x711   :  { %v3849_v41 = vadd.f32 %v3845_v57, %v3837_v53  ;;  %v3651_v48 = vmul.f32 %v12155_v62, %v10296_v54  ;;  %v3666_v35 = vadd.f32 %v3656_v44, %v11606_v29  ;;  %v10319_v8 = vmul.f32 %v10195_v12, %v4139_v1  ;;  %v10337_v60 = vld [vmem:[%s11202_s0 + $0x78] sm:$0xff]  ;;  %v12157_v44 = vld [vmem:[#allocation29_spill] sm:$0xff] }
 0x712   :  { %v4080_v50 = vadd.f32 %v4076_v9, %v4067_v27  ;;  %v4122_v43 = vmul.f32 %v12150_v3, %v10111_v16  ;;  %v3676_v42 = vrot.slane %v10244_v47, 3  ;;  %v3661_v38 = vmul.f32 %v12156_v51, %v10302_v0  ;;  %v12158_v27 = vld [vmem:[#allocation28_spill] sm:$0xff] }
 0x713   :  { %v3861_v5 = vadd.f32 %v3857_v19, %v3849_v41  ;;  %v3655_v57 = vadd.f32 %v3651_v48, %v3646_v22  ;;  %v10327_v15 = vperm.slane %v10244_v47, 7  ;;  %4563 = vmatpush.msrb.mxu2 %v10319_v8  ;;  %5638 = vmatpush.msrb.mxu3 %v10319_v8  ;;  %v4134_v9 = vmul.f32 %v12151_v18, %v10116_v26 }
 0x714   :  { %v4092_v34 = vadd.f32 %v4088_v20, %v4080_v50  ;;  %v3678_v31 = vadd.f32 %v3676_v42, %v3666_v35  ;;  %v3688_v16 = vrot.slane %v10244_v47, 4  ;;  %v3671_v53 = vmul.f32 %v10337_v60, %v10316_v61 }
 0x715   :  { %v3871_v33 = vadd.f32 %v3867_v25, %v3861_v5  ;;  %v3665_v19 = vadd.f32 %v3661_v38, %v3655_v57  ;;  %v10342_v1 = vperm.slane %v12157_v44, 0  ;;  %v3683_v26 = vmul.f32 %v12158_v27, %v10327_v15  ;;  %v12161_v27 = vld [vmem:[#allocation48_spill] sm:$0xff] }
 0x716   :  { %v4104_v20 = vadd.f32 %v4100_v52, %v4092_v34  ;;  %v3690_v63 = vadd.f32 %v3688_v16, %v3678_v31  ;;  %v3701_v22 = vrot.slane %v12157_v44, 5  ;;  %v10348_v62 = vperm.slane %v12157_v44, 1 }
 0x717   :  { %v3883_v25 = vadd.f32 %v3879_v58, %v3871_v33  ;;  %v3675_v41 = vadd.f32 %v3671_v53, %v3665_v19  ;;  %v10351_v48 = vperm.slane %v12157_v44, 2  ;;  %v3713_v42 = vrot.slane %v12157_v44, 6  ;;  %v10363_v58 = vld [vmem:[%s11202_s0 + $0xb8] sm:$0xff] }
 0x718   :  { %v4116_v35 = vadd.f32 %v4112_v49, %v4104_v20  ;;  %v3703_v50 = vadd.f32 %v3701_v22, %v3690_v63  ;;  %v10355_v52 = vperm.slane %v12157_v44, 3  ;;  %v3695_v51 = vmul.f32 %v10363_v58, %v10342_v1  ;;  %v10380_v19 = vld [vmem:[%s11202_s0 + $0xd8] sm:$0xff] }
 0x719   :  { %v10358_v5 = vmul.f32 %v10139_v6, %v3883_v25  ;;  %v3687_v57 = vadd.f32 %v3683_v26, %v3675_v41  ;;  %v10368_v49 = vperm.slane %v12157_v44, 4  ;;  %v3725_v31 = vrot.slane %v12157_v44, 7  ;;  %v10374_v6 = vpop.f32.mrf.mxu2  ;;  %v10396_v25 = vld [vmem:[%s11202_s0 + $0x118] sm:$0xff] }
 0x71a   :  { %v4126_v38 = vadd.f32 %v4122_v43, %v4116_v35  ;;  %v3715_v34 = vadd.f32 %v3713_v42, %v3703_v50  ;;  %v10372_v16 = vperm.slane %v12157_v44, 5  ;;  %12160 = vst [vmem:[#allocation128_spill] sm:$0xff] %v10374_v6  ;;  %v3708_v53 = vmul.f32 %v10380_v19, %v10348_v62  ;;  %v10387_v43 = vld [vmem:[%s11202_s0 + $0xf8] sm:$0xff]  ;;  %v12163_v35 = vld [vmem:[#allocation56_spill] sm:$0xff] }
 0x71b   :  { %12159 = vst [vmem:[#allocation78_spill] sm:$0xff] %v10358_v5  ;;  %4467 = vmatpush.msra.mxu1 %v10358_v5  ;;  %v3699_v33 = vadd.f32 %v3695_v51, %v3687_v57  ;;  %v3720_v20 = vmul.f32 %v10387_v43, %v10351_v48  ;;  %v3645_v26 = vmul.f32 %v12161_v27, %v10293_v37  ;;  %v10405_v57 = vld [vmem:[%s11202_s0 + $0x138] sm:$0xff] }
 0x71c   :  { %v4138_v63 = vadd.f32 %v4134_v9, %v4126_v38  ;;  %v3727_v22 = vadd.f32 %v3725_v31, %v3715_v34  ;;  %12162 = vst [vmem:[#allocation129_spill] sm:$0xff] %v10396_v25  ;;  %v3732_v41 = vmul.f32 %v10396_v25, %v10355_v52  ;;  %v3650_v50 = vmul.f32 %v12163_v35, %v10296_v54  ;;  %v10412_v51 = vld [vmem:[%s11202_s0 + $0x158] sm:$0xff]  ;;  %v12167_v35 = vld [vmem:[#allocation81_spill] sm:$0xff] }
 0x71d   :  { %v3712_v42 = vadd.f32 %v3708_v53, %v3699_v33  ;;  %12164 = vst [vmem:[#allocation131_spill] sm:$0xff] %v10405_v57  ;;  %v3742_v9 = vmul.f32 %v10405_v57, %v10368_v49  ;;  %v3754_v38 = vmul.f32 %v10412_v51, %v10372_v16  ;;  %v12166_v34 = vld [vmem:[#allocation43_spill] sm:$0xff]  ;;  %v3670_v29 = vmul.f32 %v12167_v35, %v10316_v61  ;;  %v12176_v35 = vld [vmem:[#allocation8_spill] sm:$0xff] }
 0x71e   :  { %12165 = vst [vmem:[#allocation132_spill] sm:$0xff] %v10412_v51  ;;  %v3660_v31 = vmul.f32 %v12166_v34, %v10302_v0  ;;  %v10419_v33 = vmul.f32 %v10195_v12, %v4138_v63  ;;  %v3737_v53 = vadd.f32 %v12157_v44, %v3727_v22  ;;  %v3654_v27 = vadd.f32 %v3650_v50, %v3645_v26  ;;  %v12168_v6 = vld [vmem:[#allocation75_spill] sm:$0xff] }
 0x71f   :  { %v3724_v7 = vadd.f32 %v3720_v20, %v3712_v42  ;;  %v3682_v30 = vmul.f32 %v12168_v6, %v10327_v15  ;;  %v3694_v5 = vmul.f32 %v12169_v32, %v10342_v1  ;;  %v3707_v51 = vmul.f32 %v12170_v24, %v10348_v62  ;;  %v12172_v20 = vld [vmem:[#allocation17_spill] sm:$0xff]  ;;  %v12173_v6 = vld [vmem:[#allocation87_spill] sm:$0xff]  ;;  %v12175_v24 = vld [vmem:[#allocation10_spill] sm:$0xff] }
 0x720   :  { %4564 = vmatpush.msrb.mxu2 %v10419_v33  ;;  %5639 = vmatpush.msrb.mxu3 %v10419_v33  ;;  %v12171_v12 = vrot.slane %v12157_v44, 1  ;;  %v3759_v63 = vrot.slane %v12157_v44, 2  ;;  %v3664_v22 = vadd.f32 %v3660_v31, %v3654_v27  ;;  %v3719_v50 = vmul.f32 %v12172_v20, %v10351_v48  ;;  %v12174_v42 = vld [vmem:[#allocation127_spill] sm:$0xff]  ;;  %v6210_v27 = vld [vmem:[#allocation4 + $0x8] sm:$0xff]  ;;  %v12180_v20 = vld [vmem:[#allocation12_spill] sm:$0xff] }
 0x721   :  { %v3736_v32 = vadd.f32 %v3732_v41, %v3724_v7  ;;  %v3731_v34 = vmul.f32 %v12175_v24, %v10355_v52  ;;  %v3644_v57 = vmul.f32 %v12176_v35, %v10293_v37  ;;  %v3649_v31 = vmul.f32 %v12132_v28, %v10296_v54  ;;  %5542 = vmatmul.msk.f32.vlgmr.msrb.gmra.mxu2 %vm904_vm1, %v6210_v27  ;;  %v12178_v7 = vld [vmem:[#allocation49_spill] sm:$0xff]  ;;  %v12179_v41 = vld [vmem:[#allocation27_spill] sm:$0xff]  ;;  %v10465_v24 = vpop.f32.mrf.mxu2 }
 0x722   :  { %v3749_v26 = vadd.f32 %v12171_v12, %v3737_v53  ;;  %4855 = vmatpush.msra.mxu2 %v12173_v6  ;;  %5033 = vmatpush.msra.mxu3 %v12174_v42  ;;  %v3674_v47 = vadd.f32 %v3670_v29, %v3664_v22  ;;  %v12177_v53 = vld [vmem:[#allocation15_spill] sm:$0xff]  ;;  %v10454_v42 = vmul.f32 %v12180_v20, %v10372_v16 }
 0x723   :  { %v10445_v44 = vmul.f32 %v12177_v53, %v10368_v49  ;;  %v3746_v12 = vadd.f32 %v3742_v9, %v3736_v32  ;;  %v12181_v29 = vld [vmem:[#allocation63_spill] sm:$0xff]  ;;  %v3653_v22 = vadd.f32 %v3649_v31, %v3644_v57  ;;  %v3659_v9 = vmul.f32 %v12133_v23, %v10302_v0  ;;  %v6211_v32 = vld [vmem:[#allocation4 + $0x28] sm:$0xff]  ;;  %v12183_v53 = vld [vmem:[#allocation126_spill] sm:$0xff] }
 0x724   :  { %v3761_v25 = vadd.f32 %v3759_v63, %v3749_v26  ;;  %4856 = vmatpush.msra.mxu2 %v12178_v7  ;;  %5034 = vmatpush.msra.mxu3 %v12179_v41  ;;  %v10457_v26 = vperm.slane %v12181_v29, 0  ;;  %v10460_v63 = vperm.slane %v12181_v29, 1  ;;  %v3686_v28 = vadd.f32 %v3682_v30, %v3674_v47  ;;  %v12182_v35 = vld [vmem:[#allocation47_spill] sm:$0xff] }
 0x725   :  { %5544 = vmatmul.msk.f32.vlgmr.msrb.gmra.mxu3 %vm904_vm1, %v6211_v32  ;;  %v3669_v27 = vmul.f32 %v9769_v36, %v10316_v61  ;;  %v3693_v47 = vmul.f32 %v9783_v4, %v10342_v1  ;;  %v3526_v23 = vrot.slane %v12181_v29, 1  ;;  %v3758_v30 = vadd.f32 %v3754_v38, %v3746_v12  ;;  %v12184_v32 = vld [vmem:[#allocation32_spill] sm:$0xff]  ;;  %v12185_v36 = vld [vmem:[#allocation26_spill] sm:$0xff] }
 0x726   :  { %5878 = vrcp.f32 %v3761_v25  ;;  %4857 = vmatpush.msra.mxu2 %v12182_v35  ;;  %5035 = vmatpush.msra.mxu3 %v12183_v53  ;;  %v3681_v25 = vmul.f32 %v9776_v21, %v10327_v15  ;;  %v3698_v57 = vadd.f32 %v3694_v5, %v3686_v28  ;;  %v3663_v31 = vadd.f32 %v3659_v9, %v3653_v22 }
 0x727   :  { %v3706_v41 = vmul.f32 %v9790_v45, %v10348_v62  ;;  %v3718_v20 = vmul.f32 %v9797_v17, %v10351_v48  ;;  %v3643_v21 = vmul.f32 %v12137_v56, %v10293_v37  ;;  %v3648_v4 = vmul.f32 %v12139_v14, %v10296_v54  ;;  %v12186_v17 = vld [vmem:[#allocation123_spill] sm:$0xff]  ;;  %v12187_v14 = vld [vmem:[#allocation84_spill] sm:$0xff] }
 0x728   :  { %4858 = vmatpush.msra.mxu2 %v12184_v32  ;;  %5036 = vmatpush.msra.mxu3 %v12185_v36  ;;  %v10487_v38 = vperm.slane %v12181_v29, 2  ;;  %v3711_v5 = vadd.f32 %v3707_v51, %v3698_v57  ;;  %v3673_v12 = vadd.f32 %v3669_v27, %v3663_v31  ;;  %v3730_v45 = vmul.f32 %v9804_v2, %v10355_v52  ;;  %v12188_v57 = vld [vmem:[#allocation25_spill] sm:$0xff] }
 0x729   :  { %v10493_v28 = vmul.f32 %v12186_v17, %v10368_v49  ;;  %v3652_v22 = vadd.f32 %v3648_v4, %v3643_v21  ;;  %v3658_v9 = vmul.f32 %v12140_v40, %v10302_v0  ;;  %v3668_v56 = vmul.f32 %v12142_v11, %v10316_v61  ;;  %v12189_v61 = vld [vmem:[#allocation82_spill] sm:$0xff] }
 0x72a   :  { %4859 = vmatpush.msra.mxu2 %v12187_v14  ;;  %v3538_v37 = vrot.slane %v12181_v29, 2  ;;  %v3723_v51 = vadd.f32 %v3719_v50, %v3711_v5  ;;  %v3685_v53 = vadd.f32 %v3681_v25, %v3673_v12  ;;  %v3680_v2 = vmul.f32 %v12143_v55, %v10327_v15  ;;  %5037 = vmatpush.msra.mxu3 %v12188_v57  ;;  %v6212_v55 = vld [vmem:[%s11202_s0 + $0x18] sm:$0xff] }
 0x72b   :  { %v3692_v27 = vmul.f32 %v12144_v46, %v10342_v1  ;;  %v3662_v40 = vadd.f32 %v3658_v9, %v3652_v22  ;;  %v3705_v11 = vmul.f32 %v12145_v10, %v10348_v62  ;;  %v3717_v0 = vmul.f32 %v12147_v39, %v10351_v48  ;;  %v6213_v15 = vld [vmem:[%s11202_s0 + $0x38] sm:$0xff] }
 0x72c   :  { %v5879_v54 = vpop.eup %5878  ;;  %4860 = vmatpush.msra.mxu2 %v12189_v61  ;;  %v3735_v50 = vadd.f32 %v3731_v34, %v3723_v51  ;;  %v3697_v25 = vadd.f32 %v3693_v47, %v3685_v53  ;;  %v3515_v46 = vmul.f32 %v6212_v55, %v10457_v26  ;;  %v3520_v1 = vmul.f32 %v6213_v15, %v10460_v63  ;;  %v6214_v48 = vld [vmem:[%s11202_s0 + $0x58] sm:$0xff]  ;;  %v12190_v47 = vld [vmem:[#allocation44_spill] sm:$0xff] }
 0x72d   :  { %v10506_v31 = vperm.slane %v5879_v54, 3  ;;  %5038 = vmatpush.msra.mxu3 %v10267_v59  ;;  %v3672_v39 = vadd.f32 %v3668_v56, %v3662_v40  ;;  %v3528_v62 = vadd.f32 %v12181_v29, %v3526_v23  ;;  %v3533_v34 = vmul.f32 %v6214_v48, %v10487_v38  ;;  %v10538_v23 = vpop.f32.mrf.mxu2  ;;  %v6217_v57 = vld [vmem:[#allocation4 + $0x38] sm:$0xff] }
 0x72e   :  { %4861 = vmatpush.msra.mxu2 %v12190_v47  ;;  %v3745_v36 = vadd.f32 %v10445_v44, %v3735_v50  ;;  %v3710_v21 = vadd.f32 %v3706_v41, %v3697_v25  ;;  %v3524_v4 = vadd.f32 %v3520_v1, %v3515_v46  ;;  %v10533_v59 = vperm.slane %v12181_v29, 3  ;;  %v12191_v41 = vld [vmem:[#allocation40_spill] sm:$0xff]  ;;  %5545 = vmatmul.msk.f32.gmra.mxu3 %vm904_vm1, %v6217_v57  ;;  %v12192_v46 = vld [vmem:[#allocation125_spill] sm:$0xff] }
 0x72f   :  { %v10523_v10 = vmul.f32 %v10506_v31, %v3758_v30  ;;  %5039 = vmatpush.msra.mxu3 %v10319_v8  ;;  %v6215_v30 = vld [vmem:[#allocation4 + $0x18] sm:$0xff]  ;;  %v3684_v5 = vadd.f32 %v3680_v2, %v3672_v39  ;;  %v3540_v12 = vadd.f32 %v3538_v37, %v3528_v62  ;;  %v3550_v17 = vrot.slane %v12181_v29, 3 }
 0x730   :  { %5543 = vmatmul.msk.f32.gmra.mxu2 %vm904_vm1, %v6215_v30  ;;  %v10542_v44 = vperm.slane %v12181_v29, 4  ;;  %v3757_v22 = vadd.f32 %v10454_v42, %v3745_v36  ;;  %v3722_v9 = vadd.f32 %v3718_v20, %v3710_v21  ;;  %v3537_v8 = vadd.f32 %v3533_v34, %v3524_v4  ;;  %v6216_v37 = vld [vmem:[%s11202_s0 + $0x98] sm:$0xff]  ;;  %v6218_v4 = vld [vmem:[#allocation4 + $0x488] sm:$0xff] }
 0x731   :  { %4468 = vmatpush.msra.mxu1 %v10523_v10  ;;  %4862 = vmatpush.msra.mxu2 %v12191_v41  ;;  %v3545_v56 = vmul.f32 %v10337_v60, %v10533_v59  ;;  %v3696_v54 = vadd.f32 %v3692_v27, %v3684_v5  ;;  %v3552_v51 = vadd.f32 %v3550_v17, %v3540_v12  ;;  %v3562_v2 = vrot.slane %v12181_v29, 4 }
 0x732   :  { %5040 = vmatpush.msra.mxu3 %v10419_v33  ;;  %v3557_v53 = vmul.f32 %v6216_v37, %v10542_v44  ;;  %v10556_v42 = vmul.f32 %v10506_v31, %v3757_v22  ;;  %v3734_v20 = vadd.f32 %v3730_v45, %v3722_v9  ;;  %v10559_v33 = vperm.slane %v12181_v29, 5  ;;  %v6219_v22 = vld [vmem:[%s11202_s0 + $0x10] sm:$0xff] }
 0x733   :  { %v3549_v60 = vadd.f32 %v3545_v56, %v3537_v8  ;;  %v3709_v27 = vadd.f32 %v3705_v11, %v3696_v54  ;;  %v3564_v40 = vadd.f32 %v3562_v2, %v3552_v51  ;;  %v3574_v50 = vrot.slane %v12181_v29, 5  ;;  %v6222_v2 = vld [vmem:[%s11202_s0 + $0x50] sm:$0xff] }
 0x734   :  { %v10563_v25 = vperm.slane %v12181_v29, 6  ;;  %4469 = vmatpush.msra.mxu1 %v10556_v42  ;;  %v3744_v55 = vadd.f32 %v10493_v28, %v3734_v20  ;;  %v3752_v15 = vmul.f32 %v12192_v46, %v10372_v16  ;;  %v3569_v45 = vmul.f32 %v10363_v58, %v10559_v33  ;;  %v6223_v46 = vld [vmem:[%s11202_s0 + $0x70] sm:$0xff] }
 0x735   :  { %v3561_v1 = vadd.f32 %v3557_v53, %v3549_v60  ;;  %v3721_v39 = vadd.f32 %v3717_v0, %v3709_v27  ;;  %v3729_v11 = vmul.f32 %v12148_v13, %v10355_v52  ;;  %v3576_v62 = vadd.f32 %v3574_v50, %v3564_v40  ;;  %v10592_v8 = vpop.f32.mrf.mxu2  ;;  %v12195_v27 = vld [vmem:[#allocation129_spill] sm:$0xff] }
 0x736   :  { %v3586_v48 = vrot.slane %v12181_v29, 6  ;;  %v3756_v34 = vadd.f32 %v3752_v15, %v3744_v55  ;;  %v3581_v21 = vmul.f32 %v10380_v19, %v10563_v25  ;;  %v10577_v28 = vperm.slane %v12181_v29, 7 }
 0x737   :  { %v3573_v36 = vadd.f32 %v3569_v45, %v3561_v1  ;;  %v3733_v30 = vadd.f32 %v3729_v11, %v3721_v39  ;;  %v3739_v58 = vmul.f32 %v12150_v3, %v10368_v49  ;;  %v3598_v13 = vrot.slane %v12181_v29, 7  ;;  %v6220_v3 = vld [vmem:[#allocation4 + $0x48] sm:$0xff]  ;;  %v12193_v29 = vld [vmem:[#allocation42_spill] sm:$0xff]  ;;  %v6224_v1 = vld [vmem:[#allocation4 + $0x498] sm:$0xff] }
 0x738   :  { %5566 = vmatmul.msk.f32.vlgmr.msra.gmra.mxu2 %vm904_vm1, %v6218_v4  ;;  %v3588_v0 = vadd.f32 %v3586_v48, %v3576_v62  ;;  %v10584_v52 = vmul.f32 %v10506_v31, %v3756_v34  ;;  %v3751_v19 = vmul.f32 %v12151_v18, %v10372_v16  ;;  %v3514_v9 = vmul.f32 %v6219_v22, %v10457_v26  ;;  %v6221_v18 = vld [vmem:[%s11202_s0 + $0x30] sm:$0xff]  ;;  %v6225_v39 = vld [vmem:[%s11202_s0 + $0x8] sm:$0xff] }
 0x739   :  { %v3585_v5 = vadd.f32 %v3581_v21, %v3573_v36  ;;  %v3743_v12 = vadd.f32 %v3739_v58, %v3733_v30  ;;  %5546 = vmatmul.msk.f32.gmra.mxu3 %vm904_vm1, %v6220_v3  ;;  %v3593_v49 = vmul.f32 %v10387_v43, %v10577_v28  ;;  %v10599_v56 = vperm.slane %v12193_v29, 0  ;;  %v6226_v62 = vld [vmem:[%s11202_s0 + $0x28] sm:$0xff]  ;;  %v6227_v21 = vld [vmem:[%s11202_s0 + $0x90] sm:$0xff] }
 0x73a   :  { %v3600_v17 = vadd.f32 %v3598_v13, %v3588_v0  ;;  %4470 = vmatpush.msra.mxu1 %v10584_v52  ;;  %v3519_v16 = vmul.f32 %v6221_v18, %v10460_v63  ;;  %v3532_v43 = vmul.f32 %v6222_v2, %v10487_v38  ;;  %v12194_v20 = vrot.slane %v12193_v29, 1  ;;  %v6228_v58 = vld [vmem:[%s11202_s0 + $0x48] sm:$0xff]  ;;  %v6229_v13 = vld [vmem:[#allocation4 + $0x58] sm:$0xff]  ;;  %v6230_v22 = vld [vmem:[%s11202_s0 + $0xb0] sm:$0xff] }
 0x73b   :  { %v3755_v54 = vadd.f32 %v3751_v19, %v3743_v12  ;;  %v3597_v37 = vadd.f32 %v3593_v49, %v3585_v5  ;;  %v3605_v40 = vmul.f32 %v12195_v27, %v10599_v56  ;;  %v10618_v50 = vperm.slane %v12193_v29, 1  ;;  %v12197_v5 = vld [vmem:[#allocation131_spill] sm:$0xff]  ;;  %v6231_v49 = vld [vmem:[%s11202_s0 + $0x68] sm:$0xff] }
 0x73c   :  { %v3610_v51 = vadd.f32 %v12193_v29, %v3600_v17  ;;  %v3523_v53 = vadd.f32 %v3519_v16, %v3514_v9  ;;  %v3544_v15 = vmul.f32 %v6223_v46, %v10533_v59  ;;  %v3513_v11 = vmul.f32 %v6225_v39, %v10457_v26  ;;  %v6232_v16 = vld [vmem:[%s11202_s0] sm:$0xff]  ;;  %v6238_v39 = vld [vmem:[#allocation4 + $0x4a8] sm:$0xff] }
 0x73d   :  { %v10611_v57 = vmul.f32 %v10506_v31, %v3755_v54  ;;  %v12196_v31 = vrot.slane %v12193_v29, 2  ;;  %v3518_v48 = vmul.f32 %v6226_v62, %v10460_v63  ;;  %v3609_v34 = vadd.f32 %v3605_v40, %v3597_v37  ;;  %v6233_v54 = vld [vmem:[%s11202_s0 + $0x20] sm:$0xff]  ;;  %v10666_v37 = vpop.f32.mrf.mxu2 }
 0x73e   :  { %v3623_v60 = vadd.f32 %v12194_v20, %v3610_v51  ;;  %v3536_v55 = vadd.f32 %v3532_v43, %v3523_v53  ;;  %v3556_v4 = vmul.f32 %v6227_v21, %v10542_v44  ;;  %v3531_v0 = vmul.f32 %v6228_v58, %v10487_v38  ;;  %v6234_v43 = vld [vmem:[%s11202_s0 + $0xd0] sm:$0xff]  ;;  %v12198_v46 = vld [vmem:[#allocation132_spill] sm:$0xff] }
 0x73f   :  { %4471 = vmatpush.msra.mxu1 %v10611_v57  ;;  %v3522_v30 = vadd.f32 %v3518_v48, %v3513_v11  ;;  %v3615_v12 = vmul.f32 %v12197_v5, %v10618_v50  ;;  %v10648_v19 = vperm.slane %v12193_v29, 2  ;;  %v3568_v9 = vmul.f32 %v6230_v22, %v10559_v33  ;;  %v6239_v48 = vld [vmem:[%s11202_s0 + $0xa8] sm:$0xff] }
 0x740   :  { %5567 = vmatmul.msk.f32.gmra.mxu2 %vm904_vm1, %v6224_v1  ;;  %v3635_v45 = vadd.f32 %v12196_v31, %v3623_v60  ;;  %v3548_v36 = vadd.f32 %v3544_v15, %v3536_v55  ;;  %v3543_v18 = vmul.f32 %v6231_v49, %v10533_v59  ;;  %v3512_v29 = vmul.f32 %v6232_v16, %v10457_v26  ;;  %v6235_v26 = vld [vmem:[%s11202_s0 + $0x88] sm:$0xff]  ;;  %v6237_v31 = vld [vmem:[%s11202_s0 + $0xf0] sm:$0xff] }
 0x741   :  { %5547 = vmatmul.msk.f32.gmra.mxu3 %vm904_vm1, %v6229_v13  ;;  %v3535_v3 = vadd.f32 %v3531_v0, %v3522_v30  ;;  %v3517_v51 = vmul.f32 %v6233_v54, %v10460_v63  ;;  %v3619_v53 = vadd.f32 %v3615_v12, %v3609_v34  ;;  %v3580_v20 = vmul.f32 %v6234_v43, %v10563_v25  ;;  %v6236_v63 = vld [vmem:[%s11202_s0 + $0x40] sm:$0xff]  ;;  %v6241_v0 = vld [vmem:[%s11202_s0 + $0x110] sm:$0xff]  ;;  %v6242_v12 = vld [vmem:[%s11202_s0 + $0xc8] sm:$0xff] }
 0x742   :  { %5880 = vrcp.f32 %v3635_v45  ;;  %v3560_v17 = vadd.f32 %v3556_v4, %v3548_v36  ;;  %v3555_v27 = vmul.f32 %v6235_v26, %v10542_v44  ;;  %v3530_v55 = vmul.f32 %v6236_v63, %v10487_v38  ;;  %v6240_v36 = vld [vmem:[%s11202_s0 + $0x60] sm:$0xff]  ;;  %v6245_v16 = vld [vmem:[%s11202_s0 + $0x130] sm:$0xff] }
 0x743   :  { %v3547_v60 = vadd.f32 %v3543_v18, %v3535_v3  ;;  %v3521_v40 = vadd.f32 %v3517_v51, %v3512_v29  ;;  %v3628_v15 = vmul.f32 %v12198_v46, %v10648_v19  ;;  %v3592_v45 = vmul.f32 %v6237_v31, %v10577_v28  ;;  %v6244_v3 = vld [vmem:[#allocation4 + $0x68] sm:$0xff]  ;;  %v6251_v31 = vld [vmem:[#allocation4 + $0x4b8] sm:$0xff] }
 0x744   :  { %v3572_v2 = vadd.f32 %v3568_v9, %v3560_v17  ;;  %v3567_v38 = vmul.f32 %v6239_v48, %v10559_v33  ;;  %v3542_v21 = vmul.f32 %v6240_v36, %v10533_v59  ;;  %v3604_v13 = vmul.f32 %v6241_v0, %v10599_v56  ;;  %v6243_v59 = vld [vmem:[%s11202_s0 + $0x80] sm:$0xff]  ;;  %v6246_v51 = vld [vmem:[%s11202_s0 + $0xe8] sm:$0xff] }
 0x745   :  { %v3559_v62 = vadd.f32 %v3555_v27, %v3547_v60  ;;  %v3534_v34 = vadd.f32 %v3530_v55, %v3521_v40  ;;  %v3632_v4 = vadd.f32 %v3628_v15, %v3619_v53  ;;  %v3579_v17 = vmul.f32 %v6242_v12, %v10563_v25  ;;  %v6248_v60 = vld [vmem:[%s11202_s0 + $0x150] sm:$0xff]  ;;  %v6249_v40 = vld [vmem:[%s11202_s0 + $0x108] sm:$0xff]  ;;  %v10738_v15 = vpop.f32.mrf.mxu2  ;;  %v6253_v48 = vld [vmem:[%s11202_s0 + $0xe0] sm:$0xff] }
 0x746   :  { %v3584_v1 = vadd.f32 %v3580_v20, %v3572_v2  ;;  %v3554_v9 = vmul.f32 %v6243_v59, %v10542_v44  ;;  %v3614_v29 = vmul.f32 %v6245_v16, %v10618_v50  ;;  %v3591_v44 = vmul.f32 %v6246_v51, %v10577_v28  ;;  %v6247_v2 = vld [vmem:[%s11202_s0 + $0xa0] sm:$0xff]  ;;  %v6254_v36 = vld [vmem:[%s11202_s0 + $0x148] sm:$0xff] }
 0x747   :  { %v3571_v5 = vadd.f32 %v3567_v38, %v3559_v62  ;;  %v3546_v22 = vadd.f32 %v3542_v21, %v3534_v34  ;;  %v3566_v43 = vmul.f32 %v6247_v2, %v10559_v33  ;;  %v3627_v26 = vmul.f32 %v6248_v60, %v10648_v19  ;;  %v6250_v33 = vld [vmem:[%s11202_s0 + $0xc0] sm:$0xff]  ;;  %v12199_v51 = vld [vmem:[#allocation13_spill] sm:$0xff]  ;;  %v12203_v60 = vld [vmem:[#allocation35_spill] sm:$0xff] }
 0x748   :  { %5568 = vmatmul.msk.f32.gmra.mxu2 %vm904_vm1, %v6238_v39  ;;  %v5881_v11 = vpop.eup %5880  ;;  %v3596_v58 = vadd.f32 %v3592_v45, %v3584_v1  ;;  %v3603_v63 = vmul.f32 %v6249_v40, %v10599_v56  ;;  %v3578_v46 = vmul.f32 %v6250_v33, %v10563_v25  ;;  %v6252_v39 = vld [vmem:[%s11202_s0 + $0x128] sm:$0xff]  ;;  %v3590_v25 = vmul.f32 %v6253_v48, %v10577_v28  ;;  %v6257_v12 = vld [vmem:[%s11202_s0 + $0x120] sm:$0xff]  ;;  %v12205_v40 = vld [vmem:[#allocation18_spill] sm:$0xff] }
 0x749   :  { %v10695_v30 = vperm.slane %v5881_v11, 0  ;;  %5548 = vmatmul.msk.f32.gmra.mxu3 %vm904_vm1, %v6244_v3  ;;  %v3583_v54 = vadd.f32 %v3579_v17, %v3571_v5  ;;  %v3558_v53 = vadd.f32 %v3554_v9, %v3546_v22  ;;  %v3613_v11 = vmul.f32 %v6252_v39, %v10618_v50  ;;  %v6259_v3 = vld [vmem:[#allocation4 + $0x4c8] sm:$0xff] }
 0x74a   :  { %v3608_v18 = vadd.f32 %v3604_v13, %v3596_v58  ;;  %v3626_v21 = vmul.f32 %v6254_v36, %v10648_v19  ;;  %v6255_v58 = vld [vmem:[%s11202_s0 + $0x100] sm:$0xff]  ;;  %v6256_v13 = vld [vmem:[#allocation4 + $0x78] sm:$0xff]  ;;  %v3612_v17 = vmul.f32 %v6257_v12, %v10618_v50  ;;  %v6277_v48 = vld [vmem:[#allocation4 + $0x528] sm:$0xff] }
 0x74b   :  { %v10711_v49 = vmul.f32 %v10695_v30, %v3632_v4  ;;  %v3595_v27 = vadd.f32 %v3591_v44, %v3583_v54  ;;  %v3570_v55 = vadd.f32 %v3566_v43, %v3558_v53  ;;  %v3602_v0 = vmul.f32 %v6255_v58, %v10599_v56  ;;  %v6258_v56 = vld [vmem:[%s11202_s0 + $0x140] sm:$0xff]  ;;  %v6260_v54 = vld [vmem:[#allocation4 + $0x88] sm:$0xff]  ;;  %v6262_v44 = vld [vmem:[#allocation4 + $0x4d8] sm:$0xff] }
 0x74c   :  { %v3618_v20 = vadd.f32 %v3614_v29, %v3608_v18  ;;  %v3625_v9 = vmul.f32 %v6258_v56, %v10648_v19  ;;  %v6261_v50 = vld [vmem:[#allocation4] sm:$0xff]  ;;  %v12200_v19 = vld [vmem:[#allocation130_spill] sm:$0xff]  ;;  %v6263_v43 = vld [vmem:[#allocation4 + $0x98] sm:$0xff] }
 0x74d   :  { %4472 = vmatpush.msra.mxu1 %v10711_v49  ;;  %v3607_v45 = vadd.f32 %v3603_v63, %v3595_v27  ;;  %v3582_v62 = vadd.f32 %v3578_v46, %v3570_v55  ;;  %v10772_v16 = vpop.f32.mrf.mxu2  ;;  %v12201_v53 = vld [vmem:[#allocation14_spill] sm:$0xff]  ;;  %v6266_v63 = vld [vmem:[#allocation4 + $0xa8] sm:$0xff]  ;;  %v6267_v46 = vld [vmem:[#allocation4 + $0x20] sm:$0xff] }
 0x74e   :  { %v3631_v1 = vadd.f32 %v3627_v26, %v3618_v20  ;;  %v6264_v20 = vld [vmem:[#allocation4 + $0x10] sm:$0xff]  ;;  %v6265_v26 = vld [vmem:[#allocation4 + $0x4e8] sm:$0xff]  ;;  %v6280_v36 = vld [vmem:[#allocation4 + $0x538] sm:$0xff] }
 0x74f   :  { %v3617_v34 = vadd.f32 %v3613_v11, %v3607_v45  ;;  %v3594_v4 = vadd.f32 %v3590_v25, %v3582_v62  ;;  %v12204_v27 = vld [vmem:[#allocation30_spill] sm:$0xff]  ;;  %v6271_v11 = vld [vmem:[#allocation4 + $0x508] sm:$0xff]  ;;  %v6286_v12 = vld [vmem:[#allocation4 + $0x558] sm:$0xff] }
 0x750   :  { %5569 = vmatmul.msk.f32.gmra.mxu2 %vm904_vm1, %v6251_v31  ;;  %v10750_v38 = vmul.f32 %v10695_v30, %v3631_v1  ;;  %v12206_v55 = vld [vmem:[#allocation78_spill] sm:$0xff]  ;;  %v6268_v1 = vld [vmem:[#allocation4 + $0x4f8] sm:$0xff]  ;;  %v6289_v56 = vld [vmem:[#allocation4 + $0x480] sm:$0xff] }
 0x751   :  { %5549 = vmatmul.msk.f32.gmra.mxu3 %vm904_vm1, %v6256_v13  ;;  %v3630_v28 = vadd.f32 %v3626_v21, %v3617_v34  ;;  %v3606_v5 = vadd.f32 %v3602_v0, %v3594_v4  ;;  %v6269_v31 = vld [vmem:[#allocation4 + $0xb8] sm:$0xff]  ;;  %v6270_v45 = vld [vmem:[#allocation4 + $0x30] sm:$0xff]  ;;  %v6279_v34 = vld [vmem:[#allocation4 + $0x60] sm:$0xff] }
 0x752   :  { %4473 = vmatpush.msra.mxu1 %v10750_v38  ;;  %v6276_v62 = vld [vmem:[#allocation4 + $0x50] sm:$0xff]  ;;  %v6281_v21 = vld [vmem:[#allocation4 + $0xf8] sm:$0xff]  ;;  %v6283_v0 = vld [vmem:[#allocation4 + $0x548] sm:$0xff] }
 0x753   :  { %v3639_v22 = vmul.f32 %v10695_v30, %v3630_v28  ;;  %v3616_v59 = vadd.f32 %v3612_v17, %v3606_v5  ;;  %v6282_v58 = vld [vmem:[#allocation4 + $0x70] sm:$0xff]  ;;  %v6284_v13 = vld [vmem:[#allocation4 + $0x108] sm:$0xff]  ;;  %v6285_v28 = vld [vmem:[#allocation4 + $0x80] sm:$0xff] }
 0x754   :  { %v6287_v17 = vld [vmem:[#allocation4 + $0x118] sm:$0xff] }
 0x755   :  { %4474 = vmatpush.msra.mxu1 %v3639_v22  ;;  %v3629_v18 = vadd.f32 %v3625_v9, %v3616_v59  ;;  %v10780_v2 = vpop.f32.mrf.mxu2  ;;  %v4388_v59 = vpop.f32.mrf.mxu0  ;;  %4774 = vmatmul.f32.vlgmr.msra.gmra.mxu0 %v6289_v56  ;;  %v6290_v9 = vld [vmem:[#allocation4 + $0x568] sm:$0xff]  ;;  %v6314_v56 = vld [vmem:[#allocation4 + $0x4d0] sm:$0xff] }
 0x757   :  { %v3638_v29 = vmul.f32 %v10695_v30, %v3629_v18  ;;  %v12202_v30 = vld [vmem:[#allocation24_spill] sm:$0xff]  ;;  %v6291_v18 = vld [vmem:[#allocation4 + $0x128] sm:$0xff] }
 0x758   :  { %5570 = vmatmul.msk.f32.gmra.mxu2 %vm904_vm1, %v6259_v3 }
 0x759   :  { %5550 = vmatmul.msk.f32.gmra.mxu3 %vm904_vm1, %v6260_v54  ;;  %4475 = vmatpush.msra.mxu1 %v3638_v29 }
 0x75a   :  { %4476 = vmatmul.f32.vlgmr.msra.gmra.mxu1 %v6261_v50  ;;  %v6293_v50 = vld [vmem:[#allocation4 + $0x490] sm:$0xff] }
 0x75b   :  { %4936 = vmatpush.msrb.mxu1 %v12199_v51  ;;  %v6294_v51 = vld [vmem:[#allocation4 + $0x578] sm:$0xff] }
 0x75d   :  { %4937 = vmatpush.msrb.mxu1 %v12200_v19  ;;  %v10790_v33 = vpop.f32.mrf.mxu2  ;;  %v10826_v54 = vpop.f32.mrf.mxu0  ;;  %4777 = vmatmul.f32.gmra.mxu0 %v6293_v50  ;;  %v6295_v19 = vld [vmem:[#allocation4 + $0x138] sm:$0xff] }
 0x75f   :  { %4938 = vmatpush.msrb.mxu1 %v12201_v53  ;;  %v6296_v53 = vld [vmem:[#allocation4 + $0xb0] sm:$0xff] }
 0x760   :  { %5571 = vmatmul.msk.f32.gmra.mxu2 %vm904_vm1, %v6262_v44 }
 0x761   :  { %5551 = vmatmul.msk.f32.gmra.mxu3 %vm904_vm1, %v6263_v43  ;;  %4939 = vmatpush.msrb.mxu1 %v12202_v30  ;;  %v6297_v30 = vld [vmem:[#allocation4 + $0x4a0] sm:$0xff] }
 0x762   :  { %4479 = vmatmul.f32.gmra.mxu1 %v6264_v20  ;;  %v6298_v20 = vld [vmem:[#allocation4 + $0x588] sm:$0xff] }
 0x763   :  { %4940 = vmatpush.msrb.mxu1 %v12203_v60  ;;  %v6299_v60 = vld [vmem:[#allocation4 + $0x148] sm:$0xff] }
 0x765   :  { %4941 = vmatpush.msrb.mxu1 %v12204_v27  ;;  %v10799_v39 = vpop.f32.mrf.mxu2  ;;  %v10832_v43 = vpop.f32.mrf.mxu0  ;;  %4780 = vmatmul.f32.gmra.mxu0 %v6297_v30  ;;  %v6300_v27 = vld [vmem:[#allocation4 + $0xc0] sm:$0xff]  ;;  %v6319_v30 = vld [vmem:[#allocation4 + $0x110] sm:$0xff] }
 0x767   :  { %4942 = vmatpush.msrb.mxu1 %v12205_v40  ;;  %v6301_v40 = vld [vmem:[#allocation4 + $0x598] sm:$0xff] }
 0x768   :  { %5572 = vmatmul.msk.f32.gmra.mxu2 %vm904_vm1, %v6265_v26 }
 0x769   :  { %5552 = vmatmul.msk.f32.gmra.mxu3 %vm904_vm1, %v6266_v63  ;;  %4943 = vmatpush.msrb.mxu1 %v12206_v55  ;;  %v6302_v63 = vld [vmem:[#allocation4 + $0x158] sm:$0xff]  ;;  %v6303_v55 = vld [vmem:[#allocation4 + $0xd0] sm:$0xff] }
 0x76a   :  { %4482 = vmatmul.f32.gmra.mxu1 %v6267_v46 }
 0x76b   :  { %4944 = vmatpush.msrb.mxu1 %v10523_v10  ;;  %v6272_v10 = vld [vmem:[#allocation4 + $0xc8] sm:$0xff] }
 0x76d   :  { %4945 = vmatpush.msrb.mxu1 %v10556_v42  ;;  %v6273_v42 = vld [vmem:[#allocation4 + $0x40] sm:$0xff] }
 0x76f   :  { %4946 = vmatpush.msrb.mxu1 %v10584_v52  ;;  %v6274_v52 = vld [vmem:[#allocation4 + $0x518] sm:$0xff] }
 0x770   :  { %5573 = vmatmul.msk.f32.gmra.mxu2 %vm904_vm1, %v6268_v1  ;;  %v6304_v1 = vld [vmem:[#allocation4 + $0x5a8] sm:$0xff] }
 0x771   :  { %5553 = vmatmul.msk.f32.gmra.mxu3 %vm904_vm1, %v6269_v31  ;;  %4947 = vmatpush.msrb.mxu1 %v10611_v57  ;;  %v10805_v57 = vpop.f32.mrf.mxu2  ;;  %v6305_v31 = vld [vmem:[#allocation4 + $0x168] sm:$0xff] }
 0x772   :  { %4485 = vmatmul.f32.gmra.mxu1 %v6270_v45  ;;  %v4397_v45 = vpop.f32.mrf.mxu0 }
 0x773   :  { %4948 = vmatpush.msrb.mxu1 %v10711_v49  ;;  %v6275_v49 = vld [vmem:[#allocation4 + $0xd8] sm:$0xff] }
 0x775   :  { %4949 = vmatpush.msrb.mxu1 %v10750_v38  ;;  %v6278_v38 = vld [vmem:[#allocation4 + $0xe8] sm:$0xff] }
 0x777   :  { %4950 = vmatpush.msrb.mxu1 %v3639_v22  ;;  %v6288_v22 = vld [vmem:[#allocation4 + $0x90] sm:$0xff] }
 0x778   :  { %5574 = vmatmul.msk.f32.gmra.mxu2 %vm904_vm1, %v6271_v11  ;;  %v6306_v11 = vld [vmem:[#allocation4 + $0x4b0] sm:$0xff] }
 0x779   :  { %5554 = vmatmul.msk.f32.gmra.mxu3 %vm904_vm1, %v6272_v10  ;;  %4951 = vmatpush.msrb.mxu1 %v3638_v29  ;;  %v10809_v25 = vpop.f32.mrf.mxu2  ;;  %v6292_v29 = vld [vmem:[#allocation4 + $0xa0] sm:$0xff] }
 0x77a   :  { %4488 = vmatmul.f32.gmra.mxu1 %v6273_v42  ;;  %4783 = vmatmul.f32.gmra.mxu0 %v6306_v11  ;;  %v6307_v10 = vld [vmem:[#allocation4 + $0xe0] sm:$0xff]  ;;  %v6308_v42 = vld [vmem:[#allocation4 + $0x5b8] sm:$0xff]  ;;  %v6322_v11 = vld [vmem:[#allocation4 + $0x4f0] sm:$0xff] }
 0x780   :  { %5575 = vmatmul.msk.f32.gmra.mxu2 %vm904_vm1, %v6274_v52 }
 0x781   :  { %5555 = vmatmul.msk.f32.gmra.mxu3 %vm904_vm1, %v6275_v49  ;;  %v10814_v4 = vpop.f32.mrf.mxu2  ;;  %v6309_v49 = vld [vmem:[#allocation4 + $0x178] sm:$0xff] }
 0x782   :  { %4491 = vmatmul.f32.gmra.mxu1 %v6276_v62  ;;  %v4400_v62 = vpop.f32.mrf.mxu0 }
 0x788   :  { %5576 = vmatmul.msk.f32.gmra.mxu2 %vm904_vm1, %v6277_v48 }
 0x789   :  { %5556 = vmatmul.msk.f32.gmra.mxu3 %vm904_vm1, %v6278_v38  ;;  %v10818_v5 = vpop.f32.mrf.mxu2  ;;  %v6310_v38 = vld [vmem:[#allocation4 + $0x4c0] sm:$0xff] }
 0x78a   :  { %4494 = vmatmul.f32.gmra.mxu1 %v6279_v34  ;;  %4786 = vmatmul.f32.gmra.mxu0 %v6310_v38  ;;  %v6311_v34 = vld [vmem:[#allocation4 + $0xf0] sm:$0xff]  ;;  %v6324_v38 = vld [vmem:[#allocation4 + $0x5f8] sm:$0xff] }
 0x790   :  { %5577 = vmatmul.msk.f32.gmra.mxu2 %vm904_vm1, %v6280_v36  ;;  %v6312_v36 = vld [vmem:[#allocation4 + $0x5c8] sm:$0xff] }
 0x791   :  { %5557 = vmatmul.msk.f32.gmra.mxu3 %vm904_vm1, %v6281_v21  ;;  %v10823_v3 = vpop.f32.mrf.mxu2  ;;  %v12207_v21 = vld [vmem:[#allocation16_spill] sm:$0xff] }
 0x792   :  { %4497 = vmatmul.f32.gmra.mxu1 %v6282_v58  ;;  %v4389_v58 = vadd.f32 %v4388_v59, %v12207_v21  ;;  %v6317_v59 = vld [vmem:[#allocation4 + $0x318] sm:$0xff] }
 0x793   :  { %v6325_v21 = vld [vmem:[#allocation4 + $0x338] sm:$0xff] }
 0x798   :  { %5578 = vmatmul.msk.f32.gmra.mxu2 %vm904_vm1, %v6283_v0 }
 0x799   :  { %5558 = vmatmul.msk.f32.gmra.mxu3 %vm904_vm1, %v6284_v13  ;;  %v10829_v44 = vpop.f32.mrf.mxu2 }
 0x79a   :  { %4500 = vmatmul.f32.gmra.mxu1 %v6285_v28  ;;  %v6313_v28 = vld [vmem:[#allocation4 + $0x308] sm:$0xff] }
 0x7a0   :  { %5579 = vmatmul.msk.f32.gmra.mxu2 %vm904_vm1, %v6286_v12 }
 0x7a1   :  { %5559 = vmatmul.msk.f32.gmra.mxu3 %vm904_vm1, %v6287_v17  ;;  %v10836_v26 = vpop.f32.mrf.mxu2  ;;  %v4403_v17 = vpop.f32.mrf.mxu0  ;;  %4789 = vmatmul.f32.gmra.mxu0 %v6314_v56  ;;  %v12210_v56 = vld [vmem:[#allocation22_spill] sm:$0xff] }
 0x7a2   :  { %4503 = vmatmul.f32.gmra.mxu1 %v6288_v22 }
 0x7a8   :  { %5580 = vmatmul.msk.f32.gmra.mxu2 %vm904_vm1, %v6290_v9  ;;  %v4572_v48 = vpop.f32.mrf.mxu3 }
 0x7a9   :  { %5560 = vmatmul.msk.f32.gmra.mxu3 %vm904_vm1, %v6291_v18  ;;  %v10840_v46 = vpop.f32.mrf.mxu2  ;;  %v6315_v18 = vld [vmem:[#allocation4 + $0x100] sm:$0xff] }
 0x7aa   :  { %4506 = vmatmul.f32.gmra.mxu1 %v6292_v29  ;;  %v6316_v29 = vld [vmem:[#allocation4 + $0x5d8] sm:$0xff] }
 0x7b0   :  { %5581 = vmatmul.msk.f32.gmra.mxu2 %vm904_vm1, %v6294_v51  ;;  %v4406_v51 = vpop.f32.mrf.mxu0 }
 0x7b1   :  { %5561 = vmatmul.msk.f32.gmra.mxu3 %vm904_vm1, %v6295_v19  ;;  %v10845_v52 = vpop.f32.mrf.mxu2  ;;  %v4575_v22 = vpop.f32.mrf.mxu3 }
 0x7b2   :  { %4509 = vmatmul.f32.gmra.mxu1 %v6296_v53  ;;  %v6318_v53 = vld [vmem:[#allocation4 + $0x4e0] sm:$0xff] }
 0x7b3   :  { %4792 = vmatmul.f32.gmra.mxu0 %v6318_v53 }
 0x7b8   :  { %5582 = vmatmul.msk.f32.gmra.mxu2 %vm904_vm1, %v6298_v20  ;;  %v6320_v20 = vld [vmem:[#allocation4 + $0x5e8] sm:$0xff] }
 0x7b9   :  { %5562 = vmatmul.msk.f32.gmra.mxu3 %vm904_vm1, %v6299_v60  ;;  %v4566_v13 = vpop.f32.mrf.mxu2  ;;  %v12208_v60 = vld [vmem:[#allocation9_spill] sm:$0xff] }
 0x7ba   :  { %4512 = vmatmul.f32.gmra.mxu1 %v6300_v27  ;;  %v4395_v27 = vadd.f32 %v10832_v43, %v12208_v60 }
 0x7bc   :  { %v4578_v19 = vpop.f32.mrf.mxu3 }
 0x7c0   :  { %5583 = vmatmul.msk.f32.gmra.mxu2 %vm904_vm1, %v6301_v40 }
 0x7c1   :  { %5563 = vmatmul.msk.f32.gmra.mxu3 %vm904_vm1, %v6302_v63  ;;  %v6321_v63 = vld [vmem:[#allocation4 + $0x328] sm:$0xff] }
 0x7c2   :  { %4515 = vmatmul.f32.gmra.mxu1 %v6303_v55 }
 0x7c8   :  { %5584 = vmatmul.msk.f32.gmra.mxu2 %vm904_vm1, %v6304_v1  ;;  %v4409_v1 = vpop.f32.mrf.mxu0  ;;  %4795 = vmatmul.f32.gmra.mxu0 %v6322_v11 }
 0x7c9   :  { %5564 = vmatmul.msk.f32.gmra.mxu3 %vm904_vm1, %v6305_v31  ;;  %v4581_v31 = vpop.f32.mrf.mxu3 }
 0x7ca   :  { %4518 = vmatmul.f32.gmra.mxu1 %v6307_v10 }
 0x7d0   :  { %5585 = vmatmul.msk.f32.gmra.mxu2 %vm904_vm1, %v6308_v42  ;;  %v6323_v42 = vld [vmem:[#allocation4 + $0x120] sm:$0xff] }
 0x7d1   :  { %5565 = vmatmul.msk.f32.gmra.mxu3 %vm904_vm1, %v6309_v49  ;;  %v10863_v49 = vpop.f32.mrf.mxu2 }
 0x7d2   :  { %4521 = vmatmul.f32.gmra.mxu1 %v6311_v34  ;;  %v12209_v34 = vld [vmem:[#allocation77_spill] sm:$0xff] }
 0x7d3   :  { %v4398_v43 = vadd.f32 %v4397_v45, %v12209_v34 }
 0x7d7   :  { %v4477_v0 = vpop.f32.mrf.mxu1 }
 0x7d8   :  { %5586 = vmatmul.msk.f32.gmra.mxu2 %vm904_vm1, %v6312_v36  ;;  %v4478_v12 = vadd.f32 %v4477_v0, %v4389_v58  ;;  %v4412_v0 = vpop.f32.mrf.mxu0 }
 0x7d9   :  { %5590 = vmatmul.msk.f32.vlgmr.msra.gmra.mxu3 %vm904_vm1, %v6313_v28  ;;  %v6326_v28 = vld [vmem:[#allocation4 + $0x500] sm:$0xff] }
 0x7da   :  { %v10851_v9 = vadd.f32 %v4566_v13, %v4478_v12  ;;  %4524 = vmatmul.f32.gmra.mxu1 %v6315_v18  ;;  %v4584_v13 = vpop.f32.mrf.mxu3  ;;  %4798 = vmatmul.f32.gmra.mxu0 %v6326_v28  ;;  %v6327_v12 = vld [vmem:[#allocation4 + $0x130] sm:$0xff]  ;;  %v4401_v18 = vadd.f32 %v4400_v62, %v12210_v56 }
 0x7df   :  { %v10854_v50 = vpop.f32.mrf.mxu1 }
 0x7e0   :  { %5587 = vmatmul.msk.f32.gmra.mxu2 %vm904_vm1, %v6316_v29  ;;  %v4415_v53 = vpop.f32.mrf.mxu0 }
 0x7e1   :  { %5591 = vmatmul.msk.f32.gmra.mxu3 %vm904_vm1, %v6317_v59  ;;  %v6328_v59 = vld [vmem:[#allocation4 + $0x348] sm:$0xff] }
 0x7e2   :  { %4527 = vmatmul.f32.gmra.mxu1 %v6319_v30  ;;  %v4587_v30 = vpop.f32.mrf.mxu3 }
 0x7e7   :  { %v4483_v40 = vpop.f32.mrf.mxu1 }
 0x7e8   :  { %5588 = vmatmul.msk.f32.gmra.mxu2 %vm904_vm1, %v6320_v20  ;;  %v4484_v55 = vadd.f32 %v4483_v40, %v4395_v27  ;;  %v6329_v20 = vld [vmem:[#allocation4 + $0x510] sm:$0xff]  ;;  %v6330_v27 = vld [vmem:[#allocation4 + $0x140] sm:$0xff]  ;;  %v4418_v11 = vpop.f32.mrf.mxu0 }
 0x7e9   :  { %5592 = vmatmul.msk.f32.gmra.mxu3 %vm904_vm1, %v6321_v63  ;;  %4801 = vmatmul.f32.gmra.mxu0 %v6329_v20  ;;  %v12211_v40 = vld [vmem:[#allocation128_spill] sm:$0xff] }
 0x7ea   :  { %v10861_v10 = vadd.f32 %v4572_v48, %v4484_v55  ;;  %4530 = vmatmul.f32.gmra.mxu1 %v6323_v42  ;;  %v6331_v55 = vld [vmem:[#allocation4 + $0x358] sm:$0xff]  ;;  %v4590_v42 = vpop.f32.mrf.mxu3  ;;  %v6338_v20 = vld [vmem:[#allocation4 + $0x540] sm:$0xff] }
 0x7ef   :  { %v4486_v36 = vpop.f32.mrf.mxu1 }
 0x7f0   :  { %5589 = vmatmul.msk.f32.gmra.mxu2 %vm904_vm1, %v6324_v38  ;;  %v4487_v58 = vadd.f32 %v4486_v36, %v4398_v43  ;;  %v6332_v38 = vld [vmem:[#allocation4 + $0x520] sm:$0xff]  ;;  %v6333_v43 = vld [vmem:[#allocation4 + $0x150] sm:$0xff] }
 0x7f1   :  { %5593 = vmatmul.msk.f32.gmra.mxu3 %vm904_vm1, %v6325_v21  ;;  %4804 = vmatmul.f32.gmra.mxu0 %v6332_v38  ;;  %v6334_v21 = vld [vmem:[#allocation4 + $0x368] sm:$0xff] }
 0x7f2   :  { %v10868_v48 = vadd.f32 %v4575_v22, %v4487_v58  ;;  %4533 = vmatmul.f32.gmra.mxu1 %v6327_v12  ;;  %v4404_v22 = vadd.f32 %v4403_v17, %v12211_v40  ;;  %v4421_v58 = vpop.f32.mrf.mxu0  ;;  %v4593_v28 = vpop.f32.mrf.mxu3  ;;  %v6335_v12 = vld [vmem:[#allocation4 + $0x530] sm:$0xff] }
 0x7f3   :  { %v6339_v40 = vld [vmem:[#allocation4 + $0x170] sm:$0xff] }
 0x7f7   :  { %v4489_v29 = vpop.f32.mrf.mxu1 }
 0x7f8   :  { %v4490_v45 = vadd.f32 %v4489_v29, %v4401_v18  ;;  %v6336_v18 = vld [vmem:[#allocation4 + $0x160] sm:$0xff] }
 0x7f9   :  { %5594 = vmatmul.msk.f32.gmra.mxu3 %vm904_vm1, %v6328_v59  ;;  %4807 = vmatmul.f32.gmra.mxu0 %v6335_v12  ;;  %v6337_v59 = vld [vmem:[#allocation4 + $0x378] sm:$0xff] }
 0x7fa   :  { %v10872_v60 = vadd.f32 %v4578_v19, %v4490_v45  ;;  %4536 = vmatmul.f32.gmra.mxu1 %v6330_v27  ;;  %v4407_v19 = vadd.f32 %v4406_v51, %v10465_v24  ;;  %v4424_v51 = vpop.f32.mrf.mxu0  ;;  %v4596_v45 = vpop.f32.mrf.mxu3 }
 0x7ff   :  { %v4492_v63 = vpop.f32.mrf.mxu1 }
 0x800   :  { %v4493_v62 = vadd.f32 %v4492_v63, %v4404_v22  ;;  %v6340_v63 = vld [vmem:[#allocation4 + $0x388] sm:$0xff] }
 0x801   :  { %5595 = vmatmul.msk.f32.gmra.mxu3 %vm904_vm1, %v6331_v55  ;;  %4810 = vmatmul.f32.gmra.mxu0 %v6338_v20 }
 0x802   :  { %v10876_v34 = vadd.f32 %v4581_v31, %v4493_v62  ;;  %4539 = vmatmul.f32.gmra.mxu1 %v6333_v43  ;;  %v4410_v31 = vadd.f32 %v4409_v1, %v10538_v23  ;;  %v4427_v1 = vpop.f32.mrf.mxu0  ;;  %v4599_v55 = vpop.f32.mrf.mxu3  ;;  %v6341_v62 = vld [vmem:[#allocation4 + $0x550] sm:$0xff]  ;;  %v6342_v43 = vld [vmem:[#allocation4 + $0x300] sm:$0xff] }
 0x807   :  { %v4495_v36 = vpop.f32.mrf.mxu1 }
 0x808   :  { %v4496_v17 = vadd.f32 %v4495_v36, %v4407_v19  ;;  %v6343_v36 = vld [vmem:[#allocation4 + $0x398] sm:$0xff] }
 0x809   :  { %5596 = vmatmul.msk.f32.gmra.mxu3 %vm904_vm1, %v6334_v21  ;;  %4813 = vmatmul.f32.gmra.mxu0 %v6341_v62 }
 0x80a   :  { %v10880_v56 = vadd.f32 %v4584_v13, %v4496_v17  ;;  %4542 = vmatmul.f32.gmra.mxu1 %v6336_v18  ;;  %v4413_v13 = vadd.f32 %v4412_v0, %v10592_v8  ;;  %v4430_v0 = vpop.f32.mrf.mxu0  ;;  %v4602_v21 = vpop.f32.mrf.mxu3  ;;  %v6344_v17 = vld [vmem:[#allocation4 + $0x560] sm:$0xff]  ;;  %v6345_v18 = vld [vmem:[#allocation4 + $0x310] sm:$0xff] }
 0x80f   :  { %v4498_v29 = vpop.f32.mrf.mxu1 }
 0x810   :  { %v4499_v24 = vadd.f32 %v4498_v29, %v4410_v31  ;;  %v6346_v29 = vld [vmem:[#allocation4 + $0x3a8] sm:$0xff] }
 0x811   :  { %5597 = vmatmul.msk.f32.gmra.mxu3 %vm904_vm1, %v6337_v59  ;;  %4816 = vmatmul.f32.gmra.mxu0 %v6344_v17 }
 0x812   :  { %v10884_v27 = vadd.f32 %v4587_v30, %v4499_v24  ;;  %4545 = vmatmul.f32.gmra.mxu1 %v6339_v40  ;;  %v4416_v30 = vadd.f32 %v4415_v53, %v10666_v37  ;;  %v4433_v53 = vpop.f32.mrf.mxu0  ;;  %v4605_v59 = vpop.f32.mrf.mxu3  ;;  %v6347_v24 = vld [vmem:[#allocation4 + $0x570] sm:$0xff]  ;;  %v6348_v40 = vld [vmem:[#allocation4 + $0x320] sm:$0xff] }
 0x817   :  { %v4501_v22 = vpop.f32.mrf.mxu1 }
 0x818   :  { %v4502_v23 = vadd.f32 %v4501_v22, %v4413_v13  ;;  %v6349_v22 = vld [vmem:[#allocation4 + $0x3b8] sm:$0xff] }
 0x819   :  { %5598 = vmatmul.msk.f32.gmra.mxu3 %vm904_vm1, %v6340_v63  ;;  %4819 = vmatmul.f32.gmra.mxu0 %v6347_v24 }
 0x81a   :  { %v10888_v38 = vadd.f32 %v4590_v42, %v4502_v23  ;;  %4952 = vmatmul.f32.vlgmr.msrb.gmra.mxu1 %v6342_v43  ;;  %v4419_v42 = vadd.f32 %v4418_v11, %v10738_v15  ;;  %v4436_v11 = vpop.f32.mrf.mxu0  ;;  %v4608_v63 = vpop.f32.mrf.mxu3  ;;  %v6350_v23 = vld [vmem:[#allocation4 + $0x580] sm:$0xff]  ;;  %v6351_v43 = vld [vmem:[#allocation4 + $0x330] sm:$0xff] }
 0x81f   :  { %v4504_v19 = vpop.f32.mrf.mxu1 }
 0x820   :  { %v4505_v8 = vadd.f32 %v4504_v19, %v4416_v30  ;;  %v6352_v19 = vld [vmem:[#allocation4 + $0x3c8] sm:$0xff] }
 0x821   :  { %5599 = vmatmul.msk.f32.gmra.mxu3 %vm904_vm1, %v6343_v36  ;;  %4822 = vmatmul.f32.gmra.mxu0 %v6350_v23 }
 0x822   :  { %v10892_v12 = vadd.f32 %v4593_v28, %v4505_v8  ;;  %4955 = vmatmul.f32.gmra.mxu1 %v6345_v18  ;;  %v4422_v28 = vadd.f32 %v4421_v58, %v10772_v16  ;;  %v4439_v58 = vpop.f32.mrf.mxu0  ;;  %v4611_v36 = vpop.f32.mrf.mxu3  ;;  %v6353_v8 = vld [vmem:[#allocation4 + $0x590] sm:$0xff]  ;;  %v6354_v18 = vld [vmem:[#allocation4 + $0x340] sm:$0xff] }
 0x827   :  { %v4507_v31 = vpop.f32.mrf.mxu1 }
 0x828   :  { %v4508_v37 = vadd.f32 %v4507_v31, %v4419_v42  ;;  %v6355_v31 = vld [vmem:[#allocation4 + $0x3d8] sm:$0xff] }
 0x829   :  { %5600 = vmatmul.msk.f32.gmra.mxu3 %vm904_vm1, %v6346_v29  ;;  %4825 = vmatmul.f32.gmra.mxu0 %v6353_v8 }
 0x82a   :  { %v10896_v20 = vadd.f32 %v4596_v45, %v4508_v37  ;;  %4958 = vmatmul.f32.gmra.mxu1 %v6348_v40  ;;  %v4425_v45 = vadd.f32 %v4424_v51, %v10780_v2  ;;  %v4442_v51 = vpop.f32.mrf.mxu0  ;;  %v4614_v29 = vpop.f32.mrf.mxu3  ;;  %v6356_v37 = vld [vmem:[#allocation4 + $0x5a0] sm:$0xff]  ;;  %v6357_v40 = vld [vmem:[#allocation4 + $0x350] sm:$0xff] }
 0x82f   :  { %v4510_v13 = vpop.f32.mrf.mxu1 }
 0x830   :  { %v4511_v15 = vadd.f32 %v4510_v13, %v4422_v28  ;;  %v6358_v13 = vld [vmem:[#allocation4 + $0x3e8] sm:$0xff] }
 0x831   :  { %5601 = vmatmul.msk.f32.gmra.mxu3 %vm904_vm1, %v6349_v22  ;;  %4828 = vmatmul.f32.gmra.mxu0 %v6356_v37 }
 0x832   :  { %v10900_v62 = vadd.f32 %v4599_v55, %v4511_v15  ;;  %4961 = vmatmul.f32.gmra.mxu1 %v6351_v43  ;;  %v4428_v55 = vadd.f32 %v4427_v1, %v10790_v33  ;;  %v4445_v1 = vpop.f32.mrf.mxu0  ;;  %v4617_v22 = vpop.f32.mrf.mxu3  ;;  %v6359_v15 = vld [vmem:[#allocation4 + $0x5b0] sm:$0xff]  ;;  %v6360_v43 = vld [vmem:[#allocation4 + $0x360] sm:$0xff] }
 0x837   :  { %v4513_v30 = vpop.f32.mrf.mxu1 }
 0x838   :  { %v4514_v16 = vadd.f32 %v4513_v30, %v4425_v45  ;;  %v6361_v30 = vld [vmem:[#allocation4 + $0x3f8] sm:$0xff] }
 0x839   :  { %5602 = vmatmul.msk.f32.gmra.mxu3 %vm904_vm1, %v6352_v19  ;;  %4831 = vmatmul.f32.gmra.mxu0 %v6359_v15 }
 0x83a   :  { %v10904_v17 = vadd.f32 %v4602_v21, %v4514_v16  ;;  %4964 = vmatmul.f32.gmra.mxu1 %v6354_v18  ;;  %v4431_v21 = vadd.f32 %v4430_v0, %v10799_v39  ;;  %v4448_v0 = vpop.f32.mrf.mxu0  ;;  %v4620_v19 = vpop.f32.mrf.mxu3  ;;  %v6362_v16 = vld [vmem:[#allocation4 + $0x5c0] sm:$0xff]  ;;  %v6363_v18 = vld [vmem:[#allocation4 + $0x370] sm:$0xff] }
 0x83f   :  { %v4516_v42 = vpop.f32.mrf.mxu1 }
 0x840   :  { %v4517_v2 = vadd.f32 %v4516_v42, %v4428_v55  ;;  %v6364_v42 = vld [vmem:[#allocation4 + $0x408] sm:$0xff] }
 0x841   :  { %5603 = vmatmul.msk.f32.gmra.mxu3 %vm904_vm1, %v6355_v31  ;;  %4834 = vmatmul.f32.gmra.mxu0 %v6362_v16 }
 0x842   :  { %v10908_v24 = vadd.f32 %v4605_v59, %v4517_v2  ;;  %4967 = vmatmul.f32.gmra.mxu1 %v6357_v40  ;;  %v4434_v59 = vadd.f32 %v4433_v53, %v10805_v57  ;;  %v4451_v53 = vpop.f32.mrf.mxu0  ;;  %v4623_v31 = vpop.f32.mrf.mxu3  ;;  %v6365_v2 = vld [vmem:[#allocation4 + $0x5d0] sm:$0xff]  ;;  %v6366_v40 = vld [vmem:[#allocation4 + $0x380] sm:$0xff] }
 0x847   :  { %v4519_v28 = vpop.f32.mrf.mxu1 }
 0x848   :  { %v4520_v33 = vadd.f32 %v4519_v28, %v4431_v21  ;;  %v6367_v28 = vld [vmem:[#allocation4 + $0x418] sm:$0xff] }
 0x849   :  { %5604 = vmatmul.msk.f32.gmra.mxu3 %vm904_vm1, %v6358_v13  ;;  %4837 = vmatmul.f32.gmra.mxu0 %v6365_v2  ;;  %v4449_v2 = vadd.f32 %v4448_v0, %v10829_v44  ;;  %v6378_v0 = vld [vmem:[#allocation4 + $0x3d0] sm:$0xff] }
 0x84a   :  { %v10912_v23 = vadd.f32 %v4608_v63, %v4520_v33  ;;  %4970 = vmatmul.f32.gmra.mxu1 %v6360_v43  ;;  %v4437_v63 = vadd.f32 %v4436_v11, %v10809_v25  ;;  %v4454_v11 = vpop.f32.mrf.mxu0  ;;  %v4626_v13 = vpop.f32.mrf.mxu3  ;;  %v6368_v33 = vld [vmem:[#allocation4 + $0x5e0] sm:$0xff]  ;;  %v6369_v43 = vld [vmem:[#allocation4 + $0x390] sm:$0xff] }
 0x84f   :  { %v4522_v45 = vpop.f32.mrf.mxu1 }
 0x850   :  { %v4523_v39 = vadd.f32 %v4522_v45, %v4434_v59  ;;  %v6370_v45 = vld [vmem:[#allocation4 + $0x428] sm:$0xff] }
 0x851   :  { %5605 = vmatmul.msk.f32.gmra.mxu3 %vm904_vm1, %v6361_v30  ;;  %4840 = vmatmul.f32.gmra.mxu0 %v6368_v33  ;;  %v6377_v33 = vld [vmem:[#allocation4 + $0x458] sm:$0xff] }
 0x852   :  { %v10916_v8 = vadd.f32 %v4611_v36, %v4523_v39  ;;  %4973 = vmatmul.f32.gmra.mxu1 %v6363_v18  ;;  %v4440_v36 = vadd.f32 %v4439_v58, %v10814_v4  ;;  %v4457_v58 = vpop.f32.mrf.mxu0  ;;  %v4629_v30 = vpop.f32.mrf.mxu3  ;;  %v6371_v39 = vld [vmem:[#allocation4 + $0x5f0] sm:$0xff]  ;;  %v6372_v18 = vld [vmem:[#allocation4 + $0x3a0] sm:$0xff] }
 0x857   :  { %v4525_v55 = vpop.f32.mrf.mxu1 }
 0x858   :  { %v4526_v57 = vadd.f32 %v4525_v55, %v4437_v63  ;;  %v6373_v55 = vld [vmem:[#allocation4 + $0x438] sm:$0xff] }
 0x859   :  { %5606 = vmatmul.msk.f32.gmra.mxu3 %vm904_vm1, %v6364_v42  ;;  %4843 = vmatmul.f32.gmra.mxu0 %v6371_v39 }
 0x85a   :  { %v10920_v37 = vadd.f32 %v4614_v29, %v4526_v57  ;;  %4976 = vmatmul.f32.gmra.mxu1 %v6366_v40  ;;  %v4443_v29 = vadd.f32 %v4442_v51, %v10818_v5  ;;  %v4632_v51 = vpop.f32.mrf.mxu3  ;;  %v6374_v57 = vld [vmem:[#allocation4 + $0x3b0] sm:$0xff] }
 0x85f   :  { %v4528_v21 = vpop.f32.mrf.mxu1 }
 0x860   :  { %v4529_v25 = vadd.f32 %v4528_v21, %v4440_v36  ;;  %v6375_v36 = vld [vmem:[#allocation4 + $0x448] sm:$0xff] }
 0x861   :  { %5607 = vmatmul.msk.f32.gmra.mxu3 %vm904_vm1, %v6367_v28 }
 0x862   :  { %v10924_v15 = vadd.f32 %v4617_v22, %v4529_v25  ;;  %4979 = vmatmul.f32.gmra.mxu1 %v6369_v43  ;;  %v4446_v22 = vadd.f32 %v4445_v1, %v10823_v3  ;;  %v4635_v21 = vpop.f32.mrf.mxu3  ;;  %v6376_v3 = vld [vmem:[#allocation4 + $0x3c0] sm:$0xff]  ;;  %v4452_v1 = vadd.f32 %v4451_v53, %v10836_v26  ;;  %v4775_v43 = vpop.f32.mrf.mxu0 }
 0x864   :  { %12212 = vst [vmem:[#allocation133_spill] sm:$0xff] %v10924_v15 }
 0x867   :  { %v4531_v59 = vpop.f32.mrf.mxu1 }
 0x868   :  { %v4532_v4 = vadd.f32 %v4531_v59, %v4443_v29  ;;  %v4864_v29 = vpop.f32.mrf.mxu2 }
 0x869   :  { %5608 = vmatmul.msk.f32.gmra.mxu3 %vm904_vm1, %v6370_v45  ;;  %v4455_v45 = vadd.f32 %v4454_v11, %v10840_v46 }
 0x86a   :  { %v10928_v16 = vadd.f32 %v4620_v19, %v4532_v4  ;;  %4982 = vmatmul.f32.gmra.mxu1 %v6372_v18  ;;  %v5042_v59 = vpop.f32.mrf.mxu3  ;;  %v6379_v4 = vld [vmem:[#allocation4 + $0x468] sm:$0xff]  ;;  %v4778_v26 = vpop.f32.mrf.mxu0 }
 0x86c   :  { %12213 = vst [vmem:[#allocation134_spill] sm:$0xff] %v10928_v16 }
 0x86f   :  { %v4534_v63 = vpop.f32.mrf.mxu1 }
 0x870   :  { %v4535_v5 = vadd.f32 %v4534_v63, %v4446_v22  ;;  %v4867_v53 = vpop.f32.mrf.mxu2  ;;  %v6380_v22 = vld [vmem:[#allocation4 + $0x3e0] sm:$0xff] }
 0x871   :  { %5609 = vmatmul.msk.f32.gmra.mxu3 %vm904_vm1, %v6373_v55 }
 0x872   :  { %v10932_v42 = vadd.f32 %v4623_v31, %v4535_v5  ;;  %4985 = vmatmul.f32.gmra.mxu1 %v6374_v57  ;;  %v5045_v63 = vpop.f32.mrf.mxu3  ;;  %v6381_v5 = vld [vmem:[#allocation4 + $0x478] sm:$0xff]  ;;  %v4781_v46 = vpop.f32.mrf.mxu0 }
 0x874   :  { %12214 = vst [vmem:[#allocation135_spill] sm:$0xff] %v10932_v42  ;;  %v12253_v42 = vld [vmem:[#allocation88_spill] sm:$0xff] }
 0x877   :  { %v4537_v40 = vpop.f32.mrf.mxu1 }
 0x878   :  { %v4538_v19 = vadd.f32 %v4537_v40, %v4449_v2  ;;  %v4870_v11 = vpop.f32.mrf.mxu2  ;;  %v6382_v40 = vld [vmem:[#allocation4 + $0x3f0] sm:$0xff] }
 0x879   :  { %5610 = vmatmul.msk.f32.gmra.mxu3 %vm904_vm1, %v6375_v36  ;;  %v4871_v36 = vadd.f32 %v4870_v11, %v4781_v46 }
 0x87a   :  { %v10936_v28 = vadd.f32 %v4626_v13, %v4538_v19  ;;  %4988 = vmatmul.f32.gmra.mxu1 %v6376_v3  ;;  %v5048_v19 = vpop.f32.mrf.mxu3  ;;  %v12219_v3 = vld [vmem:[#allocation34_spill] sm:$0xff] }
 0x87c   :  { %12215 = vst [vmem:[#allocation136_spill] sm:$0xff] %v10936_v28 }
 0x87f   :  { %v4540_v25 = vpop.f32.mrf.mxu1 }
 0x880   :  { %v4541_v31 = vadd.f32 %v4540_v25, %v4452_v1  ;;  %v4392_v1 = vadd.f32 %v10826_v54, %v12219_v3 }
 0x881   :  { %5611 = vmatmul.msk.f32.gmra.mxu3 %vm904_vm1, %v6377_v33 }
 0x882   :  { %v10940_v44 = vadd.f32 %v4629_v30, %v4541_v31  ;;  %4991 = vmatmul.f32.gmra.mxu1 %v6378_v0  ;;  %v4458_v30 = vadd.f32 %v4457_v58, %v10845_v52  ;;  %v12220_v52 = vld [vmem:[#allocation119_spill] sm:$0xff]  ;;  %v4481_v31 = vadd.f32 %v10854_v50, %v4392_v1  ;;  %v4784_v0 = vpop.f32.mrf.mxu0 }
 0x883   :  { %v4638_v58 = vadd.f32 %v10851_v9, %v12220_v52 }
 0x884   :  { %12216 = vst [vmem:[#allocation137_spill] sm:$0xff] %v10940_v44 }
 0x887   :  { %v4543_v13 = vpop.f32.mrf.mxu1 }
 0x888   :  { %v4544_v39 = vadd.f32 %v4543_v13, %v4455_v45  ;;  %v4873_v45 = vpop.f32.mrf.mxu2 }
 0x889   :  { %5612 = vmatmul.msk.f32.gmra.mxu3 %vm904_vm1, %v6379_v4  ;;  %v4874_v4 = vadd.f32 %v4873_v45, %v4784_v0 }
 0x88a   :  { %v10944_v18 = vadd.f32 %v4632_v51, %v4544_v39  ;;  %4994 = vmatmul.f32.gmra.mxu1 %v6380_v22  ;;  %v4865_v51 = vadd.f32 %v4864_v29, %v4775_v43  ;;  %v5051_v39 = vpop.f32.mrf.mxu3  ;;  %v4868_v22 = vadd.f32 %v4867_v53, %v4778_v26  ;;  %v4570_v43 = vadd.f32 %v10863_v49, %v4481_v31  ;;  %v4787_v46 = vpop.f32.mrf.mxu0  ;;  %v12223_v49 = vld [vmem:[#allocation117_spill] sm:$0xff] }
 0x88c   :  { %12217 = vst [vmem:[#allocation21_spill] sm:$0xff] %v10944_v18 }
 0x88f   :  { %v4546_v55 = vpop.f32.mrf.mxu1 }
 0x890   :  { %v4547_v57 = vadd.f32 %v4546_v55, %v4458_v30  ;;  %v4662_v30 = vmul.f32 0.5, %v4638_v58  ;;  %v12221_v55 = vld [vmem:[#allocation120_spill] sm:$0xff]  ;;  %v4876_v50 = vpop.f32.mrf.mxu2 }
 0x891   :  { %5613 = vmatmul.msk.f32.gmra.mxu3 %vm904_vm1, %v6381_v5  ;;  %v4639_v5 = vadd.f32 %v4570_v43, %v12221_v55 }
 0x892   :  { %v10948_v2 = vadd.f32 %v4635_v21, %v4547_v57  ;;  %4997 = vmatmul.f32.gmra.mxu1 %v6382_v40  ;;  %v6383_v21 = vld [vmem:[#allocation4 + $0x400] sm:$0xff]  ;;  %5882 = vtanh.f32 %v4662_v30  ;;  %v12222_v57 = vld [vmem:[#allocation62_spill] sm:$0xff]  ;;  %v4790_v58 = vpop.f32.mrf.mxu0 }
 0x893   :  { %v6384_v40 = vld [vmem:[#allocation4 + $0x410] sm:$0xff]  ;;  %v4663_v3 = vmul.f32 0.5, %v4639_v5 }
 0x894   :  { %12218 = vst [vmem:[#allocation138_spill] sm:$0xff] %v10948_v2 }
 0x897   :  { %v4953_v25 = vpop.f32.mrf.mxu1 }
 0x898   :  { %v4954_v33 = vadd.f32 %v4953_v25, %v4865_v51  ;;  %v5054_v51 = vpop.f32.mrf.mxu3  ;;  %v5883_v26 = vpop.eup %5882  ;;  %v4640_v25 = vadd.f32 %v10861_v10, %v12223_v49 }
 0x899   :  { %v4879_v31 = vpop.f32.mrf.mxu2  ;;  %v4710_v0 = vadd.f32 1.0, %v5883_v26  ;;  %v6386_v26 = vld [vmem:[#allocation4 + $0x430] sm:$0xff] }
 0x89a   :  { %v5043_v13 = vadd.f32 %v5042_v59, %v4954_v33  ;;  %5000 = vmatmul.f32.gmra.mxu1 %v6383_v21  ;;  %v4877_v59 = vadd.f32 %v4876_v50, %v4787_v46  ;;  %v12224_v33 = vld [vmem:[#allocation72_spill] sm:$0xff]  ;;  %v4664_v30 = vmul.f32 0.5, %v4640_v25  ;;  %v4793_v50 = vpop.f32.mrf.mxu0 }
 0x89b   :  { %v4734_v43 = vmul.f32 0.5, %v4710_v0 }
 0x89c   :  { %v5114_v9 = vadd.f32 %v5043_v13, %v12222_v57  ;;  %v4880_v13 = vadd.f32 %v4879_v31, %v4790_v58  ;;  %v12227_v57 = vld [vmem:[#allocation101_spill] sm:$0xff] }
 0x89e   :  { %5884 = vtanh.f32 %v5114_v9  ;;  %v4641_v9 = vadd.f32 %v10868_v48, %v12227_v57 }
 0x89f   :  { %v4956_v29 = vpop.f32.mrf.mxu1  ;;  %5886 = vtanh.f32 %v4663_v3 }
 0x8a0   :  { %v4957_v54 = vadd.f32 %v4956_v29, %v4868_v22  ;;  %v5057_v21 = vpop.f32.mrf.mxu3  ;;  %v12225_v29 = vld [vmem:[#allocation89_spill] sm:$0xff]  ;;  %v4665_v25 = vmul.f32 0.5, %v4641_v9 }
 0x8a2   :  { %v5046_v11 = vadd.f32 %v5045_v63, %v4957_v54  ;;  %5003 = vmatmul.f32.gmra.mxu1 %v6384_v40  ;;  %v6385_v63 = vld [vmem:[#allocation4 + $0x420] sm:$0xff] }
 0x8a4   :  { %v5115_v52 = vadd.f32 %v5046_v11, %v12224_v33  ;;  %v5885_v22 = vpop.eup %5884  ;;  %v4882_v11 = vpop.f32.mrf.mxu2  ;;  %v12229_v33 = vld [vmem:[#allocation50_spill] sm:$0xff] }
 0x8a5   :  { %v5887_v54 = vpop.eup %5886 }
 0x8a6   :  { %5888 = vtanh.f32 %v5115_v52  ;;  %v4711_v40 = vadd.f32 1.0, %v5887_v54 }
 0x8a7   :  { %v4959_v53 = vpop.f32.mrf.mxu1  ;;  %5890 = vtanh.f32 %v4664_v30  ;;  %v4796_v30 = vpop.f32.mrf.mxu0 }
 0x8a8   :  { %v4960_v1 = vadd.f32 %v4959_v53, %v4871_v36  ;;  %v5162_v36 = vsub.f32 %v5885_v22, %v12225_v29  ;;  %v4883_v53 = vadd.f32 %v4882_v11, %v4793_v50 }
 0x8aa   :  { %v5049_v45 = vadd.f32 %v5048_v19, %v4960_v1  ;;  %5006 = vmatmul.f32.gmra.mxu1 %v6385_v63  ;;  %v10962_v10 = vmul.f32 %v5162_v36, %v4734_v43  ;;  %v12228_v19 = vld [vmem:[#allocation107_spill] sm:$0xff]  ;;  %v5060_v1 = vpop.f32.mrf.mxu3 }
 0x8ac   :  { %12226 = vst [vmem:[#allocation124_spill] sm:$0xff] %v10962_v10  ;;  %v5116_v46 = vadd.f32 %v5049_v45, %v12228_v19  ;;  %v5889_v49 = vpop.eup %5888  ;;  %v12231_v45 = vld [vmem:[#allocation104_spill] sm:$0xff]  ;;  %v4885_v43 = vpop.f32.mrf.mxu2  ;;  %v4653_v10 = vadd.f32 %v10916_v8, %v12253_v42 }
 0x8ad   :  { %v5163_v52 = vsub.f32 %v5889_v49, %v12229_v33  ;;  %v5891_v58 = vpop.eup %5890  ;;  %v4642_v63 = vadd.f32 %v10872_v60, %v12231_v45 }
 0x8ae   :  { %5892 = vtanh.f32 %v5116_v46  ;;  %v4712_v36 = vadd.f32 1.0, %v5891_v58  ;;  %v12233_v46 = vld [vmem:[#allocation57_spill] sm:$0xff] }
 0x8af   :  { %v4962_v55 = vpop.f32.mrf.mxu1  ;;  %5894 = vtanh.f32 %v4665_v25  ;;  %v4666_v19 = vmul.f32 0.5, %v4642_v63 }
 0x8b0   :  { %v4963_v5 = vadd.f32 %v4962_v55, %v4874_v4  ;;  %v4735_v4 = vmul.f32 0.5, %v4711_v40  ;;  %v6387_v55 = vld [vmem:[#allocation4 + $0x440] sm:$0xff] }
 0x8b2   :  { %v5052_v3 = vadd.f32 %v5051_v39, %v4963_v5  ;;  %5009 = vmatmul.f32.gmra.mxu1 %v6386_v26  ;;  %v10968_v48 = vmul.f32 %v5163_v52, %v4735_v4  ;;  %v12232_v39 = vld [vmem:[#allocation116_spill] sm:$0xff]  ;;  %v4886_v5 = vadd.f32 %v4885_v43, %v4796_v30  ;;  %v5063_v57 = vpop.f32.mrf.mxu3  ;;  %v4799_v4 = vpop.f32.mrf.mxu0  ;;  %v12237_v30 = vld [vmem:[#allocation93_spill] sm:$0xff] }
 0x8b4   :  { %12230 = vst [vmem:[#allocation59_spill] sm:$0xff] %v10968_v48  ;;  %v5117_v22 = vadd.f32 %v5052_v3, %v12232_v39  ;;  %v5893_v9 = vpop.eup %5892  ;;  %v12235_v3 = vld [vmem:[#allocation46_spill] sm:$0xff]  ;;  %v4888_v52 = vpop.f32.mrf.mxu2 }
 0x8b5   :  { %v5164_v50 = vsub.f32 %v5893_v9, %v12233_v46  ;;  %v5895_v11 = vpop.eup %5894  ;;  %v4643_v49 = vadd.f32 %v10876_v34, %v12235_v3  ;;  %v4889_v45 = vadd.f32 %v4888_v52, %v4799_v4  ;;  %v6389_v3 = vld [vmem:[#allocation4 + $0x460] sm:$0xff]  ;;  %v12241_v4 = vld [vmem:[#allocation94_spill] sm:$0xff] }
 0x8b6   :  { %5896 = vtanh.f32 %v5117_v22  ;;  %v4713_v58 = vadd.f32 1.0, %v5895_v11 }
 0x8b7   :  { %v4965_v31 = vpop.f32.mrf.mxu1  ;;  %5898 = vtanh.f32 %v4666_v19  ;;  %v4667_v22 = vmul.f32 0.5, %v4643_v49 }
 0x8b8   :  { %v4966_v0 = vadd.f32 %v4965_v31, %v4877_v59  ;;  %v4736_v59 = vmul.f32 0.5, %v4712_v36 }
 0x8ba   :  { %v5055_v54 = vadd.f32 %v5054_v51, %v4966_v0  ;;  %5012 = vmatmul.f32.gmra.mxu1 %v6387_v55  ;;  %v10974_v60 = vmul.f32 %v5164_v50, %v4736_v59  ;;  %v12236_v51 = vld [vmem:[#allocation113_spill] sm:$0xff]  ;;  %v6388_v0 = vld [vmem:[#allocation4 + $0x450] sm:$0xff]  ;;  %v5066_v63 = vpop.f32.mrf.mxu3  ;;  %v10985_v50 = vpop.f32.mrf.mxu0 }
 0x8bc   :  { %12234 = vst [vmem:[#allocation58_spill] sm:$0xff] %v10974_v60  ;;  %v5118_v25 = vadd.f32 %v5055_v54, %v12236_v51  ;;  %v5897_v39 = vpop.eup %5896  ;;  %v12239_v54 = vld [vmem:[#allocation85_spill] sm:$0xff]  ;;  %v10987_v11 = vpop.f32.mrf.mxu2 }
 0x8bd   :  { %v5165_v43 = vsub.f32 %v5897_v39, %v12237_v30  ;;  %v5899_v36 = vpop.eup %5898  ;;  %v4644_v19 = vadd.f32 %v10880_v56, %v12239_v54  ;;  %v12242_v39 = vld [vmem:[#allocation51_spill] sm:$0xff]  ;;  %v6390_v54 = vld [vmem:[#allocation4 + $0x470] sm:$0xff]  ;;  %v4892_v8 = vadd.f32 %v10987_v11, %v10985_v50 }
 0x8be   :  { %5900 = vtanh.f32 %v5118_v25  ;;  %v12259_v11 = vld [vmem:[#allocation54_spill] sm:$0xff] }
 0x8bf   :  { %v4968_v40 = vpop.f32.mrf.mxu1  ;;  %5902 = vtanh.f32 %v4667_v22  ;;  %v4645_v22 = vadd.f32 %v10884_v27, %v12242_v39 }
 0x8c0   :  { %v4969_v26 = vadd.f32 %v4968_v40, %v4880_v13  ;;  %v4737_v13 = vmul.f32 0.5, %v4713_v58  ;;  %v4714_v40 = vadd.f32 1.0, %v5899_v36 }
 0x8c2   :  { %v5058_v31 = vadd.f32 %v5057_v21, %v4969_v26  ;;  %5015 = vmatmul.f32.gmra.mxu1 %v6388_v0  ;;  %v10980_v34 = vmul.f32 %v5165_v43, %v4737_v13  ;;  %v12240_v21 = vld [vmem:[#allocation114_spill] sm:$0xff]  ;;  %v10989_v49 = vpop.f32.mrf.mxu3  ;;  %v4738_v25 = vmul.f32 0.5, %v4714_v40  ;;  %v10997_v43 = vpop.f32.mrf.mxu0  ;;  %v12244_v40 = vld [vmem:[#allocation60_spill] sm:$0xff] }
 0x8c4   :  { %12238 = vst [vmem:[#allocation55_spill] sm:$0xff] %v10980_v34  ;;  %v5119_v59 = vadd.f32 %v5058_v31, %v12240_v21  ;;  %v5901_v51 = vpop.eup %5900  ;;  %v10999_v36 = vpop.f32.mrf.mxu2  ;;  %v12254_v34 = vld [vmem:[#allocation68_spill] sm:$0xff] }
 0x8c5   :  { %v5166_v52 = vsub.f32 %v5901_v51, %v12241_v4  ;;  %v5903_v58 = vpop.eup %5902 }
 0x8c6   :  { %5904 = vtanh.f32 %v5119_v59 }
 0x8c7   :  { %v4971_v55 = vpop.f32.mrf.mxu1  ;;  %v10992_v31 = vmul.f32 %v5166_v52, %v4738_v25  ;;  %v12245_v25 = vld [vmem:[#allocation52_spill] sm:$0xff] }
 0x8c8   :  { %v4972_v9 = vadd.f32 %v4971_v55, %v4883_v53  ;;  %v4668_v53 = vmul.f32 0.5, %v4644_v19  ;;  %v4715_v55 = vadd.f32 1.0, %v5903_v58  ;;  %v4646_v52 = vadd.f32 %v10888_v38, %v12245_v25  ;;  %v12248_v38 = vld [vmem:[#allocation121_spill] sm:$0xff] }
 0x8ca   :  { %v5061_v26 = vadd.f32 %v5060_v1, %v4972_v9  ;;  %5018 = vmatmul.f32.gmra.mxu1 %v6389_v3  ;;  %5906 = vtanh.f32 %v4668_v53  ;;  %v12243_v1 = vld [vmem:[#allocation90_spill] sm:$0xff]  ;;  %v11001_v19 = vpop.f32.mrf.mxu3  ;;  %v4739_v59 = vmul.f32 0.5, %v4715_v55  ;;  %v4670_v55 = vmul.f32 0.5, %v4646_v52  ;;  %v12249_v52 = vld [vmem:[#allocation97_spill] sm:$0xff] }
 0x8cc   :  { %v5120_v13 = vadd.f32 %v5061_v26, %v12243_v1  ;;  %v5905_v21 = vpop.eup %5904 }
 0x8cd   :  { %v5167_v3 = vsub.f32 %v5905_v21, %v12244_v40  ;;  %v12247_v21 = vld [vmem:[#allocation61_spill] sm:$0xff] }
 0x8ce   :  { %5908 = vtanh.f32 %v5120_v13 }
 0x8cf   :  { %v4974_v56 = vpop.f32.mrf.mxu1  ;;  %v11004_v26 = vmul.f32 %v5167_v3, %v4739_v59 }
 0x8d0   :  { %v4975_v0 = vadd.f32 %v4974_v56, %v4886_v5  ;;  %v4669_v5 = vmul.f32 0.5, %v4645_v22  ;;  %v5907_v51 = vpop.eup %5906  ;;  %v4808_v56 = vpop.f32.mrf.mxu0 }
 0x8d1   :  { %v4716_v39 = vadd.f32 1.0, %v5907_v51 }
 0x8d2   :  { %v5064_v9 = vadd.f32 %v5063_v57, %v4975_v0  ;;  %5021 = vmatmul.f32.gmra.mxu1 %v6390_v54  ;;  %5910 = vtanh.f32 %v4669_v5  ;;  %v12246_v57 = vld [vmem:[#allocation91_spill] sm:$0xff]  ;;  %v4897_v0 = vpop.f32.mrf.mxu2  ;;  %v11009_v22 = vpop.f32.mrf.mxu3 }
 0x8d3   :  { %v4740_v54 = vmul.f32 0.5, %v4716_v39  ;;  %v4898_v48 = vadd.f32 %v4897_v0, %v4808_v56  ;;  %v4647_v56 = vadd.f32 %v10892_v12, %v12259_v11 }
 0x8d4   :  { %v5121_v58 = vadd.f32 %v5064_v9, %v12246_v57  ;;  %v5909_v13 = vpop.eup %5908 }
 0x8d6   :  { %5912 = vtanh.f32 %v5121_v58 }
 0x8d7   :  { %v4977_v27 = vpop.f32.mrf.mxu1  ;;  %5914 = vtanh.f32 %v4670_v55 }
 0x8d8   :  { %v4978_v53 = vadd.f32 %v4977_v27, %v4889_v45  ;;  %v5168_v45 = vsub.f32 %v5909_v13, %v12247_v21  ;;  %v5911_v59 = vpop.eup %5910  ;;  %v4811_v27 = vpop.f32.mrf.mxu0 }
 0x8d9   :  { %v4717_v51 = vadd.f32 1.0, %v5911_v59 }
 0x8da   :  { %v5067_v1 = vadd.f32 %v5066_v63, %v4978_v53  ;;  %v11014_v5 = vmul.f32 %v5168_v45, %v4740_v54  ;;  %v4900_v25 = vpop.f32.mrf.mxu2  ;;  %v5078_v63 = vpop.f32.mrf.mxu3 }
 0x8db   :  { %v4741_v57 = vmul.f32 0.5, %v4717_v51  ;;  %v4901_v18 = vadd.f32 %v4900_v25, %v4811_v27  ;;  %v12255_v25 = vld [vmem:[#allocation71_spill] sm:$0xff] }
 0x8dc   :  { %v5122_v9 = vadd.f32 %v5067_v1, %v12248_v38  ;;  %v5913_v53 = vpop.eup %5912  ;;  %v12250_v1 = vld [vmem:[#allocation99_spill] sm:$0xff] }
 0x8dd   :  { %v5169_v58 = vsub.f32 %v5913_v53, %v12249_v52  ;;  %v5915_v39 = vpop.eup %5914 }
 0x8de   :  { %5916 = vtanh.f32 %v5122_v9  ;;  %v4718_v54 = vadd.f32 1.0, %v5915_v39 }
 0x8df   :  { %v11012_v3 = vpop.f32.mrf.mxu1  ;;  %v11018_v13 = vmul.f32 %v5169_v58, %v4741_v57 }
 0x8e0   :  { %v4814_v61 = vpop.f32.mrf.mxu0  ;;  %v4742_v32 = vmul.f32 0.5, %v4718_v54  ;;  %v12251_v54 = vld [vmem:[#allocation80_spill] sm:$0xff] }
 0x8e2   :  { %v4903_v14 = vpop.f32.mrf.mxu2  ;;  %v5081_v55 = vpop.f32.mrf.mxu3 }
 0x8e3   :  { %v4904_v39 = vadd.f32 %v4903_v14, %v4814_v61 }
 0x8e4   :  { %v5917_v45 = vpop.eup %5916 }
 0x8e5   :  { %v5170_v38 = vsub.f32 %v5917_v45, %v12250_v1  ;;  %v4649_v45 = vadd.f32 %v10900_v62, %v12251_v54  ;;  %v4895_v62 = vadd.f32 %v10999_v36, %v10997_v43  ;;  %v12257_v36 = vld [vmem:[#allocation39_spill] sm:$0xff]  ;;  %v12262_v54 = vld [vmem:[#allocation76_spill] sm:$0xff] }
 0x8e7   :  { %v4983_v47 = vpop.f32.mrf.mxu1  ;;  %v11021_v59 = vmul.f32 %v5170_v38, %v4742_v32  ;;  %v12252_v32 = vld [vmem:[#allocation73_spill] sm:$0xff]  ;;  %v4673_v46 = vmul.f32 0.5, %v4649_v45 }
 0x8e8   :  { %v4817_v6 = vpop.f32.mrf.mxu0  ;;  %v4652_v38 = vadd.f32 %v10912_v23, %v12252_v32  ;;  %v4650_v23 = vadd.f32 %v10904_v17, %v12255_v25  ;;  %v4648_v17 = vadd.f32 %v10896_v20, %v12257_v36  ;;  %v4671_v32 = vmul.f32 0.5, %v4647_v56  ;;  %v12265_v25 = vld [vmem:[#allocation37_spill] sm:$0xff] }
 0x8e9   :  { %5918 = vtanh.f32 %v4673_v46 }
 0x8ea   :  { %v4906_v9 = vpop.f32.mrf.mxu2  ;;  %v5084_v51 = vpop.f32.mrf.mxu3  ;;  %v4676_v61 = vmul.f32 0.5, %v4652_v38  ;;  %v12263_v38 = vld [vmem:[#allocation118_spill] sm:$0xff] }
 0x8eb   :  { %v4907_v2 = vadd.f32 %v4906_v9, %v4817_v6  ;;  %v4677_v9 = vmul.f32 0.5, %v4653_v10  ;;  %v4674_v10 = vmul.f32 0.5, %v4650_v23 }
 0x8ec   :  { %5920 = vtanh.f32 %v4676_v61 }
 0x8ed   :  { %5922 = vtanh.f32 %v4677_v9 }
 0x8ef   :  { %v4986_v35 = vpop.f32.mrf.mxu1 }
 0x8f0   :  { %v4820_v53 = vpop.f32.mrf.mxu0 }
 0x8f2   :  { %v4909_v15 = vpop.f32.mrf.mxu2  ;;  %v5087_v57 = vpop.f32.mrf.mxu3 }
 0x8f7   :  { %v4989_v7 = vpop.f32.mrf.mxu1 }
 0x8f8   :  { %v4823_v58 = vpop.f32.mrf.mxu0  ;;  %v4990_v14 = vadd.f32 %v4989_v7, %v4901_v18 }
 0x8fa   :  { %v4912_v28 = vpop.f32.mrf.mxu2  ;;  %v5090_v6 = vpop.f32.mrf.mxu3 }
 0x8fb   :  { %v11023_v44 = vadd.f32 %v4912_v28, %v4823_v58  ;;  %v4651_v28 = vadd.f32 %v10908_v24, %v12254_v34  ;;  %v5079_v24 = vadd.f32 %v5078_v63, %v4990_v14  ;;  %v4984_v34 = vadd.f32 %v4983_v47, %v4895_v62  ;;  %v12260_v47 = vld [vmem:[#allocation111_spill] sm:$0xff] }
 0x8fc   :  { %v12261_v58 = vld [vmem:[#allocation115_spill] sm:$0xff] }
 0x8fd   :  { %v4675_v7 = vmul.f32 0.5, %v4651_v28  ;;  %v5126_v0 = vadd.f32 %v5079_v24, %v12260_v47  ;;  %v5073_v63 = vadd.f32 %v11001_v19, %v4984_v34 }
 0x8ff   :  { %v4992_v16 = vpop.f32.mrf.mxu1  ;;  %5924 = vtanh.f32 %v4675_v7  ;;  %v5124_v19 = vadd.f32 %v5073_v63, %v12263_v38 }
 0x900   :  { %v4993_v33 = vadd.f32 %v4992_v16, %v4904_v39  ;;  %v4987_v16 = vadd.f32 %v4986_v35, %v4898_v48  ;;  %v4981_v35 = vadd.f32 %v11012_v3, %v4892_v8 }
 0x902   :  { %v5082_v42 = vadd.f32 %v5081_v55, %v4993_v33  ;;  %v11041_v18 = vpop.f32.mrf.mxu2  ;;  %v12258_v33 = vld [vmem:[#allocation74_spill] sm:$0xff]  ;;  %v5919_v55 = vpop.eup %5918 }
 0x903   :  { %v5921_v3 = vpop.eup %5920  ;;  %v4721_v56 = vadd.f32 1.0, %v5919_v55  ;;  %v12271_v55 = vld [vmem:[#allocation102_spill] sm:$0xff] }
 0x904   :  { %v5127_v48 = vadd.f32 %v5082_v42, %v12258_v33  ;;  %v5923_v45 = vpop.eup %5922  ;;  %v12268_v33 = vld [vmem:[#allocation106_spill] sm:$0xff] }
 0x905   :  { %v5925_v28 = vpop.eup %5924  ;;  %v4725_v42 = vadd.f32 1.0, %v5923_v45 }
 0x906   :  { %v4723_v34 = vadd.f32 1.0, %v5925_v28 }
 0x907   :  { %v4995_v29 = vpop.f32.mrf.mxu1 }
 0x908   :  { %v4996_v60 = vadd.f32 %v4995_v29, %v4907_v2  ;;  %v4910_v2 = vadd.f32 %v4909_v15, %v4820_v53  ;;  %v11039_v29 = vpop.f32.mrf.mxu0  ;;  %v5076_v15 = vadd.f32 %v11009_v22, %v4987_v16  ;;  %v11053_v53 = vpop.f32.mrf.mxu3  ;;  %v5070_v22 = vadd.f32 %v10989_v49, %v4981_v35  ;;  %v12264_v49 = vld [vmem:[#allocation100_spill] sm:$0xff] }
 0x909   :  { %v4724_v16 = vadd.f32 1.0, %v5921_v3  ;;  %v4749_v35 = vmul.f32 0.5, %v4725_v42  ;;  %v4747_v47 = vmul.f32 0.5, %v4723_v34 }
 0x90a   :  { %v5085_v27 = vadd.f32 %v5084_v51, %v4996_v60  ;;  %v12256_v60 = vld [vmem:[#allocation105_spill] sm:$0xff]  ;;  %v4672_v51 = vmul.f32 0.5, %v4648_v17  ;;  %v5125_v39 = vadd.f32 %v5076_v15, %v12261_v58  ;;  %v11061_v61 = vpop.f32.mrf.mxu2  ;;  %v5123_v23 = vadd.f32 %v5070_v22, %v12265_v25  ;;  %v12267_v15 = vld [vmem:[#allocation86_spill] sm:$0xff] }
 0x90c   :  { %v5128_v43 = vadd.f32 %v5085_v27, %v12256_v60  ;;  %v4654_v27 = vadd.f32 %v10920_v37, %v12264_v49  ;;  %v12266_v60 = vld [vmem:[#allocation67_spill] sm:$0xff]  ;;  %v4745_v49 = vmul.f32 0.5, %v4721_v56 }
 0x90e   :  { %5926 = vtanh.f32 %v5128_v43 }
 0x90f   :  { %v4998_v50 = vpop.f32.mrf.mxu1  ;;  %5928 = vtanh.f32 %v4674_v10  ;;  %v4678_v10 = vmul.f32 0.5, %v4654_v27 }
 0x910   :  { %v4999_v46 = vadd.f32 %v4998_v50, %v4910_v2  ;;  %5930 = vtanh.f32 %v5127_v48  ;;  %v4748_v50 = vmul.f32 0.5, %v4724_v16 }
 0x911   :  { %5932 = vtanh.f32 %v5126_v0 }
 0x912   :  { %v5088_v20 = vadd.f32 %v5087_v57, %v4999_v46  ;;  %v11059_v57 = vpop.f32.mrf.mxu0  ;;  %v11070_v46 = vpop.f32.mrf.mxu3 }
 0x913   :  { %v11080_v28 = vpop.f32.mrf.mxu2 }
 0x914   :  { %v5129_v12 = vadd.f32 %v5088_v20, %v12262_v54  ;;  %v5927_v62 = vpop.eup %5926 }
 0x915   :  { %v5929_v8 = vpop.eup %5928  ;;  %v5176_v43 = vsub.f32 %v5927_v62, %v12266_v60 }
 0x916   :  { %5934 = vtanh.f32 %v5129_v12  ;;  %v5931_v2 = vpop.eup %5930  ;;  %v4722_v17 = vadd.f32 1.0, %v5929_v8  ;;  %v12270_v12 = vld [vmem:[#allocation110_spill] sm:$0xff] }
 0x917   :  { %5936 = vtanh.f32 %v4672_v51  ;;  %v5001_v14 = vpop.f32.mrf.mxu1  ;;  %v5933_v24 = vpop.eup %5932  ;;  %v5175_v48 = vsub.f32 %v5931_v2, %v12268_v33  ;;  %v5200_v20 = vmul.f32 %v5176_v43, %v4748_v50  ;;  %v12269_v51 = vld [vmem:[#allocation103_spill] sm:$0xff]  ;;  %v12273_v2 = vld [vmem:[#allocation65_spill] sm:$0xff] }
 0x918   :  { %5938 = vtanh.f32 %v5125_v39  ;;  %v5002_v9 = vadd.f32 %v5001_v14, %v11023_v44  ;;  %v5174_v3 = vsub.f32 %v5933_v24, %v12269_v51  ;;  %v4746_v39 = vmul.f32 0.5, %v4722_v17 }
 0x919   :  { %5940 = vtanh.f32 %v4671_v32  ;;  %v5199_v38 = vmul.f32 %v5175_v48, %v4747_v47  ;;  %v5224_v27 = vadd.f32 %v5200_v20, %v12266_v60  ;;  %v5218_v47 = vadd.f32 %v11021_v59, %v12250_v1  ;;  %v12274_v59 = vld [vmem:[#allocation55_spill] sm:$0xff] }
 0x91a   :  { %5942 = vtanh.f32 %v5124_v19  ;;  %v5091_v7 = vadd.f32 %v5090_v6, %v5002_v9  ;;  %v11075_v54 = vpop.f32.mrf.mxu0  ;;  %v5198_v25 = vmul.f32 %v5174_v3, %v4746_v39  ;;  %v11089_v60 = vpop.f32.mrf.mxu3  ;;  %v5217_v20 = vadd.f32 %v11018_v13, %v12249_v52  ;;  %v12275_v13 = vld [vmem:[#allocation57_spill] sm:$0xff] }
 0x91b   :  { %5944 = vtanh.f32 %v5123_v23  ;;  %v12272_v23 = vld [vmem:[#allocation83_spill] sm:$0xff]  ;;  %v5223_v16 = vadd.f32 %v5199_v38, %v12268_v33  ;;  %v4924_v33 = vpop.f32.mrf.mxu2  ;;  %v5216_v3 = vadd.f32 %v11014_v5, %v12247_v21  ;;  %v5214_v1 = vadd.f32 %v10992_v31, %v12241_v4  ;;  %v12277_v5 = vld [vmem:[#allocation50_spill] sm:$0xff] }
 0x91c   :  { %v5935_v36 = vpop.eup %5934  ;;  %5946 = vtanh.f32 %v4678_v10  ;;  %v5130_v45 = vadd.f32 %v5091_v7, %v12270_v12  ;;  %v5213_v52 = vadd.f32 %v12274_v59, %v12237_v30  ;;  %v12278_v38 = vld [vmem:[#allocation59_spill] sm:$0xff]  ;;  %v6391_v30 = vld [vmem:[%s11206_s4] sm:$0xff] }
 0x91d   :  { %v5937_v37 = vpop.eup %5936  ;;  %v5177_v44 = vsub.f32 %v5935_v36, %v12267_v15  ;;  %v5222_v36 = vadd.f32 %v5198_v25, %v12269_v51  ;;  %v12282_v25 = vld [vmem:[#allocation135_spill] sm:$0xff] }
 0x91e   :  { %v5939_v11 = vpop.eup %5938  ;;  %v4720_v58 = vadd.f32 1.0, %v5937_v37  ;;  %5948 = vtanh.f32 %v5130_v45  ;;  %v12276_v45 = vld [vmem:[#allocation58_spill] sm:$0xff] }
 0x91f   :  { %v5941_v6 = vpop.eup %5940  ;;  %v11072_v0 = vpop.f32.mrf.mxu1  ;;  %v5201_v63 = vmul.f32 %v5177_v44, %v4749_v35  ;;  %v5173_v19 = vsub.f32 %v5939_v11, %v12271_v55 }
 0x920   :  { %v5943_v22 = vpop.eup %5942  ;;  %v4719_v62 = vadd.f32 1.0, %v5941_v6  ;;  %v4744_v8 = vmul.f32 0.5, %v4720_v58  ;;  %v5215_v58 = vadd.f32 %v11004_v26, %v12244_v40 }
 0x921   :  { %v5225_v32 = vadd.f32 %v5201_v63, %v12267_v15  ;;  %v5945_v14 = vpop.eup %5944  ;;  %v5172_v9 = vsub.f32 %v5943_v22, %v12272_v23  ;;  %v5197_v42 = vmul.f32 %v5173_v19, %v4745_v49  ;;  %v12279_v19 = vld [vmem:[#allocation89_spill] sm:$0xff] }
 0x922   :  { %v5171_v7 = vsub.f32 %v5945_v14, %v12273_v2  ;;  %v5947_v24 = vpop.eup %5946  ;;  %v4743_v34 = vmul.f32 0.5, %v4719_v62  ;;  %v4835_v35 = vpop.f32.mrf.mxu0  ;;  %v12280_v14 = vld [vmem:[#allocation124_spill] sm:$0xff] }
 0x923   :  { %5234 = vmatpush.msrb.mxu0 %v5225_v32  ;;  %v5196_v17 = vmul.f32 %v5172_v9, %v4744_v8  ;;  %v5221_v10 = vadd.f32 %v5197_v42, %v12271_v55  ;;  %v4726_v50 = vadd.f32 1.0, %v5947_v24  ;;  %v5102_v51 = vpop.f32.mrf.mxu3  ;;  %v4927_v39 = vpop.f32.mrf.mxu2  ;;  %v5212_v32 = vadd.f32 %v12276_v45, %v12275_v13  ;;  %v12284_v42 = vld [vmem:[#allocation21_spill] sm:$0xff]  ;;  %v12286_v24 = vld [vmem:[#allocation138_spill] sm:$0xff] }
 0x924   :  { %v5195_v37 = vmul.f32 %v5171_v7, %v4743_v34  ;;  %v5949_v15 = vpop.eup %5948  ;;  %v5211_v55 = vadd.f32 %v12278_v38, %v12277_v5  ;;  %v5210_v62 = vadd.f32 %v12280_v14, %v12279_v19  ;;  %v4925_v9 = vadd.f32 %v4924_v33, %v4835_v35  ;;  %v12285_v7 = vld [vmem:[#allocation79_spill] sm:$0xff]  ;;  %v12293_v5 = vld [vmem:[#allocation134_spill] sm:$0xff]  ;;  %v12296_v14 = vld [vmem:[#allocation133_spill] sm:$0xff] }
 0x925   :  { %5235 = vmatpush.msrb.mxu0 %v5224_v27  ;;  %v5220_v44 = vadd.f32 %v5196_v17, %v12272_v23  ;;  %v4750_v11 = vmul.f32 0.5, %v4726_v50  ;;  %v5178_v56 = vsub.f32 %v5949_v15, %v12191_v41  ;;  %v12281_v27 = vld [vmem:[#allocation69_spill] sm:$0xff]  ;;  %v4661_v34 = vadd.f32 %v12286_v24, %v12285_v7 }
 0x926   :  { %v5219_v48 = vadd.f32 %v5195_v37, %v12273_v2  ;;  %v4657_v23 = vadd.f32 %v12282_v25, %v12281_v27  ;;  %v4922_v17 = vadd.f32 %v11080_v28, %v11075_v54  ;;  %v12287_v15 = vld [vmem:[#allocation45_spill] sm:$0xff]  ;;  %v12289_v54 = vld [vmem:[#allocation95_spill] sm:$0xff]  ;;  %v12290_v28 = vld [vmem:[#allocation136_spill] sm:$0xff] }
 0x927   :  { %v11086_v43 = vpop.f32.mrf.mxu1  ;;  %5236 = vmatpush.msrb.mxu0 %v5223_v16  ;;  %v11097_v63 = vmul.f32 %v5178_v56, %v4750_v11  ;;  %v12283_v16 = vld [vmem:[#allocation41_spill] sm:$0xff] }
 0x928   :  { %v4660_v2 = vadd.f32 %v12284_v42, %v12283_v16  ;;  %v4681_v50 = vmul.f32 0.5, %v4657_v23 }
 0x929   :  { %5237 = vmatpush.msrb.mxu0 %v5222_v36 }
 0x92a   :  { %v4838_v22 = vpop.f32.mrf.mxu0  ;;  %v4684_v33 = vmul.f32 0.5, %v4660_v2  ;;  %5950 = vtanh.f32 %v4681_v50  ;;  %v12300_v2 = vld [vmem:[#allocation108_spill] sm:$0xff] }
 0x92b   :  { %5238 = vmatpush.msrb.mxu0 %v5221_v10  ;;  %v5105_v21 = vpop.f32.mrf.mxu3  ;;  %v4930_v4 = vpop.f32.mrf.mxu2  ;;  %v4928_v31 = vadd.f32 %v4927_v39, %v4838_v22  ;;  %v4658_v22 = vadd.f32 %v12290_v28, %v12289_v54  ;;  %v4916_v39 = vadd.f32 %v11041_v18, %v11039_v29  ;;  %v12304_v54 = vld [vmem:[#allocation47_spill] sm:$0xff] }
 0x92c   :  { %5952 = vtanh.f32 %v4684_v33 }
 0x92d   :  { %5239 = vmatpush.msrb.mxu0 %v5220_v44  ;;  %v12288_v44 = vld [vmem:[#allocation137_spill] sm:$0xff]  ;;  %v5005_v29 = vadd.f32 %v11072_v0, %v4916_v39 }
 0x92f   :  { %v5010_v6 = vpop.f32.mrf.mxu1  ;;  %5240 = vmatpush.msrb.mxu0 %v5219_v48  ;;  %v4659_v48 = vadd.f32 %v12288_v44, %v12287_v15  ;;  %v5094_v0 = vadd.f32 %v11053_v53, %v5005_v29  ;;  %v12302_v44 = vld [vmem:[#allocation49_spill] sm:$0xff] }
 0x931   :  { %5241 = vmatpush.msrb.mxu0 %v5218_v47  ;;  %v4919_v47 = vadd.f32 %v11061_v61, %v11059_v57  ;;  %v12291_v61 = vld [vmem:[#allocation70_spill] sm:$0xff] }
 0x932   :  { %v4841_v40 = vpop.f32.mrf.mxu0 }
 0x933   :  { %5242 = vmatpush.msrb.mxu0 %v5217_v20  ;;  %v4931_v49 = vadd.f32 %v4930_v4, %v4841_v40  ;;  %v5108_v8 = vpop.f32.mrf.mxu3  ;;  %v4933_v35 = vpop.f32.mrf.mxu2  ;;  %v5008_v57 = vadd.f32 %v11086_v43, %v4919_v47  ;;  %v12297_v43 = vld [vmem:[#allocation122_spill] sm:$0xff] }
 0x935   :  { %5243 = vmatpush.msrb.mxu0 %v5216_v3  ;;  %v6392_v3 = vld [vmem:[%s11206_s4 + $0x10] sm:$0xf] }
 0x937   :  { %v5013_v12 = vpop.f32.mrf.mxu1  ;;  %5244 = vmatpush.msrb.mxu0 %v5215_v58  ;;  %v4685_v58 = vmul.f32 0.5, %v4661_v34  ;;  %v12301_v34 = vld [vmem:[#allocation112_spill] sm:$0xff] }
 0x938   :  { %v5014_v11 = vadd.f32 %v5013_v12, %v4925_v9  ;;  %v5011_v12 = vadd.f32 %v5010_v6, %v4922_v17  ;;  %v12294_v6 = vld [vmem:[#allocation92_spill] sm:$0xff] }
 0x939   :  { %5245 = vmatpush.msrb.mxu0 %v5214_v1  ;;  %5954 = vtanh.f32 %v4685_v58  ;;  %v12299_v9 = vld [vmem:[#allocation64_spill] sm:$0xff] }
 0x93a   :  { %v4844_v56 = vpop.f32.mrf.mxu0  ;;  %v5103_v13 = vadd.f32 %v5102_v51, %v5014_v11  ;;  %v5100_v18 = vadd.f32 %v11089_v60, %v5011_v12  ;;  %v12295_v51 = vld [vmem:[#allocation96_spill] sm:$0xff]  ;;  %v12298_v60 = vld [vmem:[#allocation109_spill] sm:$0xff] }
 0x93b   :  { %5246 = vmatpush.msrb.mxu0 %v5213_v52  ;;  %v4934_v59 = vadd.f32 %v4933_v35, %v4844_v56  ;;  %v4683_v52 = vmul.f32 0.5, %v4659_v48 }
 0x93c   :  { %v5134_v4 = vadd.f32 %v5103_v13, %v12297_v43  ;;  %v5133_v23 = vadd.f32 %v5100_v18, %v12298_v60  ;;  %v12308_v43 = vld [vmem:[#allocation44_spill] sm:$0xff] }
 0x93d   :  { %5247 = vmatpush.msrb.mxu0 %v5212_v32  ;;  %v12292_v32 = vld [vmem:[#allocation98_spill] sm:$0xff]  ;;  %5956 = vtanh.f32 %v4683_v52  ;;  %v12305_v52 = vld [vmem:[#allocation32_spill] sm:$0xff] }
 0x93e   :  { %v4656_v38 = vadd.f32 %v12293_v5, %v12292_v32 }
 0x93f   :  { %v5016_v26 = vpop.f32.mrf.mxu1  ;;  %5248 = vmatpush.msrb.mxu0 %v5211_v55  ;;  %v4682_v55 = vmul.f32 0.5, %v4658_v22 }
 0x940   :  { %v5017_v10 = vadd.f32 %v5016_v26, %v4928_v31  ;;  %v5111_v26 = vpop.f32.mrf.mxu3  ;;  %v4680_v27 = vmul.f32 0.5, %v4656_v38  ;;  %v12306_v38 = vld [vmem:[#allocation84_spill] sm:$0xff] }
 0x941   :  { %5249 = vmatpush.msrb.mxu0 %v5210_v62  ;;  %v4655_v62 = vadd.f32 %v12296_v14, %v12295_v51 }
 0x942   :  { %5250 = vmatmul.f32.vlgmr.msrb.gmra.mxu0 %v6391_v30  ;;  %v5106_v1 = vadd.f32 %v5105_v21, %v5017_v10  ;;  %v5097_v30 = vadd.f32 %v11070_v46, %v5008_v57 }
 0x943   :  { %v4679_v42 = vmul.f32 0.5, %v4655_v62 }
 0x944   :  { %v5135_v21 = vadd.f32 %v5106_v1, %v12294_v6  ;;  %v5132_v7 = vadd.f32 %v5097_v30, %v12300_v2 }
 0x947   :  { %v5019_v36 = vpop.f32.mrf.mxu1 }
 0x948   :  { %v5020_v37 = vadd.f32 %v5019_v36, %v4931_v49  ;;  %v5951_v49 = vpop.eup %5950  ;;  %v5131_v36 = vadd.f32 %v5094_v0, %v12301_v34 }
 0x949   :  { %v5953_v25 = vpop.eup %5952  ;;  %v4729_v58 = vadd.f32 1.0, %v5951_v49 }
 0x94a   :  { %v5109_v20 = vadd.f32 %v5108_v8, %v5020_v37  ;;  %5253 = vmatmul.f32.gmra.mxu0 %v6392_v3  ;;  %v5955_v16 = vpop.eup %5954  ;;  %v4732_v53 = vadd.f32 1.0, %v5953_v25 }
 0x94b   :  { %v5957_v46 = vpop.eup %5956  ;;  %v4733_v10 = vadd.f32 1.0, %v5955_v16  ;;  %v4753_v29 = vmul.f32 0.5, %v4729_v58  ;;  %v898_v16 = vpop.permute.xlu0 %897 }
 0x94c   :  { %v5136_v45 = vadd.f32 %v5109_v20, %v12291_v61  ;;  %v4731_v15 = vadd.f32 1.0, %v5957_v46  ;;  %v4756_v33 = vmul.f32 0.5, %v4732_v53  ;;  %v12303_v20 = vld [vmem:[#allocation87_spill] sm:$0xff]  ;;  %v902_v53 = vpop.permute.xlu1 %901 }
 0x94d   :  { %v4757_v47 = vmul.f32 0.5, %v4733_v10  ;;  %v12310_v46 = vld [vmem:[#allocation19_spill] sm:$0xff] }
 0x94e   :  { %5958 = vtanh.f32 %v5136_v45  ;;  %v4755_v12 = vmul.f32 0.5, %v4731_v15 }
 0x94f   :  { %v5022_v40 = vpop.f32.mrf.mxu1  ;;  %5960 = vtanh.f32 %v4682_v55 }
 0x950   :  { %v5023_v19 = vadd.f32 %v5022_v40, %v4934_v59  ;;  %5962 = vtanh.f32 %v5135_v21  ;;  %v12307_v21 = vld [vmem:[#allocation82_spill] sm:$0xff] }
 0x951   :  { %5964 = vtanh.f32 %v5134_v4 }
 0x952   :  { %v5112_v31 = vadd.f32 %v5111_v26, %v5023_v19 }
 0x954   :  { %v5137_v8 = vadd.f32 %v5112_v31, %v12299_v9  ;;  %v5959_v24 = vpop.eup %5958  ;;  %v6393_v9 = vld [vmem:[%s11206_s4 + $0x8] sm:$0xff] }
 0x955   :  { %v5961_v17 = vpop.eup %5960  ;;  %v5184_v48 = vsub.f32 %v5959_v24, %v12302_v44  ;;  %v929_v24 = vadd.f32 %v12310_v46, %v898_v16 }
 0x956   :  { %5966 = vtanh.f32 %v5137_v8  ;;  %v5963_v37 = vpop.eup %5962  ;;  %v4730_v56 = vadd.f32 1.0, %v5961_v17  ;;  %v6394_v8 = vld [vmem:[%s11206_s4 + $0x18] sm:$0xf] }
 0x957   :  { %5968 = vtanh.f32 %v4680_v27  ;;  %v5965_v50 = vpop.eup %5964  ;;  %v5183_v28 = vsub.f32 %v5963_v37, %v12304_v54  ;;  %v5208_v59 = vmul.f32 %v5184_v48, %v4756_v33  ;;  %v12314_v48 = vld [vmem:[#allocation23_spill] sm:$0xff]  ;;  %v12315_v33 = vld [vmem:[#allocation38_spill] sm:$0xff] }
 0x958   :  { %5970 = vtanh.f32 %v5133_v23  ;;  %v5182_v13 = vsub.f32 %v5965_v50, %v12305_v52  ;;  %v4754_v45 = vmul.f32 0.5, %v4730_v56  ;;  %v5226_v23 = vadd.f32 %v11097_v63, %v12191_v41  ;;  %v12311_v41 = vld [vmem:[#allocation66_spill] sm:$0xff]  ;;  %v12313_v50 = vld [vmem:[#allocation31_spill] sm:$0xff] }
 0x959   :  { %5972 = vtanh.f32 %v4679_v42  ;;  %v5207_v5 = vmul.f32 %v5183_v28, %v4755_v12  ;;  %v5232_v18 = vadd.f32 %v5208_v59, %v12302_v44  ;;  %v12309_v42 = vld [vmem:[#allocation33_spill] sm:$0xff]  ;;  %v3348_v15 = vadd.f32 %v12313_v50, %v902_v53 }
 0x95a   :  { %5974 = vtanh.f32 %v5132_v7  ;;  %v5206_v6 = vmul.f32 %v5182_v13, %v4754_v45  ;;  %v3345_v2 = vadd.f32 %v12309_v42, %v898_v16 }
 0x95b   :  { %5976 = vtanh.f32 %v5131_v36  ;;  %v5231_v14 = vadd.f32 %v5207_v5, %v12304_v54  ;;  %v12312_v36 = vld [vmem:[#allocation20_spill] sm:$0xff]  ;;  %v12316_v54 = vld [vmem:[#allocation11_spill] sm:$0xff] }
 0x95c   :  { %v5967_v11 = vpop.eup %5966  ;;  %v5230_v31 = vadd.f32 %v5206_v6, %v12305_v52  ;;  %v3368_v63 = vadd.f32 %v12311_v41, %v3345_v2  ;;  %v952_v17 = vadd.f32 %v12312_v36, %v929_v24 }
 0x95d   :  { %v5969_v35 = vpop.eup %5968  ;;  %v5185_v3 = vsub.f32 %v5967_v11, %v12303_v20  ;;  %v932_v11 = vadd.f32 %v12314_v48, %v902_v53 }
 0x95e   :  { %v5971_v22 = vpop.eup %5970  ;;  %v4728_v61 = vadd.f32 1.0, %v5969_v35  ;;  %v5280_v37 = vmax.f32 %v952_v17, %v3368_v63 }
 0x95f   :  { %v5973_v39 = vpop.eup %5972  ;;  %v5209_v1 = vmul.f32 %v5185_v3, %v4757_v47  ;;  %v5181_v55 = vsub.f32 %v5971_v22, %v12306_v38  ;;  %v3371_v47 = vadd.f32 %v12315_v33, %v3348_v15  ;;  %v955_v28 = vadd.f32 %v12316_v54, %v932_v11 }
 0x960   :  { %v5975_v57 = vpop.eup %5974  ;;  %v4727_v26 = vadd.f32 1.0, %v5973_v39  ;;  %v4752_v51 = vmul.f32 0.5, %v4728_v61 }
 0x961   :  { %v5233_v32 = vadd.f32 %v5209_v1, %v12303_v20  ;;  %v5977_v40 = vpop.eup %5976  ;;  %v5180_v19 = vsub.f32 %v5975_v57, %v12307_v21  ;;  %v5205_v62 = vmul.f32 %v5181_v55, %v4753_v29  ;;  %v5281_v59 = vmax.f32 %v955_v28, %v3371_v47 }
 0x962   :  { %v5179_v4 = vsub.f32 %v5977_v40, %v12308_v43  ;;  %v4751_v30 = vmul.f32 0.5, %v4727_v26 }
 0x963   :  { %5265 = vmatpush.msrb.mxu2 %v5233_v32  ;;  %v5204_v49 = vmul.f32 %v5180_v19, %v4752_v51  ;;  %v5229_v27 = vadd.f32 %v5205_v62, %v12306_v38 }
 0x964   :  { %v5203_v25 = vmul.f32 %v5179_v4, %v4751_v30 }
 0x965   :  { %5266 = vmatpush.msrb.mxu2 %v5232_v18  ;;  %v5228_v0 = vadd.f32 %v5204_v49, %v12307_v21 }
 0x966   :  { %v5227_v60 = vadd.f32 %v5203_v25, %v12308_v43 }
 0x967   :  { %5267 = vmatpush.msrb.mxu2 %v5231_v14 }
 0x969   :  { %5268 = vmatpush.msrb.mxu2 %v5230_v31 }
 0x96b   :  { %5269 = vmatpush.msrb.mxu2 %v5229_v27 }
 0x96d   :  { %5270 = vmatpush.msrb.mxu2 %v5228_v0 }
 0x96f   :  { %5271 = vmatpush.msrb.mxu2 %v5227_v60 }
 0x971   :  { %5272 = vmatpush.msrb.mxu2 %v5226_v23 }
 0x972   :  { %5614 = vmatmul.msk.f32.vlgmr.msrb.gmra.mxu2 %vm904_vm1, %v6393_v9 }
 0x97a   :  { %5615 = vmatmul.msk.f32.gmra.mxu2 %vm904_vm1, %v6394_v8 }
 0x9bf   :  { %v5251_v7 = vpop.f32.mrf.mxu0 }
 0x9c0   :  { %v5252_v34 = vadd.f32 %v5251_v7, %v898_v16 }
 0x9c7   :  { %v5254_v35 = vpop.f32.mrf.mxu0 }
 0x9c8   :  { %v5255_v39 = vadd.f32 %v5254_v35, %v902_v53 }
 0x9f5   :  { %v5274_v10 = vpop.f32.mrf.mxu2 }
 0x9f6   :  { %v5275_v44 = vadd.f32 %v5274_v10, %v5252_v34 }
 0x9f8   :  { %v5282_v56 = vmax.f32 %v5280_v37, %v5275_v44 }
 0x9fa   :  { %v5284_v20 = vsub.f32 %v952_v17, %v5282_v56  ;;  %v5290_v3 = vsub.f32 %v3368_v63, %v5282_v56  ;;  %v5296_v12 = vsub.f32 %v5275_v44, %v5282_v56 }
 0x9fc   :  { %v5286_v22 = vmul.f32 1.442695, %v5284_v20  ;;  %v5292_v58 = vmul.f32 1.442695, %v5290_v3  ;;  %v5298_v57 = vmul.f32 1.442695, %v5296_v12 }
 0x9fd   :  { %v5277_v1 = vpop.f32.mrf.mxu2 }
 0x9fe   :  { %5978 = vpow2.f32 %v5286_v22  ;;  %v5278_v52 = vadd.f32 %v5277_v1, %v5255_v39 }
 0x9ff   :  { %5980 = vpow2.f32 %v5292_v58 }
 0xa00   :  { %v5283_v13 = vmax.f32 %v5281_v59, %v5278_v52  ;;  %5982 = vpow2.f32 %v5298_v57 }
 0xa02   :  { %v5285_v61 = vsub.f32 %v955_v28, %v5283_v13  ;;  %v5291_v45 = vsub.f32 %v3371_v47, %v5283_v13  ;;  %v5297_v32 = vsub.f32 %v5278_v52, %v5283_v13 }
 0xa04   :  { %v5979_v5 = vpop.eup %5978  ;;  %v5288_v38 = vmul.f32 1.442695, %v5285_v61  ;;  %v5294_v55 = vmul.f32 1.442695, %v5291_v45  ;;  %v5300_v40 = vmul.f32 1.442695, %v5297_v32 }
 0xa05   :  { %v5981_v26 = vpop.eup %5980  ;;  %v5309_v51 = vrot.slane %v5979_v5, 6 }
 0xa06   :  { %5984 = vpow2.f32 %v5288_v38  ;;  %v5302_v29 = vadd.f32 %v5981_v26, %v5979_v5  ;;  %v5983_v18 = vpop.eup %5982  ;;  %v5316_v43 = vrot.slane %v5981_v26, 6 }
 0xa07   :  { %5986 = vpow2.f32 %v5294_v55  ;;  %v5324_v23 = vrot.slane %v5983_v18, 6 }
 0xa08   :  { %5988 = vpow2.f32 %v5300_v40  ;;  %v5304_v21 = vadd.f32 %v5983_v18, %v5302_v29 }
 0xa0a   :  { %5990 = vrcp.f32 %v5304_v21 }
 0xa0c   :  { %v5985_v6 = vpop.eup %5984 }
 0xa0d   :  { %v5987_v19 = vpop.eup %5986  ;;  %v5310_v14 = vrot.slane %v5985_v6, 6 }
 0xa0e   :  { %v5989_v62 = vpop.eup %5988  ;;  %v5303_v4 = vadd.f32 %v5987_v19, %v5985_v6  ;;  %v5317_v30 = vrot.slane %v5987_v19, 6 }
 0xa0f   :  { %v5311_v31 = vsel %vm5308_vm4, %v5309_v51, %v5310_v14  ;;  %v5325_v25 = vrot.slane %v5989_v62, 6 }
 0xa10   :  { %v5305_v49 = vadd.f32 %v5989_v62, %v5303_v4  ;;  %v5318_v27 = vsel %vm5308_vm4, %v5316_v43, %v5317_v30  ;;  %v5313_v0 = vmul.f32 %v5311_v31, %v952_v17  ;;  %v5991_v8 = vpop.eup %5990 }
 0xa11   :  { %v5320_v60 = vmul.f32 %v5318_v27, %v3368_v63  ;;  %v5326_v9 = vsel %vm5308_vm4, %v5324_v23, %v5325_v25  ;;  %v5334_v7 = vrot.slane %v5991_v8, 6 }
 0xa12   :  { %5992 = vrcp.f32 %v5305_v49  ;;  %v5328_v2 = vmul.f32 %v5326_v9, %v5275_v44 }
 0xa13   :  { %v5321_v16 = vadd.f32 %v5320_v60, %v5313_v0 }
 0xa15   :  { %v5329_v24 = vadd.f32 %v5328_v2, %v5321_v16 }
 0xa18   :  { %v5993_v42 = vpop.eup %5992 }
 0xa19   :  { %v5335_v46 = vrot.slane %v5993_v42, 6 }
 0xa1b   :  { %v5336_v41 = vsel %vm5308_vm4, %v5334_v7, %v5335_v46 }
 0xa1c   :  { %v5338_v34 = vmul.f32 %v5336_v41, %v5329_v24 }
 0xa1e   :  { %v5339_v36 = vmul.f32 0.5, %v5338_v34  ;;  %v5344_v53 = vsel %vm5343_vm5, %v5338_v34, -inf  ;;  %5366 = vst.msk [vmem:[%s11208_s6 - $0x4] sm:$0x30] %vm5343_vm5, %v5338_v34 }
 0xa1f   :  { %v5345_v63 = vrot.slane %v5344_v53, 4 }
 0xa20   :  { %5994 = vtanh.f32 %v5339_v36 }
 0xa21   :  { %v5346_v17 = vmax.f32 %v5344_v53, %v5345_v63 }
 0xa23   :  { %v5347_v10 = vrot.slane %v5346_v17, 2 }
 0xa25   :  { %v5348_v37 = vmax.f32 %v5346_v17, %v5347_v10 }
 0xa26   :  { %v5995_v50 = vpop.eup %5994 }
 0xa27   :  { %v5341_v15 = vadd.f32 1.0, %v5995_v50  ;;  %v5349_v44 = vrot.slane %v5348_v37, 1 }
 0xa29   :  { %v5342_v48 = vmul.f32 0.5, %v5341_v15  ;;  %v5350_v11 = vmax.f32 %v5348_v37, %v5349_v44 }
 0xa2b   :  { %v5351_v56 = vsub.f32 %v5338_v34, %v5350_v11  ;;  %5368 = vst.msk [vmem:[%s11208_s6 + $0x2] sm:$0xf] %vm5367_vm6, %v5342_v48 }
 0xa2d   :  { %v5352_v35 = vmul.f32 1.442695, %v5351_v56 }
 0xa2f   :  { %5996 = vpow2.f32 %v5352_v35 }
 0xa35   :  { %v5997_v33 = vpop.eup %5996 }
 0xa36   :  { %v5355_v47 = vrot.slane %v5997_v33, 4 }
 0xa38   :  { %v5357_v20 = vsel %vm1085_vm3, %v5355_v47, 0.0 }
 0xa39   :  { %v5358_v3 = vrot.slane %v5357_v20, 4 }
 0xa3b   :  { %v5359_v54 = vadd.f32 %v5358_v3, %v5357_v20 }
 0xa3d   :  { %v5360_v28 = vrot.slane %v5359_v54, 2 }
 0xa3f   :  { %v5361_v22 = vadd.f32 %v5360_v28, %v5359_v54 }
 0xa41   :  { %v5362_v58 = vrot.slane %v5361_v22, 1 }
 0xa43   :  { %v5363_v39 = vadd.f32 %v5362_v58, %v5361_v22 }
 0xa45   :  { %5998 = vrcp.f32 %v5363_v39 }
 0xa4b   :  { %v5999_v12 = vpop.eup %5998 }
 0xa4c   :  { %v5365_v1 = vmul.f32 %v5999_v12, %v5997_v33 }
 0xa4e   :  { %5369 = vst.msk [vmem:[%s11208_s6 + $0x2] sm:$0x30] %vm5343_vm5, %v5365_v1 }
 0xa4f   :  { %5374 = vsyncpa [#allocation3], 1 }
 0xa50   :  { %5375 = vsyncpa [#allocation5], 1 }

</bundles_post_ra>
